<compile_context>
chip_gen: v6e
topology: v6e:2x2x1
jax: 0.10.0
libtpu: 0.0.40
codegen_flags: <defaults>
</compile_context>

<pallas_src>
import functools

import jax
import jax.numpy as jnp
from jax.experimental import pallas as pl
from jax.experimental.pallas import tpu as pltpu

EMB = 128   # embedding dim (nn.Embedding(voc, 128))
HID = 512   # GRU hidden size


# ---------------------------------------------------------------------------
# Fused kernel
# ---------------------------------------------------------------------------
def _gru_cell(x, h, wih_ref, whh_ref, bih_ref, bhh_ref):
    """One GRUCell update.

    Matmul operands are bf16 (native MXU path); accumulation, biases, gate math and
    the state blend stay in f32.
    """
    gi = jnp.dot(x.astype(jnp.bfloat16), wih_ref[...],
                 preferred_element_type=jnp.float32) + bih_ref[...]
    gh = jnp.dot(h.astype(jnp.bfloat16), whh_ref[...],
                 preferred_element_type=jnp.float32) + bhh_ref[...]
    H = h.shape[-1]
    r = jax.nn.sigmoid(gi[:, 0 * H:1 * H] + gh[:, 0 * H:1 * H])
    z = jax.nn.sigmoid(gi[:, 1 * H:2 * H] + gh[:, 1 * H:2 * H])
    n = jnp.tanh(gi[:, 2 * H:3 * H] + r * gh[:, 2 * H:3 * H])
    return (1.0 - z) * n + z * h


def multi_gru_kernel(tok_ref, h0_ref, emb_ref,
                     wih1_ref, whh1_ref, bih1_ref, bhh1_ref,
                     wih2_ref, whh2_ref, bih2_ref, bhh2_ref,
                     wih3_ref, whh3_ref, bih3_ref, bhh3_ref,
                     lw_ref, lb_ref,
                     logits_ref, hout_ref,
                     h_sc):
    t = pl.program_id(0)
    B = h0_ref.shape[1]
    voc = emb_ref.shape[0]

    # Load the initial recurrent state into the VMEM-carried scratch on step 0.
    @pl.when(t == 0)
    def _():
        h_sc[...] = h0_ref[...]

    # Embedding gather as a one-hot matmul (MXU-friendly, no data-dependent DMA).
    tok = tok_ref[0]                                             # (B, 1) int32
    col = jax.lax.broadcasted_iota(jnp.int32, (B, voc), 1)       # (B, voc)
    onehot = (tok == col).astype(jnp.float32)
    x = jnp.dot(onehot, emb_ref[...], preferred_element_type=jnp.float32)  # (B, EMB) f32

    h1 = _gru_cell(x,  h_sc[0], wih1_ref, whh1_ref, bih1_ref, bhh1_ref)
    h2 = _gru_cell(h1, h_sc[1], wih2_ref, whh2_ref, bih2_ref, bhh2_ref)
    h3 = _gru_cell(h2, h_sc[2], wih3_ref, whh3_ref, bih3_ref, bhh3_ref)

    # Carry state (f32) for the next grid step and expose it as the h_out output.
    h_sc[0] = h1
    h_sc[1] = h2
    h_sc[2] = h3
    hout_ref[0] = h1
    hout_ref[1] = h2
    hout_ref[2] = h3

    # Lane-dense (vocab padded to a multiple of 128) output projection, bf16 on MXU.
    logits_ref[0] = jnp.dot(h3.astype(jnp.bfloat16), lw_ref[...],
                            preferred_element_type=jnp.float32) + lb_ref[...]


_vmem = functools.partial(pl.BlockSpec, memory_space=pltpu.MemorySpace.VMEM)


def multi_gru_scan(params, tokens, h):
    """Run the fused MultiGRU cell over a whole token sequence in ONE pallas_call.

    tokens: (T, B) int32, h: (3, B, 512) f32.
    Returns (logits (T, B, voc) f32, h_out (3, B, 512) f32).
    Weights are DMA'd HBM->VMEM once and reused for all T steps.
    """
    T, B = tokens.shape
    voc = params["embedding"].shape[0]
    v_pad = params["lin_w_t"].shape[1]
    tok3d = tokens.reshape(T, B, 1).astype(jnp.int32)

    args = (tok3d, h, params["embedding"],
            params["gru1_w_ih_t"], params["gru1_w_hh_t"],
            params["gru1_b_ih"], params["gru1_b_hh"],
            params["gru2_w_ih_t"], params["gru2_w_hh_t"],
            params["gru2_b_ih"], params["gru2_b_hh"],
            params["gru3_w_ih_t"], params["gru3_w_hh_t"],
            params["gru3_b_ih"], params["gru3_b_hh"],
            params["lin_w_t"], params["lin_b"])

    in_specs = ([pl.BlockSpec((1, B, 1), lambda t: (t, 0, 0))]   # per-step tokens
                + [_vmem()] * (len(args) - 1))                   # whole-array VMEM operands
    out_specs = (pl.BlockSpec((1, B, v_pad), lambda t: (t, 0, 0)),   # per-step logits
                 pl.BlockSpec((3, B, HID), lambda t: (0, 0, 0)))     # resident h_out

    logits_pad, h_out = pl.pallas_call(
        multi_gru_kernel,
        grid=(T,),
        out_shape=(jax.ShapeDtypeStruct((T, B, v_pad), jnp.float32),
                   jax.ShapeDtypeStruct((3, B, HID), jnp.float32)),
        in_specs=in_specs,
        out_specs=out_specs,
        scratch_shapes=[pltpu.VMEM((3, B, HID), jnp.float32)],   # carried recurrent state
        input_output_aliases={1: 1},   # reuse the incoming h buffer for h_out
        compiler_params=pltpu.CompilerParams(
            dimension_semantics=("arbitrary",),     # steps are sequentially dependent
            vmem_limit_bytes=32 * 1024 * 1024),     # safe on v7x (64 MiB physical)
    )(*args)

    return logits_pad[:, :, :voc], h_out


def multi_gru_forward(params, x_tokens, h):
    """Matches MultiGRU.forward: (tokens (B,), h (3,B,512)) -> (logits, h_out)."""
    logits, h_out = multi_gru_scan(params, x_tokens[None, :], h)
    return logits[0], h_out


# ---------------------------------------------------------------------------
# Parameter init (deterministic; PyTorch shapes, weights stored transposed, bf16)
# ---------------------------------------------------------------------------
def init_params(key, voc_size):
    keys = jax.random.split(key, 16)

    def u(k, shape, fan, dtype=jnp.float32):
        bound = 1.0 / jnp.sqrt(jnp.float32(fan))
        return jax.random.uniform(k, shape, jnp.float32, -bound, bound).astype(dtype)

    v_pad = ((voc_size + 127) // 128) * 128

    params = {}
    # nn.Embedding(voc_size, 128): N(0, 1) init; tiny, kept in f32.
    params["embedding"] = jax.random.normal(keys[0], (voc_size, EMB), jnp.float32)
    ki = 1
    for i, in_dim in zip((1, 2, 3), (EMB, HID, HID)):
        # torch weight_ih is (3H, In); we store the transpose (In, 3H) in bf16.
        params[f"gru{i}_w_ih_t"] = u(keys[ki], (in_dim, 3 * HID), HID, jnp.bfloat16); ki += 1
        params[f"gru{i}_w_hh_t"] = u(keys[ki], (HID, 3 * HID), HID, jnp.bfloat16); ki += 1
        params[f"gru{i}_b_ih"] = u(keys[ki], (1, 3 * HID), HID); ki += 1
        params[f"gru{i}_b_hh"] = u(keys[ki], (1, 3 * HID), HID); ki += 1
    # nn.Linear(512, voc): weight (V, H) -> transposed & lane-padded (H, v_pad), bf16.
    lin_w = u(keys[13], (HID, voc_size), HID)
    lin_b = u(keys[14], (1, voc_size), HID)
    params["lin_w_t"] = jnp.pad(lin_w, ((0, 0), (0, v_pad - voc_size))).astype(jnp.bfloat16)
    params["lin_b"] = jnp.pad(lin_b, ((0, 0), (0, v_pad - voc_size)))
    return params


def init_h(batch_size):
    return jnp.zeros((3, batch_size, HID), jnp.float32)


# ---------------------------------------------------------------------------
# Pure-JAX reference (same bf16-stored weights, f32 math) for correctness check
# ---------------------------------------------------------------------------
def multi_gru_reference(params, x_tokens, h):
    voc = params["embedding"].shape[0]
    x = jnp.take(params["embedding"], x_tokens, axis=0)

    def cell(x, h, wih, whh, bih, bhh):
        gi = x @ wih.astype(jnp.float32) + bih
        gh = h @ whh.astype(jnp.float32) + bhh
        H = h.shape[-1]
        r = jax.nn.sigmoid(gi[:, :H] + gh[:, :H])
        z = jax.nn.sigmoid(gi[:, H:2 * H] + gh[:, H:2 * H])
        n = jnp.tanh(gi[:, 2 * H:] + r * gh[:, 2 * H:])
        return (1.0 - z) * n + z * h

    h1 = cell(x, h[0], params["gru1_w_ih_t"], params["gru1_w_hh_t"],
              params["gru1_b_ih"], params["gru1_b_hh"])
    h2 = cell(h1, h[1], params["gru2_w_ih_t"], params["gru2_w_hh_t"],
              params["gru2_b_ih"], params["gru2_b_hh"])
    h3 = cell(h2, h[2], params["gru3_w_ih_t"], params["gru3_w_hh_t"],
              params["gru3_b_ih"], params["gru3_b_hh"])
    logits = (h3 @ params["lin_w_t"].astype(jnp.float32) + params["lin_b"])[:, :voc]
    return logits, jnp.stack([h1, h2, h3], axis=0)


def multi_gru_reference_scan(params, tokens, h):
    def step(h, tok):
        logits, h_next = multi_gru_reference(params, tok, h)
        return h_next, logits
    h_final, logits = jax.lax.scan(step, h, tokens)
    return logits, h_final


if __name__ == "__main__":
    VOC = 32
    BATCH = 8
    SEQ = 6

    key = jax.random.PRNGKey(0)
    k_param, k_tok, k_h, k_seq = jax.random.split(key, 4)

    params = init_params(k_param, VOC)
    x_tokens = jax.random.randint(k_tok, (BATCH,), 0, VOC, dtype=jnp.int32)
    # non-zero hidden state so the z*h path is exercised
    h = jax.random.normal(k_h, (3, BATCH, HID), jnp.float32) * 0.1

    # --- single-step forward (exact semantics of MultiGRU.forward) -----------------
    fwd = jax.jit(multi_gru_forward)
    logits, h_out = fwd(params, x_tokens, h)
    jax.block_until_ready((logits, h_out))

    assert logits.shape == (BATCH, VOC)
    assert h_out.shape == (3, BATCH, HID)

    ref_logits, ref_h = multi_gru_reference(params, x_tokens, h)
    assert jnp.allclose(logits, ref_logits, atol=2e-2, rtol=2e-2), \
        float(jnp.max(jnp.abs(logits - ref_logits)))
    assert jnp.allclose(h_out, ref_h, atol=2e-2, rtol=2e-2), \
        float(jnp.max(jnp.abs(h_out - ref_h)))

    # --- in-kernel time loop: whole sequence in one pallas_call ---------------------
    tokens_seq = jax.random.randint(k_seq, (SEQ, BATCH), 0, VOC, dtype=jnp.int32)
    scan_fn = jax.jit(multi_gru_scan)
    seq_logits, seq_h = scan_fn(params, tokens_seq, h)
    jax.block_until_ready((seq_logits, seq_h))

    assert seq_logits.shape == (SEQ, BATCH, VOC)
    assert seq_h.shape == (3, BATCH, HID)

    ref_seq_logits, ref_seq_h = multi_gru_reference_scan(params, tokens_seq, h)
    assert jnp.allclose(seq_logits, ref_seq_logits, atol=3e-2, rtol=3e-2), \
        float(jnp.max(jnp.abs(seq_logits - ref_seq_logits)))
    assert jnp.allclose(seq_h, ref_seq_h, atol=3e-2, rtol=3e-2), \
        float(jnp.max(jnp.abs(seq_h - ref_seq_h)))

    print("KERNEL_OK")
</pallas_src>

<mosaic_0001>
module attributes {stable_mosaic.version = 11 : i64} {
  func.func @multi_gru_kernel(%arg0: i32, %arg1: memref<1x8x1xi32, #tpu.memory_space<vmem>>, %arg2: memref<3x8x512xf32, #tpu.memory_space<vmem>>, %arg3: memref<32x128xf32, #tpu.memory_space<vmem>>, %arg4: memref<128x1536xbf16, #tpu.memory_space<vmem>>, %arg5: memref<512x1536xbf16, #tpu.memory_space<vmem>>, %arg6: memref<1x1536xf32, #tpu.memory_space<vmem>>, %arg7: memref<1x1536xf32, #tpu.memory_space<vmem>>, %arg8: memref<512x1536xbf16, #tpu.memory_space<vmem>>, %arg9: memref<512x1536xbf16, #tpu.memory_space<vmem>>, %arg10: memref<1x1536xf32, #tpu.memory_space<vmem>>, %arg11: memref<1x1536xf32, #tpu.memory_space<vmem>>, %arg12: memref<512x1536xbf16, #tpu.memory_space<vmem>>, %arg13: memref<512x1536xbf16, #tpu.memory_space<vmem>>, %arg14: memref<1x1536xf32, #tpu.memory_space<vmem>>, %arg15: memref<1x1536xf32, #tpu.memory_space<vmem>>, %arg16: memref<512x128xbf16, #tpu.memory_space<vmem>>, %arg17: memref<1x128xf32, #tpu.memory_space<vmem>>, %arg18: memref<1x8x128xf32, #tpu.memory_space<vmem>>, %arg19: memref<3x8x512xf32, #tpu.memory_space<vmem>>, %arg20: memref<3x8x512xf32, #tpu.memory_space<vmem>>) attributes {dimension_semantics = [#tpu.dimension_semantics<arbitrary>], iteration_bounds = array<i64: 1>, scalar_prefetch = 0 : i64, scratch_operands = 1 : i64, tpu.core_type = #tpu.core_type<tc>, window_params = [{transform_indices = @transform_0, window_bounds = array<i64: 1, 8, 1>}, {pipeline_mode = #tpu.pipeline_mode<synchronous>, transform_indices = @transform_1, window_bounds = array<i64: 3, 8, 512>}, {pipeline_mode = #tpu.pipeline_mode<synchronous>, transform_indices = @transform_2, window_bounds = array<i64: 32, 128>}, {pipeline_mode = #tpu.pipeline_mode<synchronous>, transform_indices = @transform_3, window_bounds = array<i64: 128, 1536>}, {pipeline_mode = #tpu.pipeline_mode<synchronous>, transform_indices = @transform_4, window_bounds = array<i64: 512, 1536>}, {pipeline_mode = #tpu.pipeline_mode<synchronous>, transform_indices = @transform_5, window_bounds = array<i64: 1, 1536>}, {pipeline_mode = #tpu.pipeline_mode<synchronous>, transform_indices = @transform_6, window_bounds = array<i64: 1, 1536>}, {pipeline_mode = #tpu.pipeline_mode<synchronous>, transform_indices = @transform_7, window_bounds = array<i64: 512, 1536>}, {pipeline_mode = #tpu.pipeline_mode<synchronous>, transform_indices = @transform_8, window_bounds = array<i64: 512, 1536>}, {pipeline_mode = #tpu.pipeline_mode<synchronous>, transform_indices = @transform_9, window_bounds = array<i64: 1, 1536>}, {pipeline_mode = #tpu.pipeline_mode<synchronous>, transform_indices = @transform_10, window_bounds = array<i64: 1, 1536>}, {pipeline_mode = #tpu.pipeline_mode<synchronous>, transform_indices = @transform_11, window_bounds = array<i64: 512, 1536>}, {pipeline_mode = #tpu.pipeline_mode<synchronous>, transform_indices = @transform_12, window_bounds = array<i64: 512, 1536>}, {pipeline_mode = #tpu.pipeline_mode<synchronous>, transform_indices = @transform_13, window_bounds = array<i64: 1, 1536>}, {pipeline_mode = #tpu.pipeline_mode<synchronous>, transform_indices = @transform_14, window_bounds = array<i64: 1, 1536>}, {pipeline_mode = #tpu.pipeline_mode<synchronous>, transform_indices = @transform_15, window_bounds = array<i64: 512, 128>}, {pipeline_mode = #tpu.pipeline_mode<synchronous>, transform_indices = @transform_16, window_bounds = array<i64: 1, 128>}, {transform_indices = @transform_17, window_bounds = array<i64: 1, 8, 128>}, {pipeline_mode = #tpu.pipeline_mode<synchronous>, transform_indices = @transform_18, window_bounds = array<i64: 3, 8, 512>}]} {
    %c0_i32 = arith.constant 0 : i32
    %0 = arith.cmpi eq, %arg0, %c0_i32 : i32
    %1 = arith.extui %0 : i1 to i32
    %c0_i32_0 = arith.constant 0 : i32
    %2 = arith.cmpi ne, %1, %c0_i32_0 : i32
    scf.if %2 {
      %c0_77 = arith.constant 0 : index
      %c0_78 = arith.constant 0 : index
      %c0_79 = arith.constant 0 : index
      %159 = vector.load %arg2[%c0_77, %c0_78, %c0_79] : memref<3x8x512xf32, #tpu.memory_space<vmem>>, vector<3x8x512xf32>
      %c0_80 = arith.constant 0 : index
      %c0_81 = arith.constant 0 : index
      %c0_82 = arith.constant 0 : index
      %160 = vector.load %arg20[%c0_80, %c0_81, %c0_82] : memref<3x8x512xf32, #tpu.memory_space<vmem>>, vector<3x8x512xf32>
      tpu.vector_store %arg20[%c0_80, %c0_81, %c0_82], %159 {strides = array<i32>} : memref<3x8x512xf32, #tpu.memory_space<vmem>>, vector<3x8x512xf32>,
    } else {
    }
    %c0 = arith.constant 0 : index
    %c0_1 = arith.constant 0 : index
    %c0_2 = arith.constant 0 : index
    %3 = vector.load %arg1[%c0, %c0_1, %c0_2] : memref<1x8x1xi32, #tpu.memory_space<vmem>>, vector<1x8x1xi32>
    %4 = vector.shape_cast %3 : vector<1x8x1xi32> to vector<8x1xi32>
    %5 = tpu.iota {dimensions = array<i32: 1>} : vector<8x32xi32>
    %6 = vector.broadcast %4 : vector<8x1xi32> to vector<8x32xi32>
    %7 = arith.cmpi eq, %6, %5 : vector<8x32xi32>
    %8 = arith.extui %7 : vector<8x32xi1> to vector<8x32xi32>
    %9 = arith.sitofp %8 : vector<8x32xi32> to vector<8x32xf32>
    %c0_3 = arith.constant 0 : index
    %c0_4 = arith.constant 0 : index
    %10 = vector.load %arg3[%c0_3, %c0_4] : memref<32x128xf32, #tpu.memory_space<vmem>>, vector<32x128xf32>
    %cst = arith.constant dense<0.000000e+00> : vector<8x128xf32>
    %11 = tpu.matmul %9, %10, %cst {dimension_numbers = #tpu.dot_dimension_numbers<[1], [0], [0], [1], [0, 0, 1, 1], [], []>} : vector<8x32xf32>, vector<32x128xf32>, vector<8x128xf32> -> vector<8x128xf32>
    %c0_5 = arith.constant 0 : index
    %c0_6 = arith.constant 0 : index
    %c0_7 = arith.constant 0 : index
    %12 = vector.load %arg20[%c0_5, %c0_6, %c0_7] : memref<3x8x512xf32, #tpu.memory_space<vmem>>, vector<1x8x512xf32>
    %13 = vector.shape_cast %12 : vector<1x8x512xf32> to vector<8x512xf32>
    %14 = arith.truncf %11 : vector<8x128xf32> to vector<8x128xbf16>
    %c0_8 = arith.constant 0 : index
    %c0_9 = arith.constant 0 : index
    %15 = vector.load %arg4[%c0_8, %c0_9] : memref<128x1536xbf16, #tpu.memory_space<vmem>>, vector<128x1536xbf16>
    %cst_10 = arith.constant dense<0.000000e+00> : vector<8x1536xf32>
    %16 = tpu.matmul %14, %15, %cst_10 {dimension_numbers = #tpu.dot_dimension_numbers<[1], [0], [0], [1], [0, 0, 1, 1], [], []>} : vector<8x128xbf16>, vector<128x1536xbf16>, vector<8x1536xf32> -> vector<8x1536xf32>
    %c0_11 = arith.constant 0 : index
    %c0_12 = arith.constant 0 : index
    %17 = vector.load %arg6[%c0_11, %c0_12] : memref<1x1536xf32, #tpu.memory_space<vmem>>, vector<1x1536xf32>
    %18 = vector.broadcast %17 : vector<1x1536xf32> to vector<8x1536xf32>
    %19 = arith.addf %16, %18 : vector<8x1536xf32>
    %20 = arith.truncf %13 : vector<8x512xf32> to vector<8x512xbf16>
    %c0_13 = arith.constant 0 : index
    %c0_14 = arith.constant 0 : index
    %21 = vector.load %arg5[%c0_13, %c0_14] : memref<512x1536xbf16, #tpu.memory_space<vmem>>, vector<512x1536xbf16>
    %cst_15 = arith.constant dense<0.000000e+00> : vector<8x1536xf32>
    %22 = tpu.matmul %20, %21, %cst_15 {dimension_numbers = #tpu.dot_dimension_numbers<[1], [0], [0], [1], [0, 0, 1, 1], [], []>} : vector<8x512xbf16>, vector<512x1536xbf16>, vector<8x1536xf32> -> vector<8x1536xf32>
    %c0_16 = arith.constant 0 : index
    %c0_17 = arith.constant 0 : index
    %23 = vector.load %arg7[%c0_16, %c0_17] : memref<1x1536xf32, #tpu.memory_space<vmem>>, vector<1x1536xf32>
    %24 = vector.broadcast %23 : vector<1x1536xf32> to vector<8x1536xf32>
    %25 = arith.addf %22, %24 : vector<8x1536xf32>
    %26 = vector.extract_strided_slice %19 {offsets = [0, 0], sizes = [8, 512], strides = [1, 1]} : vector<8x1536xf32> to vector<8x512xf32>
    %27 = vector.extract_strided_slice %25 {offsets = [0, 0], sizes = [8, 512], strides = [1, 1]} : vector<8x1536xf32> to vector<8x512xf32>
    %28 = arith.addf %26, %27 : vector<8x512xf32>
    %29 = arith.negf %28 : vector<8x512xf32>
    %30 = math.exp %29 : vector<8x512xf32>
    %cst_18 = arith.constant 1.000000e+00 : f32
    %31 = vector.broadcast %cst_18 : f32 to vector<8x512xf32>
    %32 = arith.addf %31, %30 : vector<8x512xf32>
    %33 = arith.divf %31, %32 : vector<8x512xf32>
    %34 = vector.extract_strided_slice %19 {offsets = [0, 512], sizes = [8, 512], strides = [1, 1]} : vector<8x1536xf32> to vector<8x512xf32>
    %35 = vector.extract_strided_slice %25 {offsets = [0, 512], sizes = [8, 512], strides = [1, 1]} : vector<8x1536xf32> to vector<8x512xf32>
    %36 = arith.addf %34, %35 : vector<8x512xf32>
    %37 = arith.negf %36 : vector<8x512xf32>
    %38 = math.exp %37 : vector<8x512xf32>
    %cst_19 = arith.constant 1.000000e+00 : f32
    %39 = vector.broadcast %cst_19 : f32 to vector<8x512xf32>
    %40 = arith.addf %39, %38 : vector<8x512xf32>
    %41 = arith.divf %39, %40 : vector<8x512xf32>
    %42 = vector.extract_strided_slice %19 {offsets = [0, 1024], sizes = [8, 512], strides = [1, 1]} : vector<8x1536xf32> to vector<8x512xf32>
    %43 = vector.extract_strided_slice %25 {offsets = [0, 1024], sizes = [8, 512], strides = [1, 1]} : vector<8x1536xf32> to vector<8x512xf32>
    %44 = arith.mulf %33, %43 : vector<8x512xf32>
    %45 = arith.addf %42, %44 : vector<8x512xf32>
    %46 = math.tanh %45 : vector<8x512xf32>
    %cst_20 = arith.constant 1.000000e+00 : f32
    %47 = vector.broadcast %cst_20 : f32 to vector<8x512xf32>
    %48 = arith.subf %47, %41 : vector<8x512xf32>
    %49 = arith.mulf %48, %46 : vector<8x512xf32>
    %50 = arith.mulf %41, %13 : vector<8x512xf32>
    %51 = arith.addf %49, %50 : vector<8x512xf32>
    %c1 = arith.constant 1 : index
    %c0_21 = arith.constant 0 : index
    %c0_22 = arith.constant 0 : index
    %52 = vector.load %arg20[%c1, %c0_21, %c0_22] : memref<3x8x512xf32, #tpu.memory_space<vmem>>, vector<1x8x512xf32>
    %53 = vector.shape_cast %52 : vector<1x8x512xf32> to vector<8x512xf32>
    %54 = arith.truncf %51 : vector<8x512xf32> to vector<8x512xbf16>
    %c0_23 = arith.constant 0 : index
    %c0_24 = arith.constant 0 : index
    %55 = vector.load %arg8[%c0_23, %c0_24] : memref<512x1536xbf16, #tpu.memory_space<vmem>>, vector<512x1536xbf16>
    %cst_25 = arith.constant dense<0.000000e+00> : vector<8x1536xf32>
    %56 = tpu.matmul %54, %55, %cst_25 {dimension_numbers = #tpu.dot_dimension_numbers<[1], [0], [0], [1], [0, 0, 1, 1], [], []>} : vector<8x512xbf16>, vector<512x1536xbf16>, vector<8x1536xf32> -> vector<8x1536xf32>
    %c0_26 = arith.constant 0 : index
    %c0_27 = arith.constant 0 : index
    %57 = vector.load %arg10[%c0_26, %c0_27] : memref<1x1536xf32, #tpu.memory_space<vmem>>, vector<1x1536xf32>
    %58 = vector.broadcast %57 : vector<1x1536xf32> to vector<8x1536xf32>
    %59 = arith.addf %56, %58 : vector<8x1536xf32>
    %60 = arith.truncf %53 : vector<8x512xf32> to vector<8x512xbf16>
    %c0_28 = arith.constant 0 : index
    %c0_29 = arith.constant 0 : index
    %61 = vector.load %arg9[%c0_28, %c0_29] : memref<512x1536xbf16, #tpu.memory_space<vmem>>, vector<512x1536xbf16>
    %cst_30 = arith.constant dense<0.000000e+00> : vector<8x1536xf32>
    %62 = tpu.matmul %60, %61, %cst_30 {dimension_numbers = #tpu.dot_dimension_numbers<[1], [0], [0], [1], [0, 0, 1, 1], [], []>} : vector<8x512xbf16>, vector<512x1536xbf16>, vector<8x1536xf32> -> vector<8x1536xf32>
    %c0_31 = arith.constant 0 : index
    %c0_32 = arith.constant 0 : index
    %63 = vector.load %arg11[%c0_31, %c0_32] : memref<1x1536xf32, #tpu.memory_space<vmem>>, vector<1x1536xf32>
    %64 = vector.broadcast %63 : vector<1x1536xf32> to vector<8x1536xf32>
    %65 = arith.addf %62, %64 : vector<8x1536xf32>
    %66 = vector.extract_strided_slice %59 {offsets = [0, 0], sizes = [8, 512], strides = [1, 1]} : vector<8x1536xf32> to vector<8x512xf32>
    %67 = vector.extract_strided_slice %65 {offsets = [0, 0], sizes = [8, 512], strides = [1, 1]} : vector<8x1536xf32> to vector<8x512xf32>
    %68 = arith.addf %66, %67 : vector<8x512xf32>
    %69 = arith.negf %68 : vector<8x512xf32>
    %70 = math.exp %69 : vector<8x512xf32>
    %cst_33 = arith.constant 1.000000e+00 : f32
    %71 = vector.broadcast %cst_33 : f32 to vector<8x512xf32>
    %72 = arith.addf %71, %70 : vector<8x512xf32>
    %73 = arith.divf %71, %72 : vector<8x512xf32>
    %74 = vector.extract_strided_slice %59 {offsets = [0, 512], sizes = [8, 512], strides = [1, 1]} : vector<8x1536xf32> to vector<8x512xf32>
    %75 = vector.extract_strided_slice %65 {offsets = [0, 512], sizes = [8, 512], strides = [1, 1]} : vector<8x1536xf32> to vector<8x512xf32>
    %76 = arith.addf %74, %75 : vector<8x512xf32>
    %77 = arith.negf %76 : vector<8x512xf32>
    %78 = math.exp %77 : vector<8x512xf32>
    %cst_34 = arith.constant 1.000000e+00 : f32
    %79 = vector.broadcast %cst_34 : f32 to vector<8x512xf32>
    %80 = arith.addf %79, %78 : vector<8x512xf32>
    %81 = arith.divf %79, %80 : vector<8x512xf32>
    %82 = vector.extract_strided_slice %59 {offsets = [0, 1024], sizes = [8, 512], strides = [1, 1]} : vector<8x1536xf32> to vector<8x512xf32>
    %83 = vector.extract_strided_slice %65 {offsets = [0, 1024], sizes = [8, 512], strides = [1, 1]} : vector<8x1536xf32> to vector<8x512xf32>
    %84 = arith.mulf %73, %83 : vector<8x512xf32>
    %85 = arith.addf %82, %84 : vector<8x512xf32>
    %86 = math.tanh %85 : vector<8x512xf32>
    %cst_35 = arith.constant 1.000000e+00 : f32
    %87 = vector.broadcast %cst_35 : f32 to vector<8x512xf32>
    %88 = arith.subf %87, %81 : vector<8x512xf32>
    %89 = arith.mulf %88, %86 : vector<8x512xf32>
    %90 = arith.mulf %81, %53 : vector<8x512xf32>
    %91 = arith.addf %89, %90 : vector<8x512xf32>
    %c2 = arith.constant 2 : index
    %c0_36 = arith.constant 0 : index
    %c0_37 = arith.constant 0 : index
    %92 = vector.load %arg20[%c2, %c0_36, %c0_37] : memref<3x8x512xf32, #tpu.memory_space<vmem>>, vector<1x8x512xf32>
    %93 = vector.shape_cast %92 : vector<1x8x512xf32> to vector<8x512xf32>
    %94 = arith.truncf %91 : vector<8x512xf32> to vector<8x512xbf16>
    %c0_38 = arith.constant 0 : index
    %c0_39 = arith.constant 0 : index
    %95 = vector.load %arg12[%c0_38, %c0_39] : memref<512x1536xbf16, #tpu.memory_space<vmem>>, vector<512x1536xbf16>
    %cst_40 = arith.constant dense<0.000000e+00> : vector<8x1536xf32>
    %96 = tpu.matmul %94, %95, %cst_40 {dimension_numbers = #tpu.dot_dimension_numbers<[1], [0], [0], [1], [0, 0, 1, 1], [], []>} : vector<8x512xbf16>, vector<512x1536xbf16>, vector<8x1536xf32> -> vector<8x1536xf32>
    %c0_41 = arith.constant 0 : index
    %c0_42 = arith.constant 0 : index
    %97 = vector.load %arg14[%c0_41, %c0_42] : memref<1x1536xf32, #tpu.memory_space<vmem>>, vector<1x1536xf32>
    %98 = vector.broadcast %97 : vector<1x1536xf32> to vector<8x1536xf32>
    %99 = arith.addf %96, %98 : vector<8x1536xf32>
    %100 = arith.truncf %93 : vector<8x512xf32> to vector<8x512xbf16>
    %c0_43 = arith.constant 0 : index
    %c0_44 = arith.constant 0 : index
    %101 = vector.load %arg13[%c0_43, %c0_44] : memref<512x1536xbf16, #tpu.memory_space<vmem>>, vector<512x1536xbf16>
    %cst_45 = arith.constant dense<0.000000e+00> : vector<8x1536xf32>
    %102 = tpu.matmul %100, %101, %cst_45 {dimension_numbers = #tpu.dot_dimension_numbers<[1], [0], [0], [1], [0, 0, 1, 1], [], []>} : vector<8x512xbf16>, vector<512x1536xbf16>, vector<8x1536xf32> -> vector<8x1536xf32>
    %c0_46 = arith.constant 0 : index
    %c0_47 = arith.constant 0 : index
    %103 = vector.load %arg15[%c0_46, %c0_47] : memref<1x1536xf32, #tpu.memory_space<vmem>>, vector<1x1536xf32>
    %104 = vector.broadcast %103 : vector<1x1536xf32> to vector<8x1536xf32>
    %105 = arith.addf %102, %104 : vector<8x1536xf32>
    %106 = vector.extract_strided_slice %99 {offsets = [0, 0], sizes = [8, 512], strides = [1, 1]} : vector<8x1536xf32> to vector<8x512xf32>
    %107 = vector.extract_strided_slice %105 {offsets = [0, 0], sizes = [8, 512], strides = [1, 1]} : vector<8x1536xf32> to vector<8x512xf32>
    %108 = arith.addf %106, %107 : vector<8x512xf32>
    %109 = arith.negf %108 : vector<8x512xf32>
    %110 = math.exp %109 : vector<8x512xf32>
    %cst_48 = arith.constant 1.000000e+00 : f32
    %111 = vector.broadcast %cst_48 : f32 to vector<8x512xf32>
    %112 = arith.addf %111, %110 : vector<8x512xf32>
    %113 = arith.divf %111, %112 : vector<8x512xf32>
    %114 = vector.extract_strided_slice %99 {offsets = [0, 512], sizes = [8, 512], strides = [1, 1]} : vector<8x1536xf32> to vector<8x512xf32>
    %115 = vector.extract_strided_slice %105 {offsets = [0, 512], sizes = [8, 512], strides = [1, 1]} : vector<8x1536xf32> to vector<8x512xf32>
    %116 = arith.addf %114, %115 : vector<8x512xf32>
    %117 = arith.negf %116 : vector<8x512xf32>
    %118 = math.exp %117 : vector<8x512xf32>
    %cst_49 = arith.constant 1.000000e+00 : f32
    %119 = vector.broadcast %cst_49 : f32 to vector<8x512xf32>
    %120 = arith.addf %119, %118 : vector<8x512xf32>
    %121 = arith.divf %119, %120 : vector<8x512xf32>
    %122 = vector.extract_strided_slice %99 {offsets = [0, 1024], sizes = [8, 512], strides = [1, 1]} : vector<8x1536xf32> to vector<8x512xf32>
    %123 = vector.extract_strided_slice %105 {offsets = [0, 1024], sizes = [8, 512], strides = [1, 1]} : vector<8x1536xf32> to vector<8x512xf32>
    %124 = arith.mulf %113, %123 : vector<8x512xf32>
    %125 = arith.addf %122, %124 : vector<8x512xf32>
    %126 = math.tanh %125 : vector<8x512xf32>
    %cst_50 = arith.constant 1.000000e+00 : f32
    %127 = vector.broadcast %cst_50 : f32 to vector<8x512xf32>
    %128 = arith.subf %127, %121 : vector<8x512xf32>
    %129 = arith.mulf %128, %126 : vector<8x512xf32>
    %130 = arith.mulf %121, %93 : vector<8x512xf32>
    %131 = arith.addf %129, %130 : vector<8x512xf32>
    %c0_51 = arith.constant 0 : index
    %c0_52 = arith.constant 0 : index
    %c0_53 = arith.constant 0 : index
    %132 = vector.load %arg20[%c0_51, %c0_52, %c0_53] : memref<3x8x512xf32, #tpu.memory_space<vmem>>, vector<1x8x512xf32>
    %133 = vector.shape_cast %132 : vector<1x8x512xf32> to vector<8x512xf32>
    %134 = vector.shape_cast %51 : vector<8x512xf32> to vector<1x8x512xf32>
    tpu.vector_store %arg20[%c0_51, %c0_52, %c0_53], %134 {strides = array<i32>} : memref<3x8x512xf32, #tpu.memory_space<vmem>>, vector<1x8x512xf32>,
    %c1_54 = arith.constant 1 : index
    %c0_55 = arith.constant 0 : index
    %c0_56 = arith.constant 0 : index
    %135 = vector.load %arg20[%c1_54, %c0_55, %c0_56] : memref<3x8x512xf32, #tpu.memory_space<vmem>>, vector<1x8x512xf32>
    %136 = vector.shape_cast %135 : vector<1x8x512xf32> to vector<8x512xf32>
    %137 = vector.shape_cast %91 : vector<8x512xf32> to vector<1x8x512xf32>
    tpu.vector_store %arg20[%c1_54, %c0_55, %c0_56], %137 {strides = array<i32>} : memref<3x8x512xf32, #tpu.memory_space<vmem>>, vector<1x8x512xf32>,
    %c2_57 = arith.constant 2 : index
    %c0_58 = arith.constant 0 : index
    %c0_59 = arith.constant 0 : index
    %138 = vector.load %arg20[%c2_57, %c0_58, %c0_59] : memref<3x8x512xf32, #tpu.memory_space<vmem>>, vector<1x8x512xf32>
    %139 = vector.shape_cast %138 : vector<1x8x512xf32> to vector<8x512xf32>
    %140 = vector.shape_cast %131 : vector<8x512xf32> to vector<1x8x512xf32>
    tpu.vector_store %arg20[%c2_57, %c0_58, %c0_59], %140 {strides = array<i32>} : memref<3x8x512xf32, #tpu.memory_space<vmem>>, vector<1x8x512xf32>,
    %c0_60 = arith.constant 0 : index
    %c0_61 = arith.constant 0 : index
    %c0_62 = arith.constant 0 : index
    %141 = vector.load %arg19[%c0_60, %c0_61, %c0_62] : memref<3x8x512xf32, #tpu.memory_space<vmem>>, vector<1x8x512xf32>
    %142 = vector.shape_cast %141 : vector<1x8x512xf32> to vector<8x512xf32>
    %143 = vector.shape_cast %51 : vector<8x512xf32> to vector<1x8x512xf32>
    tpu.vector_store %arg19[%c0_60, %c0_61, %c0_62], %143 {strides = array<i32>} : memref<3x8x512xf32, #tpu.memory_space<vmem>>, vector<1x8x512xf32>,
    %c1_63 = arith.constant 1 : index
    %c0_64 = arith.constant 0 : index
    %c0_65 = arith.constant 0 : index
    %144 = vector.load %arg19[%c1_63, %c0_64, %c0_65] : memref<3x8x512xf32, #tpu.memory_space<vmem>>, vector<1x8x512xf32>
    %145 = vector.shape_cast %144 : vector<1x8x512xf32> to vector<8x512xf32>
    %146 = vector.shape_cast %91 : vector<8x512xf32> to vector<1x8x512xf32>
    tpu.vector_store %arg19[%c1_63, %c0_64, %c0_65], %146 {strides = array<i32>} : memref<3x8x512xf32, #tpu.memory_space<vmem>>, vector<1x8x512xf32>,
    %c2_66 = arith.constant 2 : index
    %c0_67 = arith.constant 0 : index
    %c0_68 = arith.constant 0 : index
    %147 = vector.load %arg19[%c2_66, %c0_67, %c0_68] : memref<3x8x512xf32, #tpu.memory_space<vmem>>, vector<1x8x512xf32>
    %148 = vector.shape_cast %147 : vector<1x8x512xf32> to vector<8x512xf32>
    %149 = vector.shape_cast %131 : vector<8x512xf32> to vector<1x8x512xf32>
    tpu.vector_store %arg19[%c2_66, %c0_67, %c0_68], %149 {strides = array<i32>} : memref<3x8x512xf32, #tpu.memory_space<vmem>>, vector<1x8x512xf32>,
    %150 = arith.truncf %131 : vector<8x512xf32> to vector<8x512xbf16>
    %c0_69 = arith.constant 0 : index
    %c0_70 = arith.constant 0 : index
    %151 = vector.load %arg16[%c0_69, %c0_70] : memref<512x128xbf16, #tpu.memory_space<vmem>>, vector<512x128xbf16>
    %cst_71 = arith.constant dense<0.000000e+00> : vector<8x128xf32>
    %152 = tpu.matmul %150, %151, %cst_71 {dimension_numbers = #tpu.dot_dimension_numbers<[1], [0], [0], [1], [0, 0, 1, 1], [], []>} : vector<8x512xbf16>, vector<512x128xbf16>, vector<8x128xf32> -> vector<8x128xf32>
    %c0_72 = arith.constant 0 : index
    %c0_73 = arith.constant 0 : index
    %153 = vector.load %arg17[%c0_72, %c0_73] : memref<1x128xf32, #tpu.memory_space<vmem>>, vector<1x128xf32>
    %154 = vector.broadcast %153 : vector<1x128xf32> to vector<8x128xf32>
    %155 = arith.addf %152, %154 : vector<8x128xf32>
    %c0_74 = arith.constant 0 : index
    %c0_75 = arith.constant 0 : index
    %c0_76 = arith.constant 0 : index
    %156 = vector.load %arg18[%c0_74, %c0_75, %c0_76] : memref<1x8x128xf32, #tpu.memory_space<vmem>>, vector<1x8x128xf32>
    %157 = vector.shape_cast %156 : vector<1x8x128xf32> to vector<8x128xf32>
    %158 = vector.shape_cast %155 : vector<8x128xf32> to vector<1x8x128xf32>
    tpu.vector_store %arg18[%c0_74, %c0_75, %c0_76], %158 {strides = array<i32>} : memref<1x8x128xf32, #tpu.memory_space<vmem>>, vector<1x8x128xf32>,
    return
  }
  func.func @transform_0(%arg0: i32) -> (i32, i32, i32) {
    %c0_i32 = arith.constant 0 : i32
    %c0_i32_0 = arith.constant 0 : i32
    %c0_i32_1 = arith.constant 0 : i32
    return %arg0, %c0_i32, %c0_i32_0 : i32, i32, i32
  }
  func.func @transform_1(%arg0: i32) -> (i32, i32, i32) {
    %c0_i32 = arith.constant 0 : i32
    %c0_i32_0 = arith.constant 0 : i32
    %c0_i32_1 = arith.constant 0 : i32
    %c0_i32_2 = arith.constant 0 : i32
    return %c0_i32, %c0_i32_0, %c0_i32_1 : i32, i32, i32
  }
  func.func @transform_2(%arg0: i32) -> (i32, i32) {
    %c0_i32 = arith.constant 0 : i32
    %c0_i32_0 = arith.constant 0 : i32
    %c0_i32_1 = arith.constant 0 : i32
    return %c0_i32, %c0_i32_0 : i32, i32
  }
  func.func @transform_3(%arg0: i32) -> (i32, i32) {
    %c0_i32 = arith.constant 0 : i32
    %c0_i32_0 = arith.constant 0 : i32
    %c0_i32_1 = arith.constant 0 : i32
    return %c0_i32, %c0_i32_0 : i32, i32
  }
  func.func @transform_4(%arg0: i32) -> (i32, i32) {
    %c0_i32 = arith.constant 0 : i32
    %c0_i32_0 = arith.constant 0 : i32
    %c0_i32_1 = arith.constant 0 : i32
    return %c0_i32, %c0_i32_0 : i32, i32
  }
  func.func @transform_5(%arg0: i32) -> (i32, i32) {
    %c0_i32 = arith.constant 0 : i32
    %c0_i32_0 = arith.constant 0 : i32
    %c0_i32_1 = arith.constant 0 : i32
    return %c0_i32, %c0_i32_0 : i32, i32
  }
  func.func @transform_6(%arg0: i32) -> (i32, i32) {
    %c0_i32 = arith.constant 0 : i32
    %c0_i32_0 = arith.constant 0 : i32
    %c0_i32_1 = arith.constant 0 : i32
    return %c0_i32, %c0_i32_0 : i32, i32
  }
  func.func @transform_7(%arg0: i32) -> (i32, i32) {
    %c0_i32 = arith.constant 0 : i32
    %c0_i32_0 = arith.constant 0 : i32
    %c0_i32_1 = arith.constant 0 : i32
    return %c0_i32, %c0_i32_0 : i32, i32
  }
  func.func @transform_8(%arg0: i32) -> (i32, i32) {
    %c0_i32 = arith.constant 0 : i32
    %c0_i32_0 = arith.constant 0 : i32
    %c0_i32_1 = arith.constant 0 : i32
    return %c0_i32, %c0_i32_0 : i32, i32
  }
  func.func @transform_9(%arg0: i32) -> (i32, i32) {
    %c0_i32 = arith.constant 0 : i32
    %c0_i32_0 = arith.constant 0 : i32
    %c0_i32_1 = arith.constant 0 : i32
    return %c0_i32, %c0_i32_0 : i32, i32
  }
  func.func @transform_10(%arg0: i32) -> (i32, i32) {
    %c0_i32 = arith.constant 0 : i32
    %c0_i32_0 = arith.constant 0 : i32
    %c0_i32_1 = arith.constant 0 : i32
    return %c0_i32, %c0_i32_0 : i32, i32
  }
  func.func @transform_11(%arg0: i32) -> (i32, i32) {
    %c0_i32 = arith.constant 0 : i32
    %c0_i32_0 = arith.constant 0 : i32
    %c0_i32_1 = arith.constant 0 : i32
    return %c0_i32, %c0_i32_0 : i32, i32
  }
  func.func @transform_12(%arg0: i32) -> (i32, i32) {
    %c0_i32 = arith.constant 0 : i32
    %c0_i32_0 = arith.constant 0 : i32
    %c0_i32_1 = arith.constant 0 : i32
    return %c0_i32, %c0_i32_0 : i32, i32
  }
  func.func @transform_13(%arg0: i32) -> (i32, i32) {
    %c0_i32 = arith.constant 0 : i32
    %c0_i32_0 = arith.constant 0 : i32
    %c0_i32_1 = arith.constant 0 : i32
    return %c0_i32, %c0_i32_0 : i32, i32
  }
  func.func @transform_14(%arg0: i32) -> (i32, i32) {
    %c0_i32 = arith.constant 0 : i32
    %c0_i32_0 = arith.constant 0 : i32
    %c0_i32_1 = arith.constant 0 : i32
    return %c0_i32, %c0_i32_0 : i32, i32
  }
  func.func @transform_15(%arg0: i32) -> (i32, i32) {
    %c0_i32 = arith.constant 0 : i32
    %c0_i32_0 = arith.constant 0 : i32
    %c0_i32_1 = arith.constant 0 : i32
    return %c0_i32, %c0_i32_0 : i32, i32
  }
  func.func @transform_16(%arg0: i32) -> (i32, i32) {
    %c0_i32 = arith.constant 0 : i32
    %c0_i32_0 = arith.constant 0 : i32
    %c0_i32_1 = arith.constant 0 : i32
    return %c0_i32, %c0_i32_0 : i32, i32
  }
  func.func @transform_17(%arg0: i32) -> (i32, i32, i32) {
    %c0_i32 = arith.constant 0 : i32
    %c0_i32_0 = arith.constant 0 : i32
    %c0_i32_1 = arith.constant 0 : i32
    return %arg0, %c0_i32, %c0_i32_0 : i32, i32, i32
  }
  func.func @transform_18(%arg0: i32) -> (i32, i32, i32) {
    %c0_i32 = arith.constant 0 : i32
    %c0_i32_0 = arith.constant 0 : i32
    %c0_i32_1 = arith.constant 0 : i32
    %c0_i32_2 = arith.constant 0 : i32
    return %c0_i32, %c0_i32_0, %c0_i32_1 : i32, i32, i32
  }
}

</mosaic_0001>

<bundles_post_ra>
// kernel: multi_gru_forward.1
= control target key start
LH: loop header
LB: loop body
LE: loop exit
PB: predicated region body
PF: predicated region fallthrough
CT: control target
= control target key end

     0   :  { %s22861_s0 = inlined_call_operand.vmem [shape: s32[1,8,1], index: 0, kind: input, shape index: {}]   ;;  %s22862_s1 = inlined_call_operand.vmem [shape: f32[3,8,512], index: 1, kind: input, shape index: {}, may-alias: {1,18}]   ;;  %s22863_s2 = inlined_call_operand.hbm [shape: f32[32,128], index: 2, kind: input, shape index: {}]   ;;  %s22864_s3 = inlined_call_operand.hbm [shape: bf16[128,1536], index: 3, kind: input, shape index: {}]   ;;  %s22865_s4 = inlined_call_operand.hbm [shape: bf16[512,1536], index: 4, kind: input, shape index: {}]   ;;  %s22866_s5 = inlined_call_operand.hbm [shape: f32[1,1536], index: 5, kind: input, shape index: {}]   ;;  %s22867_s6 = inlined_call_operand.hbm [shape: f32[1,1536], index: 6, kind: input, shape index: {}]   ;;  %s22868_s7 = inlined_call_operand.hbm [shape: bf16[512,1536], index: 7, kind: input, shape index: {}]   ;;  %s22869_s8 = inlined_call_operand.hbm [shape: bf16[512,1536], index: 8, kind: input, shape index: {}]   ;;  %s22870_s9 = inlined_call_operand.hbm [shape: f32[1,1536], index: 9, kind: input, shape index: {}]   ;;  %s22871_s10 = inlined_call_operand.hbm [shape: f32[1,1536], index: 10, kind: input, shape index: {}]   ;;  %s22872_s11 = inlined_call_operand.hbm [shape: bf16[512,1536], index: 11, kind: input, shape index: {}]   ;;  %s22873_s12 = inlined_call_operand.hbm [shape: bf16[512,1536], index: 12, kind: input, shape index: {}]   ;;  %s22874_s13 = inlined_call_operand.hbm [shape: f32[1,1536], index: 13, kind: input, shape index: {}]   ;;  %s22875_s14 = inlined_call_operand.hbm [shape: f32[1,1536], index: 14, kind: input, shape index: {}]   ;;  %s22876_s15 = inlined_call_operand.hbm [shape: bf16[512,128], index: 15, kind: input, shape index: {}]   ;;  %s22877_s16 = inlined_call_operand.hbm [shape: f32[1,128], index: 16, kind: input, shape index: {}]   ;;  %s22878_s17 = inlined_call_operand.vmem [shape: f32[1,8,128], index: 17, kind: output, shape index: {0}]   ;;  %s22879_s18 = inlined_call_operand.vmem [shape: f32[3,8,512], index: 18, kind: output, shape index: {1}, may-alias: {1,18}]  }
   0x1   :  { %22881 = sst [smem:[#allocation34_spill]] %s22861_s0 }
   0x2   :  { %22882 = sst [smem:[#allocation35_spill]] %s22862_s1 }
   0x3   :  { %22883 = sst [smem:[#allocation36_spill]] %s22863_s2 }
   0x4   :  { %24 = vsyncpa [#allocation4], 0 }
   0x5   :  { %25 = vsyncpa [#allocation6], 0 }
   0x6   :  { %26 = vsyncpa [#allocation9], 0 }
   0x7   :  { %27 = vsyncpa [#allocation12], 0 }
   0x8   :  { %28 = vsyncpa [#allocation15], 0 }
   0x9   :  { %29 = vsyncpa [#allocation18], 0 }
   0xa   :  { %30 = vsyncpa [#allocation21], 0 }
   0xb   :  { %31 = vsyncpa [#allocation24], 0  ;;  %s21902_s27 = smov [#allocation5]  }
   0xc   :  { %s53_s28 = sshll.u32 %s21902_s27, 4  ;;  %s54_s28 = int_to_ptr.vmem [resolvable:$true] %s53_s28 }
   0xd   :  { %s21594_s29 = scalar_lea.vmem %s54_s28, 12288  ;;  %p21599_p1 = scmp.lt.s32.totalorder %s54_s28, %s54_s28 }
   0xe   :  { %p21595_p0 = scmp.ne.s32.totalorder %s54_s28, %s21594_s29  ;;  %p21600_p2 = scmp.lt.s32.totalorder %s21594_s29, %s21594_s29 }
  0x10   :  { %p21601_p3 = por %p21600_p2, %p21599_p1 }
  0x12   :  { %p21602_p4 = pnand %p21601_p3, %p21595_p0 }
  0x14   :  { %21605 = shalt.err (!%p21602_p4)
}
  0x15   :  { %s21903_s30 = smov 768   ;;  %s21904_s0 = smov 48  }
  0x16   :  { %59 = dma.hbm_to_vmem [thread:$0]  %s22864_s3, 12288, %s54_s28, [#allocation6], %s21903_s30, %s21903_s30, %s21904_s0  }
  0x17   :  { %s21905_s20 = smov [#allocation8]   ;;  %s21906_s22 = smov [#allocation11]  }
  0x18   :  { %s78_s21 = sshll.u32 %s21905_s20, 4  ;;  %s97_s2 = sshll.u32 %s21906_s22, 4  ;;  %s79_s21 = int_to_ptr.vmem [resolvable:$true] %s78_s21  ;;  %s98_s2 = int_to_ptr.vmem [resolvable:$true] %s97_s2 }
  0x19   :  { %s21614_s23 = scalar_lea.vmem %s79_s21, 192  ;;  %p21619_p6 = scmp.lt.s32.totalorder %s79_s21, %s79_s21 }
  0x1a   :  { %p21615_p5 = scmp.ne.s32.totalorder %s79_s21, %s21614_s23  ;;  %p21620_p7 = scmp.lt.s32.totalorder %s21614_s23, %s21614_s23 }
  0x1c   :  { %p21621_p8 = por %p21620_p7, %p21619_p6 }
  0x1e   :  { %p21622_p9 = pnand %p21621_p8, %p21615_p5 }
  0x20   :  { %21625 = shalt.err (!%p21622_p9)
}
  0x21   :  { %81 = dma.hbm_to_vmem [thread:$0]  %s22866_s5, 192, %s79_s21, [#allocation9]  }
  0x22   :  { %s21634_s26 = scalar_lea.vmem %s98_s2, 49152  ;;  %p21639_p11 = scmp.lt.s32.totalorder %s98_s2, %s98_s2 }
  0x23   :  { %p21635_p10 = scmp.ne.s32.totalorder %s98_s2, %s21634_s26  ;;  %p21640_p12 = scmp.lt.s32.totalorder %s21634_s26, %s21634_s26 }
  0x25   :  { %p21641_p13 = por %p21640_p12, %p21639_p11 }
  0x27   :  { %p21642_p0 = pnand %p21641_p13, %p21635_p10 }
  0x29   :  { %21645 = shalt.err (!%p21642_p0)
}
  0x2a   :  { %103 = dma.hbm_to_vmem [thread:$0]  %s22868_s7, 49152, %s98_s2, [#allocation12], %s21903_s30, %s21903_s30, %s21904_s0  }
  0x2b   :  { %s21907_s28 = smov [#allocation14]   ;;  %s21908_s19 = smov [#allocation17]  }
  0x2c   :  { %s122_s29 = sshll.u32 %s21907_s28, 4  ;;  %s141_s5 = sshll.u32 %s21908_s19, 4  ;;  %s123_s29 = int_to_ptr.vmem [resolvable:$true] %s122_s29  ;;  %s142_s5 = int_to_ptr.vmem [resolvable:$true] %s141_s5 }
  0x2d   :  { %s21654_s1 = scalar_lea.vmem %s123_s29, 192  ;;  %p21659_p2 = scmp.lt.s32.totalorder %s123_s29, %s123_s29 }
  0x2e   :  { %p21655_p1 = scmp.ne.s32.totalorder %s123_s29, %s21654_s1  ;;  %p21660_p3 = scmp.lt.s32.totalorder %s21654_s1, %s21654_s1 }
  0x30   :  { %p21661_p4 = por %p21660_p3, %p21659_p2 }
  0x32   :  { %p21662_p5 = pnand %p21661_p4, %p21655_p1 }
  0x34   :  { %21665 = shalt.err (!%p21662_p5)
}
  0x35   :  { %125 = dma.hbm_to_vmem [thread:$0]  %s22870_s9, 192, %s123_s29, [#allocation15]  }
  0x36   :  { %s21674_s22 = scalar_lea.vmem %s142_s5, 49152  ;;  %p21679_p7 = scmp.lt.s32.totalorder %s142_s5, %s142_s5 }
  0x37   :  { %p21675_p6 = scmp.ne.s32.totalorder %s142_s5, %s21674_s22  ;;  %p21680_p8 = scmp.lt.s32.totalorder %s21674_s22, %s21674_s22 }
  0x39   :  { %p21681_p9 = por %p21680_p8, %p21679_p7 }
  0x3b   :  { %p21682_p10 = pnand %p21681_p9, %p21675_p6 }
  0x3d   :  { %21685 = shalt.err (!%p21682_p10)
}
  0x3e   :  { %147 = dma.hbm_to_vmem [thread:$0]  %s22872_s11, 49152, %s142_s5, [#allocation18], %s21903_s30, %s21903_s30, %s21904_s0  }
  0x3f   :  { %s21909_s23 = smov [#allocation20]   ;;  %s21910_s25 = smov [#allocation23]  }
  0x40   :  { %s166_s24 = sshll.u32 %s21909_s23, 4  ;;  %s185_s9 = sshll.u32 %s21910_s25, 4  ;;  %s167_s24 = int_to_ptr.vmem [resolvable:$true] %s166_s24  ;;  %s186_s9 = int_to_ptr.vmem [resolvable:$true] %s185_s9 }
  0x41   :  { %s21694_s26 = scalar_lea.vmem %s167_s24, 192  ;;  %p21699_p12 = scmp.lt.s32.totalorder %s167_s24, %s167_s24 }
  0x42   :  { %p21695_p11 = scmp.ne.s32.totalorder %s167_s24, %s21694_s26  ;;  %p21700_p13 = scmp.lt.s32.totalorder %s21694_s26, %s21694_s26 }
  0x44   :  { %p21701_p0 = por %p21700_p13, %p21699_p12 }
  0x46   :  { %p21702_p1 = pnand %p21701_p0, %p21695_p11 }
  0x48   :  { %21705 = shalt.err (!%p21702_p1)
}
  0x49   :  { %169 = dma.hbm_to_vmem [thread:$0]  %s22874_s13, 192, %s167_s24, [#allocation21]  }
  0x4a   :  { %s21714_s28 = scalar_lea.vmem %s186_s9, 4096  ;;  %p21719_p3 = scmp.lt.s32.totalorder %s186_s9, %s186_s9 }
  0x4b   :  { %p21715_p2 = scmp.ne.s32.totalorder %s186_s9, %s21714_s28  ;;  %p21720_p4 = scmp.lt.s32.totalorder %s21714_s28, %s21714_s28 }
  0x4d   :  { %p21721_p5 = por %p21720_p4, %p21719_p3 }
  0x4f   :  { %p21722_p6 = pnand %p21721_p5, %p21715_p2 }
  0x51   :  { %21725 = shalt.err (!%p21722_p6)
}
  0x52   :  { %s21911_s11 = smov 64   ;;  %s21912_s29 = smov 4  }
  0x53   :  { %191 = dma.hbm_to_vmem [thread:$0]  %s22876_s15, 4096, %s186_s9, [#allocation24], %s21911_s11, %s21911_s11, %s21912_s29  }
  0x54   :  { %s21913_s1 = smov [#allocation3]  }
  0x55   :  { %s41_s20 = sshll.u32 %s21913_s1, 4  ;;  %s42_s20 = int_to_ptr.vmem [resolvable:$true] %s41_s20 }
  0x56   :  { %s21734_s21 = scalar_lea.vmem %s42_s20, 512  ;;  %p21739_p8 = scmp.lt.s32.totalorder %s42_s20, %s42_s20 }
  0x57   :  { %p21735_p7 = scmp.ne.s32.totalorder %s42_s20, %s21734_s21  ;;  %p21740_p9 = scmp.lt.s32.totalorder %s21734_s21, %s21734_s21 }
  0x59   :  { %p21741_p10 = por %p21740_p9, %p21739_p8 }
  0x5b   :  { %p21742_p11 = pnand %p21741_p10, %p21735_p7 }
  0x5d   :  { %21745 = shalt.err (!%p21742_p11)
}
  0x5e   :  { %s21914_s13 = smov 128   ;;  %s21915_s22 = smov 8  }
  0x5f   :  { %s22884_s23 = sld [smem:[#allocation36_spill]]  ;;  %s21916_s24 = smov [#allocation7]  }
  0x60   :  { %s65_s25 = sshll.u32 %s21916_s24, 4  ;;  %s21917_s26 = smov [#allocation10]   ;;  %s66_s25 = int_to_ptr.vmem [resolvable:$true] %s65_s25 }
  0x61   :  { %s88_s15 = sshll.u32 %s21917_s26, 4  ;;  %s21754_s9 = scalar_lea.vmem %s66_s25, 49152  ;;  %s89_s15 = int_to_ptr.vmem [resolvable:$true] %s88_s15 }
  0x62   :  { %p21755_p12 = scmp.ne.s32.totalorder %s66_s25, %s21754_s9  ;;  %p21759_p13 = scmp.lt.s32.totalorder %s66_s25, %s66_s25 }
  0x63   :  { %p21760_p0 = scmp.lt.s32.totalorder %s21754_s9, %s21754_s9 }
  0x65   :  { %47 = dma.hbm_to_vmem [thread:$0]  %s22884_s23, 512, %s42_s20, [#allocation4], %s21914_s13, %s21914_s13, %s21915_s22  }
  0x66   :  { %p21761_p1 = por %p21760_p0, %p21759_p13 }
  0x68   :  { %p21762_p2 = pnand %p21761_p1, %p21755_p12 }
  0x6a   :  { %21765 = shalt.err (!%p21762_p2)
}
  0x6b   :  { %71 = dma.hbm_to_vmem [thread:$0]  %s22865_s4, 49152, %s66_s25, [#allocation6], %s21903_s30, %s21903_s30, %s21904_s0  }
  0x6c   :  { %s21774_s28 = scalar_lea.vmem %s89_s15, 192  ;;  %p21779_p4 = scmp.lt.s32.totalorder %s89_s15, %s89_s15 }
  0x6d   :  { %p21775_p3 = scmp.ne.s32.totalorder %s89_s15, %s21774_s28  ;;  %p21780_p5 = scmp.lt.s32.totalorder %s21774_s28, %s21774_s28 }
  0x6f   :  { %p21781_p6 = por %p21780_p5, %p21779_p4 }
  0x71   :  { %p21782_p7 = pnand %p21781_p6, %p21775_p3 }
  0x73   :  { %21785 = shalt.err (!%p21782_p7)
}
  0x74   :  { %91 = dma.hbm_to_vmem [thread:$0]  %s22867_s6, 192, %s89_s15, [#allocation9]  }
  0x75   :  { %s21918_s19 = smov [#allocation13]   ;;  %s21919_s1 = smov [#allocation16]  }
  0x76   :  { %s109_s5 = sshll.u32 %s21918_s19, 4  ;;  %s132_s20 = sshll.u32 %s21919_s1, 4  ;;  %s110_s5 = int_to_ptr.vmem [resolvable:$true] %s109_s5  ;;  %s133_s20 = int_to_ptr.vmem [resolvable:$true] %s132_s20 }
  0x77   :  { %s21794_s21 = scalar_lea.vmem %s110_s5, 49152  ;;  %p21799_p9 = scmp.lt.s32.totalorder %s110_s5, %s110_s5 }
  0x78   :  { %p21795_p8 = scmp.ne.s32.totalorder %s110_s5, %s21794_s21  ;;  %p21800_p10 = scmp.lt.s32.totalorder %s21794_s21, %s21794_s21 }
  0x7a   :  { %p21801_p11 = por %p21800_p10, %p21799_p9 }
  0x7c   :  { %p21802_p12 = pnand %p21801_p11, %p21795_p8 }
  0x7e   :  { %21805 = shalt.err (!%p21802_p12)
}
  0x7f   :  { %115 = dma.hbm_to_vmem [thread:$0]  %s22869_s8, 49152, %s110_s5, [#allocation12], %s21903_s30, %s21903_s30, %s21904_s0  }
  0x80   :  { %s21814_s6 = scalar_lea.vmem %s133_s20, 192  ;;  %p21819_p0 = scmp.lt.s32.totalorder %s133_s20, %s133_s20 }
  0x81   :  { %p21815_p13 = scmp.ne.s32.totalorder %s133_s20, %s21814_s6  ;;  %p21820_p1 = scmp.lt.s32.totalorder %s21814_s6, %s21814_s6 }
  0x83   :  { %p21821_p2 = por %p21820_p1, %p21819_p0 }
  0x85   :  { %p21822_p3 = pnand %p21821_p2, %p21815_p13 }
  0x87   :  { %21825 = shalt.err (!%p21822_p3)
}
  0x88   :  { %135 = dma.hbm_to_vmem [thread:$0]  %s22871_s10, 192, %s133_s20, [#allocation15]  }
  0x89   :  { %s21920_s2 = smov [#allocation19]   ;;  %s21921_s24 = smov [#allocation22]  }
  0x8a   :  { %s153_s23 = sshll.u32 %s21920_s2, 4  ;;  %s176_s25 = sshll.u32 %s21921_s24, 4  ;;  %s154_s23 = int_to_ptr.vmem [resolvable:$true] %s153_s23  ;;  %s177_s25 = int_to_ptr.vmem [resolvable:$true] %s176_s25 }
  0x8b   :  { %s21834_s26 = scalar_lea.vmem %s154_s23, 49152  ;;  %p21839_p5 = scmp.lt.s32.totalorder %s154_s23, %s154_s23 }
  0x8c   :  { %p21835_p4 = scmp.ne.s32.totalorder %s154_s23, %s21834_s26  ;;  %p21840_p6 = scmp.lt.s32.totalorder %s21834_s26, %s21834_s26 }
  0x8e   :  { %p21841_p7 = por %p21840_p6, %p21839_p5 }
  0x90   :  { %p21842_p8 = pnand %p21841_p7, %p21835_p4 }
  0x92   :  { %21845 = shalt.err (!%p21842_p8)
}
  0x93   :  { %159 = dma.hbm_to_vmem [thread:$0]  %s22873_s12, 49152, %s154_s23, [#allocation18], %s21903_s30, %s21903_s30, %s21904_s0  }
  0x94   :  { %s21854_s10 = scalar_lea.vmem %s177_s25, 192  ;;  %p21859_p10 = scmp.lt.s32.totalorder %s177_s25, %s177_s25 }
  0x95   :  { %p21855_p9 = scmp.ne.s32.totalorder %s177_s25, %s21854_s10  ;;  %p21860_p11 = scmp.lt.s32.totalorder %s21854_s10, %s21854_s10 }
  0x97   :  { %p21861_p12 = por %p21860_p11, %p21859_p10 }
  0x99   :  { %p21862_p13 = pnand %p21861_p12, %p21855_p9 }
  0x9b   :  { %21865 = shalt.err (!%p21862_p13)
}
  0x9c   :  { %179 = dma.hbm_to_vmem [thread:$0]  %s22875_s14, 192, %s177_s25, [#allocation21]  }
  0x9d   :  { %s21922_s27 = smov [#allocation25]  }
  0x9e   :  { %s198_s28 = sshll.u32 %s21922_s27, 4  ;;  %s199_s28 = int_to_ptr.vmem [resolvable:$true] %s198_s28 }
  0x9f   :  { %s21874_s11 = scalar_lea.vmem %s199_s28, 16  ;;  %s21878_s29 = scalar_lea.vmem %s199_s28, 32 }
  0xa0   :  { %p21875_p0 = scmp.ne.s32.totalorder %s199_s28, %s21874_s11  ;;  %p21879_p1 = scmp.lt.s32.totalorder %s199_s28, %s199_s28 }
  0xa1   :  { %p21880_p2 = scmp.lt.s32.totalorder %s21878_s29, %s21874_s11 }
  0xa3   :  { %p21881_p3 = por %p21880_p2, %p21879_p1 }
  0xa5   :  { %p21882_p4 = pnand %p21881_p3, %p21875_p0 }
  0xa7   :  { %21885 = shalt.err (!%p21882_p4)
}
  0xa8   :  { %201 = dma.hbm_to_vmem [thread:$0]  %s22877_s16, 16, %s199_s28, [#allocation24]  }
  0xa9   :  { %21886 = dma.done.wait [#allocation4], 512  }
  0xaa   :  { %21887 = vsyncadd [#allocation4], 4294966784 }
  0xab   :  { %21888 = dma.done.wait [#allocation6], 61440  }
  0xac   :  { %21889 = vsyncadd [#allocation6], 4294905856 }
  0xad   :  { %21890 = dma.done.wait [#allocation9], 384  }
  0xae   :  { %21891 = vsyncadd [#allocation9], 4294966912 }
  0xaf   :  { %21892 = dma.done.wait [#allocation12], 98304  }
  0xb0   :  { %21893 = vsyncadd [#allocation12], 4294868992 }
  0xb1   :  { %21894 = dma.done.wait [#allocation15], 384  }
  0xb2   :  { %21895 = vsyncadd [#allocation15], 4294966912 }
  0xb3   :  { %21896 = dma.done.wait [#allocation18], 98304  }
  0xb4   :  { %21897 = vsyncadd [#allocation18], 4294868992 }
  0xb5   :  { %21898 = dma.done.wait [#allocation21], 384  }
  0xb6   :  { %21899 = vsyncadd [#allocation21], 4294966912 }
  0xb7   :  { %21900 = dma.done.wait [#allocation24], 4112  }
  0xb8   :  { %21901 = vsyncadd [#allocation24], 4294963184  ;;  %v21923_v0 = vmov 0   ;;  %v21924_v1 = vmov 0.0   ;;  %vm21925_vm0 = vmmov 0   ;;  %s22885_s0 = sld [smem:[#allocation34_spill]]  ;;  %v277_v24 = vlaneseq }
  0xb9   :  { %18393 = vset.pattern.permute.xlu0 %v21923_v0  ;;  %18358 = vmatprep.subr.mxu0 %v21924_v1  ;;  %v288_v3 = vld [vmem:[#allocation3 + $0x18] sm:$0xff]  ;;  %v287_v4 = vld [vmem:[#allocation3 + $0x10] sm:$0xff]  ;;  %v286_v5 = vld [vmem:[#allocation3 + $0x8] sm:$0xff]  ;;  %vm289_vm1 = vcmask 261120   ;;  %s22886_s1 = sld [smem:[#allocation35_spill]] }
  0xba   :  { %1040 = vmatprep.mubr.bf16.mxu1 %v21923_v0  ;;  %18366 = vmatprep.mubr.msk.f32.mxu0 %vm21925_vm0, %v21924_v1  ;;  %v18394_v6 = vld [vmem:[#allocation5 + $0x2a4] ss:$48 sps:$4 sm:$0xff]   ;;  %v18398_v8 = vld [vmem:[#allocation5 + $0x2ac] ss:$48 sps:$4 sm:$0xff]   ;;  %v18399_v9 = vld [vmem:[#allocation5 + $0x2a0] ss:$48 sps:$4 sm:$0xff]  }
  0xbb   :  { %18359 = vmatpush3.msra.mxu0 %v288_v3  ;;  %v285_v7 = vld [vmem:[#allocation3] sm:$0xff]  ;;  %1008 = vmatprep.subr.bf16.mxu1 %v18394_v6  ;;  %v278_v25 = vand.u32 127, %v277_v24  ;;  %v18396_v26 = vld [vmem:[#allocation5 + $0x2a8] ss:$48 sps:$4 sm:$0xff]   ;;  %v18404_v27 = vld [vmem:[#allocation5 + $0x24c] ss:$48 sps:$4 sm:$0xff]  }
  0xbc   :  { %18360 = vmatprep.subr.mxu0 %v21924_v1  ;;  %v18400_v10 = vld [vmem:[#allocation5 + $0x244] ss:$48 sps:$4 sm:$0xff]   ;;  %1009 = vmatpush1.bf16.msra.mxu1 %v18399_v9  ;;  %v18405_v11 = vld [vmem:[#allocation5 + $0x240] ss:$48 sps:$4 sm:$0xff]   ;;  %v18402_v30 = vld [vmem:[#allocation5 + $0x248] ss:$48 sps:$4 sm:$0xff]  }
  0xbd   :  { %18361 = vmatpush3.msra.mxu0 %v287_v4  ;;  %1010 = vmatprep.subr.bf16.mxu1 %v18400_v10  ;;  %v18406_v12 = vld [vmem:[#allocation5 + $0x1e4] ss:$48 sps:$4 sm:$0xff]   ;;  %v18411_v13 = vld [vmem:[#allocation5 + $0x1e0] ss:$48 sps:$4 sm:$0xff]   ;;  %v18410_v31 = vld [vmem:[#allocation5 + $0x1ec] ss:$48 sps:$4 sm:$0xff]  }
  0xbe   :  { %v276_v2 = vld [vmem:[%s22885_s0] sm:$0xff]  ;;  %18362 = vmatprep.subr.mxu0 %v21924_v1  ;;  %v18408_v32 = vld [vmem:[#allocation5 + $0x1e8] ss:$48 sps:$4 sm:$0xff]   ;;  %v18416_v33 = vld [vmem:[#allocation5 + $0x18c] ss:$48 sps:$4 sm:$0xff]  }
  0xbf   :  { %280 = vperm.xlu0 %18393, %v276_v2   ;;  %18363 = vmatpush3.msra.mxu0 %v286_v5  ;;  %v18412_v14 = vld [vmem:[#allocation5 + $0x184] ss:$48 sps:$4 sm:$0xff]   ;;  %v18417_v15 = vld [vmem:[#allocation5 + $0x180] ss:$48 sps:$4 sm:$0xff]   ;;  %v18414_v34 = vld [vmem:[#allocation5 + $0x188] ss:$48 sps:$4 sm:$0xff]  }
  0xc0   :  { %18364 = vmatprep.subr.mxu0 %v21924_v1  ;;  %1011 = vmatpush1.bf16.msra.mxu1 %v18405_v11  ;;  %v18418_v16 = vld [vmem:[#allocation5 + $0x124] ss:$48 sps:$4 sm:$0xff]   ;;  %v18423_v17 = vld [vmem:[#allocation5 + $0x120] ss:$48 sps:$4 sm:$0xff]   ;;  %v18422_v35 = vld [vmem:[#allocation5 + $0x12c] ss:$48 sps:$4 sm:$0xff]  }
  0xc1   :  { %18365 = vmatpush3.msra.mxu0 %v285_v7  ;;  %1012 = vmatprep.subr.bf16.mxu1 %v18406_v12  ;;  %v18424_v18 = vld [vmem:[#allocation5 + $0xc4] ss:$48 sps:$4 sm:$0xff]   ;;  %v18429_v19 = vld [vmem:[#allocation5 + $0xc0] ss:$48 sps:$4 sm:$0xff]   ;;  %v18420_v36 = vld [vmem:[#allocation5 + $0x128] ss:$48 sps:$4 sm:$0xff]  }
  0xc2   :  { %1049 = vmatprep.subr.bf16.mxu0 %v18398_v8  ;;  %v18430_v20 = vld [vmem:[#allocation5 + $0x64] ss:$48 sps:$4 sm:$0xff]   ;;  %v18435_v21 = vld [vmem:[#allocation5 + $0x60] ss:$48 sps:$4 sm:$0xff]   ;;  %v18428_v37 = vld [vmem:[#allocation5 + $0xcc] ss:$48 sps:$4 sm:$0xff]  }
  0xc3   :  { %v18436_v22 = vld [vmem:[#allocation5 + $0x4] ss:$48 sps:$4 sm:$0xff]   ;;  %v18441_v23 = vld [vmem:[#allocation5] ss:$48 sps:$4 sm:$0xff]   ;;  %v18426_v38 = vld [vmem:[#allocation5 + $0xc8] ss:$48 sps:$4 sm:$0xff]  }
  0xc4   :  { %1013 = vmatpush1.bf16.msra.mxu1 %v18411_v13  ;;  %v18434_v39 = vld [vmem:[#allocation5 + $0x6c] ss:$48 sps:$4 sm:$0xff]   ;;  %v18432_v40 = vld [vmem:[#allocation5 + $0x68] ss:$48 sps:$4 sm:$0xff]   ;;  %v18444_v43 = vld [vmem:[#allocation5 + $0x2b4] ss:$48 sps:$4 sm:$0xff]  }
  0xc5   :  { %1014 = vmatprep.subr.bf16.mxu1 %v18412_v14  ;;  %v18440_v41 = vld [vmem:[#allocation5 + $0xc] ss:$48 sps:$4 sm:$0xff]   ;;  %v18438_v42 = vld [vmem:[#allocation5 + $0x8] ss:$48 sps:$4 sm:$0xff]   ;;  %v18442_v46 = vld [vmem:[#allocation5 + $0x2b0] ss:$48 sps:$4 sm:$0xff]  }
  0xc6   :  { %v18447_v44 = vld [vmem:[#allocation5 + $0x2bc] ss:$48 sps:$4 sm:$0xff]   ;;  %v18445_v47 = vld [vmem:[#allocation5 + $0x2b8] ss:$48 sps:$4 sm:$0xff]   ;;  %v18450_v49 = vld [vmem:[#allocation5 + $0x254] ss:$48 sps:$4 sm:$0xff]  }
  0xc7   :  { %v18453_v50 = vld [vmem:[#allocation5 + $0x25c] ss:$48 sps:$4 sm:$0xff]   ;;  %v18448_v52 = vld [vmem:[#allocation5 + $0x250] ss:$48 sps:$4 sm:$0xff]   ;;  %v18451_v53 = vld [vmem:[#allocation5 + $0x258] ss:$48 sps:$4 sm:$0xff]  }
  0xc8   :  { %1015 = vmatpush1.bf16.msra.mxu1 %v18417_v15  ;;  %v18456_v54 = vld [vmem:[#allocation5 + $0x1f4] ss:$48 sps:$4 sm:$0xff]   ;;  %v18459_v55 = vld [vmem:[#allocation5 + $0x1fc] ss:$48 sps:$4 sm:$0xff]   ;;  %v18454_v56 = vld [vmem:[#allocation5 + $0x1f0] ss:$48 sps:$4 sm:$0xff]  }
  0xc9   :  { %1016 = vmatprep.subr.bf16.mxu1 %v18418_v16  ;;  %v18457_v57 = vld [vmem:[#allocation5 + $0x1f8] ss:$48 sps:$4 sm:$0xff]   ;;  %v18462_v58 = vld [vmem:[#allocation5 + $0x194] ss:$48 sps:$4 sm:$0xff]   ;;  %v18465_v59 = vld [vmem:[#allocation5 + $0x19c] ss:$48 sps:$4 sm:$0xff]  }
  0xca   :  { %v18460_v60 = vld [vmem:[#allocation5 + $0x190] ss:$48 sps:$4 sm:$0xff]   ;;  %v18463_v61 = vld [vmem:[#allocation5 + $0x198] ss:$48 sps:$4 sm:$0xff]   ;;  %v18468_v62 = vld [vmem:[#allocation5 + $0x134] ss:$48 sps:$4 sm:$0xff]  }
  0xcb   :  { %v18471_v63 = vld [vmem:[#allocation5 + $0x13c] ss:$48 sps:$4 sm:$0xff]   ;;  %v18469_v2 = vld [vmem:[#allocation5 + $0x138] ss:$48 sps:$4 sm:$0xff]   ;;  %v18474_v3 = vld [vmem:[#allocation5 + $0xd4] ss:$48 sps:$4 sm:$0xff]  }
  0xcc   :  { %1017 = vmatpush1.bf16.msra.mxu1 %v18423_v17  ;;  %v18477_v4 = vld [vmem:[#allocation5 + $0xdc] ss:$48 sps:$4 sm:$0xff]   ;;  %v18472_v5 = vld [vmem:[#allocation5 + $0xd0] ss:$48 sps:$4 sm:$0xff]   ;;  %v18475_v6 = vld [vmem:[#allocation5 + $0xd8] ss:$48 sps:$4 sm:$0xff]  }
  0xcd   :  { %1018 = vmatprep.subr.bf16.mxu1 %v18424_v18  ;;  %v18480_v7 = vld [vmem:[#allocation5 + $0x74] ss:$48 sps:$4 sm:$0xff]   ;;  %v18483_v8 = vld [vmem:[#allocation5 + $0x7c] ss:$48 sps:$4 sm:$0xff]   ;;  %v18478_v9 = vld [vmem:[#allocation5 + $0x70] ss:$48 sps:$4 sm:$0xff]  }
  0xce   :  { %v18481_v10 = vld [vmem:[#allocation5 + $0x78] ss:$48 sps:$4 sm:$0xff]   ;;  %v18486_v11 = vld [vmem:[#allocation5 + $0x14] ss:$48 sps:$4 sm:$0xff]   ;;  %v18489_v12 = vld [vmem:[#allocation5 + $0x1c] ss:$48 sps:$4 sm:$0xff]  }
  0xcf   :  { %v18484_v13 = vld [vmem:[#allocation5 + $0x10] ss:$48 sps:$4 sm:$0xff]   ;;  %v18487_v14 = vld [vmem:[#allocation5 + $0x18] ss:$48 sps:$4 sm:$0xff]   ;;  %v18492_v15 = vld [vmem:[#allocation5 + $0x2c4] ss:$48 sps:$4 sm:$0xff]  }
  0xd0   :  { %1019 = vmatpush1.bf16.msra.mxu1 %v18429_v19  ;;  %v18495_v16 = vld [vmem:[#allocation5 + $0x2cc] ss:$48 sps:$4 sm:$0xff]   ;;  %v18490_v17 = vld [vmem:[#allocation5 + $0x2c0] ss:$48 sps:$4 sm:$0xff]   ;;  %v18493_v18 = vld [vmem:[#allocation5 + $0x2c8] ss:$48 sps:$4 sm:$0xff]  }
  0xd1   :  { %1020 = vmatprep.subr.bf16.mxu1 %v18430_v20  ;;  %v18498_v19 = vld [vmem:[#allocation5 + $0x264] ss:$48 sps:$4 sm:$0xff]   ;;  %v18501_v20 = vld [vmem:[#allocation5 + $0x26c] ss:$48 sps:$4 sm:$0xff]  }
  0xd4   :  { %1021 = vmatpush1.bf16.msra.mxu1 %v18435_v21  ;;  %v18496_v21 = vld [vmem:[#allocation5 + $0x260] ss:$48 sps:$4 sm:$0xff]  }
  0xd5   :  { %1022 = vmatprep.subr.bf16.mxu1 %v18436_v22  ;;  %v18499_v22 = vld [vmem:[#allocation5 + $0x268] ss:$48 sps:$4 sm:$0xff]  }
  0xd8   :  { %1023 = vmatpush1.bf16.msra.mxu1 %v18441_v23  ;;  %v18504_v23 = vld [vmem:[#allocation5 + $0x204] ss:$48 sps:$4 sm:$0xff]  }
  0xd9   :  { %1090 = vmatprep.subr.bf16.mxu1 %v18444_v43  ;;  %v18534_v43 = vld [vmem:[#allocation5 + $0x24] ss:$48 sps:$4 sm:$0xff]  }
 0x13a   :  { %v281_v28 = vpop.permute.xlu0 %280 }
 0x13b   :  { %vm282_vm2 = vcmp.eq.s32.totalorder %v281_v28, %v278_v25  ;;  %v18507_v25 = vld [vmem:[#allocation5 + $0x20c] ss:$48 sps:$4 sm:$0xff]   ;;  %v18510_v28 = vld [vmem:[#allocation5 + $0x1a4] ss:$48 sps:$4 sm:$0xff]  }
 0x13c   :  { %v16226_v29 = vsel %vm282_vm2, 1.0, %v21924_v1  ;;  %v18466_v1 = vld [vmem:[#allocation5 + $0x130] ss:$48 sps:$4 sm:$0xff]  }
 0x13d   :  { %18367 = vmatmul.mubr.msk.f32.vlgmr.msra.gmra.mxu0 %vm289_vm1, %v16226_v29  ;;  %v18513_v29 = vld [vmem:[#allocation5 + $0x1ac] ss:$48 sps:$4 sm:$0xff]  }
 0x13e   :  { %1050 = vmatpush1.bf16.msra.mxu0 %v18396_v26  ;;  %1081 = vmatprep.mubr.bf16.mxu0 %v21923_v0  ;;  %v18502_v26 = vld [vmem:[#allocation5 + $0x200] ss:$48 sps:$4 sm:$0xff]  }
 0x13f   :  { %1051 = vmatprep.subr.bf16.mxu0 %v18404_v27  ;;  %v18505_v27 = vld [vmem:[#allocation5 + $0x208] ss:$48 sps:$4 sm:$0xff]  }
 0x142   :  { %1052 = vmatpush1.bf16.msra.mxu0 %v18402_v30  ;;  %v18508_v30 = vld [vmem:[#allocation5 + $0x1a0] ss:$48 sps:$4 sm:$0xff]  }
 0x143   :  { %1053 = vmatprep.subr.bf16.mxu0 %v18410_v31  ;;  %v18511_v31 = vld [vmem:[#allocation5 + $0x1a8] ss:$48 sps:$4 sm:$0xff]  }
 0x146   :  { %1054 = vmatpush1.bf16.msra.mxu0 %v18408_v32  ;;  %v18516_v32 = vld [vmem:[#allocation5 + $0x144] ss:$48 sps:$4 sm:$0xff]  }
 0x147   :  { %1055 = vmatprep.subr.bf16.mxu0 %v18416_v33  ;;  %v18519_v33 = vld [vmem:[#allocation5 + $0x14c] ss:$48 sps:$4 sm:$0xff]  }
 0x14a   :  { %1056 = vmatpush1.bf16.msra.mxu0 %v18414_v34  ;;  %v18514_v34 = vld [vmem:[#allocation5 + $0x140] ss:$48 sps:$4 sm:$0xff]  }
 0x14b   :  { %1057 = vmatprep.subr.bf16.mxu0 %v18422_v35  ;;  %v18522_v35 = vld [vmem:[#allocation5 + $0xe4] ss:$48 sps:$4 sm:$0xff]  }
 0x14e   :  { %1058 = vmatpush1.bf16.msra.mxu0 %v18420_v36  ;;  %v18525_v36 = vld [vmem:[#allocation5 + $0xec] ss:$48 sps:$4 sm:$0xff]  }
 0x14f   :  { %1059 = vmatprep.subr.bf16.mxu0 %v18428_v37  ;;  %v18520_v37 = vld [vmem:[#allocation5 + $0xe0] ss:$48 sps:$4 sm:$0xff]  }
 0x152   :  { %1060 = vmatpush1.bf16.msra.mxu0 %v18426_v38  ;;  %v18523_v38 = vld [vmem:[#allocation5 + $0xe8] ss:$48 sps:$4 sm:$0xff]  }
 0x153   :  { %1061 = vmatprep.subr.bf16.mxu0 %v18434_v39  ;;  %v18528_v39 = vld [vmem:[#allocation5 + $0x84] ss:$48 sps:$4 sm:$0xff]  }
 0x156   :  { %1062 = vmatpush1.bf16.msra.mxu0 %v18432_v40  ;;  %v18531_v40 = vld [vmem:[#allocation5 + $0x8c] ss:$48 sps:$4 sm:$0xff]  }
 0x157   :  { %1063 = vmatprep.subr.bf16.mxu0 %v18440_v41  ;;  %v18526_v41 = vld [vmem:[#allocation5 + $0x80] ss:$48 sps:$4 sm:$0xff]  }
 0x15a   :  { %1064 = vmatpush1.bf16.msra.mxu0 %v18438_v42  ;;  %v18529_v42 = vld [vmem:[#allocation5 + $0x88] ss:$48 sps:$4 sm:$0xff]  }
 0x15b   :  { %1131 = vmatprep.subr.bf16.mxu0 %v18447_v44  ;;  %v18537_v44 = vld [vmem:[#allocation5 + $0x2c] ss:$48 sps:$4 sm:$0xff]  }
 0x1fd   :  { %v359_v45 = vpop.f32.mrf.mxu0 }
 0x1fe   :  { %v22091_v48 = vpack.c.bf16 %v359_v45, %v359_v45  ;;  %v18532_v45 = vld [vmem:[#allocation5 + $0x20] ss:$48 sps:$4 sm:$0xff]  }
 0x1ff   :  { %v18368_v51 = vpop.f32.mrf.mxu0 }
 0x200   :  { %1041 = vmatmul.mubr.bf16.vlgmr.msra.gmra.mxu1 %v22091_v48  ;;  %1082 = vmatmul.mubr.bf16.vlgmr.msra.gmra.mxu0 %v22091_v48  ;;  %v255_v51 = vld [vmem:[%s22886_s1 + $0x18] sm:$0xff] }
 0x201   :  { %1091 = vmatpush1.bf16.msra.mxu1 %v18442_v46  ;;  %1132 = vmatpush1.bf16.msra.mxu0 %v18445_v47  ;;  %v18535_v46 = vld [vmem:[#allocation5 + $0x28] ss:$48 sps:$4 sm:$0xff]   ;;  %v18540_v47 = vld [vmem:[#allocation7 + $0x2a4] ss:$48 sps:$4 sm:$0xff]  }
 0x202   :  { %1092 = vmatprep.subr.bf16.mxu1 %v18450_v49  ;;  %1133 = vmatprep.subr.bf16.mxu0 %v18453_v50  ;;  %v18543_v49 = vld [vmem:[#allocation7 + $0x8a4] ss:$48 sps:$4 sm:$0xff]   ;;  %v253_v50 = vld [vmem:[%s22886_s1 + $0x8] sm:$0xff] }
 0x203   :  { %1122 = vmatprep.mubr.bf16.mxu1 %v21923_v0  ;;  %1163 = vmatprep.mubr.bf16.mxu0 %v21923_v0 }
 0x205   :  { %1093 = vmatpush1.bf16.msra.mxu1 %v18448_v52  ;;  %1134 = vmatpush1.bf16.msra.mxu0 %v18451_v53  ;;  %v18538_v52 = vld [vmem:[#allocation7 + $0x2a0] ss:$48 sps:$4 sm:$0xff]  }
 0x206   :  { %1094 = vmatprep.subr.bf16.mxu1 %v18456_v54  ;;  %1135 = vmatprep.subr.bf16.mxu0 %v18459_v55  ;;  %v18541_v53 = vld [vmem:[#allocation7 + $0x8a0] ss:$48 sps:$4 sm:$0xff]   ;;  %v18546_v54 = vld [vmem:[#allocation7 + $0x244] ss:$48 sps:$4 sm:$0xff]  }
 0x207   :  { %v18549_v55 = vld [vmem:[#allocation7 + $0x844] ss:$48 sps:$4 sm:$0xff]  }
 0x209   :  { %1095 = vmatpush1.bf16.msra.mxu1 %v18454_v56  ;;  %1136 = vmatpush1.bf16.msra.mxu0 %v18457_v57  ;;  %v18544_v56 = vld [vmem:[#allocation7 + $0x240] ss:$48 sps:$4 sm:$0xff]  }
 0x20a   :  { %1096 = vmatprep.subr.bf16.mxu1 %v18462_v58  ;;  %1137 = vmatprep.subr.bf16.mxu0 %v18465_v59  ;;  %v18547_v57 = vld [vmem:[#allocation7 + $0x840] ss:$48 sps:$4 sm:$0xff]   ;;  %v22107_v58 = vpack.c.bf16 %v253_v50, %v253_v50  ;;  %v22109_v59 = vpack.c.bf16 %v255_v51, %v255_v51  ;;  %v18633_v50 = vld [vmem:[#allocation7 + $0x904] ss:$48 sps:$4 sm:$0xff]  }
 0x20b   :  { %v18628_v51 = vld [vmem:[#allocation7 + $0x300] ss:$48 sps:$4 sm:$0xff]  }
 0x20d   :  { %1097 = vmatpush1.bf16.msra.mxu1 %v18460_v60  ;;  %1138 = vmatpush1.bf16.msra.mxu0 %v18463_v61  ;;  %v18552_v60 = vld [vmem:[#allocation7 + $0x1e4] ss:$48 sps:$4 sm:$0xff]  }
 0x20e   :  { %1098 = vmatprep.subr.bf16.mxu1 %v18468_v62  ;;  %1139 = vmatprep.subr.bf16.mxu0 %v18471_v63  ;;  %v18555_v61 = vld [vmem:[#allocation7 + $0x7e4] ss:$48 sps:$4 sm:$0xff]   ;;  %v18550_v62 = vld [vmem:[#allocation7 + $0x1e0] ss:$48 sps:$4 sm:$0xff]  }
 0x20f   :  { %v18553_v63 = vld [vmem:[#allocation7 + $0x7e0] ss:$48 sps:$4 sm:$0xff]  }
 0x211   :  { %1099 = vmatpush1.bf16.msra.mxu1 %v18466_v1  ;;  %1140 = vmatpush1.bf16.msra.mxu0 %v18469_v2  ;;  %v18558_v1 = vld [vmem:[#allocation7 + $0x184] ss:$48 sps:$4 sm:$0xff]  }
 0x212   :  { %1100 = vmatprep.subr.bf16.mxu1 %v18474_v3  ;;  %1141 = vmatprep.subr.bf16.mxu0 %v18477_v4  ;;  %v18561_v2 = vld [vmem:[#allocation7 + $0x784] ss:$48 sps:$4 sm:$0xff]   ;;  %v18559_v3 = vld [vmem:[#allocation7 + $0x780] ss:$48 sps:$4 sm:$0xff]  }
 0x213   :  { %v18564_v4 = vld [vmem:[#allocation7 + $0x124] ss:$48 sps:$4 sm:$0xff]  }
 0x215   :  { %1101 = vmatpush1.bf16.msra.mxu1 %v18472_v5  ;;  %1142 = vmatpush1.bf16.msra.mxu0 %v18475_v6  ;;  %v18567_v5 = vld [vmem:[#allocation7 + $0x724] ss:$48 sps:$4 sm:$0xff]   ;;  %v18562_v6 = vld [vmem:[#allocation7 + $0x120] ss:$48 sps:$4 sm:$0xff]  }
 0x216   :  { %1102 = vmatprep.subr.bf16.mxu1 %v18480_v7  ;;  %1143 = vmatprep.subr.bf16.mxu0 %v18483_v8  ;;  %v18565_v7 = vld [vmem:[#allocation7 + $0x720] ss:$48 sps:$4 sm:$0xff]   ;;  %v18570_v8 = vld [vmem:[#allocation7 + $0xc4] ss:$48 sps:$4 sm:$0xff]  }
 0x219   :  { %1103 = vmatpush1.bf16.msra.mxu1 %v18478_v9  ;;  %1144 = vmatpush1.bf16.msra.mxu0 %v18481_v10  ;;  %v18573_v9 = vld [vmem:[#allocation7 + $0x6c4] ss:$48 sps:$4 sm:$0xff]   ;;  %v18568_v10 = vld [vmem:[#allocation7 + $0xc0] ss:$48 sps:$4 sm:$0xff]  }
 0x21a   :  { %1104 = vmatprep.subr.bf16.mxu1 %v18486_v11  ;;  %1145 = vmatprep.subr.bf16.mxu0 %v18489_v12  ;;  %v18571_v11 = vld [vmem:[#allocation7 + $0x6c0] ss:$48 sps:$4 sm:$0xff]   ;;  %v18576_v12 = vld [vmem:[#allocation7 + $0x64] ss:$48 sps:$4 sm:$0xff]  }
 0x21d   :  { %1105 = vmatpush1.bf16.msra.mxu1 %v18484_v13  ;;  %1146 = vmatpush1.bf16.msra.mxu0 %v18487_v14  ;;  %v18579_v13 = vld [vmem:[#allocation7 + $0x664] ss:$48 sps:$4 sm:$0xff]   ;;  %v18574_v14 = vld [vmem:[#allocation7 + $0x60] ss:$48 sps:$4 sm:$0xff]  }
 0x21e   :  { %1172 = vmatprep.subr.bf16.mxu1 %v18492_v15  ;;  %1213 = vmatprep.subr.bf16.mxu0 %v18495_v16  ;;  %v18577_v15 = vld [vmem:[#allocation7 + $0x660] ss:$48 sps:$4 sm:$0xff]   ;;  %v18582_v16 = vld [vmem:[#allocation7 + $0x4] ss:$48 sps:$4 sm:$0xff]  }
 0x220   :  { %1123 = vmatmul.mubr.bf16.vlgmr.msra.gmra.mxu1 %v22091_v48  ;;  %1164 = vmatmul.mubr.bf16.vlgmr.msra.gmra.mxu0 %v22091_v48 }
 0x221   :  { %1173 = vmatpush1.bf16.msra.mxu1 %v18490_v17  ;;  %1214 = vmatpush1.bf16.msra.mxu0 %v18493_v18  ;;  %v18585_v17 = vld [vmem:[#allocation7 + $0x604] ss:$48 sps:$4 sm:$0xff]   ;;  %v18580_v18 = vld [vmem:[#allocation7] ss:$48 sps:$4 sm:$0xff]  }
 0x222   :  { %1174 = vmatprep.subr.bf16.mxu1 %v18498_v19  ;;  %1215 = vmatprep.subr.bf16.mxu0 %v18501_v20  ;;  %v18583_v19 = vld [vmem:[#allocation7 + $0x600] ss:$48 sps:$4 sm:$0xff]   ;;  %v18588_v20 = vld [vmem:[#allocation7 + $0x5a4] ss:$48 sps:$4 sm:$0xff]  }
 0x223   :  { %1204 = vmatprep.mubr.bf16.mxu1 %v21923_v0  ;;  %1245 = vmatprep.mubr.bf16.mxu0 %v21923_v0  ;;  %v18517_v0 = vld [vmem:[#allocation5 + $0x148] ss:$48 sps:$4 sm:$0xff]  }
 0x225   :  { %1175 = vmatpush1.bf16.msra.mxu1 %v18496_v21  ;;  %1216 = vmatpush1.bf16.msra.mxu0 %v18499_v22  ;;  %v18591_v21 = vld [vmem:[#allocation7 + $0xba4] ss:$48 sps:$4 sm:$0xff]   ;;  %v18586_v22 = vld [vmem:[#allocation7 + $0x5a0] ss:$48 sps:$4 sm:$0xff]  }
 0x226   :  { %1176 = vmatprep.subr.bf16.mxu1 %v18504_v23  ;;  %1217 = vmatprep.subr.bf16.mxu0 %v18507_v25  ;;  %v18589_v23 = vld [vmem:[#allocation7 + $0xba0] ss:$48 sps:$4 sm:$0xff]   ;;  %v18594_v25 = vld [vmem:[#allocation7 + $0x544] ss:$48 sps:$4 sm:$0xff]  }
 0x229   :  { %1177 = vmatpush1.bf16.msra.mxu1 %v18502_v26  ;;  %1218 = vmatpush1.bf16.msra.mxu0 %v18505_v27  ;;  %v18597_v26 = vld [vmem:[#allocation7 + $0xb44] ss:$48 sps:$4 sm:$0xff]   ;;  %v18592_v27 = vld [vmem:[#allocation7 + $0x540] ss:$48 sps:$4 sm:$0xff]  }
 0x22a   :  { %1178 = vmatprep.subr.bf16.mxu1 %v18510_v28  ;;  %1219 = vmatprep.subr.bf16.mxu0 %v18513_v29  ;;  %v18595_v28 = vld [vmem:[#allocation7 + $0xb40] ss:$48 sps:$4 sm:$0xff]   ;;  %v18600_v29 = vld [vmem:[#allocation7 + $0x4e4] ss:$48 sps:$4 sm:$0xff]  }
 0x22d   :  { %1179 = vmatpush1.bf16.msra.mxu1 %v18508_v30  ;;  %1220 = vmatpush1.bf16.msra.mxu0 %v18511_v31  ;;  %v18603_v30 = vld [vmem:[#allocation7 + $0xae4] ss:$48 sps:$4 sm:$0xff]   ;;  %v18598_v31 = vld [vmem:[#allocation7 + $0x4e0] ss:$48 sps:$4 sm:$0xff]  }
 0x22e   :  { %1180 = vmatprep.subr.bf16.mxu1 %v18516_v32  ;;  %1221 = vmatprep.subr.bf16.mxu0 %v18519_v33  ;;  %v18601_v32 = vld [vmem:[#allocation7 + $0xae0] ss:$48 sps:$4 sm:$0xff]   ;;  %v18606_v33 = vld [vmem:[#allocation7 + $0x484] ss:$48 sps:$4 sm:$0xff]  }
 0x231   :  { %1181 = vmatpush1.bf16.msra.mxu1 %v18514_v34  ;;  %1222 = vmatpush1.bf16.msra.mxu0 %v18517_v0  ;;  %v18609_v34 = vld [vmem:[#allocation7 + $0xa84] ss:$48 sps:$4 sm:$0xff]   ;;  %v18604_v0 = vld [vmem:[#allocation7 + $0x480] ss:$48 sps:$4 sm:$0xff]  }
 0x232   :  { %1182 = vmatprep.subr.bf16.mxu1 %v18522_v35  ;;  %1223 = vmatprep.subr.bf16.mxu0 %v18525_v36  ;;  %v18607_v35 = vld [vmem:[#allocation7 + $0xa80] ss:$48 sps:$4 sm:$0xff]   ;;  %v18612_v36 = vld [vmem:[#allocation7 + $0x424] ss:$48 sps:$4 sm:$0xff]  }
 0x235   :  { %1183 = vmatpush1.bf16.msra.mxu1 %v18520_v37  ;;  %1224 = vmatpush1.bf16.msra.mxu0 %v18523_v38  ;;  %v18615_v37 = vld [vmem:[#allocation7 + $0xa24] ss:$48 sps:$4 sm:$0xff]   ;;  %v18610_v38 = vld [vmem:[#allocation7 + $0x420] ss:$48 sps:$4 sm:$0xff]  }
 0x236   :  { %1184 = vmatprep.subr.bf16.mxu1 %v18528_v39  ;;  %1225 = vmatprep.subr.bf16.mxu0 %v18531_v40  ;;  %v18613_v39 = vld [vmem:[#allocation7 + $0xa20] ss:$48 sps:$4 sm:$0xff]   ;;  %v18618_v40 = vld [vmem:[#allocation7 + $0x3c4] ss:$48 sps:$4 sm:$0xff]  }
 0x239   :  { %1185 = vmatpush1.bf16.msra.mxu1 %v18526_v41  ;;  %1226 = vmatpush1.bf16.msra.mxu0 %v18529_v42  ;;  %v18621_v41 = vld [vmem:[#allocation7 + $0x9c4] ss:$48 sps:$4 sm:$0xff]   ;;  %v18616_v42 = vld [vmem:[#allocation7 + $0x3c0] ss:$48 sps:$4 sm:$0xff]  }
 0x23a   :  { %1186 = vmatprep.subr.bf16.mxu1 %v18534_v43  ;;  %1227 = vmatprep.subr.bf16.mxu0 %v18537_v44  ;;  %v18619_v43 = vld [vmem:[#allocation7 + $0x9c0] ss:$48 sps:$4 sm:$0xff]   ;;  %v18624_v44 = vld [vmem:[#allocation7 + $0x364] ss:$48 sps:$4 sm:$0xff]  }
 0x23d   :  { %1187 = vmatpush1.bf16.msra.mxu1 %v18532_v45  ;;  %1228 = vmatpush1.bf16.msra.mxu0 %v18535_v46  ;;  %v18627_v45 = vld [vmem:[#allocation7 + $0x964] ss:$48 sps:$4 sm:$0xff]   ;;  %v18622_v46 = vld [vmem:[#allocation7 + $0x360] ss:$48 sps:$4 sm:$0xff]  }
 0x23e   :  { %3626 = vmatprep.subr.bf16.mxu1 %v18540_v47  ;;  %3667 = vmatprep.subr.bf16.mxu0 %v18543_v49  ;;  %v18625_v47 = vld [vmem:[#allocation7 + $0x960] ss:$48 sps:$4 sm:$0xff]   ;;  %v18630_v49 = vld [vmem:[#allocation7 + $0x304] ss:$48 sps:$4 sm:$0xff]  }
 0x240   :  { %1205 = vmatmul.mubr.bf16.vlgmr.msra.gmra.mxu1 %v22091_v48  ;;  %1246 = vmatmul.mubr.bf16.vlgmr.msra.gmra.mxu0 %v22091_v48  ;;  %v18556_v48 = vld [vmem:[#allocation7 + $0x180] ss:$48 sps:$4 sm:$0xff]  }
 0x241   :  { %3627 = vmatpush1.bf16.msra.mxu1 %v18538_v52  ;;  %3668 = vmatpush1.bf16.msra.mxu0 %v18541_v53  ;;  %v18631_v52 = vld [vmem:[#allocation7 + $0x900] ss:$48 sps:$4 sm:$0xff]  }
 0x242   :  { %3628 = vmatprep.subr.bf16.mxu1 %v18546_v54  ;;  %3669 = vmatprep.subr.bf16.mxu0 %v18549_v55  ;;  %v252_v53 = vld [vmem:[%s22886_s1] sm:$0xff]  ;;  %v254_v54 = vld [vmem:[%s22886_s1 + $0x10] sm:$0xff]  ;;  %v18636_v55 = vld [vmem:[#allocation7 + $0x2ac] ss:$48 sps:$4 sm:$0xff]  }
 0x243   :  { %3658 = vmatprep.mubr.bf16.mxu1 %v22107_v58  ;;  %3699 = vmatprep.mubr.bf16.mxu0 %v22109_v59 }
 0x245   :  { %3629 = vmatpush1.bf16.msra.mxu1 %v18544_v56  ;;  %3670 = vmatpush1.bf16.msra.mxu0 %v18547_v57  ;;  %v18639_v56 = vld [vmem:[#allocation7 + $0x8ac] ss:$48 sps:$4 sm:$0xff]   ;;  %v18634_v57 = vld [vmem:[#allocation7 + $0x2a8] ss:$48 sps:$4 sm:$0xff]  }
 0x246   :  { %3630 = vmatprep.subr.bf16.mxu1 %v18552_v60  ;;  %3671 = vmatprep.subr.bf16.mxu0 %v18555_v61  ;;  %v22121_v60 = vpack.c.bf16 %v252_v53, %v252_v53  ;;  %v22123_v61 = vpack.c.bf16 %v254_v54, %v254_v54  ;;  %v18723_v53 = vld [vmem:[#allocation7 + $0x96c] ss:$48 sps:$4 sm:$0xff]   ;;  %v22130_v54 = vshrl.u32 %v277_v24, 7  ;;  %v18735_v24 = vld [vmem:[#allocation7 + $0x8b4] ss:$48 sps:$4 sm:$0xff]  }
 0x249   :  { %3631 = vmatpush1.bf16.msra.mxu1 %v18550_v62  ;;  %3672 = vmatpush1.bf16.msra.mxu0 %v18553_v63  ;;  %v18637_v62 = vld [vmem:[#allocation7 + $0x8a8] ss:$48 sps:$4 sm:$0xff]   ;;  %v18642_v63 = vld [vmem:[#allocation7 + $0x24c] ss:$48 sps:$4 sm:$0xff]  }
 0x24a   :  { %3632 = vmatprep.subr.bf16.mxu1 %v18558_v1  ;;  %3673 = vmatprep.subr.bf16.mxu0 %v18561_v2  ;;  %v18645_v1 = vld [vmem:[#allocation7 + $0x84c] ss:$48 sps:$4 sm:$0xff]   ;;  %v18640_v2 = vld [vmem:[#allocation7 + $0x248] ss:$48 sps:$4 sm:$0xff]  }
 0x24d   :  { %3633 = vmatpush1.bf16.msra.mxu1 %v18556_v48  ;;  %3674 = vmatpush1.bf16.msra.mxu0 %v18559_v3  ;;  %v18643_v48 = vld [vmem:[#allocation7 + $0x848] ss:$48 sps:$4 sm:$0xff]   ;;  %v18648_v3 = vld [vmem:[#allocation7 + $0x1ec] ss:$48 sps:$4 sm:$0xff]  }
 0x24e   :  { %3634 = vmatprep.subr.bf16.mxu1 %v18564_v4  ;;  %3675 = vmatprep.subr.bf16.mxu0 %v18567_v5  ;;  %v18651_v4 = vld [vmem:[#allocation7 + $0x7ec] ss:$48 sps:$4 sm:$0xff]   ;;  %v18646_v5 = vld [vmem:[#allocation7 + $0x1e8] ss:$48 sps:$4 sm:$0xff]  }
 0x251   :  { %3635 = vmatpush1.bf16.msra.mxu1 %v18562_v6  ;;  %3676 = vmatpush1.bf16.msra.mxu0 %v18565_v7  ;;  %v18649_v6 = vld [vmem:[#allocation7 + $0x7e8] ss:$48 sps:$4 sm:$0xff]   ;;  %v18654_v7 = vld [vmem:[#allocation7 + $0x18c] ss:$48 sps:$4 sm:$0xff]  }
 0x252   :  { %3636 = vmatprep.subr.bf16.mxu1 %v18570_v8  ;;  %3677 = vmatprep.subr.bf16.mxu0 %v18573_v9  ;;  %v18657_v8 = vld [vmem:[#allocation7 + $0x78c] ss:$48 sps:$4 sm:$0xff]   ;;  %v18652_v9 = vld [vmem:[#allocation7 + $0x188] ss:$48 sps:$4 sm:$0xff]  }
 0x255   :  { %3637 = vmatpush1.bf16.msra.mxu1 %v18568_v10  ;;  %3678 = vmatpush1.bf16.msra.mxu0 %v18571_v11  ;;  %v18655_v10 = vld [vmem:[#allocation7 + $0x788] ss:$48 sps:$4 sm:$0xff]   ;;  %v18660_v11 = vld [vmem:[#allocation7 + $0x12c] ss:$48 sps:$4 sm:$0xff]  }
 0x256   :  { %3638 = vmatprep.subr.bf16.mxu1 %v18576_v12  ;;  %3679 = vmatprep.subr.bf16.mxu0 %v18579_v13  ;;  %v18663_v12 = vld [vmem:[#allocation7 + $0x72c] ss:$48 sps:$4 sm:$0xff]   ;;  %v18658_v13 = vld [vmem:[#allocation7 + $0x128] ss:$48 sps:$4 sm:$0xff]  }
 0x259   :  { %3639 = vmatpush1.bf16.msra.mxu1 %v18574_v14  ;;  %3680 = vmatpush1.bf16.msra.mxu0 %v18577_v15  ;;  %v18661_v14 = vld [vmem:[#allocation7 + $0x728] ss:$48 sps:$4 sm:$0xff]   ;;  %v18666_v15 = vld [vmem:[#allocation7 + $0xcc] ss:$48 sps:$4 sm:$0xff]  }
 0x25a   :  { %3640 = vmatprep.subr.bf16.mxu1 %v18582_v16  ;;  %3681 = vmatprep.subr.bf16.mxu0 %v18585_v17  ;;  %v18669_v16 = vld [vmem:[#allocation7 + $0x6cc] ss:$48 sps:$4 sm:$0xff]   ;;  %v18664_v17 = vld [vmem:[#allocation7 + $0xc8] ss:$48 sps:$4 sm:$0xff]  }
 0x25d   :  { %3641 = vmatpush1.bf16.msra.mxu1 %v18580_v18  ;;  %3682 = vmatpush1.bf16.msra.mxu0 %v18583_v19  ;;  %v18667_v18 = vld [vmem:[#allocation7 + $0x6c8] ss:$48 sps:$4 sm:$0xff]   ;;  %v18672_v19 = vld [vmem:[#allocation7 + $0x6c] ss:$48 sps:$4 sm:$0xff]  }
 0x25e   :  { %3642 = vmatprep.subr.bf16.mxu1 %v18588_v20  ;;  %3683 = vmatprep.subr.bf16.mxu0 %v18591_v21  ;;  %v18675_v20 = vld [vmem:[#allocation7 + $0x66c] ss:$48 sps:$4 sm:$0xff]   ;;  %v18670_v21 = vld [vmem:[#allocation7 + $0x68] ss:$48 sps:$4 sm:$0xff]  }
 0x261   :  { %3643 = vmatpush2.bf16.msra.mxu1 %v18586_v22  ;;  %3684 = vmatpush2.bf16.msra.mxu0 %v18589_v23  ;;  %v18673_v22 = vld [vmem:[#allocation7 + $0x668] ss:$48 sps:$4 sm:$0xff]   ;;  %v18678_v23 = vld [vmem:[#allocation7 + $0xc] ss:$48 sps:$4 sm:$0xff]  }
 0x262   :  { %3644 = vmatprep.subr.bf16.mxu1 %v18594_v25  ;;  %3685 = vmatprep.subr.bf16.mxu0 %v18597_v26  ;;  %v18681_v25 = vld [vmem:[#allocation7 + $0x60c] ss:$48 sps:$4 sm:$0xff]   ;;  %v18676_v26 = vld [vmem:[#allocation7 + $0x8] ss:$48 sps:$4 sm:$0xff]  }
 0x265   :  { %3645 = vmatpush2.bf16.msra.mxu1 %v18592_v27  ;;  %3686 = vmatpush2.bf16.msra.mxu0 %v18595_v28  ;;  %v18679_v27 = vld [vmem:[#allocation7 + $0x608] ss:$48 sps:$4 sm:$0xff]   ;;  %v18684_v28 = vld [vmem:[#allocation7 + $0x5ac] ss:$48 sps:$4 sm:$0xff]  }
 0x266   :  { %3646 = vmatprep.subr.bf16.mxu1 %v18600_v29  ;;  %3687 = vmatprep.subr.bf16.mxu0 %v18603_v30  ;;  %v18687_v29 = vld [vmem:[#allocation7 + $0xbac] ss:$48 sps:$4 sm:$0xff]   ;;  %v18682_v30 = vld [vmem:[#allocation7 + $0x5a8] ss:$48 sps:$4 sm:$0xff]  }
 0x269   :  { %3647 = vmatpush2.bf16.msra.mxu1 %v18598_v31  ;;  %3688 = vmatpush2.bf16.msra.mxu0 %v18601_v32  ;;  %v18685_v31 = vld [vmem:[#allocation7 + $0xba8] ss:$48 sps:$4 sm:$0xff]   ;;  %v18690_v32 = vld [vmem:[#allocation7 + $0x54c] ss:$48 sps:$4 sm:$0xff]  }
 0x26a   :  { %3648 = vmatprep.subr.bf16.mxu1 %v18606_v33  ;;  %3689 = vmatprep.subr.bf16.mxu0 %v18609_v34  ;;  %v18693_v33 = vld [vmem:[#allocation7 + $0xb4c] ss:$48 sps:$4 sm:$0xff]   ;;  %v18688_v34 = vld [vmem:[#allocation7 + $0x548] ss:$48 sps:$4 sm:$0xff]  }
 0x26d   :  { %3649 = vmatpush2.bf16.msra.mxu1 %v18604_v0  ;;  %3690 = vmatpush2.bf16.msra.mxu0 %v18607_v35  ;;  %v18691_v0 = vld [vmem:[#allocation7 + $0xb48] ss:$48 sps:$4 sm:$0xff]   ;;  %v18696_v35 = vld [vmem:[#allocation7 + $0x4ec] ss:$48 sps:$4 sm:$0xff]  }
 0x26e   :  { %3650 = vmatprep.subr.bf16.mxu1 %v18612_v36  ;;  %3691 = vmatprep.subr.bf16.mxu0 %v18615_v37  ;;  %v18699_v36 = vld [vmem:[#allocation7 + $0xaec] ss:$48 sps:$4 sm:$0xff]   ;;  %v18694_v37 = vld [vmem:[#allocation7 + $0x4e8] ss:$48 sps:$4 sm:$0xff]  }
 0x271   :  { %3651 = vmatpush2.bf16.msra.mxu1 %v18610_v38  ;;  %3692 = vmatpush2.bf16.msra.mxu0 %v18613_v39  ;;  %v18697_v38 = vld [vmem:[#allocation7 + $0xae8] ss:$48 sps:$4 sm:$0xff]   ;;  %v18702_v39 = vld [vmem:[#allocation7 + $0x48c] ss:$48 sps:$4 sm:$0xff]  }
 0x272   :  { %3652 = vmatprep.subr.bf16.mxu1 %v18618_v40  ;;  %3693 = vmatprep.subr.bf16.mxu0 %v18621_v41  ;;  %v18705_v40 = vld [vmem:[#allocation7 + $0xa8c] ss:$48 sps:$4 sm:$0xff]   ;;  %v18700_v41 = vld [vmem:[#allocation7 + $0x488] ss:$48 sps:$4 sm:$0xff]  }
 0x275   :  { %3653 = vmatpush2.bf16.msra.mxu1 %v18616_v42  ;;  %3694 = vmatpush2.bf16.msra.mxu0 %v18619_v43  ;;  %v18703_v42 = vld [vmem:[#allocation7 + $0xa88] ss:$48 sps:$4 sm:$0xff]   ;;  %v18708_v43 = vld [vmem:[#allocation7 + $0x42c] ss:$48 sps:$4 sm:$0xff]  }
 0x276   :  { %3654 = vmatprep.subr.bf16.mxu1 %v18624_v44  ;;  %3695 = vmatprep.subr.bf16.mxu0 %v18627_v45  ;;  %v18711_v44 = vld [vmem:[#allocation7 + $0xa2c] ss:$48 sps:$4 sm:$0xff]   ;;  %v18706_v45 = vld [vmem:[#allocation7 + $0x428] ss:$48 sps:$4 sm:$0xff]  }
 0x279   :  { %3655 = vmatpush2.bf16.msra.mxu1 %v18622_v46  ;;  %3696 = vmatpush2.bf16.msra.mxu0 %v18625_v47  ;;  %v18709_v46 = vld [vmem:[#allocation7 + $0xa28] ss:$48 sps:$4 sm:$0xff]   ;;  %v18714_v47 = vld [vmem:[#allocation7 + $0x3cc] ss:$48 sps:$4 sm:$0xff]  }
 0x27a   :  { %3656 = vmatprep.subr.bf16.mxu1 %v18630_v49  ;;  %3697 = vmatprep.subr.bf16.mxu0 %v18633_v50  ;;  %v18717_v49 = vld [vmem:[#allocation7 + $0x9cc] ss:$48 sps:$4 sm:$0xff]   ;;  %v18712_v50 = vld [vmem:[#allocation7 + $0x3c8] ss:$48 sps:$4 sm:$0xff]  }
 0x27d   :  { %3657 = vmatpush2.bf16.msra.mxu1 %v18628_v51  ;;  %3698 = vmatpush2.bf16.msra.mxu0 %v18631_v52  ;;  %v18715_v51 = vld [vmem:[#allocation7 + $0x9c8] ss:$48 sps:$4 sm:$0xff]   ;;  %v18720_v52 = vld [vmem:[#allocation7 + $0x36c] ss:$48 sps:$4 sm:$0xff]  }
 0x27e   :  { %3708 = vmatprep.subr.bf16.mxu1 %v18636_v55  ;;  %3749 = vmatprep.subr.bf16.mxu0 %v18639_v56  ;;  %v18718_v55 = vld [vmem:[#allocation7 + $0x368] ss:$48 sps:$4 sm:$0xff]  }
 0x27f   :  { %v18721_v56 = vld [vmem:[#allocation7 + $0x968] ss:$48 sps:$4 sm:$0xff]  }
 0x280   :  { %3659 = vmatmul.mubr.bf16.vlgmr.msra.gmra.mxu1 %v22121_v60  ;;  %3700 = vmatmul.mubr.bf16.vlgmr.msra.gmra.mxu0 %v22123_v61 }
 0x281   :  { %3709 = vmatpush1.bf16.msra.mxu1 %v18634_v57  ;;  %3750 = vmatpush1.bf16.msra.mxu0 %v18637_v62  ;;  %v18726_v57 = vld [vmem:[#allocation7 + $0x30c] ss:$48 sps:$4 sm:$0xff]  }
 0x282   :  { %3710 = vmatprep.subr.bf16.mxu1 %v18642_v63  ;;  %3751 = vmatprep.subr.bf16.mxu0 %v18645_v1  ;;  %v18729_v62 = vld [vmem:[#allocation7 + $0x90c] ss:$48 sps:$4 sm:$0xff]   ;;  %v18724_v63 = vld [vmem:[#allocation7 + $0x308] ss:$48 sps:$4 sm:$0xff]  }
 0x283   :  { %3740 = vmatprep.mubr.bf16.mxu1 %v22107_v58  ;;  %3781 = vmatprep.mubr.bf16.mxu0 %v22109_v59  ;;  %v18727_v1 = vld [vmem:[#allocation7 + $0x908] ss:$48 sps:$4 sm:$0xff]  }
 0x285   :  { %3711 = vmatpush1.bf16.msra.mxu1 %v18640_v2  ;;  %3752 = vmatpush1.bf16.msra.mxu0 %v18643_v48  ;;  %v18732_v2 = vld [vmem:[#allocation7 + $0x2b4] ss:$48 sps:$4 sm:$0xff]   ;;  %v22133_v48 = vsub.s32 2, %v22130_v54 }
 0x286   :  { %3712 = vmatprep.subr.bf16.mxu1 %v18648_v3  ;;  %3753 = vmatprep.subr.bf16.mxu0 %v18651_v4  ;;  %v22135_v3 = vld [vmem:[#allocation8] sm:$0xff] }
 0x287   :  { %v18730_v4 = vld [vmem:[#allocation7 + $0x2b0] ss:$48 sps:$4 sm:$0xff]  }
 0x289   :  { %3713 = vmatpush1.bf16.msra.mxu1 %v18646_v5  ;;  %3754 = vmatpush1.bf16.msra.mxu0 %v18649_v6  ;;  %v22138_v5 = vsub.s32 3, %v22130_v54  ;;  %v18733_v6 = vld [vmem:[#allocation7 + $0x8b0] ss:$48 sps:$4 sm:$0xff]  }
 0x28a   :  { %3714 = vmatprep.subr.bf16.mxu1 %v18654_v7  ;;  %3755 = vmatprep.subr.bf16.mxu0 %v18657_v8  ;;  %v479_v7 = vrot.slane %v22135_v3, %v22133_v48  ;;  %v18738_v8 = vld [vmem:[#allocation7 + $0x254] ss:$48 sps:$4 sm:$0xff]  }
 0x28d   :  { %3715 = vmatpush1.bf16.msra.mxu1 %v18652_v9  ;;  %3756 = vmatpush1.bf16.msra.mxu0 %v18655_v10  ;;  %v18741_v9 = vld [vmem:[#allocation7 + $0x854] ss:$48 sps:$4 sm:$0xff]   ;;  %v483_v10 = vrot.slane %v22135_v3, %v22138_v5 }
 0x28e   :  { %3716 = vmatprep.subr.bf16.mxu1 %v18660_v11  ;;  %3757 = vmatprep.subr.bf16.mxu0 %v18663_v12  ;;  %v18736_v11 = vld [vmem:[#allocation7 + $0x250] ss:$48 sps:$4 sm:$0xff]  }
 0x28f   :  { %v18739_v12 = vld [vmem:[#allocation7 + $0x850] ss:$48 sps:$4 sm:$0xff]  }
 0x291   :  { %3717 = vmatpush1.bf16.msra.mxu1 %v18658_v13  ;;  %3758 = vmatpush1.bf16.msra.mxu0 %v18661_v14 }
 0x292   :  { %3718 = vmatprep.subr.bf16.mxu1 %v18666_v15  ;;  %3759 = vmatprep.subr.bf16.mxu0 %v18669_v16 }
 0x295   :  { %3719 = vmatpush1.bf16.msra.mxu1 %v18664_v17  ;;  %3760 = vmatpush1.bf16.msra.mxu0 %v18667_v18  ;;  %v18744_v18 = vld [vmem:[#allocation7 + $0x1f4] ss:$48 sps:$4 sm:$0xff]  }
 0x296   :  { %3720 = vmatprep.subr.bf16.mxu1 %v18672_v19  ;;  %3761 = vmatprep.subr.bf16.mxu0 %v18675_v20  ;;  %v18747_v19 = vld [vmem:[#allocation7 + $0x7f4] ss:$48 sps:$4 sm:$0xff]  }
 0x299   :  { %3721 = vmatpush1.bf16.msra.mxu1 %v18670_v21  ;;  %3762 = vmatpush1.bf16.msra.mxu0 %v18673_v22  ;;  %v18742_v21 = vld [vmem:[#allocation7 + $0x1f0] ss:$48 sps:$4 sm:$0xff]  }
 0x29a   :  { %3722 = vmatprep.subr.bf16.mxu1 %v18678_v23  ;;  %3763 = vmatprep.subr.bf16.mxu0 %v18681_v25  ;;  %v18745_v22 = vld [vmem:[#allocation7 + $0x7f0] ss:$48 sps:$4 sm:$0xff]  }
 0x29d   :  { %3723 = vmatpush1.bf16.msra.mxu1 %v18676_v26  ;;  %3764 = vmatpush1.bf16.msra.mxu0 %v18679_v27 }
 0x29e   :  { %3724 = vmatprep.subr.bf16.mxu1 %v18684_v28  ;;  %3765 = vmatprep.subr.bf16.mxu0 %v18687_v29  ;;  %v18750_v28 = vld [vmem:[#allocation7 + $0x194] ss:$48 sps:$4 sm:$0xff]  }
 0x29f   :  { %v18753_v29 = vld [vmem:[#allocation7 + $0x794] ss:$48 sps:$4 sm:$0xff]  }
 0x2a1   :  { %3725 = vmatpush2.bf16.msra.mxu1 %v18682_v30  ;;  %3766 = vmatpush2.bf16.msra.mxu0 %v18685_v31  ;;  %v18748_v30 = vld [vmem:[#allocation7 + $0x190] ss:$48 sps:$4 sm:$0xff]  }
 0x2a2   :  { %3726 = vmatprep.subr.bf16.mxu1 %v18690_v32  ;;  %3767 = vmatprep.subr.bf16.mxu0 %v18693_v33  ;;  %v18751_v31 = vld [vmem:[#allocation7 + $0x790] ss:$48 sps:$4 sm:$0xff]   ;;  %v18756_v32 = vld [vmem:[#allocation7 + $0x134] ss:$48 sps:$4 sm:$0xff]  }
 0x2a3   :  { %v18759_v33 = vld [vmem:[#allocation7 + $0x734] ss:$48 sps:$4 sm:$0xff]  }
 0x2a5   :  { %3727 = vmatpush2.bf16.msra.mxu1 %v18688_v34  ;;  %3768 = vmatpush2.bf16.msra.mxu0 %v18691_v0  ;;  %v18754_v34 = vld [vmem:[#allocation7 + $0x130] ss:$48 sps:$4 sm:$0xff]  }
 0x2a6   :  { %3728 = vmatprep.subr.bf16.mxu1 %v18696_v35  ;;  %3769 = vmatprep.subr.bf16.mxu0 %v18699_v36  ;;  %v18757_v0 = vld [vmem:[#allocation7 + $0x730] ss:$48 sps:$4 sm:$0xff]   ;;  %v18762_v35 = vld [vmem:[#allocation7 + $0xd4] ss:$48 sps:$4 sm:$0xff]  }
 0x2a7   :  { %v18765_v36 = vld [vmem:[#allocation7 + $0x6d4] ss:$48 sps:$4 sm:$0xff]  }
 0x2a9   :  { %3729 = vmatpush2.bf16.msra.mxu1 %v18694_v37  ;;  %3770 = vmatpush2.bf16.msra.mxu0 %v18697_v38  ;;  %v18760_v37 = vld [vmem:[#allocation7 + $0xd0] ss:$48 sps:$4 sm:$0xff]  }
 0x2aa   :  { %3730 = vmatprep.subr.bf16.mxu1 %v18702_v39  ;;  %3771 = vmatprep.subr.bf16.mxu0 %v18705_v40  ;;  %v18763_v38 = vld [vmem:[#allocation7 + $0x6d0] ss:$48 sps:$4 sm:$0xff]   ;;  %v18768_v39 = vld [vmem:[#allocation7 + $0x74] ss:$48 sps:$4 sm:$0xff]  }
 0x2ab   :  { %v18771_v40 = vld [vmem:[#allocation7 + $0x674] ss:$48 sps:$4 sm:$0xff]  }
 0x2ad   :  { %3731 = vmatpush2.bf16.msra.mxu1 %v18700_v41  ;;  %3772 = vmatpush2.bf16.msra.mxu0 %v18703_v42  ;;  %v18766_v41 = vld [vmem:[#allocation7 + $0x70] ss:$48 sps:$4 sm:$0xff]  }
 0x2ae   :  { %3732 = vmatprep.subr.bf16.mxu1 %v18708_v43  ;;  %3773 = vmatprep.subr.bf16.mxu0 %v18711_v44  ;;  %v18769_v42 = vld [vmem:[#allocation7 + $0x670] ss:$48 sps:$4 sm:$0xff]   ;;  %v18774_v43 = vld [vmem:[#allocation7 + $0x14] ss:$48 sps:$4 sm:$0xff]  }
 0x2af   :  { %v18777_v44 = vld [vmem:[#allocation7 + $0x614] ss:$48 sps:$4 sm:$0xff]  }
 0x2b1   :  { %3733 = vmatpush2.bf16.msra.mxu1 %v18706_v45  ;;  %3774 = vmatpush2.bf16.msra.mxu0 %v18709_v46  ;;  %v18772_v45 = vld [vmem:[#allocation7 + $0x10] ss:$48 sps:$4 sm:$0xff]  }
 0x2b2   :  { %3734 = vmatprep.subr.bf16.mxu1 %v18714_v47  ;;  %3775 = vmatprep.subr.bf16.mxu0 %v18717_v49  ;;  %v18775_v46 = vld [vmem:[#allocation7 + $0x610] ss:$48 sps:$4 sm:$0xff]   ;;  %v22157_v47 = vsub.s32 6, %v22130_v54  ;;  %v18780_v49 = vld [vmem:[#allocation7 + $0x5b4] ss:$48 sps:$4 sm:$0xff]  }
 0x2b5   :  { %3735 = vmatpush2.bf16.msra.mxu1 %v18712_v50  ;;  %3776 = vmatpush2.bf16.msra.mxu0 %v18715_v51  ;;  %v18783_v50 = vld [vmem:[#allocation7 + $0xbb4] ss:$48 sps:$4 sm:$0xff]   ;;  %v22160_v51 = vsub.s32 7, %v22130_v54 }
 0x2b6   :  { %3736 = vmatprep.subr.bf16.mxu1 %v18720_v52  ;;  %3777 = vmatprep.subr.bf16.mxu0 %v18723_v53  ;;  %v495_v52 = vrot.slane %v22135_v3, %v22157_v47  ;;  %v18778_v53 = vld [vmem:[#allocation7 + $0x5b0] ss:$48 sps:$4 sm:$0xff]  }
 0x2b9   :  { %3737 = vmatpush2.bf16.msra.mxu1 %v18718_v55  ;;  %3778 = vmatpush2.bf16.msra.mxu0 %v18721_v56  ;;  %v18781_v55 = vld [vmem:[#allocation7 + $0xbb0] ss:$48 sps:$4 sm:$0xff]   ;;  %v18786_v56 = vld [vmem:[#allocation7 + $0x554] ss:$48 sps:$4 sm:$0xff]  }
 0x2ba   :  { %3738 = vmatprep.subr.bf16.mxu1 %v18726_v57  ;;  %3779 = vmatprep.subr.bf16.mxu0 %v18729_v62  ;;  %v18789_v57 = vld [vmem:[#allocation7 + $0xb54] ss:$48 sps:$4 sm:$0xff]   ;;  %v499_v62 = vrot.slane %v22135_v3, %v22160_v51 }
 0x2bd   :  { %3739 = vmatpush2.bf16.msra.mxu1 %v18724_v63  ;;  %3780 = vmatpush2.bf16.msra.mxu0 %v18727_v1 }
 0x2be   :  { %3790 = vmatprep.subr.bf16.mxu1 %v18732_v2  ;;  %3831 = vmatprep.subr.bf16.mxu0 %v18735_v24  ;;  %v18784_v24 = vld [vmem:[#allocation7 + $0x550] ss:$48 sps:$4 sm:$0xff]  }
 0x2c0   :  { %3741 = vmatmul.mubr.bf16.vlgmr.msra.gmra.mxu1 %v22121_v60  ;;  %3782 = vmatmul.mubr.bf16.vlgmr.msra.gmra.mxu0 %v22123_v61  ;;  %v22146_v13 = vpop.f32.mrf.mxu1  ;;  %v1083_v14 = vpop.f32.mrf.mxu0 }
 0x2c1   :  { %v22148_v15 = vadd.f32 %v1083_v14, %v479_v7  ;;  %3791 = vmatpush1.bf16.msra.mxu1 %v18730_v4  ;;  %3832 = vmatpush1.bf16.msra.mxu0 %v18733_v6  ;;  %v18787_v4 = vld [vmem:[#allocation7 + $0xb50] ss:$48 sps:$4 sm:$0xff]  }
 0x2c2   :  { %v22150_v16 = vpop.f32.mrf.mxu1  ;;  %v1085_v17 = vpop.f32.mrf.mxu0  ;;  %3792 = vmatprep.subr.bf16.mxu1 %v18738_v8  ;;  %3833 = vmatprep.subr.bf16.mxu0 %v18741_v9  ;;  %v18792_v8 = vld [vmem:[#allocation7 + $0x4f4] ss:$48 sps:$4 sm:$0xff]   ;;  %v18793_v14 = vld [vmem:[#allocation7 + $0xaf0] ss:$48 sps:$4 sm:$0xff]  }
 0x2c3   :  { %v22152_v20 = vadd.f32 %v1085_v17, %v483_v10  ;;  %3822 = vmatprep.mubr.bf16.mxu1 %v22107_v58  ;;  %3863 = vmatprep.mubr.bf16.mxu0 %v22109_v59  ;;  %v18795_v9 = vld [vmem:[#allocation7 + $0xaf4] ss:$48 sps:$4 sm:$0xff]  }
 0x2c4   :  { %v1046_v23 = vpop.f32.mrf.mxu1  ;;  %v1087_v25 = vpop.f32.mrf.mxu0 }
 0x2c5   :  { %3793 = vmatpush1.bf16.msra.mxu1 %v18736_v11  ;;  %3834 = vmatpush1.bf16.msra.mxu0 %v18739_v12  ;;  %v18790_v12 = vld [vmem:[#allocation7 + $0x4f0] ss:$48 sps:$4 sm:$0xff]   ;;  %v18804_v25 = vld [vmem:[#allocation7 + $0x434] ss:$48 sps:$4 sm:$0xff]  }
 0x2c6   :  { %v1047_v26 = vpop.f32.mrf.mxu1  ;;  %v1088_v27 = vpop.f32.mrf.mxu0  ;;  %3794 = vmatprep.subr.bf16.mxu1 %v18744_v18  ;;  %3835 = vmatprep.subr.bf16.mxu0 %v18747_v19  ;;  %v18798_v19 = vld [vmem:[#allocation7 + $0x494] ss:$48 sps:$4 sm:$0xff]   ;;  %v18799_v23 = vld [vmem:[#allocation7 + $0xa90] ss:$48 sps:$4 sm:$0xff]  }
 0x2c7   :  { %v18807_v26 = vld [vmem:[#allocation7 + $0xa34] ss:$48 sps:$4 sm:$0xff]   ;;  %v18802_v27 = vld [vmem:[#allocation7 + $0x430] ss:$48 sps:$4 sm:$0xff]  }
 0x2c9   :  { %3795 = vmatpush1.bf16.msra.mxu1 %v18742_v21  ;;  %3836 = vmatpush1.bf16.msra.mxu0 %v18745_v22  ;;  %v18801_v21 = vld [vmem:[#allocation7 + $0xa94] ss:$48 sps:$4 sm:$0xff]   ;;  %v18796_v22 = vld [vmem:[#allocation7 + $0x490] ss:$48 sps:$4 sm:$0xff]  }
 0x2ca   :  { %3796 = vmatprep.subr.bf16.mxu1 %v18750_v28  ;;  %3837 = vmatprep.subr.bf16.mxu0 %v18753_v29  ;;  %v18805_v28 = vld [vmem:[#allocation7 + $0xa30] ss:$48 sps:$4 sm:$0xff]   ;;  %v18810_v29 = vld [vmem:[#allocation7 + $0x3d4] ss:$48 sps:$4 sm:$0xff]  }
 0x2cd   :  { %3797 = vmatpush1.bf16.msra.mxu1 %v18748_v30  ;;  %3838 = vmatpush1.bf16.msra.mxu0 %v18751_v31  ;;  %v18813_v30 = vld [vmem:[#allocation7 + $0x9d4] ss:$48 sps:$4 sm:$0xff]   ;;  %v18808_v31 = vld [vmem:[#allocation7 + $0x3d0] ss:$48 sps:$4 sm:$0xff]  }
 0x2ce   :  { %3798 = vmatprep.subr.bf16.mxu1 %v18756_v32  ;;  %3839 = vmatprep.subr.bf16.mxu0 %v18759_v33  ;;  %v18811_v32 = vld [vmem:[#allocation7 + $0x9d0] ss:$48 sps:$4 sm:$0xff]   ;;  %v18816_v33 = vld [vmem:[#allocation7 + $0x374] ss:$48 sps:$4 sm:$0xff]  }
 0x2d1   :  { %3799 = vmatpush1.bf16.msra.mxu1 %v18754_v34  ;;  %3840 = vmatpush1.bf16.msra.mxu0 %v18757_v0  ;;  %v18819_v34 = vld [vmem:[#allocation7 + $0x974] ss:$48 sps:$4 sm:$0xff]   ;;  %v18814_v0 = vld [vmem:[#allocation7 + $0x370] ss:$48 sps:$4 sm:$0xff]  }
 0x2d2   :  { %3800 = vmatprep.subr.bf16.mxu1 %v18762_v35  ;;  %3841 = vmatprep.subr.bf16.mxu0 %v18765_v36  ;;  %v18817_v35 = vld [vmem:[#allocation7 + $0x970] ss:$48 sps:$4 sm:$0xff]   ;;  %v18822_v36 = vld [vmem:[#allocation7 + $0x314] ss:$48 sps:$4 sm:$0xff]  }
 0x2d5   :  { %3801 = vmatpush1.bf16.msra.mxu1 %v18760_v37  ;;  %3842 = vmatpush1.bf16.msra.mxu0 %v18763_v38  ;;  %v18825_v37 = vld [vmem:[#allocation7 + $0x914] ss:$48 sps:$4 sm:$0xff]   ;;  %v18820_v38 = vld [vmem:[#allocation7 + $0x310] ss:$48 sps:$4 sm:$0xff]  }
 0x2d6   :  { %3802 = vmatprep.subr.bf16.mxu1 %v18768_v39  ;;  %3843 = vmatprep.subr.bf16.mxu0 %v18771_v40  ;;  %v18823_v39 = vld [vmem:[#allocation7 + $0x910] ss:$48 sps:$4 sm:$0xff]   ;;  %v465_v40 = vld [vmem:[#allocation8 + $0x8] sm:$0xf] }
 0x2d9   :  { %3803 = vmatpush1.bf16.msra.mxu1 %v18766_v41  ;;  %3844 = vmatpush1.bf16.msra.mxu0 %v18769_v42  ;;  %v18828_v41 = vld [vmem:[#allocation7 + $0x2bc] ss:$48 sps:$4 sm:$0xff]  }
 0x2da   :  { %3804 = vmatprep.subr.bf16.mxu1 %v18774_v43  ;;  %3845 = vmatprep.subr.bf16.mxu0 %v18777_v44  ;;  %v18831_v42 = vld [vmem:[#allocation7 + $0x8bc] ss:$48 sps:$4 sm:$0xff]   ;;  %v18826_v43 = vld [vmem:[#allocation7 + $0x2b8] ss:$48 sps:$4 sm:$0xff]  }
 0x2db   :  { %v18829_v44 = vld [vmem:[#allocation7 + $0x8b8] ss:$48 sps:$4 sm:$0xff]  }
 0x2dd   :  { %3805 = vmatpush1.bf16.msra.mxu1 %v18772_v45  ;;  %3846 = vmatpush1.bf16.msra.mxu0 %v18775_v46  ;;  %v511_v45 = vrot.slane %v465_v40, %v22133_v48  ;;  %v18834_v46 = vld [vmem:[#allocation7 + $0x25c] ss:$48 sps:$4 sm:$0xff]  }
 0x2de   :  { %3806 = vmatprep.subr.bf16.mxu1 %v18780_v49  ;;  %3847 = vmatprep.subr.bf16.mxu0 %v18783_v50  ;;  %v18837_v49 = vld [vmem:[#allocation7 + $0x85c] ss:$48 sps:$4 sm:$0xff]   ;;  %v515_v50 = vrot.slane %v465_v40, %v22138_v5  ;;  %v18874_v40 = vld [vmem:[#allocation7 + $0x5b8] ss:$48 sps:$4 sm:$0xff]  }
 0x2e0   :  { %v22166_v63 = vpop.f32.mrf.mxu1  ;;  %v1165_v1 = vpop.f32.mrf.mxu0 }
 0x2e1   :  { %v22168_v2 = vadd.f32 %v1165_v1, %v495_v52  ;;  %3807 = vmatpush2.bf16.msra.mxu1 %v18778_v53  ;;  %3848 = vmatpush2.bf16.msra.mxu0 %v18781_v55  ;;  %v18832_v52 = vld [vmem:[#allocation7 + $0x258] ss:$48 sps:$4 sm:$0xff]  }
 0x2e2   :  { %v22170_v6 = vpop.f32.mrf.mxu1  ;;  %v1167_v7 = vpop.f32.mrf.mxu0  ;;  %3808 = vmatprep.subr.bf16.mxu1 %v18786_v56  ;;  %3849 = vmatprep.subr.bf16.mxu0 %v18789_v57  ;;  %v18835_v53 = vld [vmem:[#allocation7 + $0x858] ss:$48 sps:$4 sm:$0xff]  }
 0x2e3   :  { %v22172_v10 = vadd.f32 %v1167_v7, %v499_v62 }
 0x2e4   :  { %v1128_v11 = vpop.f32.mrf.mxu1  ;;  %v1169_v3 = vpop.f32.mrf.mxu0 }
 0x2e5   :  { %3809 = vmatpush2.bf16.msra.mxu1 %v18784_v24  ;;  %3850 = vmatpush2.bf16.msra.mxu0 %v18787_v4  ;;  %v18840_v24 = vld [vmem:[#allocation7 + $0x1fc] ss:$48 sps:$4 sm:$0xff]  }
 0x2e6   :  { %v1129_v17 = vpop.f32.mrf.mxu1  ;;  %v1170_v18 = vpop.f32.mrf.mxu0  ;;  %3810 = vmatprep.subr.bf16.mxu1 %v18792_v8  ;;  %3851 = vmatprep.subr.bf16.mxu0 %v18795_v9  ;;  %v18843_v4 = vld [vmem:[#allocation7 + $0x7fc] ss:$48 sps:$4 sm:$0xff]   ;;  %v18838_v8 = vld [vmem:[#allocation7 + $0x1f8] ss:$48 sps:$4 sm:$0xff]  }
 0x2e7   :  { %v18841_v9 = vld [vmem:[#allocation7 + $0x7f8] ss:$48 sps:$4 sm:$0xff]   ;;  %v18846_v17 = vld [vmem:[#allocation7 + $0x19c] ss:$48 sps:$4 sm:$0xff]  }
 0x2e8   :  { %v18849_v18 = vld [vmem:[#allocation7 + $0x79c] ss:$48 sps:$4 sm:$0xff]  }
 0x2e9   :  { %3811 = vmatpush2.bf16.msra.mxu1 %v18790_v12  ;;  %3852 = vmatpush2.bf16.msra.mxu0 %v18793_v14 }
 0x2ea   :  { %3812 = vmatprep.subr.bf16.mxu1 %v18798_v19  ;;  %3853 = vmatprep.subr.bf16.mxu0 %v18801_v21  ;;  %v18844_v19 = vld [vmem:[#allocation7 + $0x198] ss:$48 sps:$4 sm:$0xff]  }
 0x2eb   :  { %v18847_v21 = vld [vmem:[#allocation7 + $0x798] ss:$48 sps:$4 sm:$0xff]  }
 0x2ed   :  { %3813 = vmatpush2.bf16.msra.mxu1 %v18796_v22  ;;  %3854 = vmatpush2.bf16.msra.mxu0 %v18799_v23  ;;  %v18852_v22 = vld [vmem:[#allocation7 + $0x13c] ss:$48 sps:$4 sm:$0xff]  }
 0x2ee   :  { %3814 = vmatprep.subr.bf16.mxu1 %v18804_v25  ;;  %3855 = vmatprep.subr.bf16.mxu0 %v18807_v26  ;;  %v18855_v23 = vld [vmem:[#allocation7 + $0x73c] ss:$48 sps:$4 sm:$0xff]   ;;  %v18850_v25 = vld [vmem:[#allocation7 + $0x138] ss:$48 sps:$4 sm:$0xff]  }
 0x2ef   :  { %v18853_v26 = vld [vmem:[#allocation7 + $0x738] ss:$48 sps:$4 sm:$0xff]  }
 0x2f1   :  { %3815 = vmatpush2.bf16.msra.mxu1 %v18802_v27  ;;  %3856 = vmatpush2.bf16.msra.mxu0 %v18805_v28  ;;  %v18858_v27 = vld [vmem:[#allocation7 + $0xdc] ss:$48 sps:$4 sm:$0xff]  }
 0x2f2   :  { %3816 = vmatprep.subr.bf16.mxu1 %v18810_v29  ;;  %3857 = vmatprep.subr.bf16.mxu0 %v18813_v30  ;;  %v18861_v28 = vld [vmem:[#allocation7 + $0x6dc] ss:$48 sps:$4 sm:$0xff]   ;;  %v18856_v29 = vld [vmem:[#allocation7 + $0xd8] ss:$48 sps:$4 sm:$0xff]  }
 0x2f3   :  { %v18859_v30 = vld [vmem:[#allocation7 + $0x6d8] ss:$48 sps:$4 sm:$0xff]  }
 0x2f5   :  { %3817 = vmatpush2.bf16.msra.mxu1 %v18808_v31  ;;  %3858 = vmatpush2.bf16.msra.mxu0 %v18811_v32  ;;  %v18864_v31 = vld [vmem:[#allocation7 + $0x7c] ss:$48 sps:$4 sm:$0xff]  }
 0x2f6   :  { %3818 = vmatprep.subr.bf16.mxu1 %v18816_v33  ;;  %3859 = vmatprep.subr.bf16.mxu0 %v18819_v34  ;;  %v18867_v32 = vld [vmem:[#allocation7 + $0x67c] ss:$48 sps:$4 sm:$0xff]   ;;  %v18862_v33 = vld [vmem:[#allocation7 + $0x78] ss:$48 sps:$4 sm:$0xff]  }
 0x2f7   :  { %v18865_v34 = vld [vmem:[#allocation7 + $0x678] ss:$48 sps:$4 sm:$0xff]  }
 0x2f9   :  { %3819 = vmatpush2.bf16.msra.mxu1 %v18814_v0  ;;  %3860 = vmatpush2.bf16.msra.mxu0 %v18817_v35  ;;  %v18870_v0 = vld [vmem:[#allocation7 + $0x1c] ss:$48 sps:$4 sm:$0xff]  }
 0x2fa   :  { %3820 = vmatprep.subr.bf16.mxu1 %v18822_v36  ;;  %3861 = vmatprep.subr.bf16.mxu0 %v18825_v37  ;;  %v18873_v35 = vld [vmem:[#allocation7 + $0x61c] ss:$48 sps:$4 sm:$0xff]   ;;  %v18868_v36 = vld [vmem:[#allocation7 + $0x18] ss:$48 sps:$4 sm:$0xff]  }
 0x2fb   :  { %v18871_v37 = vld [vmem:[#allocation7 + $0x618] ss:$48 sps:$4 sm:$0xff]  }
 0x2fd   :  { %3821 = vmatpush2.bf16.msra.mxu1 %v18820_v38  ;;  %3862 = vmatpush2.bf16.msra.mxu0 %v18823_v39  ;;  %v18876_v38 = vld [vmem:[#allocation7 + $0x5bc] ss:$48 sps:$4 sm:$0xff]  }
 0x2fe   :  { %3872 = vmatprep.subr.bf16.mxu1 %v18828_v41  ;;  %3913 = vmatprep.subr.bf16.mxu0 %v18831_v42  ;;  %v18879_v39 = vld [vmem:[#allocation7 + $0xbbc] ss:$48 sps:$4 sm:$0xff]   ;;  %v18877_v41 = vld [vmem:[#allocation7 + $0xbb8] ss:$48 sps:$4 sm:$0xff]  }
 0x2ff   :  { %v18882_v42 = vld [vmem:[#allocation7 + $0x55c] ss:$48 sps:$4 sm:$0xff]  }
 0x300   :  { %v22176_v55 = vpop.f32.mrf.mxu1  ;;  %v1247_v56 = vpop.f32.mrf.mxu0  ;;  %3823 = vmatmul.mubr.bf16.vlgmr.msra.gmra.mxu1 %v22121_v60  ;;  %3864 = vmatmul.mubr.bf16.vlgmr.msra.gmra.mxu0 %v22123_v61 }
 0x301   :  { %v22180_v57 = vadd.f32 %v1247_v56, %v511_v45  ;;  %3873 = vmatpush1.bf16.msra.mxu1 %v18826_v43  ;;  %3914 = vmatpush1.bf16.msra.mxu0 %v18829_v44  ;;  %v18885_v43 = vld [vmem:[#allocation7 + $0xb5c] ss:$48 sps:$4 sm:$0xff]   ;;  %v18880_v44 = vld [vmem:[#allocation7 + $0x558] ss:$48 sps:$4 sm:$0xff]  }
 0x302   :  { %v22182_v62 = vpop.f32.mrf.mxu1  ;;  %v1249_v1 = vpop.f32.mrf.mxu0  ;;  %3874 = vmatprep.subr.bf16.mxu1 %v18834_v46  ;;  %3915 = vmatprep.subr.bf16.mxu0 %v18837_v49  ;;  %v18883_v45 = vld [vmem:[#allocation7 + $0xb58] ss:$48 sps:$4 sm:$0xff]   ;;  %v18888_v46 = vld [vmem:[#allocation7 + $0x4fc] ss:$48 sps:$4 sm:$0xff]  }
 0x303   :  { %v22184_v7 = vadd.f32 %v1249_v1, %v515_v50  ;;  %3904 = vmatprep.mubr.bf16.mxu1 %v22107_v58  ;;  %3945 = vmatprep.mubr.bf16.mxu0 %v22109_v59  ;;  %v18891_v49 = vld [vmem:[#allocation7 + $0xafc] ss:$48 sps:$4 sm:$0xff]   ;;  %v18886_v50 = vld [vmem:[#allocation7 + $0x4f8] ss:$48 sps:$4 sm:$0xff]  }
 0x304   :  { %v1210_v11 = vpop.f32.mrf.mxu1  ;;  %v1251_v3 = vpop.f32.mrf.mxu0  ;;  %v18897_v56 = vld [vmem:[#allocation7 + $0xa9c] ss:$48 sps:$4 sm:$0xff]   ;;  %v18892_v1 = vld [vmem:[#allocation7 + $0x498] ss:$48 sps:$4 sm:$0xff]  }
 0x305   :  { %3875 = vmatpush1.bf16.msra.mxu1 %v18832_v52  ;;  %3916 = vmatpush1.bf16.msra.mxu0 %v18835_v53  ;;  %v18889_v52 = vld [vmem:[#allocation7 + $0xaf8] ss:$48 sps:$4 sm:$0xff]   ;;  %v18894_v53 = vld [vmem:[#allocation7 + $0x49c] ss:$48 sps:$4 sm:$0xff]  }
 0x306   :  { %v1211_v12 = vpop.f32.mrf.mxu1  ;;  %v1252_v14 = vpop.f32.mrf.mxu0  ;;  %3876 = vmatprep.subr.bf16.mxu1 %v18840_v24  ;;  %3917 = vmatprep.subr.bf16.mxu0 %v18843_v4  ;;  %v18895_v24 = vld [vmem:[#allocation7 + $0xa98] ss:$48 sps:$4 sm:$0xff]   ;;  %v18900_v4 = vld [vmem:[#allocation7 + $0x43c] ss:$48 sps:$4 sm:$0xff]  }
 0x307   :  { %v18901_v11 = vld [vmem:[#allocation7 + $0xa38] ss:$48 sps:$4 sm:$0xff]   ;;  %v18906_v3 = vld [vmem:[#allocation7 + $0x3dc] ss:$48 sps:$4 sm:$0xff]  }
 0x308   :  { %v18909_v12 = vld [vmem:[#allocation7 + $0x9dc] ss:$48 sps:$4 sm:$0xff]   ;;  %v18904_v14 = vld [vmem:[#allocation7 + $0x3d8] ss:$48 sps:$4 sm:$0xff]  }
 0x309   :  { %3877 = vmatpush1.bf16.msra.mxu1 %v18838_v8  ;;  %3918 = vmatpush1.bf16.msra.mxu0 %v18841_v9  ;;  %v18903_v8 = vld [vmem:[#allocation7 + $0xa3c] ss:$48 sps:$4 sm:$0xff]   ;;  %v18898_v9 = vld [vmem:[#allocation7 + $0x438] ss:$48 sps:$4 sm:$0xff]  }
 0x30a   :  { %3878 = vmatprep.subr.bf16.mxu1 %v18846_v17  ;;  %3919 = vmatprep.subr.bf16.mxu0 %v18849_v18  ;;  %v18907_v17 = vld [vmem:[#allocation7 + $0x9d8] ss:$48 sps:$4 sm:$0xff]   ;;  %v18912_v18 = vld [vmem:[#allocation7 + $0x37c] ss:$48 sps:$4 sm:$0xff]  }
 0x30d   :  { %3879 = vmatpush1.bf16.msra.mxu1 %v18844_v19  ;;  %3920 = vmatpush1.bf16.msra.mxu0 %v18847_v21  ;;  %v18915_v19 = vld [vmem:[#allocation7 + $0x97c] ss:$48 sps:$4 sm:$0xff]   ;;  %v18910_v21 = vld [vmem:[#allocation7 + $0x378] ss:$48 sps:$4 sm:$0xff]  }
 0x30e   :  { %3880 = vmatprep.subr.bf16.mxu1 %v18852_v22  ;;  %3921 = vmatprep.subr.bf16.mxu0 %v18855_v23  ;;  %v18913_v22 = vld [vmem:[#allocation7 + $0x978] ss:$48 sps:$4 sm:$0xff]   ;;  %v18918_v23 = vld [vmem:[#allocation7 + $0x31c] ss:$48 sps:$4 sm:$0xff]  }
 0x311   :  { %3881 = vmatpush1.bf16.msra.mxu1 %v18850_v25  ;;  %3922 = vmatpush1.bf16.msra.mxu0 %v18853_v26  ;;  %v18921_v25 = vld [vmem:[#allocation7 + $0x91c] ss:$48 sps:$4 sm:$0xff]   ;;  %v18916_v26 = vld [vmem:[#allocation7 + $0x318] ss:$48 sps:$4 sm:$0xff]  }
 0x312   :  { %3882 = vmatprep.subr.bf16.mxu1 %v18858_v27  ;;  %3923 = vmatprep.subr.bf16.mxu0 %v18861_v28  ;;  %v18919_v27 = vld [vmem:[#allocation7 + $0x918] ss:$48 sps:$4 sm:$0xff]   ;;  %v22188_v28 = vld [vmem:[#allocation10] sm:$0xff] }
 0x315   :  { %3883 = vmatpush1.bf16.msra.mxu1 %v18856_v29  ;;  %3924 = vmatpush1.bf16.msra.mxu0 %v18859_v30  ;;  %v18924_v29 = vld [vmem:[#allocation7 + $0x2c4] ss:$48 sps:$4 sm:$0xff]  }
 0x316   :  { %3884 = vmatprep.subr.bf16.mxu1 %v18864_v31  ;;  %3925 = vmatprep.subr.bf16.mxu0 %v18867_v32  ;;  %v18927_v30 = vld [vmem:[#allocation7 + $0x8c4] ss:$48 sps:$4 sm:$0xff]   ;;  %v22191_v31 = vsub.s32 0, %v22130_v54  ;;  %v18922_v32 = vld [vmem:[#allocation7 + $0x2c0] ss:$48 sps:$4 sm:$0xff]  }
 0x319   :  { %3885 = vmatpush1.bf16.msra.mxu1 %v18862_v33  ;;  %3926 = vmatpush1.bf16.msra.mxu0 %v18865_v34  ;;  %v18925_v33 = vld [vmem:[#allocation7 + $0x8c0] ss:$48 sps:$4 sm:$0xff]   ;;  %v18930_v34 = vld [vmem:[#allocation7 + $0x264] ss:$48 sps:$4 sm:$0xff]  }
 0x31a   :  { %3886 = vmatprep.subr.bf16.mxu1 %v18870_v0  ;;  %3927 = vmatprep.subr.bf16.mxu0 %v18873_v35  ;;  %v18933_v0 = vld [vmem:[#allocation7 + $0x864] ss:$48 sps:$4 sm:$0xff]   ;;  %v22194_v35 = vsub.s32 1, %v22130_v54 }
 0x31d   :  { %3887 = vmatpush1.bf16.msra.mxu1 %v18868_v36  ;;  %3928 = vmatpush1.bf16.msra.mxu0 %v18871_v37  ;;  %v1649_v36 = vrot.slane %v22188_v28, %v22191_v31  ;;  %v21570_v37 = vld [vmem:[#allocation8] sm:$0xff] }
 0x31e   :  { %3888 = vmatprep.subr.bf16.mxu1 %v18876_v38  ;;  %3929 = vmatprep.subr.bf16.mxu0 %v18879_v39  ;;  %v471_v38 = vrot.slane %v21570_v37, %v22191_v31  ;;  %v1653_v39 = vrot.slane %v22188_v28, %v22194_v35 }
 0x321   :  { %3889 = vmatpush2.bf16.msra.mxu1 %v18874_v40  ;;  %3930 = vmatpush2.bf16.msra.mxu0 %v18877_v41  ;;  %v18928_v40 = vld [vmem:[#allocation7 + $0x260] ss:$48 sps:$4 sm:$0xff]  }
 0x322   :  { %3890 = vmatprep.subr.bf16.mxu1 %v18882_v42  ;;  %3931 = vmatprep.subr.bf16.mxu0 %v18885_v43  ;;  %v18931_v41 = vld [vmem:[#allocation7 + $0x860] ss:$48 sps:$4 sm:$0xff]  }
 0x325   :  { %3891 = vmatpush2.bf16.msra.mxu1 %v18880_v44  ;;  %3932 = vmatpush2.bf16.msra.mxu0 %v18883_v45  ;;  %v18936_v44 = vld [vmem:[#allocation7 + $0x204] ss:$48 sps:$4 sm:$0xff]  }
 0x326   :  { %3892 = vmatprep.subr.bf16.mxu1 %v18888_v46  ;;  %3933 = vmatprep.subr.bf16.mxu0 %v18891_v49  ;;  %v18939_v45 = vld [vmem:[#allocation7 + $0x804] ss:$48 sps:$4 sm:$0xff]   ;;  %v475_v46 = vrot.slane %v21570_v37, %v22194_v35 }
 0x327   :  { %v18966_v37 = vld [vmem:[#allocation7 + $0x24] ss:$48 sps:$4 sm:$0xff]  }
 0x329   :  { %3893 = vmatpush2.bf16.msra.mxu1 %v18886_v50  ;;  %3934 = vmatpush2.bf16.msra.mxu0 %v18889_v52 }
 0x32a   :  { %3894 = vmatprep.subr.bf16.mxu1 %v18894_v53  ;;  %3935 = vmatprep.subr.bf16.mxu0 %v18897_v56  ;;  %v1043_v53 = vadd.f32 %v22146_v13, %v471_v38  ;;  %v18969_v38 = vld [vmem:[#allocation7 + $0x624] ss:$48 sps:$4 sm:$0xff]  }
 0x32d   :  { %3895 = vmatpush2.bf16.msra.mxu1 %v18892_v1  ;;  %3936 = vmatpush2.bf16.msra.mxu0 %v18895_v24  ;;  %v18934_v24 = vld [vmem:[#allocation7 + $0x200] ss:$48 sps:$4 sm:$0xff]  }
 0x32e   :  { %3896 = vmatprep.subr.bf16.mxu1 %v18900_v4  ;;  %3937 = vmatprep.subr.bf16.mxu0 %v18903_v8  ;;  %v18937_v4 = vld [vmem:[#allocation7 + $0x800] ss:$48 sps:$4 sm:$0xff]  }
 0x331   :  { %3897 = vmatpush2.bf16.msra.mxu1 %v18898_v9  ;;  %3938 = vmatpush2.bf16.msra.mxu0 %v18901_v11  ;;  %v18942_v11 = vld [vmem:[#allocation7 + $0x1a4] ss:$48 sps:$4 sm:$0xff]  }
 0x332   :  { %3898 = vmatprep.subr.bf16.mxu1 %v18906_v3  ;;  %3939 = vmatprep.subr.bf16.mxu0 %v18909_v12  ;;  %v18945_v3 = vld [vmem:[#allocation7 + $0x7a4] ss:$48 sps:$4 sm:$0xff]   ;;  %v1045_v12 = vadd.f32 %v22150_v16, %v475_v46  ;;  %v18946_v16 = vld [vmem:[#allocation7 + $0x140] ss:$48 sps:$4 sm:$0xff]  }
 0x333   :  { %v18981_v46 = vld [vmem:[#allocation7 + $0xb64] ss:$48 sps:$4 sm:$0xff]  }
 0x335   :  { %3899 = vmatpush2.bf16.msra.mxu1 %v18904_v14  ;;  %3940 = vmatpush2.bf16.msra.mxu0 %v18907_v17 }
 0x336   :  { %3900 = vmatprep.subr.bf16.mxu1 %v18912_v18  ;;  %3941 = vmatprep.subr.bf16.mxu0 %v18915_v19 }
 0x339   :  { %3901 = vmatpush2.bf16.msra.mxu1 %v18910_v21  ;;  %3942 = vmatpush2.bf16.msra.mxu0 %v18913_v22  ;;  %v18940_v21 = vld [vmem:[#allocation7 + $0x1a0] ss:$48 sps:$4 sm:$0xff]  }
 0x33a   :  { %3902 = vmatprep.subr.bf16.mxu1 %v18918_v23  ;;  %3943 = vmatprep.subr.bf16.mxu0 %v18921_v25  ;;  %v18943_v22 = vld [vmem:[#allocation7 + $0x7a0] ss:$48 sps:$4 sm:$0xff]   ;;  %v18948_v23 = vld [vmem:[#allocation7 + $0x144] ss:$48 sps:$4 sm:$0xff]  }
 0x33b   :  { %v18951_v25 = vld [vmem:[#allocation7 + $0x744] ss:$48 sps:$4 sm:$0xff]  }
 0x33d   :  { %3903 = vmatpush2.bf16.msra.mxu1 %v18916_v26  ;;  %3944 = vmatpush2.bf16.msra.mxu0 %v18919_v27  ;;  %v18949_v26 = vld [vmem:[#allocation7 + $0x740] ss:$48 sps:$4 sm:$0xff]   ;;  %v18954_v27 = vld [vmem:[#allocation7 + $0xe4] ss:$48 sps:$4 sm:$0xff]  }
 0x33e   :  { %3954 = vmatprep.subr.bf16.mxu1 %v18924_v29  ;;  %3995 = vmatprep.subr.bf16.mxu0 %v18927_v30  ;;  %v18957_v29 = vld [vmem:[#allocation7 + $0x6e4] ss:$48 sps:$4 sm:$0xff]   ;;  %v18952_v30 = vld [vmem:[#allocation7 + $0xe0] ss:$48 sps:$4 sm:$0xff]  }
 0x340   :  { %v3660_v42 = vpop.f32.mrf.mxu1  ;;  %v3701_v43 = vpop.f32.mrf.mxu0  ;;  %3905 = vmatmul.mubr.bf16.vlgmr.msra.gmra.mxu1 %v22121_v60  ;;  %3946 = vmatmul.mubr.bf16.vlgmr.msra.gmra.mxu0 %v22123_v61 }
 0x341   :  { %v3661_v49 = vadd.f32 %v3660_v42, %v1649_v36  ;;  %3955 = vmatpush1.bf16.msra.mxu1 %v18922_v32  ;;  %3996 = vmatpush1.bf16.msra.mxu0 %v18925_v33  ;;  %v18955_v32 = vld [vmem:[#allocation7 + $0x6e0] ss:$48 sps:$4 sm:$0xff]   ;;  %v18960_v33 = vld [vmem:[#allocation7 + $0x84] ss:$48 sps:$4 sm:$0xff]  }
 0x342   :  { %v3662_v50 = vpop.f32.mrf.mxu1  ;;  %v3703_v52 = vpop.f32.mrf.mxu0  ;;  %3956 = vmatprep.subr.bf16.mxu1 %v18930_v34  ;;  %3997 = vmatprep.subr.bf16.mxu0 %v18933_v0  ;;  %v18963_v34 = vld [vmem:[#allocation7 + $0x684] ss:$48 sps:$4 sm:$0xff]   ;;  %v18958_v0 = vld [vmem:[#allocation7 + $0x80] ss:$48 sps:$4 sm:$0xff]  }
 0x343   :  { %v3702_v56 = vadd.f32 %v3701_v43, %v3661_v49  ;;  %v3663_v1 = vadd.f32 %v3662_v50, %v1653_v39  ;;  %3986 = vmatprep.mubr.bf16.mxu1 %v22107_v58  ;;  %4027 = vmatprep.mubr.bf16.mxu0 %v22109_v59  ;;  %v18961_v36 = vld [vmem:[#allocation7 + $0x680] ss:$48 sps:$4 sm:$0xff]   ;;  %v18975_v42 = vld [vmem:[#allocation7 + $0xbc4] ss:$48 sps:$4 sm:$0xff]  }
 0x344   :  { %v3664_v8 = vpop.f32.mrf.mxu1  ;;  %v3705_v9 = vpop.f32.mrf.mxu0  ;;  %v18964_v39 = vld [vmem:[#allocation7 + $0x20] ss:$48 sps:$4 sm:$0xff]  }
 0x345   :  { %v22208_v14 = vadd.f32 %v3702_v56, %v1043_v53  ;;  %v3704_v17 = vadd.f32 %v3703_v52, %v3663_v1  ;;  %3957 = vmatpush1.bf16.msra.mxu1 %v18928_v40  ;;  %3998 = vmatpush1.bf16.msra.mxu0 %v18931_v41  ;;  %v18967_v40 = vld [vmem:[#allocation7 + $0x620] ss:$48 sps:$4 sm:$0xff]   ;;  %v18972_v41 = vld [vmem:[#allocation7 + $0x5c4] ss:$48 sps:$4 sm:$0xff]  }
 0x346   :  { %v3665_v13 = vpop.f32.mrf.mxu1  ;;  %v3706_v18 = vpop.f32.mrf.mxu0  ;;  %3958 = vmatprep.subr.bf16.mxu1 %v18936_v44  ;;  %3999 = vmatprep.subr.bf16.mxu0 %v18939_v45  ;;  %v18970_v43 = vld [vmem:[#allocation7 + $0x5c0] ss:$48 sps:$4 sm:$0xff]   ;;  %v18978_v45 = vld [vmem:[#allocation7 + $0x564] ss:$48 sps:$4 sm:$0xff]  }
 0x347   :  { %v22210_v19 = vadd.f32 %v3704_v17, %v1045_v12  ;;  %v18973_v44 = vld [vmem:[#allocation7 + $0xbc0] ss:$48 sps:$4 sm:$0xff]   ;;  %v18984_v52 = vld [vmem:[#allocation7 + $0x504] ss:$48 sps:$4 sm:$0xff]  }
 0x348   :  { %v18976_v49 = vld [vmem:[#allocation7 + $0x560] ss:$48 sps:$4 sm:$0xff]   ;;  %v18987_v53 = vld [vmem:[#allocation7 + $0xb04] ss:$48 sps:$4 sm:$0xff]  }
 0x349   :  { %3959 = vmatpush1.bf16.msra.mxu1 %v18934_v24  ;;  %4000 = vmatpush1.bf16.msra.mxu0 %v18937_v4  ;;  %v18979_v50 = vld [vmem:[#allocation7 + $0xb60] ss:$48 sps:$4 sm:$0xff]   ;;  %v18990_v24 = vld [vmem:[#allocation7 + $0x4a4] ss:$48 sps:$4 sm:$0xff]  }
 0x34a   :  { %3960 = vmatprep.subr.bf16.mxu1 %v18942_v11  ;;  %4001 = vmatprep.subr.bf16.mxu0 %v18945_v3  ;;  %v18982_v56 = vld [vmem:[#allocation7 + $0x500] ss:$48 sps:$4 sm:$0xff]   ;;  %v18993_v4 = vld [vmem:[#allocation7 + $0xaa4] ss:$48 sps:$4 sm:$0xff]  }
 0x34b   :  { %v18985_v1 = vld [vmem:[#allocation7 + $0xb00] ss:$48 sps:$4 sm:$0xff]   ;;  %v18996_v11 = vld [vmem:[#allocation7 + $0x444] ss:$48 sps:$4 sm:$0xff]  }
 0x34c   :  { %v18988_v8 = vld [vmem:[#allocation7 + $0x4a0] ss:$48 sps:$4 sm:$0xff]   ;;  %v18999_v3 = vld [vmem:[#allocation7 + $0xa44] ss:$48 sps:$4 sm:$0xff]  }
 0x34d   :  { %3961 = vmatpush1.bf16.msra.mxu1 %v18940_v21  ;;  %4002 = vmatpush1.bf16.msra.mxu0 %v18943_v22  ;;  %v18991_v9 = vld [vmem:[#allocation7 + $0xaa0] ss:$48 sps:$4 sm:$0xff]   ;;  %v19002_v13 = vld [vmem:[#allocation7 + $0x3e4] ss:$48 sps:$4 sm:$0xff]  }
 0x34e   :  { %3962 = vmatprep.subr.bf16.mxu1 %v18948_v23  ;;  %4003 = vmatprep.subr.bf16.mxu0 %v18951_v25  ;;  %v18994_v12 = vld [vmem:[#allocation7 + $0x440] ss:$48 sps:$4 sm:$0xff]   ;;  %v19005_v18 = vld [vmem:[#allocation7 + $0x9e4] ss:$48 sps:$4 sm:$0xff]  }
 0x34f   :  { %v18997_v17 = vld [vmem:[#allocation7 + $0xa40] ss:$48 sps:$4 sm:$0xff]   ;;  %v19008_v23 = vld [vmem:[#allocation7 + $0x384] ss:$48 sps:$4 sm:$0xff]  }
 0x350   :  { %v19000_v21 = vld [vmem:[#allocation7 + $0x3e0] ss:$48 sps:$4 sm:$0xff]   ;;  %v19011_v25 = vld [vmem:[#allocation7 + $0x984] ss:$48 sps:$4 sm:$0xff]  }
 0x351   :  { %3963 = vmatpush1.bf16.msra.mxu1 %v18946_v16  ;;  %4004 = vmatpush1.bf16.msra.mxu0 %v18949_v26  ;;  %v19003_v22 = vld [vmem:[#allocation7 + $0x9e0] ss:$48 sps:$4 sm:$0xff]  }
 0x352   :  { %3964 = vmatprep.subr.bf16.mxu1 %v18954_v27  ;;  %4005 = vmatprep.subr.bf16.mxu0 %v18957_v29  ;;  %v19006_v16 = vld [vmem:[#allocation7 + $0x380] ss:$48 sps:$4 sm:$0xff]   ;;  %v19014_v27 = vld [vmem:[#allocation7 + $0x324] ss:$48 sps:$4 sm:$0xff]  }
 0x353   :  { %v19009_v26 = vld [vmem:[#allocation7 + $0x980] ss:$48 sps:$4 sm:$0xff]   ;;  %v19017_v29 = vld [vmem:[#allocation7 + $0x924] ss:$48 sps:$4 sm:$0xff]  }
 0x355   :  { %3965 = vmatpush1.bf16.msra.mxu1 %v18952_v30  ;;  %4006 = vmatpush1.bf16.msra.mxu0 %v18955_v32  ;;  %v19012_v30 = vld [vmem:[#allocation7 + $0x320] ss:$48 sps:$4 sm:$0xff]  }
 0x356   :  { %3966 = vmatprep.subr.bf16.mxu1 %v18960_v33  ;;  %4007 = vmatprep.subr.bf16.mxu0 %v18963_v34  ;;  %v19015_v32 = vld [vmem:[#allocation7 + $0x920] ss:$48 sps:$4 sm:$0xff]   ;;  %v19020_v33 = vld [vmem:[#allocation7 + $0x2cc] ss:$48 sps:$4 sm:$0xff]  }
 0x357   :  { %v19023_v34 = vld [vmem:[#allocation7 + $0x8cc] ss:$48 sps:$4 sm:$0xff]  }
 0x359   :  { %3967 = vmatpush1.bf16.msra.mxu1 %v18958_v0  ;;  %4008 = vmatpush1.bf16.msra.mxu0 %v18961_v36  ;;  %v19018_v0 = vld [vmem:[#allocation7 + $0x2c8] ss:$48 sps:$4 sm:$0xff]  }
 0x35a   :  { %3968 = vmatprep.subr.bf16.mxu1 %v18966_v37  ;;  %4009 = vmatprep.subr.bf16.mxu0 %v18969_v38  ;;  %v19021_v36 = vld [vmem:[#allocation7 + $0x8c8] ss:$48 sps:$4 sm:$0xff]   ;;  %v19026_v37 = vld [vmem:[#allocation7 + $0x26c] ss:$48 sps:$4 sm:$0xff]  }
 0x35b   :  { %v19029_v38 = vld [vmem:[#allocation7 + $0x86c] ss:$48 sps:$4 sm:$0xff]  }
 0x35d   :  { %3969 = vmatpush1.bf16.msra.mxu1 %v18964_v39  ;;  %4010 = vmatpush1.bf16.msra.mxu0 %v18967_v40  ;;  %v1657_v39 = vrot.slane %v22188_v28, %v22133_v48  ;;  %v1661_v40 = vrot.slane %v22188_v28, %v22138_v5  ;;  %v19030_v28 = vld [vmem:[#allocation7 + $0x208] ss:$48 sps:$4 sm:$0xff]  }
 0x35e   :  { %3970 = vmatprep.subr.bf16.mxu1 %v18972_v41  ;;  %4011 = vmatprep.subr.bf16.mxu0 %v18975_v42  ;;  %v19024_v41 = vld [vmem:[#allocation7 + $0x268] ss:$48 sps:$4 sm:$0xff]  }
 0x35f   :  { %v19027_v42 = vld [vmem:[#allocation7 + $0x868] ss:$48 sps:$4 sm:$0xff]  }
 0x361   :  { %3971 = vmatpush2.bf16.msra.mxu1 %v18970_v43  ;;  %4012 = vmatpush2.bf16.msra.mxu0 %v18973_v44 }
 0x362   :  { %3972 = vmatprep.subr.bf16.mxu1 %v18978_v45  ;;  %4013 = vmatprep.subr.bf16.mxu0 %v18981_v46  ;;  %v19032_v45 = vld [vmem:[#allocation7 + $0x20c] ss:$48 sps:$4 sm:$0xff]  }
 0x363   :  { %v19035_v46 = vld [vmem:[#allocation7 + $0x80c] ss:$48 sps:$4 sm:$0xff]  }
 0x365   :  { %3973 = vmatpush2.bf16.msra.mxu1 %v18976_v49  ;;  %4014 = vmatpush2.bf16.msra.mxu0 %v18979_v50 }
 0x366   :  { %3974 = vmatprep.subr.bf16.mxu1 %v18984_v52  ;;  %4015 = vmatprep.subr.bf16.mxu0 %v18987_v53 }
 0x369   :  { %3975 = vmatpush2.bf16.msra.mxu1 %v18982_v56  ;;  %4016 = vmatpush2.bf16.msra.mxu0 %v18985_v1  ;;  %v19033_v1 = vld [vmem:[#allocation7 + $0x808] ss:$48 sps:$4 sm:$0xff]  }
 0x36a   :  { %3976 = vmatprep.subr.bf16.mxu1 %v18990_v24  ;;  %4017 = vmatprep.subr.bf16.mxu0 %v18993_v4 }
 0x36d   :  { %3977 = vmatpush2.bf16.msra.mxu1 %v18988_v8  ;;  %4018 = vmatpush2.bf16.msra.mxu0 %v18991_v9  ;;  %v19038_v8 = vld [vmem:[#allocation7 + $0x1ac] ss:$48 sps:$4 sm:$0xff]  }
 0x36e   :  { %3978 = vmatprep.subr.bf16.mxu1 %v18996_v11  ;;  %4019 = vmatprep.subr.bf16.mxu0 %v18999_v3  ;;  %v19041_v9 = vld [vmem:[#allocation7 + $0x7ac] ss:$48 sps:$4 sm:$0xff]  }
 0x371   :  { %3979 = vmatpush2.bf16.msra.mxu1 %v18994_v12  ;;  %4020 = vmatpush2.bf16.msra.mxu0 %v18997_v17 }
 0x372   :  { %3980 = vmatprep.subr.bf16.mxu1 %v19002_v13  ;;  %4021 = vmatprep.subr.bf16.mxu0 %v19005_v18  ;;  %v19039_v18 = vld [vmem:[#allocation7 + $0x7a8] ss:$48 sps:$4 sm:$0xff]  }
 0x375   :  { %3981 = vmatpush2.bf16.msra.mxu1 %v19000_v21  ;;  %4022 = vmatpush2.bf16.msra.mxu0 %v19003_v22  ;;  %v19047_v21 = vld [vmem:[#allocation7 + $0x74c] ss:$48 sps:$4 sm:$0xff]   ;;  %v19045_v22 = vld [vmem:[#allocation7 + $0x748] ss:$48 sps:$4 sm:$0xff]  }
 0x376   :  { %3982 = vmatprep.subr.bf16.mxu1 %v19008_v23  ;;  %4023 = vmatprep.subr.bf16.mxu0 %v19011_v25  ;;  %v19050_v23 = vld [vmem:[#allocation7 + $0xec] ss:$48 sps:$4 sm:$0xff]  }
 0x377   :  { %v19053_v25 = vld [vmem:[#allocation7 + $0x6ec] ss:$48 sps:$4 sm:$0xff]  }
 0x379   :  { %3983 = vmatpush2.bf16.msra.mxu1 %v19006_v16  ;;  %4024 = vmatpush2.bf16.msra.mxu0 %v19009_v26  ;;  %v19048_v16 = vld [vmem:[#allocation7 + $0xe8] ss:$48 sps:$4 sm:$0xff]  }
 0x37a   :  { %3984 = vmatprep.subr.bf16.mxu1 %v19014_v27  ;;  %4025 = vmatprep.subr.bf16.mxu0 %v19017_v29  ;;  %v19051_v26 = vld [vmem:[#allocation7 + $0x6e8] ss:$48 sps:$4 sm:$0xff]   ;;  %v19059_v27 = vld [vmem:[#allocation7 + $0x68c] ss:$48 sps:$4 sm:$0xff]  }
 0x37b   :  { %v19054_v29 = vld [vmem:[#allocation7 + $0x88] ss:$48 sps:$4 sm:$0xff]  }
 0x37d   :  { %3985 = vmatpush2.bf16.msra.mxu1 %v19012_v30  ;;  %4026 = vmatpush2.bf16.msra.mxu0 %v19015_v32  ;;  %v19057_v30 = vld [vmem:[#allocation7 + $0x688] ss:$48 sps:$4 sm:$0xff]   ;;  %v19062_v32 = vld [vmem:[#allocation7 + $0x2c] ss:$48 sps:$4 sm:$0xff]  }
 0x37e   :  { %4036 = vmatprep.subr.bf16.mxu1 %v19020_v33  ;;  %4077 = vmatprep.subr.bf16.mxu0 %v19023_v34  ;;  %v19065_v33 = vld [vmem:[#allocation7 + $0x62c] ss:$48 sps:$4 sm:$0xff]   ;;  %v19060_v34 = vld [vmem:[#allocation7 + $0x28] ss:$48 sps:$4 sm:$0xff]  }
 0x380   :  { %v3742_v43 = vpop.f32.mrf.mxu1  ;;  %v3783_v44 = vpop.f32.mrf.mxu0  ;;  %3987 = vmatmul.mubr.bf16.vlgmr.msra.gmra.mxu1 %v22121_v60  ;;  %4028 = vmatmul.mubr.bf16.vlgmr.msra.gmra.mxu0 %v22123_v61 }
 0x381   :  { %v3743_v49 = vadd.f32 %v3742_v43, %v1657_v39  ;;  %4037 = vmatpush1.bf16.msra.mxu1 %v19018_v0  ;;  %4078 = vmatpush1.bf16.msra.mxu0 %v19021_v36  ;;  %v19063_v0 = vld [vmem:[#allocation7 + $0x628] ss:$48 sps:$4 sm:$0xff]   ;;  %v19068_v36 = vld [vmem:[#allocation7 + $0x5cc] ss:$48 sps:$4 sm:$0xff]  }
 0x382   :  { %v3744_v50 = vpop.f32.mrf.mxu1  ;;  %v3785_v52 = vpop.f32.mrf.mxu0  ;;  %4038 = vmatprep.subr.bf16.mxu1 %v19026_v37  ;;  %4079 = vmatprep.subr.bf16.mxu0 %v19029_v38  ;;  %v19071_v37 = vld [vmem:[#allocation7 + $0xbcc] ss:$48 sps:$4 sm:$0xff]   ;;  %v19066_v38 = vld [vmem:[#allocation7 + $0x5c8] ss:$48 sps:$4 sm:$0xff]  }
 0x383   :  { %v3784_v53 = vadd.f32 %v3783_v44, %v3743_v49  ;;  %v3745_v56 = vadd.f32 %v3744_v50, %v1661_v40  ;;  %4068 = vmatprep.mubr.bf16.mxu1 %v22107_v58  ;;  %4109 = vmatprep.mubr.bf16.mxu0 %v22109_v59  ;;  %v19036_v58 = vld [vmem:[#allocation7 + $0x1a8] ss:$48 sps:$4 sm:$0xff]   ;;  %v19044_v59 = vld [vmem:[#allocation7 + $0x14c] ss:$48 sps:$4 sm:$0xff]  }
 0x384   :  { %v3746_v24 = vpop.f32.mrf.mxu1  ;;  %v3787_v4 = vpop.f32.mrf.mxu0  ;;  %v19069_v39 = vld [vmem:[#allocation7 + $0xbc8] ss:$48 sps:$4 sm:$0xff]   ;;  %v19074_v40 = vld [vmem:[#allocation7 + $0x56c] ss:$48 sps:$4 sm:$0xff]  }
 0x385   :  { %v22221_v11 = vadd.f32 %v3784_v53, %v22148_v15  ;;  %v3786_v3 = vadd.f32 %v3785_v52, %v3745_v56  ;;  %4039 = vmatpush1.bf16.msra.mxu1 %v19024_v41  ;;  %4080 = vmatpush1.bf16.msra.mxu0 %v19027_v42  ;;  %v19042_v15 = vld [vmem:[#allocation7 + $0x148] ss:$48 sps:$4 sm:$0xff]   ;;  %v19077_v41 = vld [vmem:[#allocation7 + $0xb6c] ss:$48 sps:$4 sm:$0xff]  }
 0x386   :  { %v3747_v12 = vpop.f32.mrf.mxu1  ;;  %v3788_v17 = vpop.f32.mrf.mxu0  ;;  %4040 = vmatprep.subr.bf16.mxu1 %v19032_v45  ;;  %4081 = vmatprep.subr.bf16.mxu0 %v19035_v46  ;;  %v19072_v42 = vld [vmem:[#allocation7 + $0x568] ss:$48 sps:$4 sm:$0xff]   ;;  %v19080_v44 = vld [vmem:[#allocation7 + $0x50c] ss:$48 sps:$4 sm:$0xff]  }
 0x387   :  { %v22224_v13 = vadd.f32 %v3786_v3, %v22152_v20  ;;  %v19056_v20 = vld [vmem:[#allocation7 + $0x8c] ss:$48 sps:$4 sm:$0xff]   ;;  %v19075_v43 = vld [vmem:[#allocation7 + $0xb68] ss:$48 sps:$4 sm:$0xff]  }
 0x388   :  { %v19083_v45 = vld [vmem:[#allocation7 + $0xb0c] ss:$48 sps:$4 sm:$0xff]   ;;  %v19078_v46 = vld [vmem:[#allocation7 + $0x508] ss:$48 sps:$4 sm:$0xff]  }
 0x389   :  { %4041 = vmatpush1.bf16.msra.mxu1 %v19030_v28  ;;  %4082 = vmatpush1.bf16.msra.mxu0 %v19033_v1  ;;  %v19081_v49 = vld [vmem:[#allocation7 + $0xb08] ss:$48 sps:$4 sm:$0xff]   ;;  %v19086_v50 = vld [vmem:[#allocation7 + $0x4ac] ss:$48 sps:$4 sm:$0xff]  }
 0x38a   :  { %4042 = vmatprep.subr.bf16.mxu1 %v19038_v8  ;;  %4083 = vmatprep.subr.bf16.mxu0 %v19041_v9  ;;  %v19089_v52 = vld [vmem:[#allocation7 + $0xaac] ss:$48 sps:$4 sm:$0xff]   ;;  %v19084_v53 = vld [vmem:[#allocation7 + $0x4a8] ss:$48 sps:$4 sm:$0xff]  }
 0x38b   :  { %v19087_v56 = vld [vmem:[#allocation7 + $0xaa8] ss:$48 sps:$4 sm:$0xff]   ;;  %v19092_v28 = vld [vmem:[#allocation7 + $0x44c] ss:$48 sps:$4 sm:$0xff]  }
 0x38c   :  { %v19095_v1 = vld [vmem:[#allocation7 + $0xa4c] ss:$48 sps:$4 sm:$0xff]   ;;  %v19090_v24 = vld [vmem:[#allocation7 + $0x448] ss:$48 sps:$4 sm:$0xff]  }
 0x38d   :  { %4043 = vmatpush1.bf16.msra.mxu1 %v19036_v58  ;;  %4084 = vmatpush1.bf16.msra.mxu0 %v19039_v18  ;;  %v19093_v4 = vld [vmem:[#allocation7 + $0xa48] ss:$48 sps:$4 sm:$0xff]   ;;  %v19098_v8 = vld [vmem:[#allocation7 + $0x3ec] ss:$48 sps:$4 sm:$0xff]  }
 0x38e   :  { %4044 = vmatprep.subr.bf16.mxu1 %v19044_v59  ;;  %4085 = vmatprep.subr.bf16.mxu0 %v19047_v21  ;;  %v19101_v9 = vld [vmem:[#allocation7 + $0x9ec] ss:$48 sps:$4 sm:$0xff]   ;;  %v19096_v3 = vld [vmem:[#allocation7 + $0x3e8] ss:$48 sps:$4 sm:$0xff]  }
 0x38f   :  { %v19099_v12 = vld [vmem:[#allocation7 + $0x9e8] ss:$48 sps:$4 sm:$0xff]   ;;  %v19104_v17 = vld [vmem:[#allocation7 + $0x38c] ss:$48 sps:$4 sm:$0xff]  }
 0x390   :  { %v19107_v58 = vld [vmem:[#allocation7 + $0x98c] ss:$48 sps:$4 sm:$0xff]   ;;  %v19102_v18 = vld [vmem:[#allocation7 + $0x388] ss:$48 sps:$4 sm:$0xff]  }
 0x391   :  { %4045 = vmatpush1.bf16.msra.mxu1 %v19042_v15  ;;  %4086 = vmatpush1.bf16.msra.mxu0 %v19045_v22  ;;  %v19105_v59 = vld [vmem:[#allocation7 + $0x988] ss:$48 sps:$4 sm:$0xff]   ;;  %v19110_v21 = vld [vmem:[#allocation7 + $0x32c] ss:$48 sps:$4 sm:$0xff]  }
 0x392   :  { %4046 = vmatprep.subr.bf16.mxu1 %v19050_v23  ;;  %4087 = vmatprep.subr.bf16.mxu0 %v19053_v25  ;;  %v19113_v15 = vld [vmem:[#allocation7 + $0x92c] ss:$48 sps:$4 sm:$0xff]   ;;  %v19108_v22 = vld [vmem:[#allocation7 + $0x328] ss:$48 sps:$4 sm:$0xff]  }
 0x393   :  { %v19111_v23 = vld [vmem:[#allocation7 + $0x928] ss:$48 sps:$4 sm:$0xff]   ;;  %v19116_v25 = vld [vmem:[#allocation11 + $0x2a4] ss:$48 sps:$4 sm:$0xff]  }
 0x395   :  { %4047 = vmatpush1.bf16.msra.mxu1 %v19048_v16  ;;  %4088 = vmatpush1.bf16.msra.mxu0 %v19051_v26  ;;  %v22227_v16 = vsub.s32 4, %v22130_v54  ;;  %v19114_v26 = vld [vmem:[#allocation11 + $0x2a0] ss:$48 sps:$4 sm:$0xff]  }
 0x396   :  { %4048 = vmatprep.subr.bf16.mxu1 %v19056_v20  ;;  %4089 = vmatprep.subr.bf16.mxu0 %v19059_v27  ;;  %v19119_v20 = vld [vmem:[#allocation11 + $0x244] ss:$48 sps:$4 sm:$0xff]   ;;  %v22230_v27 = vsub.s32 5, %v22130_v54 }
 0x399   :  { %4049 = vmatpush1.bf16.msra.mxu1 %v19054_v29  ;;  %4090 = vmatpush1.bf16.msra.mxu0 %v19057_v30  ;;  %v22232_v29 = vld [vmem:[#allocation10] sm:$0xff] }
 0x39a   :  { %4050 = vmatprep.subr.bf16.mxu1 %v19062_v32  ;;  %4091 = vmatprep.subr.bf16.mxu0 %v19065_v33  ;;  %v1665_v30 = vrot.slane %v22232_v29, %v22227_v16  ;;  %v21572_v32 = vld [vmem:[#allocation8] sm:$0xff] }
 0x39b   :  { %v487_v33 = vrot.slane %v21572_v32, %v22227_v16  ;;  %v491_v54 = vrot.slane %v21572_v32, %v22230_v27  ;;  %v19149_v32 = vld [vmem:[#allocation11 + $0x484] ss:$48 sps:$4 sm:$0xff]  }
 0x39d   :  { %4051 = vmatpush1.bf16.msra.mxu1 %v19060_v34  ;;  %4092 = vmatpush1.bf16.msra.mxu0 %v19063_v0  ;;  %v1669_v34 = vrot.slane %v22232_v29, %v22230_v27 }
 0x39e   :  { %4052 = vmatprep.subr.bf16.mxu1 %v19068_v36  ;;  %4093 = vmatprep.subr.bf16.mxu0 %v19071_v37 }
 0x3a1   :  { %4053 = vmatpush2.bf16.msra.mxu1 %v19066_v38  ;;  %4094 = vmatpush2.bf16.msra.mxu0 %v19069_v39  ;;  %v19117_v38 = vld [vmem:[#allocation11 + $0x240] ss:$48 sps:$4 sm:$0xff]  }
 0x3a2   :  { %4054 = vmatprep.subr.bf16.mxu1 %v19074_v40  ;;  %4095 = vmatprep.subr.bf16.mxu0 %v19077_v41  ;;  %v19122_v41 = vld [vmem:[#allocation11 + $0x1e4] ss:$48 sps:$4 sm:$0xff]  }
 0x3a5   :  { %4055 = vmatpush2.bf16.msra.mxu1 %v19072_v42  ;;  %4096 = vmatpush2.bf16.msra.mxu0 %v19075_v43  ;;  %v1125_v42 = vadd.f32 %v22166_v63, %v487_v33  ;;  %v19128_v63 = vld [vmem:[#allocation11 + $0x124] ss:$48 sps:$4 sm:$0xff]   ;;  %v19147_v33 = vld [vmem:[#allocation11 + $0x480] ss:$48 sps:$4 sm:$0xff]  }
 0x3a6   :  { %4056 = vmatprep.subr.bf16.mxu1 %v19080_v44  ;;  %4097 = vmatprep.subr.bf16.mxu0 %v19083_v45 }
 0x3a9   :  { %4057 = vmatpush2.bf16.msra.mxu1 %v19078_v46  ;;  %4098 = vmatpush2.bf16.msra.mxu0 %v19081_v49  ;;  %v1127_v49 = vadd.f32 %v22170_v6, %v491_v54  ;;  %v19129_v6 = vld [vmem:[#allocation11 + $0xc0] ss:$48 sps:$4 sm:$0xff]  }
 0x3aa   :  { %4058 = vmatprep.subr.bf16.mxu1 %v19086_v50  ;;  %4099 = vmatprep.subr.bf16.mxu0 %v19089_v52  ;;  %v19120_v50 = vld [vmem:[#allocation11 + $0x1e0] ss:$48 sps:$4 sm:$0xff]  }
 0x3ab   :  { %v19150_v54 = vld [vmem:[#allocation11 + $0x420] ss:$48 sps:$4 sm:$0xff]  }
 0x3ad   :  { %4059 = vmatpush2.bf16.msra.mxu1 %v19084_v53  ;;  %4100 = vmatpush2.bf16.msra.mxu0 %v19087_v56  ;;  %v19125_v56 = vld [vmem:[#allocation11 + $0x184] ss:$48 sps:$4 sm:$0xff]  }
 0x3ae   :  { %4060 = vmatprep.subr.bf16.mxu1 %v19092_v28  ;;  %4101 = vmatprep.subr.bf16.mxu0 %v19095_v1  ;;  %v19123_v1 = vld [vmem:[#allocation11 + $0x180] ss:$48 sps:$4 sm:$0xff]  }
 0x3b1   :  { %4061 = vmatpush2.bf16.msra.mxu1 %v19090_v24  ;;  %4102 = vmatpush2.bf16.msra.mxu0 %v19093_v4  ;;  %v19126_v24 = vld [vmem:[#allocation11 + $0x120] ss:$48 sps:$4 sm:$0xff]   ;;  %v19131_v4 = vld [vmem:[#allocation11 + $0xc4] ss:$48 sps:$4 sm:$0xff]  }
 0x3b2   :  { %4062 = vmatprep.subr.bf16.mxu1 %v19098_v8  ;;  %4103 = vmatprep.subr.bf16.mxu0 %v19101_v9  ;;  %v19134_v8 = vld [vmem:[#allocation11 + $0x64] ss:$48 sps:$4 sm:$0xff]   ;;  %v19132_v9 = vld [vmem:[#allocation11 + $0x60] ss:$48 sps:$4 sm:$0xff]  }
 0x3b5   :  { %4063 = vmatpush2.bf16.msra.mxu1 %v19096_v3  ;;  %4104 = vmatpush2.bf16.msra.mxu0 %v19099_v12  ;;  %v19137_v3 = vld [vmem:[#allocation11 + $0x4] ss:$48 sps:$4 sm:$0xff]   ;;  %v19135_v12 = vld [vmem:[#allocation11] ss:$48 sps:$4 sm:$0xff]  }
 0x3b6   :  { %4064 = vmatprep.subr.bf16.mxu1 %v19104_v17  ;;  %4105 = vmatprep.subr.bf16.mxu0 %v19107_v58  ;;  %v19140_v17 = vld [vmem:[#allocation11 + $0x5a4] ss:$48 sps:$4 sm:$0xff]   ;;  %v19138_v58 = vld [vmem:[#allocation11 + $0x5a0] ss:$48 sps:$4 sm:$0xff]  }
 0x3b9   :  { %4065 = vmatpush2.bf16.msra.mxu1 %v19102_v18  ;;  %4106 = vmatpush2.bf16.msra.mxu0 %v19105_v59  ;;  %v19164_v18 = vld [vmem:[#allocation11 + $0x8a4] ss:$48 sps:$4 sm:$0xff]  }
 0x3ba   :  { %4066 = vmatprep.subr.bf16.mxu1 %v19110_v21  ;;  %4107 = vmatprep.subr.bf16.mxu0 %v19113_v15  ;;  %v19143_v59 = vld [vmem:[#allocation11 + $0x544] ss:$48 sps:$4 sm:$0xff]   ;;  %v19162_v21 = vld [vmem:[#allocation11 + $0x8a0] ss:$48 sps:$4 sm:$0xff]  }
 0x3bb   :  { %v19141_v15 = vld [vmem:[#allocation11 + $0x540] ss:$48 sps:$4 sm:$0xff]  }
 0x3bd   :  { %4067 = vmatpush2.bf16.msra.mxu1 %v19108_v22  ;;  %4108 = vmatpush2.bf16.msra.mxu0 %v19111_v23  ;;  %v19168_v22 = vld [vmem:[#allocation11 + $0x840] ss:$48 sps:$4 sm:$0xff]   ;;  %v19170_v23 = vld [vmem:[#allocation11 + $0x844] ss:$48 sps:$4 sm:$0xff]  }
 0x3be   :  { %6579 = vmatprep.subr.bf16.mxu1 %v19116_v25  ;;  %6620 = vmatprep.subr.bf16.mxu0 %v19164_v18  ;;  %v19146_v25 = vld [vmem:[#allocation11 + $0x4e4] ss:$48 sps:$4 sm:$0xff]   ;;  %v19216_v18 = vld [vmem:[#allocation11 + $0xb40] ss:$48 sps:$4 sm:$0xff]  }
 0x3c0   :  { %v3824_v0 = vpop.f32.mrf.mxu1  ;;  %v3865_v36 = vpop.f32.mrf.mxu0  ;;  %4069 = vmatmul.mubr.bf16.vlgmr.msra.gmra.mxu1 %v22121_v60  ;;  %4110 = vmatmul.mubr.bf16.vlgmr.msra.gmra.mxu0 %v22123_v61 }
 0x3c1   :  { %v3825_v37 = vadd.f32 %v3824_v0, %v1665_v30  ;;  %6580 = vmatpush1.bf16.msra.mxu1 %v19114_v26  ;;  %6621 = vmatpush1.bf16.msra.mxu0 %v19162_v21  ;;  %v19144_v26 = vld [vmem:[#allocation11 + $0x4e0] ss:$48 sps:$4 sm:$0xff]   ;;  %v19176_v30 = vld [vmem:[#allocation11 + $0x7e4] ss:$48 sps:$4 sm:$0xff]  }
 0x3c2   :  { %v3826_v39 = vpop.f32.mrf.mxu1  ;;  %v3867_v40 = vpop.f32.mrf.mxu0  ;;  %6581 = vmatprep.subr.bf16.mxu1 %v19119_v20  ;;  %6622 = vmatprep.subr.bf16.mxu0 %v19170_v23  ;;  %v19174_v20 = vld [vmem:[#allocation11 + $0x7e0] ss:$48 sps:$4 sm:$0xff]   ;;  %v19182_v0 = vld [vmem:[#allocation11 + $0x784] ss:$48 sps:$4 sm:$0xff]  }
 0x3c3   :  { %v3866_v43 = vadd.f32 %v3865_v36, %v3825_v37  ;;  %v3827_v44 = vadd.f32 %v3826_v39, %v1669_v34  ;;  %v19180_v34 = vld [vmem:[#allocation11 + $0x780] ss:$48 sps:$4 sm:$0xff]   ;;  %v19152_v36 = vld [vmem:[#allocation11 + $0x424] ss:$48 sps:$4 sm:$0xff]  }
 0x3c4   :  { %v3828_v45 = vpop.f32.mrf.mxu1  ;;  %v3869_v46 = vpop.f32.mrf.mxu0  ;;  %v19186_v37 = vld [vmem:[#allocation11 + $0x720] ss:$48 sps:$4 sm:$0xff]   ;;  %v19155_v39 = vld [vmem:[#allocation11 + $0x3c4] ss:$48 sps:$4 sm:$0xff]  }
 0x3c5   :  { %v22244_v60 = vadd.f32 %v3866_v43, %v1125_v42  ;;  %v3868_v61 = vadd.f32 %v3867_v40, %v3827_v44  ;;  %6582 = vmatpush1.bf16.msra.mxu1 %v19117_v38  ;;  %6623 = vmatpush1.bf16.msra.mxu0 %v19168_v22  ;;  %v19188_v38 = vld [vmem:[#allocation11 + $0x724] ss:$48 sps:$4 sm:$0xff]   ;;  %v19153_v40 = vld [vmem:[#allocation11 + $0x3c0] ss:$48 sps:$4 sm:$0xff]  }
 0x3c6   :  { %v3829_v52 = vpop.f32.mrf.mxu1  ;;  %v3870_v53 = vpop.f32.mrf.mxu0  ;;  %6583 = vmatprep.subr.bf16.mxu1 %v19122_v41  ;;  %6624 = vmatprep.subr.bf16.mxu0 %v19176_v30  ;;  %v19192_v41 = vld [vmem:[#allocation11 + $0x6c0] ss:$48 sps:$4 sm:$0xff]   ;;  %v19194_v42 = vld [vmem:[#allocation11 + $0x6c4] ss:$48 sps:$4 sm:$0xff]  }
 0x3c7   :  { %v22246_v28 = vadd.f32 %v3868_v61, %v1127_v49  ;;  %v19158_v43 = vld [vmem:[#allocation11 + $0x364] ss:$48 sps:$4 sm:$0xff]   ;;  %v19156_v44 = vld [vmem:[#allocation11 + $0x360] ss:$48 sps:$4 sm:$0xff]   ;;  %v19167_v53 = vld [vmem:[#allocation11 + $0x2ac] ss:$48 sps:$4 sm:$0xff]  }
 0x3c8   :  { %v19198_v45 = vld [vmem:[#allocation11 + $0x660] ss:$48 sps:$4 sm:$0xff]   ;;  %v19200_v46 = vld [vmem:[#allocation11 + $0x664] ss:$48 sps:$4 sm:$0xff]  }
 0x3c9   :  { %6584 = vmatpush1.bf16.msra.mxu1 %v19120_v50  ;;  %6625 = vmatpush1.bf16.msra.mxu0 %v19174_v20  ;;  %v19161_v49 = vld [vmem:[#allocation11 + $0x304] ss:$48 sps:$4 sm:$0xff]   ;;  %v19159_v61 = vld [vmem:[#allocation11 + $0x300] ss:$48 sps:$4 sm:$0xff]  }
 0x3ca   :  { %6585 = vmatprep.subr.bf16.mxu1 %v19125_v56  ;;  %6626 = vmatprep.subr.bf16.mxu0 %v19182_v0  ;;  %v19204_v50 = vld [vmem:[#allocation11 + $0x600] ss:$48 sps:$4 sm:$0xff]   ;;  %v19206_v52 = vld [vmem:[#allocation11 + $0x604] ss:$48 sps:$4 sm:$0xff]   ;;  %v1673_v56 = vrot.slane %v22232_v29, %v22157_v47 }
 0x3cb   :  { %v19222_v20 = vld [vmem:[#allocation11 + $0xae0] ss:$48 sps:$4 sm:$0xff]   ;;  %v19230_v30 = vld [vmem:[#allocation11 + $0xa84] ss:$48 sps:$4 sm:$0xff]  }
 0x3cc   :  { %v19240_v0 = vld [vmem:[#allocation11 + $0x9c0] ss:$48 sps:$4 sm:$0xff]  }
 0x3cd   :  { %6586 = vmatpush1.bf16.msra.mxu1 %v19123_v1  ;;  %6627 = vmatpush1.bf16.msra.mxu0 %v19180_v34  ;;  %v19210_v1 = vld [vmem:[#allocation11 + $0xba0] ss:$48 sps:$4 sm:$0xff]  }
 0x3ce   :  { %6587 = vmatprep.subr.bf16.mxu1 %v19128_v63  ;;  %6628 = vmatprep.subr.bf16.mxu0 %v19188_v38  ;;  %v19212_v63 = vld [vmem:[#allocation11 + $0xba4] ss:$48 sps:$4 sm:$0xff]   ;;  %v19234_v34 = vld [vmem:[#allocation11 + $0xa20] ss:$48 sps:$4 sm:$0xff]   ;;  %v16708_v38 = vmul.f32 -1.442695, %v22208_v14 }
 0x3d0   :  { %21450 = vpow2.f32 %v16708_v38 }
 0x3d1   :  { %6588 = vmatpush1.bf16.msra.mxu1 %v19126_v24  ;;  %6629 = vmatpush1.bf16.msra.mxu0 %v19186_v37  ;;  %v1677_v24 = vrot.slane %v22232_v29, %v22160_v51  ;;  %v19254_v37 = vld [vmem:[#allocation11 + $0x904] ss:$48 sps:$4 sm:$0xff]  }
 0x3d2   :  { %6589 = vmatprep.subr.bf16.mxu1 %v19131_v4  ;;  %6630 = vmatprep.subr.bf16.mxu0 %v19194_v42  ;;  %v16713_v42 = vmul.f32 -1.442695, %v22246_v28 }
 0x3d5   :  { %6590 = vmatpush1.bf16.msra.mxu1 %v19129_v6  ;;  %6631 = vmatpush1.bf16.msra.mxu0 %v19192_v41  ;;  %v16712_v41 = vmul.f32 -1.442695, %v22244_v60 }
 0x3d6   :  { %6591 = vmatprep.subr.bf16.mxu1 %v19134_v8  ;;  %6632 = vmatprep.subr.bf16.mxu0 %v19200_v46 }
 0x3d9   :  { %6592 = vmatpush1.bf16.msra.mxu1 %v19132_v9  ;;  %6633 = vmatpush1.bf16.msra.mxu0 %v19198_v45 }
 0x3da   :  { %6593 = vmatprep.subr.bf16.mxu1 %v19137_v3  ;;  %6634 = vmatprep.subr.bf16.mxu0 %v19206_v52  ;;  %v21573_v52 = vld [vmem:[#allocation8 + $0x8] sm:$0xf] }
 0x3dd   :  { %6594 = vmatpush1.bf16.msra.mxu1 %v19135_v12  ;;  %6635 = vmatpush1.bf16.msra.mxu0 %v19204_v50  ;;  %v19218_v12 = vld [vmem:[#allocation11 + $0xb44] ss:$48 sps:$4 sm:$0xff]  }
 0x3de   :  { %6595 = vmatprep.subr.bf16.mxu1 %v19140_v17  ;;  %6636 = vmatprep.subr.bf16.mxu0 %v19212_v63 }
 0x3e1   :  { %6596 = vmatpush2.bf16.msra.mxu1 %v19138_v58  ;;  %6637 = vmatpush2.bf16.msra.mxu0 %v19210_v1 }
 0x3e2   :  { %6597 = vmatprep.subr.bf16.mxu1 %v19143_v59  ;;  %6638 = vmatprep.subr.bf16.mxu0 %v19218_v12 }
 0x3e5   :  { %6598 = vmatpush2.bf16.msra.mxu1 %v19141_v15  ;;  %6639 = vmatpush2.bf16.msra.mxu0 %v19216_v18 }
 0x3e6   :  { %6599 = vmatprep.subr.bf16.mxu1 %v19146_v25  ;;  %v19224_v25 = vld [vmem:[#allocation11 + $0xae4] ss:$48 sps:$4 sm:$0xff]  }
 0x3e7   :  { %6640 = vmatprep.subr.bf16.mxu0 %v19224_v25 }
 0x3e9   :  { %6600 = vmatpush2.bf16.msra.mxu1 %v19144_v26  ;;  %6641 = vmatpush2.bf16.msra.mxu0 %v19222_v20 }
 0x3ea   :  { %6601 = vmatprep.subr.bf16.mxu1 %v19149_v32  ;;  %v19228_v32 = vld [vmem:[#allocation11 + $0xa80] ss:$48 sps:$4 sm:$0xff]   ;;  %6642 = vmatprep.subr.bf16.mxu0 %v19230_v30 }
 0x3ed   :  { %6602 = vmatpush2.bf16.msra.mxu1 %v19147_v33  ;;  %6643 = vmatpush2.bf16.msra.mxu0 %v19228_v32  ;;  %v19236_v33 = vld [vmem:[#allocation11 + $0xa24] ss:$48 sps:$4 sm:$0xff]  }
 0x3ee   :  { %6603 = vmatprep.subr.bf16.mxu1 %v19152_v36  ;;  %6644 = vmatprep.subr.bf16.mxu0 %v19236_v33  ;;  %v19248_v36 = vld [vmem:[#allocation11 + $0x964] ss:$48 sps:$4 sm:$0xff]  }
 0x3f1   :  { %6604 = vmatpush2.bf16.msra.mxu1 %v19150_v54  ;;  %6645 = vmatpush2.bf16.msra.mxu0 %v19234_v34  ;;  %v19246_v54 = vld [vmem:[#allocation11 + $0x960] ss:$48 sps:$4 sm:$0xff]  }
 0x3f2   :  { %6605 = vmatprep.subr.bf16.mxu1 %v19155_v39  ;;  %v19260_v39 = vld [vmem:[#allocation11 + $0x8ac] ss:$48 sps:$4 sm:$0xff]  }
 0x3f5   :  { %6606 = vmatpush2.bf16.msra.mxu1 %v19153_v40  ;;  %v16709_v40 = vmul.f32 -1.442695, %v22210_v19 }
 0x3f6   :  { %6607 = vmatprep.subr.bf16.mxu1 %v19158_v43  ;;  %v21451_v43 = vpop.eup %21450 }
 0x3f7   :  { %21452 = vpow2.f32 %v16709_v40  ;;  %v4134_v45 = vadd.f32 1.0, %v21451_v43 }
 0x3f8   :  { %21454 = vpow2.f32 %v16712_v41 }
 0x3f9   :  { %6608 = vmatpush2.bf16.msra.mxu1 %v19156_v44  ;;  %21456 = vpow2.f32 %v16713_v42  ;;  %v19165_v42 = vld [vmem:[#allocation11 + $0x2a8] ss:$48 sps:$4 sm:$0xff]  }
 0x3fa   :  { %6609 = vmatprep.subr.bf16.mxu1 %v19161_v49  ;;  %21458 = vrcp.f32 %v4134_v45  ;;  %v22262_v49 = vld [vmem:[#allocation10 + $0x8] sm:$0xf]  ;;  %v16710_v45 = vmul.f32 -1.442695, %v22221_v11  ;;  %v19183_v11 = vld [vmem:[#allocation11 + $0x188] ss:$48 sps:$4 sm:$0xff]  }
 0x3fb   :  { %v1681_v14 = vrot.slane %v22262_v49, %v22191_v31  ;;  %v1685_v60 = vrot.slane %v22262_v49, %v22194_v35 }
 0x3fd   :  { %6610 = vmatpush2.bf16.msra.mxu1 %v19159_v61 }
 0x3fe   :  { %6661 = vmatprep.subr.bf16.mxu1 %v19167_v53  ;;  %v503_v53 = vrot.slane %v21573_v52, %v22191_v31 }
 0x400   :  { %v3906_v4 = vpop.f32.mrf.mxu1  ;;  %v3947_v6 = vpop.f32.mrf.mxu0 }
 0x401   :  { %v3907_v8 = vadd.f32 %v3906_v4, %v1673_v56 }
 0x402   :  { %v3908_v9 = vpop.f32.mrf.mxu1  ;;  %v3949_v3 = vpop.f32.mrf.mxu0 }
 0x403   :  { %v3948_v17 = vadd.f32 %v3947_v6, %v3907_v8  ;;  %v3909_v58 = vadd.f32 %v3908_v9, %v1677_v24  ;;  %v507_v6 = vrot.slane %v21573_v52, %v22194_v35  ;;  %v19197_v52 = vld [vmem:[#allocation11 + $0xcc] ss:$48 sps:$4 sm:$0xff]  }
 0x404   :  { %v3910_v59 = vpop.f32.mrf.mxu1  ;;  %v3951_v21 = vpop.f32.mrf.mxu0 }
 0x405   :  { %v22253_v15 = vadd.f32 %v3948_v17, %v22168_v2  ;;  %v3950_v22 = vadd.f32 %v3949_v3, %v3909_v58  ;;  %v19242_v2 = vld [vmem:[#allocation11 + $0x9c4] ss:$48 sps:$4 sm:$0xff]   ;;  %v21453_v44 = vpop.eup %21452  ;;  %v1207_v58 = vadd.f32 %v22176_v55, %v503_v53 }
 0x406   :  { %v3911_v29 = vpop.f32.mrf.mxu1  ;;  %v3952_v23 = vpop.f32.mrf.mxu0  ;;  %6646 = vmatprep.subr.bf16.mxu0 %v19242_v2  ;;  %v4135_v46 = vadd.f32 1.0, %v21453_v44  ;;  %v19173_v44 = vld [vmem:[#allocation11 + $0x24c] ss:$48 sps:$4 sm:$0xff]  }
 0x407   :  { %v22256_v26 = vadd.f32 %v3950_v22, %v22172_v10  ;;  %6647 = vmatpush2.bf16.msra.mxu0 %v19240_v0  ;;  %v19252_v10 = vld [vmem:[#allocation11 + $0x900] ss:$48 sps:$4 sm:$0xff]   ;;  %v21455_v19 = vpop.eup %21454  ;;  %v1209_v23 = vadd.f32 %v22182_v62, %v507_v6 }
 0x408   :  { %6648 = vmatprep.subr.bf16.mxu0 %v19248_v36  ;;  %21460 = vrcp.f32 %v4135_v46  ;;  %v21457_v61 = vpop.eup %21456  ;;  %v4162_v56 = vadd.f32 1.0, %v21455_v19  ;;  %v21574_v36 = vld [vmem:[%s22886_s1] sm:$0xff]  ;;  %v21575_v62 = vld [vmem:[%s22886_s1 + $0x8] sm:$0xff]  ;;  %v16711_v46 = vmul.f32 -1.442695, %v22224_v13 }
 0x409   :  { %v4163_v63 = vadd.f32 1.0, %v21457_v61  ;;  %v21459_v3 = vpop.eup %21458  ;;  %v19179_v19 = vld [vmem:[#allocation11 + $0x1ec] ss:$48 sps:$4 sm:$0xff]   ;;  %v19177_v61 = vld [vmem:[#allocation11 + $0x1e8] ss:$48 sps:$4 sm:$0xff]  }
 0x40a   :  { %21462 = vrcp.f32 %v4162_v56  ;;  %v19189_v13 = vld [vmem:[#allocation11 + $0x128] ss:$48 sps:$4 sm:$0xff]   ;;  %v16715_v53 = vmul.f32 -1.442695, %v22256_v26  ;;  %v19215_v26 = vld [vmem:[#allocation11 + $0x5ac] ss:$48 sps:$4 sm:$0xff]  }
 0x40b   :  { %6649 = vmatpush2.bf16.msra.mxu0 %v19246_v54  ;;  %21464 = vrcp.f32 %v4163_v63 }
 0x40c   :  { %6650 = vmatprep.subr.bf16.mxu0 %v19254_v37 }
 0x40f   :  { %6651 = vmatpush2.bf16.msra.mxu0 %v19252_v10 }
 0x410   :  { %6702 = vmatprep.subr.bf16.mxu0 %v19260_v39 }
 0x415   :  { %v21461_v21 = vpop.eup %21460 }
 0x417   :  { %v21463_v32 = vpop.eup %21462 }
 0x418   :  { %v21465_v33 = vpop.eup %21464  ;;  %v4186_v34 = vsub.f32 1.0, %v21463_v32  ;;  %v4194_v54 = vmul.f32 %v21574_v36, %v21463_v32  ;;  %v19227_v32 = vld [vmem:[#allocation11 + $0x4ec] ss:$48 sps:$4 sm:$0xff]  }
 0x419   :  { %v4187_v55 = vsub.f32 1.0, %v21465_v33  ;;  %v4195_v38 = vmul.f32 %v21575_v62, %v21465_v33 }
 0x440   :  { %v3988_v50 = vpop.f32.mrf.mxu1  ;;  %v4029_v28 = vpop.f32.mrf.mxu0 }
 0x441   :  { %v3989_v1 = vadd.f32 %v3988_v50, %v1681_v14  ;;  %v19171_v14 = vld [vmem:[#allocation11 + $0x248] ss:$48 sps:$4 sm:$0xff]   ;;  %v19191_v50 = vld [vmem:[#allocation11 + $0x12c] ss:$48 sps:$4 sm:$0xff]  }
 0x442   :  { %v3990_v24 = vpop.f32.mrf.mxu1  ;;  %v4031_v4 = vpop.f32.mrf.mxu0 }
 0x443   :  { %v4030_v8 = vadd.f32 %v4029_v28, %v3989_v1  ;;  %v3991_v9 = vadd.f32 %v3990_v24, %v1685_v60  ;;  %v19185_v60 = vld [vmem:[#allocation11 + $0x18c] ss:$48 sps:$4 sm:$0xff]   ;;  %v16714_v28 = vmul.f32 -1.442695, %v22253_v15  ;;  %v19195_v1 = vld [vmem:[#allocation11 + $0xc8] ss:$48 sps:$4 sm:$0xff]  }
 0x444   :  { %v3992_v12 = vpop.f32.mrf.mxu1  ;;  %v4033_v17 = vpop.f32.mrf.mxu0  ;;  %v19203_v24 = vld [vmem:[#allocation11 + $0x6c] ss:$48 sps:$4 sm:$0xff]  }
 0x445   :  { %v4174_v18 = vmul.f32 %v21459_v3, %v4030_v8  ;;  %v4032_v59 = vadd.f32 %v4031_v4, %v3991_v9  ;;  %v19201_v8 = vld [vmem:[#allocation11 + $0x68] ss:$48 sps:$4 sm:$0xff]   ;;  %v19209_v15 = vld [vmem:[#allocation11 + $0xc] ss:$48 sps:$4 sm:$0xff]   ;;  %v1689_v12 = vrot.slane %v22262_v49, %v22133_v48 }
 0x446   :  { %v3993_v22 = vpop.f32.mrf.mxu1  ;;  %v4034_v29 = vpop.f32.mrf.mxu0  ;;  %v19207_v9 = vld [vmem:[#allocation11 + $0x8] ss:$48 sps:$4 sm:$0xff]  }
 0x447   :  { %v4178_v25 = vadd.f32 %v4174_v18, %v1207_v58  ;;  %v4175_v20 = vmul.f32 %v21461_v21, %v4032_v59  ;;  %v19213_v3 = vld [vmem:[#allocation11 + $0x5a8] ss:$48 sps:$4 sm:$0xff]   ;;  %v19221_v58 = vld [vmem:[#allocation11 + $0x54c] ss:$48 sps:$4 sm:$0xff]   ;;  %v1693_v18 = vrot.slane %v22262_v49, %v22138_v5 }
 0x449   :  { %21466 = vtanh.f32 %v4178_v25  ;;  %v4179_v30 = vadd.f32 %v4175_v20, %v1209_v23  ;;  %v19219_v25 = vld [vmem:[#allocation11 + $0x548] ss:$48 sps:$4 sm:$0xff]  }
 0x44b   :  { %21468 = vtanh.f32 %v4179_v30 }
 0x44c   :  { %21470 = vpow2.f32 %v16710_v45  ;;  %v19231_v45 = vld [vmem:[#allocation11 + $0x488] ss:$48 sps:$4 sm:$0xff]  }
 0x44d   :  { %21472 = vpow2.f32 %v16711_v46  ;;  %v19239_v46 = vld [vmem:[#allocation11 + $0x42c] ss:$48 sps:$4 sm:$0xff]  }
 0x44e   :  { %21474 = vpow2.f32 %v16714_v28  ;;  %v19249_v28 = vld [vmem:[#allocation11 + $0x368] ss:$48 sps:$4 sm:$0xff]  }
 0x44f   :  { %21476 = vpow2.f32 %v16715_v53 }
 0x456   :  { %v21467_v2 = vpop.eup %21466 }
 0x457   :  { %v4190_v0 = vmul.f32 %v21467_v2, %v4186_v34 }
 0x458   :  { %v21469_v10 = vpop.eup %21468 }
 0x459   :  { %v4191_v37 = vmul.f32 %v21469_v10, %v4187_v55  ;;  %v4198_v39 = vadd.f32 %v4194_v54, %v4190_v0  ;;  %v21471_v56 = vpop.eup %21470  ;;  %v19225_v10 = vld [vmem:[#allocation11 + $0x4e8] ss:$48 sps:$4 sm:$0xff]  }
 0x45a   :  { %v21473_v63 = vpop.eup %21472  ;;  %v4136_v4 = vadd.f32 1.0, %v21471_v56 }
 0x45b   :  { %v4199_v40 = vadd.f32 %v4195_v38, %v4191_v37  ;;  %15848 = vst [vmem:[%s22879_s18] sm:$0xff] %v4198_v39  ;;  %v22286_v43 = vpack.c.bf16 %v4198_v39, %v4198_v39  ;;  %v4137_v6 = vadd.f32 1.0, %v21473_v63  ;;  %v21475_v17 = vpop.eup %21474  ;;  %v19233_v39 = vld [vmem:[#allocation11 + $0x48c] ss:$48 sps:$4 sm:$0xff]  }
 0x45c   :  { %21478 = vrcp.f32 %v4136_v4  ;;  %v21477_v59 = vpop.eup %21476  ;;  %v4164_v29 = vadd.f32 1.0, %v21475_v17  ;;  %v19255_v4 = vld [vmem:[#allocation11 + $0x308] ss:$48 sps:$4 sm:$0xff]   ;;  %v19261_v17 = vld [vmem:[#allocation11 + $0x2b0] ss:$48 sps:$4 sm:$0xff]  }
 0x45d   :  { %v22281_v41 = vpack.c.bf16 %v4199_v40, %v4199_v40  ;;  %15849 = vst [vmem:[%s22879_s18 + $0x8] sm:$0xff] %v4199_v40  ;;  %21480 = vrcp.f32 %v4137_v6  ;;  %v4165_v33 = vadd.f32 1.0, %v21477_v59  ;;  %v19269_v59 = vld [vmem:[#allocation11 + $0x254] ss:$48 sps:$4 sm:$0xff]  }
 0x45e   :  { %21482 = vrcp.f32 %v4164_v29  ;;  %v19272_v29 = vld [vmem:[#allocation11 + $0x7ec] ss:$48 sps:$4 sm:$0xff]  }
 0x45f   :  { %6611 = vmatprep.mubr.bf16.mxu1 %v22281_v41  ;;  %21484 = vrcp.f32 %v4165_v33  ;;  %v19276_v33 = vld [vmem:[#allocation11 + $0x788] ss:$48 sps:$4 sm:$0xff]  }
 0x460   :  { %6612 = vmatmul.mubr.bf16.vlgmr.msra.gmra.mxu1 %v22286_v43 }
 0x461   :  { %6662 = vmatpush1.bf16.msra.mxu1 %v19165_v42  ;;  %6693 = vmatprep.mubr.bf16.mxu1 %v22281_v41 }
 0x462   :  { %6663 = vmatprep.subr.bf16.mxu1 %v19173_v44 }
 0x464   :  { %v21576_v56 = vld [vmem:[%s22886_s1 + $0x10] sm:$0xff]  ;;  %v21577_v6 = vld [vmem:[%s22886_s1 + $0x18] sm:$0xff] }
 0x465   :  { %6664 = vmatpush1.bf16.msra.mxu1 %v19171_v14  ;;  %v19237_v14 = vld [vmem:[#allocation11 + $0x428] ss:$48 sps:$4 sm:$0xff]  }
 0x466   :  { %6665 = vmatprep.subr.bf16.mxu1 %v19179_v19  ;;  %v19245_v19 = vld [vmem:[#allocation11 + $0x3cc] ss:$48 sps:$4 sm:$0xff]  }
 0x469   :  { %6666 = vmatpush1.bf16.msra.mxu1 %v19177_v61  ;;  %v21479_v0 = vpop.eup %21478  ;;  %v19243_v61 = vld [vmem:[#allocation11 + $0x3c8] ss:$48 sps:$4 sm:$0xff]  }
 0x46a   :  { %6667 = vmatprep.subr.bf16.mxu1 %v19185_v60  ;;  %v21481_v37 = vpop.eup %21480 }
 0x46b   :  { %v21483_v60 = vpop.eup %21482 }
 0x46d   :  { %6668 = vmatpush1.bf16.msra.mxu1 %v19183_v11  ;;  %v19251_v11 = vld [vmem:[#allocation11 + $0x36c] ss:$48 sps:$4 sm:$0xff]  }
 0x46e   :  { %6669 = vmatprep.subr.bf16.mxu1 %v19191_v50  ;;  %v21485_v50 = vpop.eup %21484 }
 0x46f   :  { %v4189_v53 = vsub.f32 1.0, %v21485_v50 }
 0x471   :  { %6670 = vmatpush1.bf16.msra.mxu1 %v19189_v13 }
 0x472   :  { %6671 = vmatprep.subr.bf16.mxu1 %v19197_v52 }
 0x475   :  { %6672 = vmatpush1.bf16.msra.mxu1 %v19195_v1  ;;  %v4196_v1 = vmul.f32 %v21576_v56, %v21483_v60  ;;  %v19326_v56 = vld [vmem:[#allocation11 + $0xa8c] ss:$48 sps:$4 sm:$0xff]  }
 0x476   :  { %6673 = vmatprep.subr.bf16.mxu1 %v19203_v24 }
 0x479   :  { %6674 = vmatpush1.bf16.msra.mxu1 %v19201_v8  ;;  %v4197_v8 = vmul.f32 %v21577_v6, %v21485_v50  ;;  %v19317_v50 = vld [vmem:[#allocation11 + $0x554] ss:$48 sps:$4 sm:$0xff]  }
 0x47a   :  { %6675 = vmatprep.subr.bf16.mxu1 %v19209_v15  ;;  %v19335_v6 = vld [vmem:[#allocation11 + $0x434] ss:$48 sps:$4 sm:$0xff]  }
 0x47d   :  { %6676 = vmatpush1.bf16.msra.mxu1 %v19207_v9  ;;  %v19263_v9 = vld [vmem:[#allocation11 + $0x2b4] ss:$48 sps:$4 sm:$0xff]  }
 0x47e   :  { %6677 = vmatprep.subr.bf16.mxu1 %v19215_v26 }
 0x480   :  { %v4070_v21 = vpop.f32.mrf.mxu1  ;;  %v4111_v22 = vpop.f32.mrf.mxu0 }
 0x481   :  { %v4071_v23 = vadd.f32 %v4070_v21, %v1689_v12  ;;  %6678 = vmatpush2.bf16.msra.mxu1 %v19213_v3  ;;  %v19258_v12 = vld [vmem:[#allocation11 + $0x8a8] ss:$48 sps:$4 sm:$0xff]  }
 0x482   :  { %v4072_v20 = vpop.f32.mrf.mxu1  ;;  %v4113_v30 = vpop.f32.mrf.mxu0  ;;  %6679 = vmatprep.subr.bf16.mxu1 %v19221_v58  ;;  %v19264_v21 = vld [vmem:[#allocation11 + $0x848] ss:$48 sps:$4 sm:$0xff]  }
 0x483   :  { %v4112_v34 = vadd.f32 %v4111_v22, %v4071_v23  ;;  %v4073_v2 = vadd.f32 %v4072_v20, %v1693_v18  ;;  %v19266_v18 = vld [vmem:[#allocation11 + $0x84c] ss:$48 sps:$4 sm:$0xff]   ;;  %v19267_v22 = vld [vmem:[#allocation11 + $0x250] ss:$48 sps:$4 sm:$0xff]   ;;  %v19275_v23 = vld [vmem:[#allocation11 + $0x1f4] ss:$48 sps:$4 sm:$0xff]  }
 0x484   :  { %v4074_v55 = vpop.f32.mrf.mxu1  ;;  %v4115_v36 = vpop.f32.mrf.mxu0  ;;  %v19273_v20 = vld [vmem:[#allocation11 + $0x1f0] ss:$48 sps:$4 sm:$0xff]  }
 0x485   :  { %v4176_v54 = vmul.f32 %v21479_v0, %v4112_v34  ;;  %v4114_v49 = vadd.f32 %v4113_v30, %v4073_v2  ;;  %6680 = vmatpush2.bf16.msra.mxu1 %v19219_v25  ;;  %v19270_v25 = vld [vmem:[#allocation11 + $0x7e8] ss:$48 sps:$4 sm:$0xff]   ;;  %v19278_v30 = vld [vmem:[#allocation11 + $0x78c] ss:$48 sps:$4 sm:$0xff]   ;;  %v19279_v34 = vld [vmem:[#allocation11 + $0x190] ss:$48 sps:$4 sm:$0xff]  }
 0x486   :  { %v4075_v62 = vpop.f32.mrf.mxu1  ;;  %v4116_v38 = vpop.f32.mrf.mxu0  ;;  %6681 = vmatprep.subr.bf16.mxu1 %v19227_v32  ;;  %v19281_v32 = vld [vmem:[#allocation11 + $0x194] ss:$48 sps:$4 sm:$0xff]   ;;  %v19284_v2 = vld [vmem:[#allocation11 + $0x72c] ss:$48 sps:$4 sm:$0xff]   ;;  %v19282_v55 = vld [vmem:[#allocation11 + $0x728] ss:$48 sps:$4 sm:$0xff]  }
 0x487   :  { %v4180_v40 = vadd.f32 %v4176_v54, %v22180_v57  ;;  %v4177_v42 = vmul.f32 %v21481_v37, %v4114_v49  ;;  %v4188_v57 = vsub.f32 1.0, %v21483_v60  ;;  %v19287_v0 = vld [vmem:[#allocation11 + $0x134] ss:$48 sps:$4 sm:$0xff]   ;;  %v19285_v36 = vld [vmem:[#allocation11 + $0x130] ss:$48 sps:$4 sm:$0xff]  }
 0x488   :  { %v19290_v54 = vld [vmem:[#allocation11 + $0x6cc] ss:$48 sps:$4 sm:$0xff]   ;;  %v19293_v49 = vld [vmem:[#allocation11 + $0xd4] ss:$48 sps:$4 sm:$0xff]   ;;  %v19291_v37 = vld [vmem:[#allocation11 + $0xd0] ss:$48 sps:$4 sm:$0xff]  }
 0x489   :  { %21486 = vtanh.f32 %v4180_v40  ;;  %v4181_v44 = vadd.f32 %v4177_v42, %v22184_v7  ;;  %6682 = vmatpush2.bf16.msra.mxu1 %v19225_v10  ;;  %v19257_v7 = vld [vmem:[#allocation11 + $0x30c] ss:$48 sps:$4 sm:$0xff]   ;;  %v19288_v10 = vld [vmem:[#allocation11 + $0x6c8] ss:$48 sps:$4 sm:$0xff]   ;;  %v19299_v38 = vld [vmem:[#allocation11 + $0x74] ss:$48 sps:$4 sm:$0xff]  }
 0x48a   :  { %6683 = vmatprep.subr.bf16.mxu1 %v19233_v39  ;;  %v19296_v62 = vld [vmem:[#allocation11 + $0x66c] ss:$48 sps:$4 sm:$0xff]   ;;  %v19294_v39 = vld [vmem:[#allocation11 + $0x668] ss:$48 sps:$4 sm:$0xff]   ;;  %v19297_v40 = vld [vmem:[#allocation11 + $0x70] ss:$48 sps:$4 sm:$0xff]  }
 0x48b   :  { %21488 = vtanh.f32 %v4181_v44  ;;  %v19302_v42 = vld [vmem:[#allocation11 + $0x60c] ss:$48 sps:$4 sm:$0xff]   ;;  %v19305_v44 = vld [vmem:[#allocation11 + $0x14] ss:$48 sps:$4 sm:$0xff]   ;;  %v19309_v60 = vld [vmem:[#allocation11 + $0x5b0] ss:$48 sps:$4 sm:$0xff]  }
 0x48d   :  { %6684 = vmatpush2.bf16.msra.mxu1 %v19231_v45  ;;  %v19300_v45 = vld [vmem:[#allocation11 + $0x608] ss:$48 sps:$4 sm:$0xff]  }
 0x48e   :  { %6685 = vmatprep.subr.bf16.mxu1 %v19239_v46  ;;  %v19303_v46 = vld [vmem:[#allocation11 + $0x10] ss:$48 sps:$4 sm:$0xff]  }
 0x491   :  { %6686 = vmatpush2.bf16.msra.mxu1 %v19237_v14  ;;  %v19308_v14 = vld [vmem:[#allocation11 + $0xbac] ss:$48 sps:$4 sm:$0xff]  }
 0x492   :  { %6687 = vmatprep.subr.bf16.mxu1 %v19245_v19  ;;  %v19311_v19 = vld [vmem:[#allocation11 + $0x5b4] ss:$48 sps:$4 sm:$0xff]  }
 0x495   :  { %6688 = vmatpush2.bf16.msra.mxu1 %v19243_v61  ;;  %v19306_v61 = vld [vmem:[#allocation11 + $0xba8] ss:$48 sps:$4 sm:$0xff]  }
 0x496   :  { %v21487_v13 = vpop.eup %21486  ;;  %6689 = vmatprep.subr.bf16.mxu1 %v19251_v11  ;;  %v19314_v11 = vld [vmem:[#allocation11 + $0xb4c] ss:$48 sps:$4 sm:$0xff]  }
 0x497   :  { %v4192_v52 = vmul.f32 %v21487_v13, %v4188_v57  ;;  %v19312_v57 = vld [vmem:[#allocation11 + $0xb48] ss:$48 sps:$4 sm:$0xff]   ;;  %v19320_v13 = vld [vmem:[#allocation11 + $0xaec] ss:$48 sps:$4 sm:$0xff]  }
 0x498   :  { %v21489_v63 = vpop.eup %21488 }
 0x499   :  { %v4193_v24 = vmul.f32 %v21489_v63, %v4189_v53  ;;  %6690 = vmatpush2.bf16.msra.mxu1 %v19249_v28  ;;  %v4200_v15 = vadd.f32 %v4196_v1, %v4192_v52  ;;  %v19315_v28 = vld [vmem:[#allocation11 + $0x550] ss:$48 sps:$4 sm:$0xff]   ;;  %v19318_v52 = vld [vmem:[#allocation11 + $0xae8] ss:$48 sps:$4 sm:$0xff]   ;;  %v19329_v1 = vld [vmem:[#allocation11 + $0x494] ss:$48 sps:$4 sm:$0xff]  }
 0x49a   :  { %6691 = vmatprep.subr.bf16.mxu1 %v19257_v7  ;;  %v19323_v7 = vld [vmem:[#allocation11 + $0x4f4] ss:$48 sps:$4 sm:$0xff]   ;;  %v19321_v53 = vld [vmem:[#allocation11 + $0x4f0] ss:$48 sps:$4 sm:$0xff]   ;;  %v19324_v63 = vld [vmem:[#allocation11 + $0xa88] ss:$48 sps:$4 sm:$0xff]  }
 0x49b   :  { %v4201_v26 = vadd.f32 %v4197_v8, %v4193_v24  ;;  %15850 = vst [vmem:[%s22879_s18 + $0x10] sm:$0xff] %v4200_v15  ;;  %v22315_v58 = vpack.c.bf16 %v4200_v15, %v4200_v15  ;;  %v19327_v24 = vld [vmem:[#allocation11 + $0x490] ss:$48 sps:$4 sm:$0xff]   ;;  %v19330_v8 = vld [vmem:[#allocation11 + $0xa28] ss:$48 sps:$4 sm:$0xff]  }
 0x49c   :  { %v19333_v15 = vld [vmem:[#allocation11 + $0x430] ss:$48 sps:$4 sm:$0xff]  }
 0x49d   :  { %6692 = vmatpush2.bf16.msra.mxu1 %v19255_v4  ;;  %v22310_v3 = vpack.c.bf16 %v4201_v26, %v4201_v26  ;;  %15851 = vst [vmem:[%s22879_s18 + $0x18] sm:$0xff] %v4201_v26  ;;  %v19332_v4 = vld [vmem:[#allocation11 + $0xa2c] ss:$48 sps:$4 sm:$0xff]   ;;  %v19341_v26 = vld [vmem:[#allocation11 + $0x3d4] ss:$48 sps:$4 sm:$0xff]  }
 0x49e   :  { %6743 = vmatprep.subr.bf16.mxu1 %v19263_v9  ;;  %v19338_v9 = vld [vmem:[#allocation11 + $0x9cc] ss:$48 sps:$4 sm:$0xff]  }
 0x49f   :  { %6652 = vmatprep.mubr.bf16.mxu0 %v22310_v3 }
 0x4a0   :  { %6694 = vmatmul.mubr.bf16.vlgmr.msra.gmra.mxu1 %v22286_v43  ;;  %6653 = vmatmul.mubr.bf16.vlgmr.msra.gmra.mxu0 %v22315_v58 }
 0x4a1   :  { %6703 = vmatpush1.bf16.msra.mxu0 %v19258_v12  ;;  %6744 = vmatpush1.bf16.msra.mxu1 %v19261_v17  ;;  %v19336_v12 = vld [vmem:[#allocation11 + $0x9c8] ss:$48 sps:$4 sm:$0xff]   ;;  %v19339_v17 = vld [vmem:[#allocation11 + $0x3d0] ss:$48 sps:$4 sm:$0xff]  }
 0x4a2   :  { %6775 = vmatprep.mubr.bf16.mxu1 %v22281_v41  ;;  %6734 = vmatprep.mubr.bf16.mxu0 %v22310_v3 }
 0x4a3   :  { %6704 = vmatprep.subr.bf16.mxu0 %v19266_v18  ;;  %6745 = vmatprep.subr.bf16.mxu1 %v19269_v59  ;;  %v19344_v18 = vld [vmem:[#allocation11 + $0x96c] ss:$48 sps:$4 sm:$0xff]   ;;  %v19347_v59 = vld [vmem:[#allocation11 + $0x374] ss:$48 sps:$4 sm:$0xff]  }
 0x4a5   :  { %6705 = vmatpush1.bf16.msra.mxu0 %v19264_v21  ;;  %6746 = vmatpush1.bf16.msra.mxu1 %v19267_v22  ;;  %v19342_v21 = vld [vmem:[#allocation11 + $0x968] ss:$48 sps:$4 sm:$0xff]   ;;  %v19345_v22 = vld [vmem:[#allocation11 + $0x370] ss:$48 sps:$4 sm:$0xff]  }
 0x4a6   :  { %6706 = vmatprep.subr.bf16.mxu0 %v19272_v29  ;;  %6747 = vmatprep.subr.bf16.mxu1 %v19275_v23  ;;  %v19350_v29 = vld [vmem:[#allocation11 + $0x90c] ss:$48 sps:$4 sm:$0xff]   ;;  %v19353_v23 = vld [vmem:[#allocation11 + $0x314] ss:$48 sps:$4 sm:$0xff]  }
 0x4a9   :  { %6707 = vmatpush1.bf16.msra.mxu0 %v19270_v25  ;;  %6748 = vmatpush1.bf16.msra.mxu1 %v19273_v20  ;;  %v19348_v25 = vld [vmem:[#allocation11 + $0x908] ss:$48 sps:$4 sm:$0xff]   ;;  %v19351_v20 = vld [vmem:[#allocation11 + $0x310] ss:$48 sps:$4 sm:$0xff]  }
 0x4aa   :  { %6708 = vmatprep.subr.bf16.mxu0 %v19278_v30  ;;  %6749 = vmatprep.subr.bf16.mxu1 %v19281_v32  ;;  %v19356_v30 = vld [vmem:[#allocation11 + $0x8b4] ss:$48 sps:$4 sm:$0xff]   ;;  %v19359_v32 = vld [vmem:[#allocation11 + $0x2bc] ss:$48 sps:$4 sm:$0xff]  }
 0x4ad   :  { %6709 = vmatpush1.bf16.msra.mxu0 %v19276_v33  ;;  %6750 = vmatpush1.bf16.msra.mxu1 %v19279_v34  ;;  %v19354_v33 = vld [vmem:[#allocation11 + $0x8b0] ss:$48 sps:$4 sm:$0xff]   ;;  %v19357_v34 = vld [vmem:[#allocation11 + $0x2b8] ss:$48 sps:$4 sm:$0xff]  }
 0x4ae   :  { %6710 = vmatprep.subr.bf16.mxu0 %v19284_v2  ;;  %6751 = vmatprep.subr.bf16.mxu1 %v19287_v0  ;;  %v19362_v2 = vld [vmem:[#allocation11 + $0x854] ss:$48 sps:$4 sm:$0xff]   ;;  %v19365_v0 = vld [vmem:[#allocation11 + $0x25c] ss:$48 sps:$4 sm:$0xff]  }
 0x4b1   :  { %6711 = vmatpush1.bf16.msra.mxu0 %v19282_v55  ;;  %6752 = vmatpush1.bf16.msra.mxu1 %v19285_v36  ;;  %v19360_v55 = vld [vmem:[#allocation11 + $0x850] ss:$48 sps:$4 sm:$0xff]   ;;  %v19363_v36 = vld [vmem:[#allocation11 + $0x258] ss:$48 sps:$4 sm:$0xff]  }
 0x4b2   :  { %6712 = vmatprep.subr.bf16.mxu0 %v19290_v54  ;;  %6753 = vmatprep.subr.bf16.mxu1 %v19293_v49  ;;  %v19368_v54 = vld [vmem:[#allocation11 + $0x7f4] ss:$48 sps:$4 sm:$0xff]   ;;  %v19371_v49 = vld [vmem:[#allocation11 + $0x1fc] ss:$48 sps:$4 sm:$0xff]  }
 0x4b5   :  { %6713 = vmatpush1.bf16.msra.mxu0 %v19288_v10  ;;  %6754 = vmatpush1.bf16.msra.mxu1 %v19291_v37  ;;  %v19366_v10 = vld [vmem:[#allocation11 + $0x7f0] ss:$48 sps:$4 sm:$0xff]   ;;  %v19369_v37 = vld [vmem:[#allocation11 + $0x1f8] ss:$48 sps:$4 sm:$0xff]  }
 0x4b6   :  { %6714 = vmatprep.subr.bf16.mxu0 %v19296_v62  ;;  %6755 = vmatprep.subr.bf16.mxu1 %v19299_v38  ;;  %v19374_v62 = vld [vmem:[#allocation11 + $0x794] ss:$48 sps:$4 sm:$0xff]   ;;  %v19377_v38 = vld [vmem:[#allocation11 + $0x19c] ss:$48 sps:$4 sm:$0xff]  }
 0x4b9   :  { %6715 = vmatpush1.bf16.msra.mxu0 %v19294_v39  ;;  %6756 = vmatpush1.bf16.msra.mxu1 %v19297_v40  ;;  %v19372_v39 = vld [vmem:[#allocation11 + $0x790] ss:$48 sps:$4 sm:$0xff]   ;;  %v19375_v40 = vld [vmem:[#allocation11 + $0x198] ss:$48 sps:$4 sm:$0xff]  }
 0x4ba   :  { %6716 = vmatprep.subr.bf16.mxu0 %v19302_v42  ;;  %6757 = vmatprep.subr.bf16.mxu1 %v19305_v44  ;;  %v19380_v42 = vld [vmem:[#allocation11 + $0x734] ss:$48 sps:$4 sm:$0xff]   ;;  %v19383_v44 = vld [vmem:[#allocation11 + $0x13c] ss:$48 sps:$4 sm:$0xff]  }
 0x4bd   :  { %6717 = vmatpush1.bf16.msra.mxu0 %v19300_v45  ;;  %6758 = vmatpush1.bf16.msra.mxu1 %v19303_v46  ;;  %v19378_v45 = vld [vmem:[#allocation11 + $0x730] ss:$48 sps:$4 sm:$0xff]   ;;  %v19381_v46 = vld [vmem:[#allocation11 + $0x138] ss:$48 sps:$4 sm:$0xff]  }
 0x4be   :  { %6718 = vmatprep.subr.bf16.mxu0 %v19308_v14  ;;  %6759 = vmatprep.subr.bf16.mxu1 %v19311_v19  ;;  %v19386_v14 = vld [vmem:[#allocation11 + $0x6d4] ss:$48 sps:$4 sm:$0xff]   ;;  %v19389_v19 = vld [vmem:[#allocation11 + $0xdc] ss:$48 sps:$4 sm:$0xff]  }
 0x4c1   :  { %6719 = vmatpush2.bf16.msra.mxu0 %v19306_v61  ;;  %6760 = vmatpush2.bf16.msra.mxu1 %v19309_v60  ;;  %v19384_v61 = vld [vmem:[#allocation11 + $0x6d0] ss:$48 sps:$4 sm:$0xff]   ;;  %v19387_v60 = vld [vmem:[#allocation11 + $0xd8] ss:$48 sps:$4 sm:$0xff]  }
 0x4c2   :  { %6720 = vmatprep.subr.bf16.mxu0 %v19314_v11  ;;  %6761 = vmatprep.subr.bf16.mxu1 %v19317_v50  ;;  %v19392_v11 = vld [vmem:[#allocation11 + $0x674] ss:$48 sps:$4 sm:$0xff]   ;;  %v19395_v50 = vld [vmem:[#allocation11 + $0x7c] ss:$48 sps:$4 sm:$0xff]  }
 0x4c5   :  { %6721 = vmatpush2.bf16.msra.mxu0 %v19312_v57  ;;  %6762 = vmatpush2.bf16.msra.mxu1 %v19315_v28  ;;  %v19390_v57 = vld [vmem:[#allocation11 + $0x670] ss:$48 sps:$4 sm:$0xff]   ;;  %v19393_v28 = vld [vmem:[#allocation11 + $0x78] ss:$48 sps:$4 sm:$0xff]  }
 0x4c6   :  { %6722 = vmatprep.subr.bf16.mxu0 %v19320_v13  ;;  %6763 = vmatprep.subr.bf16.mxu1 %v19323_v7  ;;  %v19398_v13 = vld [vmem:[#allocation11 + $0x614] ss:$48 sps:$4 sm:$0xff]   ;;  %v19401_v7 = vld [vmem:[#allocation11 + $0x1c] ss:$48 sps:$4 sm:$0xff]  }
 0x4c9   :  { %6723 = vmatpush2.bf16.msra.mxu0 %v19318_v52  ;;  %6764 = vmatpush2.bf16.msra.mxu1 %v19321_v53  ;;  %v19396_v52 = vld [vmem:[#allocation11 + $0x610] ss:$48 sps:$4 sm:$0xff]   ;;  %v19399_v53 = vld [vmem:[#allocation11 + $0x18] ss:$48 sps:$4 sm:$0xff]  }
 0x4ca   :  { %6724 = vmatprep.subr.bf16.mxu0 %v19326_v56  ;;  %6765 = vmatprep.subr.bf16.mxu1 %v19329_v1  ;;  %v19404_v56 = vld [vmem:[#allocation11 + $0xbb4] ss:$48 sps:$4 sm:$0xff]   ;;  %v19407_v1 = vld [vmem:[#allocation11 + $0x5bc] ss:$48 sps:$4 sm:$0xff]  }
 0x4cd   :  { %6725 = vmatpush2.bf16.msra.mxu0 %v19324_v63  ;;  %6766 = vmatpush2.bf16.msra.mxu1 %v19327_v24  ;;  %v19402_v63 = vld [vmem:[#allocation11 + $0xbb0] ss:$48 sps:$4 sm:$0xff]   ;;  %v19405_v24 = vld [vmem:[#allocation11 + $0x5b8] ss:$48 sps:$4 sm:$0xff]  }
 0x4ce   :  { %6726 = vmatprep.subr.bf16.mxu0 %v19332_v4  ;;  %6767 = vmatprep.subr.bf16.mxu1 %v19335_v6  ;;  %v19410_v4 = vld [vmem:[#allocation11 + $0xb54] ss:$48 sps:$4 sm:$0xff]   ;;  %v19413_v6 = vld [vmem:[#allocation11 + $0x55c] ss:$48 sps:$4 sm:$0xff]  }
 0x4d1   :  { %6727 = vmatpush2.bf16.msra.mxu0 %v19330_v8  ;;  %6768 = vmatpush2.bf16.msra.mxu1 %v19333_v15  ;;  %v19408_v8 = vld [vmem:[#allocation11 + $0xb50] ss:$48 sps:$4 sm:$0xff]   ;;  %v19411_v15 = vld [vmem:[#allocation11 + $0x558] ss:$48 sps:$4 sm:$0xff]  }
 0x4d2   :  { %6728 = vmatprep.subr.bf16.mxu0 %v19338_v9  ;;  %6769 = vmatprep.subr.bf16.mxu1 %v19341_v26  ;;  %v19416_v9 = vld [vmem:[#allocation11 + $0xaf4] ss:$48 sps:$4 sm:$0xff]   ;;  %v19419_v26 = vld [vmem:[#allocation11 + $0x4fc] ss:$48 sps:$4 sm:$0xff]  }
 0x4d5   :  { %6729 = vmatpush2.bf16.msra.mxu0 %v19336_v12  ;;  %6770 = vmatpush2.bf16.msra.mxu1 %v19339_v17  ;;  %v19414_v12 = vld [vmem:[#allocation11 + $0xaf0] ss:$48 sps:$4 sm:$0xff]   ;;  %v19417_v17 = vld [vmem:[#allocation11 + $0x4f8] ss:$48 sps:$4 sm:$0xff]  }
 0x4d6   :  { %6730 = vmatprep.subr.bf16.mxu0 %v19344_v18  ;;  %6771 = vmatprep.subr.bf16.mxu1 %v19347_v59  ;;  %v19422_v18 = vld [vmem:[#allocation11 + $0xa94] ss:$48 sps:$4 sm:$0xff]   ;;  %v19425_v59 = vld [vmem:[#allocation11 + $0x49c] ss:$48 sps:$4 sm:$0xff]  }
 0x4d9   :  { %6731 = vmatpush2.bf16.msra.mxu0 %v19342_v21  ;;  %6772 = vmatpush2.bf16.msra.mxu1 %v19345_v22  ;;  %v19420_v21 = vld [vmem:[#allocation11 + $0xa90] ss:$48 sps:$4 sm:$0xff]   ;;  %v19423_v22 = vld [vmem:[#allocation11 + $0x498] ss:$48 sps:$4 sm:$0xff]  }
 0x4da   :  { %6732 = vmatprep.subr.bf16.mxu0 %v19350_v29  ;;  %6773 = vmatprep.subr.bf16.mxu1 %v19353_v23  ;;  %v19428_v29 = vld [vmem:[#allocation11 + $0xa34] ss:$48 sps:$4 sm:$0xff]   ;;  %v19431_v23 = vld [vmem:[#allocation11 + $0x43c] ss:$48 sps:$4 sm:$0xff]  }
 0x4dd   :  { %6733 = vmatpush2.bf16.msra.mxu0 %v19348_v25  ;;  %6774 = vmatpush2.bf16.msra.mxu1 %v19351_v20  ;;  %v19426_v25 = vld [vmem:[#allocation11 + $0xa30] ss:$48 sps:$4 sm:$0xff]   ;;  %v19429_v20 = vld [vmem:[#allocation11 + $0x438] ss:$48 sps:$4 sm:$0xff]  }
 0x4de   :  { %6784 = vmatprep.subr.bf16.mxu0 %v19356_v30  ;;  %6825 = vmatprep.subr.bf16.mxu1 %v19359_v32  ;;  %v19434_v30 = vld [vmem:[#allocation11 + $0x9d4] ss:$48 sps:$4 sm:$0xff]   ;;  %v19437_v32 = vld [vmem:[#allocation11 + $0x3dc] ss:$48 sps:$4 sm:$0xff]  }
 0x4e0   :  { %6735 = vmatmul.mubr.bf16.vlgmr.msra.gmra.mxu0 %v22315_v58  ;;  %6776 = vmatmul.mubr.bf16.vlgmr.msra.gmra.mxu1 %v22286_v43 }
 0x4e1   :  { %6785 = vmatpush1.bf16.msra.mxu0 %v19354_v33  ;;  %6816 = vmatprep.mubr.bf16.mxu0 %v22310_v3  ;;  %v19432_v33 = vld [vmem:[#allocation11 + $0x9d0] ss:$48 sps:$4 sm:$0xff]  }
 0x4e2   :  { %6826 = vmatpush1.bf16.msra.mxu1 %v19357_v34  ;;  %6857 = vmatprep.mubr.bf16.mxu1 %v22281_v41  ;;  %v19435_v34 = vld [vmem:[#allocation11 + $0x3d8] ss:$48 sps:$4 sm:$0xff]  }
 0x4e3   :  { %6786 = vmatprep.subr.bf16.mxu0 %v19362_v2  ;;  %6827 = vmatprep.subr.bf16.mxu1 %v19365_v0  ;;  %v19440_v2 = vld [vmem:[#allocation11 + $0x974] ss:$48 sps:$4 sm:$0xff]   ;;  %v19443_v0 = vld [vmem:[#allocation11 + $0x37c] ss:$48 sps:$4 sm:$0xff]  }
 0x4e5   :  { %6787 = vmatpush1.bf16.msra.mxu0 %v19360_v55  ;;  %v19438_v55 = vld [vmem:[#allocation11 + $0x970] ss:$48 sps:$4 sm:$0xff]  }
 0x4e6   :  { %6828 = vmatpush1.bf16.msra.mxu1 %v19363_v36  ;;  %6788 = vmatprep.subr.bf16.mxu0 %v19368_v54  ;;  %v19441_v36 = vld [vmem:[#allocation11 + $0x378] ss:$48 sps:$4 sm:$0xff]   ;;  %v19446_v54 = vld [vmem:[#allocation11 + $0x914] ss:$48 sps:$4 sm:$0xff]  }
 0x4e7   :  { %6829 = vmatprep.subr.bf16.mxu1 %v19371_v49  ;;  %v19449_v49 = vld [vmem:[#allocation11 + $0x31c] ss:$48 sps:$4 sm:$0xff]  }
 0x4e9   :  { %6789 = vmatpush1.bf16.msra.mxu0 %v19366_v10  ;;  %v19444_v10 = vld [vmem:[#allocation11 + $0x910] ss:$48 sps:$4 sm:$0xff]  }
 0x4ea   :  { %6830 = vmatpush1.bf16.msra.mxu1 %v19369_v37  ;;  %6790 = vmatprep.subr.bf16.mxu0 %v19374_v62  ;;  %v19447_v37 = vld [vmem:[#allocation11 + $0x318] ss:$48 sps:$4 sm:$0xff]   ;;  %v19452_v62 = vld [vmem:[#allocation11 + $0x8bc] ss:$48 sps:$4 sm:$0xff]  }
 0x4eb   :  { %6831 = vmatprep.subr.bf16.mxu1 %v19377_v38  ;;  %v19455_v38 = vld [vmem:[#allocation11 + $0x2c4] ss:$48 sps:$4 sm:$0xff]  }
 0x4ed   :  { %6791 = vmatpush1.bf16.msra.mxu0 %v19372_v39  ;;  %v19450_v39 = vld [vmem:[#allocation11 + $0x8b8] ss:$48 sps:$4 sm:$0xff]  }
 0x4ee   :  { %6832 = vmatpush1.bf16.msra.mxu1 %v19375_v40  ;;  %6792 = vmatprep.subr.bf16.mxu0 %v19380_v42  ;;  %v19453_v40 = vld [vmem:[#allocation11 + $0x2c0] ss:$48 sps:$4 sm:$0xff]   ;;  %v19458_v42 = vld [vmem:[#allocation11 + $0x85c] ss:$48 sps:$4 sm:$0xff]  }
 0x4ef   :  { %6833 = vmatprep.subr.bf16.mxu1 %v19383_v44 }
 0x4f1   :  { %6793 = vmatpush1.bf16.msra.mxu0 %v19378_v45  ;;  %v19461_v45 = vld [vmem:[#allocation11 + $0x264] ss:$48 sps:$4 sm:$0xff]  }
 0x4f2   :  { %6834 = vmatpush1.bf16.msra.mxu1 %v19381_v46  ;;  %6794 = vmatprep.subr.bf16.mxu0 %v19386_v14  ;;  %v19456_v46 = vld [vmem:[#allocation11 + $0x858] ss:$48 sps:$4 sm:$0xff]  }
 0x4f3   :  { %6835 = vmatprep.subr.bf16.mxu1 %v19389_v19  ;;  %v19459_v19 = vld [vmem:[#allocation11 + $0x260] ss:$48 sps:$4 sm:$0xff]  }
 0x4f5   :  { %6795 = vmatpush1.bf16.msra.mxu0 %v19384_v61  ;;  %v19464_v61 = vld [vmem:[#allocation11 + $0x7fc] ss:$48 sps:$4 sm:$0xff]  }
 0x4f6   :  { %6836 = vmatpush1.bf16.msra.mxu1 %v19387_v60  ;;  %6796 = vmatprep.subr.bf16.mxu0 %v19392_v11  ;;  %v19467_v60 = vld [vmem:[#allocation11 + $0x204] ss:$48 sps:$4 sm:$0xff]  }
 0x4f7   :  { %6837 = vmatprep.subr.bf16.mxu1 %v19395_v50  ;;  %v19462_v50 = vld [vmem:[#allocation11 + $0x7f8] ss:$48 sps:$4 sm:$0xff]  }
 0x4f9   :  { %6797 = vmatpush1.bf16.msra.mxu0 %v19390_v57 }
 0x4fa   :  { %6838 = vmatpush1.bf16.msra.mxu1 %v19393_v28  ;;  %6798 = vmatprep.subr.bf16.mxu0 %v19398_v13  ;;  %v19465_v28 = vld [vmem:[#allocation11 + $0x200] ss:$48 sps:$4 sm:$0xff]   ;;  %v19470_v13 = vld [vmem:[#allocation11 + $0x79c] ss:$48 sps:$4 sm:$0xff]  }
 0x4fb   :  { %6839 = vmatprep.subr.bf16.mxu1 %v19401_v7  ;;  %v19473_v7 = vld [vmem:[#allocation11 + $0x1a4] ss:$48 sps:$4 sm:$0xff]  }
 0x4fd   :  { %6799 = vmatpush1.bf16.msra.mxu0 %v19396_v52  ;;  %v19468_v52 = vld [vmem:[#allocation11 + $0x798] ss:$48 sps:$4 sm:$0xff]  }
 0x4fe   :  { %6840 = vmatpush1.bf16.msra.mxu1 %v19399_v53  ;;  %6800 = vmatprep.subr.bf16.mxu0 %v19404_v56  ;;  %v19471_v53 = vld [vmem:[#allocation11 + $0x1a0] ss:$48 sps:$4 sm:$0xff]   ;;  %v19476_v56 = vld [vmem:[#allocation11 + $0x73c] ss:$48 sps:$4 sm:$0xff]  }
 0x4ff   :  { %6841 = vmatprep.subr.bf16.mxu1 %v19407_v1  ;;  %v19479_v1 = vld [vmem:[#allocation11 + $0x144] ss:$48 sps:$4 sm:$0xff]  }
 0x501   :  { %6801 = vmatpush2.bf16.msra.mxu0 %v19402_v63  ;;  %v19474_v63 = vld [vmem:[#allocation11 + $0x738] ss:$48 sps:$4 sm:$0xff]  }
 0x502   :  { %6842 = vmatpush2.bf16.msra.mxu1 %v19405_v24  ;;  %6802 = vmatprep.subr.bf16.mxu0 %v19410_v4  ;;  %v19477_v24 = vld [vmem:[#allocation11 + $0x140] ss:$48 sps:$4 sm:$0xff]   ;;  %v19482_v4 = vld [vmem:[#allocation11 + $0x6dc] ss:$48 sps:$4 sm:$0xff]  }
 0x503   :  { %6843 = vmatprep.subr.bf16.mxu1 %v19413_v6  ;;  %v19485_v6 = vld [vmem:[#allocation11 + $0xe4] ss:$48 sps:$4 sm:$0xff]  }
 0x505   :  { %6803 = vmatpush2.bf16.msra.mxu0 %v19408_v8  ;;  %v19480_v8 = vld [vmem:[#allocation11 + $0x6d8] ss:$48 sps:$4 sm:$0xff]  }
 0x506   :  { %6844 = vmatpush2.bf16.msra.mxu1 %v19411_v15  ;;  %6804 = vmatprep.subr.bf16.mxu0 %v19416_v9  ;;  %v19483_v15 = vld [vmem:[#allocation11 + $0xe0] ss:$48 sps:$4 sm:$0xff]   ;;  %v19488_v9 = vld [vmem:[#allocation11 + $0x67c] ss:$48 sps:$4 sm:$0xff]  }
 0x507   :  { %6845 = vmatprep.subr.bf16.mxu1 %v19419_v26  ;;  %v19491_v26 = vld [vmem:[#allocation11 + $0x84] ss:$48 sps:$4 sm:$0xff]  }
 0x509   :  { %6805 = vmatpush2.bf16.msra.mxu0 %v19414_v12  ;;  %v19486_v12 = vld [vmem:[#allocation11 + $0x678] ss:$48 sps:$4 sm:$0xff]  }
 0x50a   :  { %6846 = vmatpush2.bf16.msra.mxu1 %v19417_v17  ;;  %6806 = vmatprep.subr.bf16.mxu0 %v19422_v18  ;;  %v19489_v17 = vld [vmem:[#allocation11 + $0x80] ss:$48 sps:$4 sm:$0xff]   ;;  %v19494_v18 = vld [vmem:[#allocation11 + $0x61c] ss:$48 sps:$4 sm:$0xff]  }
 0x50b   :  { %6847 = vmatprep.subr.bf16.mxu1 %v19425_v59  ;;  %v19497_v59 = vld [vmem:[#allocation11 + $0x24] ss:$48 sps:$4 sm:$0xff]  }
 0x50d   :  { %6807 = vmatpush2.bf16.msra.mxu0 %v19420_v21  ;;  %v19492_v21 = vld [vmem:[#allocation11 + $0x618] ss:$48 sps:$4 sm:$0xff]  }
 0x50e   :  { %6848 = vmatpush2.bf16.msra.mxu1 %v19423_v22  ;;  %6808 = vmatprep.subr.bf16.mxu0 %v19428_v29  ;;  %v19495_v22 = vld [vmem:[#allocation11 + $0x20] ss:$48 sps:$4 sm:$0xff]   ;;  %v19500_v29 = vld [vmem:[#allocation11 + $0xbbc] ss:$48 sps:$4 sm:$0xff]  }
 0x50f   :  { %6849 = vmatprep.subr.bf16.mxu1 %v19431_v23  ;;  %v19503_v23 = vld [vmem:[#allocation11 + $0x5c4] ss:$48 sps:$4 sm:$0xff]  }
 0x511   :  { %6809 = vmatpush2.bf16.msra.mxu0 %v19426_v25  ;;  %v19498_v25 = vld [vmem:[#allocation11 + $0xbb8] ss:$48 sps:$4 sm:$0xff]  }
 0x512   :  { %6850 = vmatpush2.bf16.msra.mxu1 %v19429_v20  ;;  %6810 = vmatprep.subr.bf16.mxu0 %v19434_v30  ;;  %v19501_v20 = vld [vmem:[#allocation11 + $0x5c0] ss:$48 sps:$4 sm:$0xff]   ;;  %v19506_v30 = vld [vmem:[#allocation11 + $0xb5c] ss:$48 sps:$4 sm:$0xff]  }
 0x513   :  { %6851 = vmatprep.subr.bf16.mxu1 %v19437_v32  ;;  %v19509_v32 = vld [vmem:[#allocation11 + $0x564] ss:$48 sps:$4 sm:$0xff]  }
 0x515   :  { %6811 = vmatpush2.bf16.msra.mxu0 %v19432_v33  ;;  %v19504_v33 = vld [vmem:[#allocation11 + $0xb58] ss:$48 sps:$4 sm:$0xff]  }
 0x516   :  { %6852 = vmatpush2.bf16.msra.mxu1 %v19435_v34  ;;  %6812 = vmatprep.subr.bf16.mxu0 %v19440_v2  ;;  %v19507_v34 = vld [vmem:[#allocation11 + $0x560] ss:$48 sps:$4 sm:$0xff]   ;;  %v19512_v2 = vld [vmem:[#allocation11 + $0xafc] ss:$48 sps:$4 sm:$0xff]  }
 0x517   :  { %6853 = vmatprep.subr.bf16.mxu1 %v19443_v0  ;;  %v19515_v0 = vld [vmem:[#allocation11 + $0x504] ss:$48 sps:$4 sm:$0xff]  }
 0x519   :  { %6813 = vmatpush2.bf16.msra.mxu0 %v19438_v55  ;;  %v19510_v55 = vld [vmem:[#allocation11 + $0xaf8] ss:$48 sps:$4 sm:$0xff]  }
 0x51a   :  { %6854 = vmatpush2.bf16.msra.mxu1 %v19441_v36  ;;  %6814 = vmatprep.subr.bf16.mxu0 %v19446_v54  ;;  %v19513_v36 = vld [vmem:[#allocation11 + $0x500] ss:$48 sps:$4 sm:$0xff]   ;;  %v19518_v54 = vld [vmem:[#allocation11 + $0xa9c] ss:$48 sps:$4 sm:$0xff]  }
 0x51b   :  { %6855 = vmatprep.subr.bf16.mxu1 %v19449_v49  ;;  %v19521_v49 = vld [vmem:[#allocation11 + $0x4a4] ss:$48 sps:$4 sm:$0xff]  }
 0x51d   :  { %6815 = vmatpush2.bf16.msra.mxu0 %v19444_v10  ;;  %v19516_v10 = vld [vmem:[#allocation11 + $0xa98] ss:$48 sps:$4 sm:$0xff]  }
 0x51e   :  { %6856 = vmatpush2.bf16.msra.mxu1 %v19447_v37  ;;  %6866 = vmatprep.subr.bf16.mxu0 %v19452_v62  ;;  %v19519_v37 = vld [vmem:[#allocation11 + $0x4a0] ss:$48 sps:$4 sm:$0xff]   ;;  %v19524_v62 = vld [vmem:[#allocation11 + $0xa3c] ss:$48 sps:$4 sm:$0xff]  }
 0x51f   :  { %6907 = vmatprep.subr.bf16.mxu1 %v19455_v38  ;;  %v19527_v38 = vld [vmem:[#allocation11 + $0x444] ss:$48 sps:$4 sm:$0xff]  }
 0x520   :  { %6817 = vmatmul.mubr.bf16.vlgmr.msra.gmra.mxu0 %v22315_v58  ;;  %v22327_v44 = vpop.f32.mrf.mxu1 }
 0x521   :  { %6858 = vmatmul.mubr.bf16.vlgmr.msra.gmra.mxu1 %v22286_v43  ;;  %6867 = vmatpush1.bf16.msra.mxu0 %v19450_v39  ;;  %v19522_v39 = vld [vmem:[#allocation11 + $0xa38] ss:$48 sps:$4 sm:$0xff]  }
 0x522   :  { %6898 = vmatprep.mubr.bf16.mxu0 %v22310_v3  ;;  %6908 = vmatpush1.bf16.msra.mxu1 %v19453_v40  ;;  %v22331_v14 = vpop.f32.mrf.mxu1  ;;  %v19525_v40 = vld [vmem:[#allocation11 + $0x440] ss:$48 sps:$4 sm:$0xff]  }
 0x523   :  { %6939 = vmatprep.mubr.bf16.mxu1 %v22281_v41  ;;  %6868 = vmatprep.subr.bf16.mxu0 %v19458_v42  ;;  %v19530_v42 = vld [vmem:[#allocation11 + $0x9dc] ss:$48 sps:$4 sm:$0xff]  }
 0x524   :  { %6909 = vmatprep.subr.bf16.mxu1 %v19461_v45  ;;  %v6617_v11 = vpop.f32.mrf.mxu1  ;;  %v19533_v45 = vld [vmem:[#allocation11 + $0x3e4] ss:$48 sps:$4 sm:$0xff]  }
 0x525   :  { %6869 = vmatpush1.bf16.msra.mxu0 %v19456_v46  ;;  %v19528_v46 = vld [vmem:[#allocation11 + $0x9d8] ss:$48 sps:$4 sm:$0xff]  }
 0x526   :  { %6910 = vmatpush1.bf16.msra.mxu1 %v19459_v19  ;;  %v6618_v57 = vpop.f32.mrf.mxu1  ;;  %6870 = vmatprep.subr.bf16.mxu0 %v19464_v61  ;;  %v19531_v19 = vld [vmem:[#allocation11 + $0x3e0] ss:$48 sps:$4 sm:$0xff]   ;;  %v19536_v61 = vld [vmem:[#allocation11 + $0x97c] ss:$48 sps:$4 sm:$0xff]   ;;  %v19534_v11 = vld [vmem:[#allocation11 + $0x978] ss:$48 sps:$4 sm:$0xff]  }
 0x527   :  { %6911 = vmatprep.subr.bf16.mxu1 %v19467_v60  ;;  %v19539_v60 = vld [vmem:[#allocation11 + $0x384] ss:$48 sps:$4 sm:$0xff]   ;;  %v19542_v57 = vld [vmem:[#allocation11 + $0x91c] ss:$48 sps:$4 sm:$0xff]  }
 0x529   :  { %6871 = vmatpush1.bf16.msra.mxu0 %v19462_v50  ;;  %v19537_v50 = vld [vmem:[#allocation11 + $0x380] ss:$48 sps:$4 sm:$0xff]  }
 0x52a   :  { %6912 = vmatpush1.bf16.msra.mxu1 %v19465_v28  ;;  %6872 = vmatprep.subr.bf16.mxu0 %v19470_v13  ;;  %v19545_v28 = vld [vmem:[#allocation11 + $0x324] ss:$48 sps:$4 sm:$0xff]  }
 0x52b   :  { %6913 = vmatprep.subr.bf16.mxu1 %v19473_v7  ;;  %v22334_v13 = vld [vmem:[#allocation14] sm:$0xff]  ;;  %v19540_v7 = vld [vmem:[#allocation11 + $0x918] ss:$48 sps:$4 sm:$0xff]  }
 0x52d   :  { %6873 = vmatpush1.bf16.msra.mxu0 %v19468_v52  ;;  %v19543_v52 = vld [vmem:[#allocation11 + $0x320] ss:$48 sps:$4 sm:$0xff]  }
 0x52e   :  { %6914 = vmatpush1.bf16.msra.mxu1 %v19471_v53  ;;  %6874 = vmatprep.subr.bf16.mxu0 %v19476_v56  ;;  %v19548_v53 = vld [vmem:[#allocation11 + $0x8c4] ss:$48 sps:$4 sm:$0xff]   ;;  %v4602_v56 = vrot.slane %v22334_v13, %v22191_v31 }
 0x52f   :  { %6915 = vmatprep.subr.bf16.mxu1 %v19479_v1  ;;  %v19551_v1 = vld [vmem:[#allocation11 + $0x2cc] ss:$48 sps:$4 sm:$0xff]  }
 0x531   :  { %6875 = vmatpush1.bf16.msra.mxu0 %v19474_v63  ;;  %v4606_v63 = vrot.slane %v22334_v13, %v22194_v35 }
 0x532   :  { %6916 = vmatpush1.bf16.msra.mxu1 %v19477_v24  ;;  %6876 = vmatprep.subr.bf16.mxu0 %v19482_v4  ;;  %v19546_v24 = vld [vmem:[#allocation11 + $0x8c0] ss:$48 sps:$4 sm:$0xff]   ;;  %v19549_v4 = vld [vmem:[#allocation11 + $0x2c8] ss:$48 sps:$4 sm:$0xff]  }
 0x533   :  { %6917 = vmatprep.subr.bf16.mxu1 %v19485_v6  ;;  %v6614_v6 = vadd.f32 %v22327_v44, %v4602_v56  ;;  %v19603_v56 = vld [vmem:[#allocation11 + $0x568] ss:$48 sps:$4 sm:$0xff]  }
 0x535   :  { %6877 = vmatpush1.bf16.msra.mxu0 %v19480_v8  ;;  %v19554_v8 = vld [vmem:[#allocation11 + $0x864] ss:$48 sps:$4 sm:$0xff]  }
 0x536   :  { %6918 = vmatpush1.bf16.msra.mxu1 %v19483_v15  ;;  %6878 = vmatprep.subr.bf16.mxu0 %v19488_v9 }
 0x537   :  { %6919 = vmatprep.subr.bf16.mxu1 %v19491_v26  ;;  %v19557_v26 = vld [vmem:[#allocation11 + $0x26c] ss:$48 sps:$4 sm:$0xff]  }
 0x539   :  { %6879 = vmatpush1.bf16.msra.mxu0 %v19486_v12  ;;  %v6616_v12 = vadd.f32 %v22331_v14, %v4606_v63  ;;  %v19563_v14 = vld [vmem:[#allocation11 + $0x20c] ss:$48 sps:$4 sm:$0xff]  }
 0x53a   :  { %6920 = vmatpush1.bf16.msra.mxu1 %v19489_v17  ;;  %6880 = vmatprep.subr.bf16.mxu0 %v19494_v18  ;;  %v19552_v18 = vld [vmem:[#allocation11 + $0x860] ss:$48 sps:$4 sm:$0xff]   ;;  %v19611_v63 = vld [vmem:[#allocation11 + $0x50c] ss:$48 sps:$4 sm:$0xff]  }
 0x53b   :  { %6921 = vmatprep.subr.bf16.mxu1 %v19497_v59 }
 0x53d   :  { %6881 = vmatpush1.bf16.msra.mxu0 %v19492_v21  ;;  %v19555_v21 = vld [vmem:[#allocation11 + $0x268] ss:$48 sps:$4 sm:$0xff]  }
 0x53e   :  { %6922 = vmatpush1.bf16.msra.mxu1 %v19495_v22  ;;  %6882 = vmatprep.subr.bf16.mxu0 %v19500_v29  ;;  %v19560_v22 = vld [vmem:[#allocation11 + $0x804] ss:$48 sps:$4 sm:$0xff]  }
 0x53f   :  { %6923 = vmatprep.subr.bf16.mxu1 %v19503_v23 }
 0x541   :  { %6883 = vmatpush2.bf16.msra.mxu0 %v19498_v25 }
 0x542   :  { %6924 = vmatpush2.bf16.msra.mxu1 %v19501_v20  ;;  %6884 = vmatprep.subr.bf16.mxu0 %v19506_v30  ;;  %v19558_v20 = vld [vmem:[#allocation11 + $0x800] ss:$48 sps:$4 sm:$0xff]  }
 0x543   :  { %6925 = vmatprep.subr.bf16.mxu1 %v19509_v32 }
 0x545   :  { %6885 = vmatpush2.bf16.msra.mxu0 %v19504_v33  ;;  %v19561_v33 = vld [vmem:[#allocation11 + $0x208] ss:$48 sps:$4 sm:$0xff]  }
 0x546   :  { %6926 = vmatpush2.bf16.msra.mxu1 %v19507_v34  ;;  %6886 = vmatprep.subr.bf16.mxu0 %v19512_v2  ;;  %v19566_v34 = vld [vmem:[#allocation11 + $0x7a4] ss:$48 sps:$4 sm:$0xff]   ;;  %v19569_v2 = vld [vmem:[#allocation11 + $0x1ac] ss:$48 sps:$4 sm:$0xff]  }
 0x547   :  { %6927 = vmatprep.subr.bf16.mxu1 %v19515_v0  ;;  %v19564_v0 = vld [vmem:[#allocation11 + $0x7a0] ss:$48 sps:$4 sm:$0xff]  }
 0x549   :  { %6887 = vmatpush2.bf16.msra.mxu0 %v19510_v55  ;;  %v19572_v55 = vld [vmem:[#allocation11 + $0x744] ss:$48 sps:$4 sm:$0xff]  }
 0x54a   :  { %6928 = vmatpush2.bf16.msra.mxu1 %v19513_v36  ;;  %6888 = vmatprep.subr.bf16.mxu0 %v19518_v54  ;;  %v19575_v36 = vld [vmem:[#allocation11 + $0x14c] ss:$48 sps:$4 sm:$0xff]   ;;  %v19570_v54 = vld [vmem:[#allocation11 + $0x740] ss:$48 sps:$4 sm:$0xff]  }
 0x54b   :  { %6929 = vmatprep.subr.bf16.mxu1 %v19521_v49  ;;  %v19573_v49 = vld [vmem:[#allocation11 + $0x148] ss:$48 sps:$4 sm:$0xff]  }
 0x54d   :  { %6889 = vmatpush2.bf16.msra.mxu0 %v19516_v10  ;;  %v19578_v10 = vld [vmem:[#allocation11 + $0x6e4] ss:$48 sps:$4 sm:$0xff]  }
 0x54e   :  { %6930 = vmatpush2.bf16.msra.mxu1 %v19519_v37  ;;  %6890 = vmatprep.subr.bf16.mxu0 %v19524_v62  ;;  %v19581_v37 = vld [vmem:[#allocation11 + $0xec] ss:$48 sps:$4 sm:$0xff]   ;;  %v19576_v62 = vld [vmem:[#allocation11 + $0x6e0] ss:$48 sps:$4 sm:$0xff]  }
 0x54f   :  { %6931 = vmatprep.subr.bf16.mxu1 %v19527_v38  ;;  %v19579_v38 = vld [vmem:[#allocation11 + $0xe8] ss:$48 sps:$4 sm:$0xff]  }
 0x551   :  { %6891 = vmatpush2.bf16.msra.mxu0 %v19522_v39  ;;  %v19584_v39 = vld [vmem:[#allocation11 + $0x684] ss:$48 sps:$4 sm:$0xff]  }
 0x552   :  { %6932 = vmatpush2.bf16.msra.mxu1 %v19525_v40  ;;  %6892 = vmatprep.subr.bf16.mxu0 %v19530_v42  ;;  %v19587_v40 = vld [vmem:[#allocation11 + $0x8c] ss:$48 sps:$4 sm:$0xff]   ;;  %v19582_v42 = vld [vmem:[#allocation11 + $0x680] ss:$48 sps:$4 sm:$0xff]  }
 0x553   :  { %6933 = vmatprep.subr.bf16.mxu1 %v19533_v45  ;;  %v19585_v45 = vld [vmem:[#allocation11 + $0x88] ss:$48 sps:$4 sm:$0xff]  }
 0x555   :  { %6893 = vmatpush2.bf16.msra.mxu0 %v19528_v46  ;;  %v19590_v46 = vld [vmem:[#allocation11 + $0x624] ss:$48 sps:$4 sm:$0xff]  }
 0x556   :  { %6934 = vmatpush2.bf16.msra.mxu1 %v19531_v19  ;;  %6894 = vmatprep.subr.bf16.mxu0 %v19536_v61  ;;  %v19593_v19 = vld [vmem:[#allocation11 + $0x2c] ss:$48 sps:$4 sm:$0xff]   ;;  %v19588_v61 = vld [vmem:[#allocation11 + $0x620] ss:$48 sps:$4 sm:$0xff]  }
 0x557   :  { %6935 = vmatprep.subr.bf16.mxu1 %v19539_v60  ;;  %v19591_v60 = vld [vmem:[#allocation11 + $0x28] ss:$48 sps:$4 sm:$0xff]  }
 0x559   :  { %6895 = vmatpush2.bf16.msra.mxu0 %v19534_v11  ;;  %v19596_v11 = vld [vmem:[#allocation11 + $0xbc4] ss:$48 sps:$4 sm:$0xff]  }
 0x55a   :  { %6936 = vmatpush2.bf16.msra.mxu1 %v19537_v50  ;;  %6896 = vmatprep.subr.bf16.mxu0 %v19542_v57  ;;  %v19599_v50 = vld [vmem:[#allocation11 + $0x5cc] ss:$48 sps:$4 sm:$0xff]   ;;  %v19594_v57 = vld [vmem:[#allocation11 + $0xbc0] ss:$48 sps:$4 sm:$0xff]  }
 0x55b   :  { %6937 = vmatprep.subr.bf16.mxu1 %v19545_v28  ;;  %v19597_v28 = vld [vmem:[#allocation11 + $0x5c8] ss:$48 sps:$4 sm:$0xff]  }
 0x55d   :  { %6897 = vmatpush2.bf16.msra.mxu0 %v19540_v7  ;;  %v19602_v7 = vld [vmem:[#allocation11 + $0xb64] ss:$48 sps:$4 sm:$0xff]  }
 0x55e   :  { %6938 = vmatpush2.bf16.msra.mxu1 %v19543_v52  ;;  %6948 = vmatprep.subr.bf16.mxu0 %v19548_v53  ;;  %v19605_v52 = vld [vmem:[#allocation11 + $0x56c] ss:$48 sps:$4 sm:$0xff]   ;;  %v19600_v53 = vld [vmem:[#allocation11 + $0xb60] ss:$48 sps:$4 sm:$0xff]  }
 0x55f   :  { %6989 = vmatprep.subr.bf16.mxu1 %v19551_v1  ;;  %v19608_v1 = vld [vmem:[#allocation11 + $0xb04] ss:$48 sps:$4 sm:$0xff]  }
 0x560   :  { %v22341_v15 = vpop.f32.mrf.mxu1  ;;  %6899 = vmatmul.mubr.bf16.vlgmr.msra.gmra.mxu0 %v22315_v58  ;;  %v6654_v9 = vpop.f32.mrf.mxu0 }
 0x561   :  { %6940 = vmatmul.mubr.bf16.vlgmr.msra.gmra.mxu1 %v22286_v43  ;;  %v22346_v17 = vadd.f32 %v6654_v9, %v6614_v6  ;;  %6949 = vmatpush1.bf16.msra.mxu0 %v19546_v24  ;;  %v19606_v24 = vld [vmem:[#allocation11 + $0xb00] ss:$48 sps:$4 sm:$0xff]   ;;  %v19614_v6 = vld [vmem:[#allocation11 + $0xaa4] ss:$48 sps:$4 sm:$0xff]  }
 0x562   :  { %6980 = vmatprep.mubr.bf16.mxu0 %v22310_v3  ;;  %6990 = vmatpush1.bf16.msra.mxu1 %v19549_v4  ;;  %v22349_v44 = vpop.f32.mrf.mxu1  ;;  %v6656_v59 = vpop.f32.mrf.mxu0  ;;  %v19609_v4 = vld [vmem:[#allocation11 + $0x508] ss:$48 sps:$4 sm:$0xff]   ;;  %v19612_v9 = vld [vmem:[#allocation11 + $0xaa0] ss:$48 sps:$4 sm:$0xff]  }
 0x563   :  { %7021 = vmatprep.mubr.bf16.mxu1 %v22281_v41  ;;  %v22352_v29 = vadd.f32 %v6656_v59, %v6616_v12  ;;  %6950 = vmatprep.subr.bf16.mxu0 %v19554_v8  ;;  %v19567_v41 = vld [vmem:[#allocation11 + $0x1a8] ss:$48 sps:$4 sm:$0xff]   ;;  %v19617_v8 = vld [vmem:[#allocation11 + $0x4ac] ss:$48 sps:$4 sm:$0xff]   ;;  %v19620_v12 = vld [vmem:[#allocation11 + $0xa44] ss:$48 sps:$4 sm:$0xff]  }
 0x564   :  { %v6699_v23 = vpop.f32.mrf.mxu1  ;;  %6991 = vmatprep.subr.bf16.mxu1 %v19557_v26  ;;  %v6658_v25 = vpop.f32.mrf.mxu0  ;;  %v19615_v26 = vld [vmem:[#allocation11 + $0x4a8] ss:$48 sps:$4 sm:$0xff]   ;;  %v19618_v59 = vld [vmem:[#allocation11 + $0xa40] ss:$48 sps:$4 sm:$0xff]  }
 0x565   :  { %6951 = vmatpush1.bf16.msra.mxu0 %v19552_v18  ;;  %v19623_v18 = vld [vmem:[#allocation11 + $0x44c] ss:$48 sps:$4 sm:$0xff]   ;;  %v19624_v23 = vld [vmem:[#allocation11 + $0x9e0] ss:$48 sps:$4 sm:$0xff]   ;;  %v19627_v25 = vld [vmem:[#allocation11 + $0x3e8] ss:$48 sps:$4 sm:$0xff]  }
 0x566   :  { %6992 = vmatpush1.bf16.msra.mxu1 %v19555_v21  ;;  %v6700_v30 = vpop.f32.mrf.mxu1  ;;  %v6659_v32 = vpop.f32.mrf.mxu0  ;;  %6952 = vmatprep.subr.bf16.mxu0 %v19560_v22  ;;  %v19621_v21 = vld [vmem:[#allocation11 + $0x448] ss:$48 sps:$4 sm:$0xff]   ;;  %v19626_v22 = vld [vmem:[#allocation11 + $0x9e4] ss:$48 sps:$4 sm:$0xff]  }
 0x567   :  { %6993 = vmatprep.subr.bf16.mxu1 %v19563_v14  ;;  %v19629_v14 = vld [vmem:[#allocation11 + $0x3ec] ss:$48 sps:$4 sm:$0xff]   ;;  %v19630_v32 = vld [vmem:[#allocation11 + $0x980] ss:$48 sps:$4 sm:$0xff]  }
 0x568   :  { %v19635_v30 = vld [vmem:[#allocation11 + $0x38c] ss:$48 sps:$4 sm:$0xff]  }
 0x569   :  { %6953 = vmatpush1.bf16.msra.mxu0 %v19558_v20  ;;  %v19632_v20 = vld [vmem:[#allocation11 + $0x984] ss:$48 sps:$4 sm:$0xff]  }
 0x56a   :  { %6994 = vmatpush1.bf16.msra.mxu1 %v19561_v33  ;;  %6954 = vmatprep.subr.bf16.mxu0 %v19566_v34  ;;  %v19633_v33 = vld [vmem:[#allocation11 + $0x388] ss:$48 sps:$4 sm:$0xff]   ;;  %v19638_v34 = vld [vmem:[#allocation11 + $0x924] ss:$48 sps:$4 sm:$0xff]  }
 0x56b   :  { %6995 = vmatprep.subr.bf16.mxu1 %v19569_v2  ;;  %v19641_v2 = vld [vmem:[#allocation11 + $0x32c] ss:$48 sps:$4 sm:$0xff]  }
 0x56d   :  { %6955 = vmatpush1.bf16.msra.mxu0 %v19564_v0  ;;  %v19636_v0 = vld [vmem:[#allocation11 + $0x920] ss:$48 sps:$4 sm:$0xff]  }
 0x56e   :  { %6996 = vmatpush1.bf16.msra.mxu1 %v19567_v41  ;;  %6956 = vmatprep.subr.bf16.mxu0 %v19572_v55  ;;  %v19639_v41 = vld [vmem:[#allocation11 + $0x328] ss:$48 sps:$4 sm:$0xff]   ;;  %v19644_v55 = vld [vmem:[#allocation11 + $0x8cc] ss:$48 sps:$4 sm:$0xff]  }
 0x56f   :  { %6997 = vmatprep.subr.bf16.mxu1 %v19575_v36  ;;  %v4610_v36 = vrot.slane %v22334_v13, %v22133_v48 }
 0x571   :  { %6957 = vmatpush1.bf16.msra.mxu0 %v19570_v54  ;;  %v19689_v54 = vld [vmem:[#allocation13 + $0x2a4] ss:$48 sps:$4 sm:$0xff]  }
 0x572   :  { %6998 = vmatpush1.bf16.msra.mxu1 %v19573_v49  ;;  %6958 = vmatprep.subr.bf16.mxu0 %v19578_v10  ;;  %v257_v49 = vld [vmem:[%s22886_s1 + $0x28] sm:$0xff]  ;;  %v4614_v10 = vrot.slane %v22334_v13, %v22138_v5 }
 0x573   :  { %6999 = vmatprep.subr.bf16.mxu1 %v19581_v37  ;;  %v19642_v37 = vld [vmem:[#allocation11 + $0x8c8] ss:$48 sps:$4 sm:$0xff]  }
 0x575   :  { %6959 = vmatpush1.bf16.msra.mxu0 %v19576_v62  ;;  %v19647_v62 = vld [vmem:[#allocation11 + $0x86c] ss:$48 sps:$4 sm:$0xff]  }
 0x576   :  { %7000 = vmatpush1.bf16.msra.mxu1 %v19579_v38  ;;  %6960 = vmatprep.subr.bf16.mxu0 %v19584_v39  ;;  %v6696_v38 = vadd.f32 %v22341_v15, %v4610_v36  ;;  %v19687_v39 = vld [vmem:[#allocation13 + $0x2a0] ss:$48 sps:$4 sm:$0xff]   ;;  %v19740_v36 = vld [vmem:[#allocation13 + $0x544] ss:$48 sps:$4 sm:$0xff]  }
 0x577   :  { %7001 = vmatprep.subr.bf16.mxu1 %v19587_v40  ;;  %v22362_v40 = vpack.c.bf16 %v257_v49, %v257_v49  ;;  %v19674_v49 = vld [vmem:[#allocation11 + $0xb0c] ss:$48 sps:$4 sm:$0xff]  }
 0x579   :  { %6961 = vmatpush1.bf16.msra.mxu0 %v19582_v42 }
 0x57a   :  { %7002 = vmatpush1.bf16.msra.mxu1 %v19585_v45  ;;  %6962 = vmatprep.subr.bf16.mxu0 %v19590_v46  ;;  %v19695_v46 = vld [vmem:[#allocation13 + $0x244] ss:$48 sps:$4 sm:$0xff]  }
 0x57b   :  { %7003 = vmatprep.subr.bf16.mxu1 %v19593_v19  ;;  %v6698_v19 = vadd.f32 %v22349_v44, %v4614_v10  ;;  %v19738_v10 = vld [vmem:[#allocation13 + $0x540] ss:$48 sps:$4 sm:$0xff]  }
 0x57d   :  { %6963 = vmatpush1.bf16.msra.mxu0 %v19588_v61 }
 0x57e   :  { %7004 = vmatpush1.bf16.msra.mxu1 %v19591_v60  ;;  %6964 = vmatprep.subr.bf16.mxu0 %v19596_v11  ;;  %v19645_v60 = vld [vmem:[#allocation11 + $0x868] ss:$48 sps:$4 sm:$0xff]  }
 0x57f   :  { %7005 = vmatprep.subr.bf16.mxu1 %v19599_v50  ;;  %v19650_v50 = vld [vmem:[#allocation11 + $0x80c] ss:$48 sps:$4 sm:$0xff]  }
 0x581   :  { %6965 = vmatpush2.bf16.msra.mxu0 %v19594_v57 }
 0x582   :  { %7006 = vmatpush2.bf16.msra.mxu1 %v19597_v28  ;;  %6966 = vmatprep.subr.bf16.mxu0 %v19602_v7  ;;  %v19693_v28 = vld [vmem:[#allocation13 + $0x240] ss:$48 sps:$4 sm:$0xff]  }
 0x583   :  { %7007 = vmatprep.subr.bf16.mxu1 %v19605_v52  ;;  %v19698_v52 = vld [vmem:[#allocation13 + $0x1e4] ss:$48 sps:$4 sm:$0xff]  }
 0x585   :  { %6967 = vmatpush2.bf16.msra.mxu0 %v19600_v53 }
 0x586   :  { %7008 = vmatpush2.bf16.msra.mxu1 %v19603_v56  ;;  %6968 = vmatprep.subr.bf16.mxu0 %v19608_v1  ;;  %v19696_v1 = vld [vmem:[#allocation13 + $0x1e0] ss:$48 sps:$4 sm:$0xff]  }
 0x587   :  { %7009 = vmatprep.subr.bf16.mxu1 %v19611_v63  ;;  %v19704_v63 = vld [vmem:[#allocation13 + $0x184] ss:$48 sps:$4 sm:$0xff]  }
 0x589   :  { %6969 = vmatpush2.bf16.msra.mxu0 %v19606_v24  ;;  %v19651_v24 = vld [vmem:[#allocation11 + $0x7a8] ss:$48 sps:$4 sm:$0xff]  }
 0x58a   :  { %7010 = vmatpush2.bf16.msra.mxu1 %v19609_v4  ;;  %6970 = vmatprep.subr.bf16.mxu0 %v19614_v6  ;;  %v19656_v4 = vld [vmem:[#allocation11 + $0x74c] ss:$48 sps:$4 sm:$0xff]   ;;  %v19702_v6 = vld [vmem:[#allocation13 + $0x180] ss:$48 sps:$4 sm:$0xff]  }
 0x58b   :  { %7011 = vmatprep.subr.bf16.mxu1 %v19617_v8  ;;  %v19710_v8 = vld [vmem:[#allocation13 + $0x124] ss:$48 sps:$4 sm:$0xff]  }
 0x58d   :  { %6971 = vmatpush2.bf16.msra.mxu0 %v19612_v9  ;;  %v19654_v9 = vld [vmem:[#allocation11 + $0x748] ss:$48 sps:$4 sm:$0xff]  }
 0x58e   :  { %7012 = vmatpush2.bf16.msra.mxu1 %v19615_v26  ;;  %6972 = vmatprep.subr.bf16.mxu0 %v19620_v12  ;;  %v19659_v26 = vld [vmem:[#allocation11 + $0x6ec] ss:$48 sps:$4 sm:$0xff]   ;;  %v19708_v12 = vld [vmem:[#allocation13 + $0x120] ss:$48 sps:$4 sm:$0xff]  }
 0x58f   :  { %7013 = vmatprep.subr.bf16.mxu1 %v19623_v18  ;;  %v19716_v18 = vld [vmem:[#allocation13 + $0xc4] ss:$48 sps:$4 sm:$0xff]  }
 0x591   :  { %6973 = vmatpush2.bf16.msra.mxu0 %v19618_v59  ;;  %v19657_v59 = vld [vmem:[#allocation11 + $0x6e8] ss:$48 sps:$4 sm:$0xff]  }
 0x592   :  { %7014 = vmatpush2.bf16.msra.mxu1 %v19621_v21  ;;  %6974 = vmatprep.subr.bf16.mxu0 %v19626_v22  ;;  %v19662_v21 = vld [vmem:[#allocation11 + $0x68c] ss:$48 sps:$4 sm:$0xff]   ;;  %v19714_v22 = vld [vmem:[#allocation13 + $0xc0] ss:$48 sps:$4 sm:$0xff]  }
 0x593   :  { %7015 = vmatprep.subr.bf16.mxu1 %v19629_v14  ;;  %v19722_v14 = vld [vmem:[#allocation13 + $0x64] ss:$48 sps:$4 sm:$0xff]  }
 0x595   :  { %6975 = vmatpush2.bf16.msra.mxu0 %v19624_v23  ;;  %v19660_v23 = vld [vmem:[#allocation11 + $0x688] ss:$48 sps:$4 sm:$0xff]  }
 0x596   :  { %7016 = vmatpush2.bf16.msra.mxu1 %v19627_v25  ;;  %6976 = vmatprep.subr.bf16.mxu0 %v19632_v20  ;;  %v19665_v25 = vld [vmem:[#allocation11 + $0x62c] ss:$48 sps:$4 sm:$0xff]   ;;  %v19720_v20 = vld [vmem:[#allocation13 + $0x60] ss:$48 sps:$4 sm:$0xff]  }
 0x597   :  { %7017 = vmatprep.subr.bf16.mxu1 %v19635_v30  ;;  %v19728_v30 = vld [vmem:[#allocation13 + $0x4] ss:$48 sps:$4 sm:$0xff]  }
 0x599   :  { %6977 = vmatpush2.bf16.msra.mxu0 %v19630_v32  ;;  %v19663_v32 = vld [vmem:[#allocation11 + $0x628] ss:$48 sps:$4 sm:$0xff]  }
 0x59a   :  { %7018 = vmatpush2.bf16.msra.mxu1 %v19633_v33  ;;  %6978 = vmatprep.subr.bf16.mxu0 %v19638_v34  ;;  %v19668_v33 = vld [vmem:[#allocation11 + $0xbcc] ss:$48 sps:$4 sm:$0xff]   ;;  %v19726_v34 = vld [vmem:[#allocation13] ss:$48 sps:$4 sm:$0xff]  }
 0x59b   :  { %7019 = vmatprep.subr.bf16.mxu1 %v19641_v2  ;;  %v19734_v2 = vld [vmem:[#allocation13 + $0x5a4] ss:$48 sps:$4 sm:$0xff]  }
 0x59d   :  { %6979 = vmatpush2.bf16.msra.mxu0 %v19636_v0  ;;  %v19666_v0 = vld [vmem:[#allocation11 + $0xbc8] ss:$48 sps:$4 sm:$0xff]  }
 0x59e   :  { %7020 = vmatpush2.bf16.msra.mxu1 %v19639_v41  ;;  %7030 = vmatprep.subr.bf16.mxu0 %v19644_v55  ;;  %v19671_v41 = vld [vmem:[#allocation11 + $0xb6c] ss:$48 sps:$4 sm:$0xff]   ;;  %v19732_v55 = vld [vmem:[#allocation13 + $0x5a0] ss:$48 sps:$4 sm:$0xff]  }
 0x59f   :  { %9443 = vmatprep.subr.bf16.mxu1 %v19689_v54  ;;  %v19669_v54 = vld [vmem:[#allocation11 + $0xb68] ss:$48 sps:$4 sm:$0xff]  }
 0x5a0   :  { %v6736_v42 = vpop.f32.mrf.mxu0  ;;  %v22364_v45 = vpop.f32.mrf.mxu1  ;;  %6981 = vmatmul.mubr.bf16.vlgmr.msra.gmra.mxu0 %v22315_v58 }
 0x5a1   :  { %v22368_v61 = vadd.f32 %v6736_v42, %v6696_v38  ;;  %7022 = vmatmul.mubr.bf16.vlgmr.msra.gmra.mxu1 %v22286_v43  ;;  %7031 = vmatpush1.bf16.msra.mxu0 %v19642_v37  ;;  %v19648_v43 = vld [vmem:[#allocation11 + $0x808] ss:$48 sps:$4 sm:$0xff]   ;;  %v19746_v37 = vld [vmem:[#allocation13 + $0x4e4] ss:$48 sps:$4 sm:$0xff]   ;;  %v19677_v38 = vld [vmem:[#allocation11 + $0xaac] ss:$48 sps:$4 sm:$0xff]  }
 0x5a2   :  { %7062 = vmatprep.mubr.bf16.mxu0 %v22310_v3  ;;  %v6738_v15 = vpop.f32.mrf.mxu0  ;;  %v22372_v11 = vpop.f32.mrf.mxu1  ;;  %7032 = vmatprep.subr.bf16.mxu0 %v19647_v62  ;;  %v19653_v3 = vld [vmem:[#allocation11 + $0x7ac] ss:$48 sps:$4 sm:$0xff]   ;;  %v19672_v62 = vld [vmem:[#allocation11 + $0xb08] ss:$48 sps:$4 sm:$0xff]   ;;  %v19752_v42 = vld [vmem:[#allocation13 + $0x484] ss:$48 sps:$4 sm:$0xff]  }
 0x5a3   :  { %v22374_v57 = vadd.f32 %v6738_v15, %v6698_v19  ;;  %9444 = vmatpush1.bf16.msra.mxu1 %v19687_v39  ;;  %9475 = vmatprep.mubr.bf16.mxu1 %v22362_v40  ;;  %v19744_v39 = vld [vmem:[#allocation13 + $0x4e0] ss:$48 sps:$4 sm:$0xff]   ;;  %v19680_v19 = vld [vmem:[#allocation11 + $0xa4c] ss:$48 sps:$4 sm:$0xff]   ;;  %v19758_v15 = vld [vmem:[#allocation13 + $0x424] ss:$48 sps:$4 sm:$0xff]  }
 0x5a4   :  { %v6740_v44 = vpop.f32.mrf.mxu0  ;;  %v6781_v7 = vpop.f32.mrf.mxu1  ;;  %9445 = vmatprep.subr.bf16.mxu1 %v19695_v46  ;;  %v19675_v46 = vld [vmem:[#allocation11 + $0xaa8] ss:$48 sps:$4 sm:$0xff]  }
 0x5a5   :  { %7033 = vmatpush1.bf16.msra.mxu0 %v19645_v60  ;;  %v19750_v60 = vld [vmem:[#allocation13 + $0x480] ss:$48 sps:$4 sm:$0xff]   ;;  %v19764_v7 = vld [vmem:[#allocation13 + $0x3c4] ss:$48 sps:$4 sm:$0xff]  }
 0x5a6   :  { %v6741_v53 = vpop.f32.mrf.mxu0  ;;  %v6782_v56 = vpop.f32.mrf.mxu1  ;;  %7034 = vmatprep.subr.bf16.mxu0 %v19650_v50  ;;  %v19678_v50 = vld [vmem:[#allocation11 + $0xa48] ss:$48 sps:$4 sm:$0xff]   ;;  %v19756_v44 = vld [vmem:[#allocation13 + $0x420] ss:$48 sps:$4 sm:$0xff]  }
 0x5a7   :  { %9446 = vmatpush1.bf16.msra.mxu1 %v19693_v28  ;;  %v19683_v28 = vld [vmem:[#allocation11 + $0x9ec] ss:$48 sps:$4 sm:$0xff]   ;;  %v19762_v53 = vld [vmem:[#allocation13 + $0x3c0] ss:$48 sps:$4 sm:$0xff]   ;;  %v19770_v56 = vld [vmem:[#allocation13 + $0x364] ss:$48 sps:$4 sm:$0xff]  }
 0x5a8   :  { %9447 = vmatprep.subr.bf16.mxu1 %v19698_v52  ;;  %v19681_v52 = vld [vmem:[#allocation11 + $0x9e8] ss:$48 sps:$4 sm:$0xff]  }
 0x5a9   :  { %7035 = vmatpush1.bf16.msra.mxu0 %v19648_v43  ;;  %v19686_v43 = vld [vmem:[#allocation11 + $0x98c] ss:$48 sps:$4 sm:$0xff]  }
 0x5aa   :  { %7036 = vmatprep.subr.bf16.mxu0 %v19653_v3  ;;  %v19684_v3 = vld [vmem:[#allocation11 + $0x988] ss:$48 sps:$4 sm:$0xff]  }
 0x5ab   :  { %9448 = vmatpush1.bf16.msra.mxu1 %v19696_v1  ;;  %v19692_v1 = vld [vmem:[#allocation11 + $0x92c] ss:$48 sps:$4 sm:$0xff]  }
 0x5ac   :  { %9449 = vmatprep.subr.bf16.mxu1 %v19704_v63  ;;  %v19768_v63 = vld [vmem:[#allocation13 + $0x360] ss:$48 sps:$4 sm:$0xff]  }
 0x5ad   :  { %7037 = vmatpush1.bf16.msra.mxu0 %v19651_v24  ;;  %v19776_v24 = vld [vmem:[#allocation13 + $0x304] ss:$48 sps:$4 sm:$0xff]  }
 0x5ae   :  { %7038 = vmatprep.subr.bf16.mxu0 %v19656_v4  ;;  %v19690_v4 = vld [vmem:[#allocation11 + $0x928] ss:$48 sps:$4 sm:$0xff]  }
 0x5af   :  { %9450 = vmatpush1.bf16.msra.mxu1 %v19702_v6  ;;  %v19701_v6 = vld [vmem:[#allocation13 + $0x8a4] ss:$48 sps:$4 sm:$0xff]  }
 0x5b0   :  { %9451 = vmatprep.subr.bf16.mxu1 %v19710_v8  ;;  %v259_v8 = vld [vmem:[%s22886_s1 + $0x38] sm:$0xff] }
 0x5b1   :  { %7039 = vmatpush1.bf16.msra.mxu0 %v19654_v9  ;;  %v4618_v9 = vrot.slane %v22334_v13, %v22227_v16 }
 0x5b2   :  { %7040 = vmatprep.subr.bf16.mxu0 %v19659_v26  ;;  %v19774_v26 = vld [vmem:[#allocation13 + $0x300] ss:$48 sps:$4 sm:$0xff]  }
 0x5b3   :  { %9452 = vmatpush1.bf16.msra.mxu1 %v19708_v12  ;;  %v256_v12 = vld [vmem:[%s22886_s1 + $0x20] sm:$0xff] }
 0x5b4   :  { %9453 = vmatprep.subr.bf16.mxu1 %v19716_v18  ;;  %v19785_v18 = vld [vmem:[#allocation13 + $0x2ac] ss:$48 sps:$4 sm:$0xff]  }
 0x5b5   :  { %7041 = vmatpush1.bf16.msra.mxu0 %v19657_v59  ;;  %v4622_v59 = vrot.slane %v22334_v13, %v22230_v27 }
 0x5b6   :  { %7042 = vmatprep.subr.bf16.mxu0 %v19662_v21  ;;  %v19699_v21 = vld [vmem:[#allocation13 + $0x8a0] ss:$48 sps:$4 sm:$0xff]  }
 0x5b7   :  { %9454 = vmatpush1.bf16.msra.mxu1 %v19714_v22  ;;  %v22387_v22 = vpack.c.bf16 %v259_v8, %v259_v8  ;;  %v19822_v8 = vld [vmem:[#allocation13 + $0x8] ss:$48 sps:$4 sm:$0xff]  }
 0x5b8   :  { %9455 = vmatprep.subr.bf16.mxu1 %v19722_v14  ;;  %v19707_v14 = vld [vmem:[#allocation13 + $0x844] ss:$48 sps:$4 sm:$0xff]  }
 0x5b9   :  { %7043 = vmatpush1.bf16.msra.mxu0 %v19660_v23  ;;  %v22389_v23 = vpack.c.bf16 %v256_v12, %v256_v12  ;;  %v19755_v12 = vld [vmem:[#allocation13 + $0xb44] ss:$48 sps:$4 sm:$0xff]  }
 0x5ba   :  { %7044 = vmatprep.subr.bf16.mxu0 %v19665_v25  ;;  %v6778_v25 = vadd.f32 %v22364_v45, %v4618_v9  ;;  %v19713_v45 = vld [vmem:[#allocation13 + $0x7e4] ss:$48 sps:$4 sm:$0xff]   ;;  %v19830_v9 = vld [vmem:[#allocation13 + $0x5ac] ss:$48 sps:$4 sm:$0xff]  }
 0x5bb   :  { %9456 = vmatpush1.bf16.msra.mxu1 %v19720_v20  ;;  %v19783_v20 = vld [vmem:[#allocation13 + $0x2a8] ss:$48 sps:$4 sm:$0xff]  }
 0x5bc   :  { %9457 = vmatprep.subr.bf16.mxu1 %v19728_v30 }
 0x5bd   :  { %7045 = vmatpush1.bf16.msra.mxu0 %v19663_v32  ;;  %v19791_v32 = vld [vmem:[#allocation13 + $0x24c] ss:$48 sps:$4 sm:$0xff]  }
 0x5be   :  { %7046 = vmatprep.subr.bf16.mxu0 %v19668_v33  ;;  %v6780_v33 = vadd.f32 %v22372_v11, %v4622_v59  ;;  %v19836_v59 = vld [vmem:[#allocation13 + $0x54c] ss:$48 sps:$4 sm:$0xff]  }
 0x5bf   :  { %9458 = vmatpush1.bf16.msra.mxu1 %v19726_v34 }
 0x5c0   :  { %9459 = vmatprep.subr.bf16.mxu1 %v19734_v2 }
 0x5c1   :  { %7047 = vmatpush2.bf16.msra.mxu0 %v19666_v0  ;;  %v19705_v0 = vld [vmem:[#allocation13 + $0x840] ss:$48 sps:$4 sm:$0xff]  }
 0x5c2   :  { %7048 = vmatprep.subr.bf16.mxu0 %v19671_v41 }
 0x5c3   :  { %9460 = vmatpush2.bf16.msra.mxu1 %v19732_v55 }
 0x5c4   :  { %9461 = vmatprep.subr.bf16.mxu1 %v19740_v36  ;;  %v19789_v36 = vld [vmem:[#allocation13 + $0x248] ss:$48 sps:$4 sm:$0xff]  }
 0x5c5   :  { %7049 = vmatpush2.bf16.msra.mxu0 %v19669_v54  ;;  %v19794_v54 = vld [vmem:[#allocation13 + $0x1ec] ss:$48 sps:$4 sm:$0xff]  }
 0x5c6   :  { %7050 = vmatprep.subr.bf16.mxu0 %v19674_v49 }
 0x5c7   :  { %9462 = vmatpush2.bf16.msra.mxu1 %v19738_v10  ;;  %v19711_v10 = vld [vmem:[#allocation13 + $0x7e0] ss:$48 sps:$4 sm:$0xff]  }
 0x5c8   :  { %9463 = vmatprep.subr.bf16.mxu1 %v19746_v37 }
 0x5c9   :  { %7051 = vmatpush2.bf16.msra.mxu0 %v19672_v62  ;;  %v19719_v62 = vld [vmem:[#allocation13 + $0x784] ss:$48 sps:$4 sm:$0xff]  }
 0x5ca   :  { %7052 = vmatprep.subr.bf16.mxu0 %v19677_v38 }
 0x5cb   :  { %9464 = vmatpush2.bf16.msra.mxu1 %v19744_v39  ;;  %v19792_v39 = vld [vmem:[#allocation13 + $0x1e8] ss:$48 sps:$4 sm:$0xff]  }
 0x5cc   :  { %9465 = vmatprep.subr.bf16.mxu1 %v19752_v42  ;;  %v19800_v42 = vld [vmem:[#allocation13 + $0x18c] ss:$48 sps:$4 sm:$0xff]  }
 0x5cd   :  { %7053 = vmatpush2.bf16.msra.mxu0 %v19675_v46  ;;  %v19717_v46 = vld [vmem:[#allocation13 + $0x780] ss:$48 sps:$4 sm:$0xff]  }
 0x5ce   :  { %7054 = vmatprep.subr.bf16.mxu0 %v19680_v19  ;;  %v19725_v19 = vld [vmem:[#allocation13 + $0x724] ss:$48 sps:$4 sm:$0xff]  }
 0x5cf   :  { %9466 = vmatpush2.bf16.msra.mxu1 %v19750_v60  ;;  %v19798_v60 = vld [vmem:[#allocation13 + $0x188] ss:$48 sps:$4 sm:$0xff]  }
 0x5d0   :  { %9467 = vmatprep.subr.bf16.mxu1 %v19758_v15  ;;  %v19806_v15 = vld [vmem:[#allocation13 + $0x12c] ss:$48 sps:$4 sm:$0xff]  }
 0x5d1   :  { %7055 = vmatpush2.bf16.msra.mxu0 %v19678_v50  ;;  %v19723_v50 = vld [vmem:[#allocation13 + $0x720] ss:$48 sps:$4 sm:$0xff]  }
 0x5d2   :  { %7056 = vmatprep.subr.bf16.mxu0 %v19683_v28  ;;  %v19731_v28 = vld [vmem:[#allocation13 + $0x6c4] ss:$48 sps:$4 sm:$0xff]  }
 0x5d3   :  { %9468 = vmatpush2.bf16.msra.mxu1 %v19756_v44  ;;  %v19804_v44 = vld [vmem:[#allocation13 + $0x128] ss:$48 sps:$4 sm:$0xff]  }
 0x5d4   :  { %9469 = vmatprep.subr.bf16.mxu1 %v19764_v7  ;;  %v19812_v7 = vld [vmem:[#allocation13 + $0xcc] ss:$48 sps:$4 sm:$0xff]  }
 0x5d5   :  { %7057 = vmatpush2.bf16.msra.mxu0 %v19681_v52  ;;  %v19729_v52 = vld [vmem:[#allocation13 + $0x6c0] ss:$48 sps:$4 sm:$0xff]  }
 0x5d6   :  { %7058 = vmatprep.subr.bf16.mxu0 %v19686_v43  ;;  %v19737_v43 = vld [vmem:[#allocation13 + $0x664] ss:$48 sps:$4 sm:$0xff]  }
 0x5d7   :  { %9470 = vmatpush2.bf16.msra.mxu1 %v19762_v53  ;;  %v19810_v53 = vld [vmem:[#allocation13 + $0xc8] ss:$48 sps:$4 sm:$0xff]  }
 0x5d8   :  { %9471 = vmatprep.subr.bf16.mxu1 %v19770_v56  ;;  %v19818_v56 = vld [vmem:[#allocation13 + $0x6c] ss:$48 sps:$4 sm:$0xff]  }
 0x5d9   :  { %7059 = vmatpush2.bf16.msra.mxu0 %v19684_v3  ;;  %v19735_v3 = vld [vmem:[#allocation13 + $0x660] ss:$48 sps:$4 sm:$0xff]  }
 0x5da   :  { %7060 = vmatprep.subr.bf16.mxu0 %v19692_v1  ;;  %v19743_v1 = vld [vmem:[#allocation13 + $0x604] ss:$48 sps:$4 sm:$0xff]  }
 0x5db   :  { %9472 = vmatpush2.bf16.msra.mxu1 %v19768_v63  ;;  %v19816_v63 = vld [vmem:[#allocation13 + $0x68] ss:$48 sps:$4 sm:$0xff]  }
 0x5dc   :  { %9473 = vmatprep.subr.bf16.mxu1 %v19776_v24  ;;  %v19824_v24 = vld [vmem:[#allocation13 + $0xc] ss:$48 sps:$4 sm:$0xff]  }
 0x5dd   :  { %7061 = vmatpush2.bf16.msra.mxu0 %v19690_v4  ;;  %v19741_v4 = vld [vmem:[#allocation13 + $0x600] ss:$48 sps:$4 sm:$0xff]  }
 0x5de   :  { %9484 = vmatprep.subr.bf16.mxu0 %v19701_v6  ;;  %v19749_v6 = vld [vmem:[#allocation13 + $0xba4] ss:$48 sps:$4 sm:$0xff]  }
 0x5df   :  { %9474 = vmatpush2.bf16.msra.mxu1 %v19774_v26  ;;  %v19747_v26 = vld [vmem:[#allocation13 + $0xba0] ss:$48 sps:$4 sm:$0xff]  }
 0x5e0   :  { %v6818_v30 = vpop.f32.mrf.mxu0  ;;  %7063 = vmatmul.mubr.bf16.vlgmr.msra.gmra.mxu0 %v22315_v58  ;;  %9525 = vmatprep.subr.bf16.mxu1 %v19785_v18  ;;  %v19828_v18 = vld [vmem:[#allocation13 + $0x5a8] ss:$48 sps:$4 sm:$0xff]  }
 0x5e1   :  { %v22394_v34 = vadd.f32 %v6818_v30, %v6778_v25  ;;  %v22396_v2 = vpop.f32.mrf.mxu1  ;;  %9485 = vmatpush1.bf16.msra.mxu0 %v19699_v21  ;;  %9516 = vmatprep.mubr.bf16.mxu0 %v22387_v22  ;;  %v19753_v21 = vld [vmem:[#allocation13 + $0xb40] ss:$48 sps:$4 sm:$0xff]   ;;  %v19834_v25 = vld [vmem:[#allocation13 + $0x548] ss:$48 sps:$4 sm:$0xff]  }
 0x5e2   :  { %v6820_v41 = vpop.f32.mrf.mxu0  ;;  %9486 = vmatprep.subr.bf16.mxu0 %v19707_v14  ;;  %9476 = vmatmul.mubr.bf16.vlgmr.msra.gmra.mxu1 %v22389_v23  ;;  %v19761_v14 = vld [vmem:[#allocation13 + $0xae4] ss:$48 sps:$4 sm:$0xff]   ;;  %v19759_v30 = vld [vmem:[#allocation13 + $0xae0] ss:$48 sps:$4 sm:$0xff]  }
 0x5e3   :  { %v22400_v55 = vadd.f32 %v6820_v41, %v6780_v33  ;;  %v22402_v58 = vpop.f32.mrf.mxu1  ;;  %9526 = vmatpush1.bf16.msra.mxu1 %v19783_v20  ;;  %9557 = vmatprep.mubr.bf16.mxu1 %v22362_v40  ;;  %v19842_v20 = vld [vmem:[#allocation13 + $0x4ec] ss:$48 sps:$4 sm:$0xff]   ;;  %v19840_v33 = vld [vmem:[#allocation13 + $0x4e8] ss:$48 sps:$4 sm:$0xff]   ;;  %v19765_v41 = vld [vmem:[#allocation13 + $0xa80] ss:$48 sps:$4 sm:$0xff]  }
 0x5e4   :  { %v6822_v11 = vpop.f32.mrf.mxu0  ;;  %9527 = vmatprep.subr.bf16.mxu1 %v19791_v32  ;;  %v19767_v32 = vld [vmem:[#allocation13 + $0xa84] ss:$48 sps:$4 sm:$0xff]  }
 0x5e5   :  { %v6863_v49 = vpop.f32.mrf.mxu1  ;;  %9487 = vmatpush1.bf16.msra.mxu0 %v19705_v0  ;;  %v19848_v0 = vld [vmem:[#allocation13 + $0x48c] ss:$48 sps:$4 sm:$0xff]  }
 0x5e6   :  { %v6823_v37 = vpop.f32.mrf.mxu0  ;;  %9488 = vmatprep.subr.bf16.mxu0 %v19713_v45  ;;  %v19773_v45 = vld [vmem:[#allocation13 + $0xa24] ss:$48 sps:$4 sm:$0xff]   ;;  %v19854_v11 = vld [vmem:[#allocation13 + $0x42c] ss:$48 sps:$4 sm:$0xff]  }
 0x5e7   :  { %v6864_v38 = vpop.f32.mrf.mxu1  ;;  %9528 = vmatpush1.bf16.msra.mxu1 %v19789_v36  ;;  %v19846_v36 = vld [vmem:[#allocation13 + $0x488] ss:$48 sps:$4 sm:$0xff]   ;;  %v19779_v49 = vld [vmem:[#allocation13 + $0x9c4] ss:$48 sps:$4 sm:$0xff]   ;;  %v19860_v37 = vld [vmem:[#allocation13 + $0x3cc] ss:$48 sps:$4 sm:$0xff]  }
 0x5e8   :  { %9529 = vmatprep.subr.bf16.mxu1 %v19794_v54  ;;  %v19771_v54 = vld [vmem:[#allocation13 + $0xa20] ss:$48 sps:$4 sm:$0xff]   ;;  %v19782_v38 = vld [vmem:[#allocation13 + $0x964] ss:$48 sps:$4 sm:$0xff]  }
 0x5e9   :  { %9489 = vmatpush1.bf16.msra.mxu0 %v19711_v10  ;;  %v19852_v10 = vld [vmem:[#allocation13 + $0x428] ss:$48 sps:$4 sm:$0xff]  }
 0x5ea   :  { %9490 = vmatprep.subr.bf16.mxu0 %v19719_v62  ;;  %v19777_v62 = vld [vmem:[#allocation13 + $0x9c0] ss:$48 sps:$4 sm:$0xff]  }
 0x5eb   :  { %9530 = vmatpush1.bf16.msra.mxu1 %v19792_v39  ;;  %v19858_v39 = vld [vmem:[#allocation13 + $0x3c8] ss:$48 sps:$4 sm:$0xff]  }
 0x5ec   :  { %9531 = vmatprep.subr.bf16.mxu1 %v19800_v42  ;;  %v19866_v42 = vld [vmem:[#allocation13 + $0x36c] ss:$48 sps:$4 sm:$0xff]  }
 0x5ed   :  { %9491 = vmatpush1.bf16.msra.mxu0 %v19717_v46  ;;  %v19780_v46 = vld [vmem:[#allocation13 + $0x960] ss:$48 sps:$4 sm:$0xff]  }
 0x5ee   :  { %9492 = vmatprep.subr.bf16.mxu0 %v19725_v19  ;;  %v19788_v19 = vld [vmem:[#allocation13 + $0x904] ss:$48 sps:$4 sm:$0xff]  }
 0x5ef   :  { %9532 = vmatpush1.bf16.msra.mxu1 %v19798_v60  ;;  %v19864_v60 = vld [vmem:[#allocation13 + $0x368] ss:$48 sps:$4 sm:$0xff]  }
 0x5f0   :  { %9533 = vmatprep.subr.bf16.mxu1 %v19806_v15  ;;  %v19872_v15 = vld [vmem:[#allocation13 + $0x30c] ss:$48 sps:$4 sm:$0xff]  }
 0x5f1   :  { %9493 = vmatpush1.bf16.msra.mxu0 %v19723_v50  ;;  %v19786_v50 = vld [vmem:[#allocation13 + $0x900] ss:$48 sps:$4 sm:$0xff]  }
 0x5f2   :  { %9494 = vmatprep.subr.bf16.mxu0 %v19731_v28  ;;  %v258_v28 = vld [vmem:[%s22886_s1 + $0x30] sm:$0xff] }
 0x5f3   :  { %9534 = vmatpush1.bf16.msra.mxu1 %v19804_v44  ;;  %v19797_v44 = vld [vmem:[#allocation13 + $0x8ac] ss:$48 sps:$4 sm:$0xff]  }
 0x5f4   :  { %9535 = vmatprep.subr.bf16.mxu1 %v19812_v7  ;;  %v4626_v7 = vrot.slane %v22334_v13, %v22157_v47 }
 0x5f5   :  { %9495 = vmatpush1.bf16.msra.mxu0 %v19729_v52  ;;  %v19870_v52 = vld [vmem:[#allocation13 + $0x308] ss:$48 sps:$4 sm:$0xff]  }
 0x5f6   :  { %9496 = vmatprep.subr.bf16.mxu0 %v19737_v43  ;;  %v22410_v43 = vpack.c.bf16 %v258_v28, %v258_v28  ;;  %v19837_v28 = vld [vmem:[#allocation13 + $0x608] ss:$48 sps:$4 sm:$0xff]  }
 0x5f7   :  { %9536 = vmatpush1.bf16.msra.mxu1 %v19810_v53  ;;  %v19881_v53 = vld [vmem:[#allocation13 + $0x2b4] ss:$48 sps:$4 sm:$0xff]  }
 0x5f8   :  { %9537 = vmatprep.subr.bf16.mxu1 %v19818_v56  ;;  %v4630_v56 = vrot.slane %v22334_v13, %v22160_v51  ;;  %v19801_v13 = vld [vmem:[#allocation13 + $0x848] ss:$48 sps:$4 sm:$0xff]  }
 0x5f9   :  { %9497 = vmatpush1.bf16.msra.mxu0 %v19735_v3  ;;  %v19795_v3 = vld [vmem:[#allocation13 + $0x8a8] ss:$48 sps:$4 sm:$0xff]  }
 0x5fa   :  { %9498 = vmatprep.subr.bf16.mxu0 %v19743_v1  ;;  %v19803_v1 = vld [vmem:[#allocation13 + $0x84c] ss:$48 sps:$4 sm:$0xff]  }
 0x5fb   :  { %9538 = vmatpush1.bf16.msra.mxu1 %v19816_v63  ;;  %v6860_v63 = vadd.f32 %v22396_v2, %v4626_v7  ;;  %v19809_v2 = vld [vmem:[#allocation13 + $0x7ec] ss:$48 sps:$4 sm:$0xff]   ;;  %v19918_v7 = vld [vmem:[#allocation13 + $0x10] ss:$48 sps:$4 sm:$0xff]  }
 0x5fc   :  { %9539 = vmatprep.subr.bf16.mxu1 %v19824_v24  ;;  %v19879_v24 = vld [vmem:[#allocation13 + $0x2b0] ss:$48 sps:$4 sm:$0xff]  }
 0x5fd   :  { %9499 = vmatpush1.bf16.msra.mxu0 %v19741_v4 }
 0x5fe   :  { %9500 = vmatprep.subr.bf16.mxu0 %v19749_v6  ;;  %v19887_v6 = vld [vmem:[#allocation13 + $0x254] ss:$48 sps:$4 sm:$0xff]  }
 0x5ff   :  { %9540 = vmatpush1.bf16.msra.mxu1 %v19822_v8  ;;  %v6862_v8 = vadd.f32 %v22402_v58, %v4630_v56  ;;  %v19851_v56 = vld [vmem:[#allocation13 + $0xb4c] ss:$48 sps:$4 sm:$0xff]  }
 0x600   :  { %9541 = vmatprep.subr.bf16.mxu1 %v19830_v9 }
 0x601   :  { %9501 = vmatpush2.bf16.msra.mxu0 %v19747_v26 }
 0x602   :  { %9502 = vmatprep.subr.bf16.mxu0 %v19755_v12 }
 0x603   :  { %9542 = vmatpush2.bf16.msra.mxu1 %v19828_v18 }
 0x604   :  { %9543 = vmatprep.subr.bf16.mxu1 %v19836_v59 }
 0x605   :  { %9503 = vmatpush2.bf16.msra.mxu0 %v19753_v21  ;;  %v19885_v21 = vld [vmem:[#allocation13 + $0x250] ss:$48 sps:$4 sm:$0xff]  }
 0x606   :  { %9504 = vmatprep.subr.bf16.mxu0 %v19761_v14  ;;  %v19890_v14 = vld [vmem:[#allocation13 + $0x1f4] ss:$48 sps:$4 sm:$0xff]  }
 0x607   :  { %9544 = vmatpush2.bf16.msra.mxu1 %v19834_v25 }
 0x608   :  { %9545 = vmatprep.subr.bf16.mxu1 %v19842_v20  ;;  %v19807_v20 = vld [vmem:[#allocation13 + $0x7e8] ss:$48 sps:$4 sm:$0xff]  }
 0x609   :  { %9505 = vmatpush2.bf16.msra.mxu0 %v19759_v30 }
 0x60a   :  { %9506 = vmatprep.subr.bf16.mxu0 %v19767_v32  ;;  %v19815_v32 = vld [vmem:[#allocation13 + $0x78c] ss:$48 sps:$4 sm:$0xff]  }
 0x60b   :  { %9546 = vmatpush2.bf16.msra.mxu1 %v19840_v33 }
 0x60c   :  { %9547 = vmatprep.subr.bf16.mxu1 %v19848_v0  ;;  %v19888_v0 = vld [vmem:[#allocation13 + $0x1f0] ss:$48 sps:$4 sm:$0xff]  }
 0x60d   :  { %9507 = vmatpush2.bf16.msra.mxu0 %v19765_v41  ;;  %v19896_v41 = vld [vmem:[#allocation13 + $0x194] ss:$48 sps:$4 sm:$0xff]  }
 0x60e   :  { %9508 = vmatprep.subr.bf16.mxu0 %v19773_v45  ;;  %v19813_v45 = vld [vmem:[#allocation13 + $0x788] ss:$48 sps:$4 sm:$0xff]  }
 0x60f   :  { %9548 = vmatpush2.bf16.msra.mxu1 %v19846_v36  ;;  %v19821_v36 = vld [vmem:[#allocation13 + $0x72c] ss:$48 sps:$4 sm:$0xff]  }
 0x610   :  { %9549 = vmatprep.subr.bf16.mxu1 %v19854_v11  ;;  %v19894_v11 = vld [vmem:[#allocation13 + $0x190] ss:$48 sps:$4 sm:$0xff]  }
 0x611   :  { %9509 = vmatpush2.bf16.msra.mxu0 %v19771_v54  ;;  %v19902_v54 = vld [vmem:[#allocation13 + $0x134] ss:$48 sps:$4 sm:$0xff]  }
 0x612   :  { %9510 = vmatprep.subr.bf16.mxu0 %v19779_v49  ;;  %v19819_v49 = vld [vmem:[#allocation13 + $0x728] ss:$48 sps:$4 sm:$0xff]  }
 0x613   :  { %9550 = vmatpush2.bf16.msra.mxu1 %v19852_v10  ;;  %v19827_v10 = vld [vmem:[#allocation13 + $0x6cc] ss:$48 sps:$4 sm:$0xff]  }
 0x614   :  { %9551 = vmatprep.subr.bf16.mxu1 %v19860_v37  ;;  %v19900_v37 = vld [vmem:[#allocation13 + $0x130] ss:$48 sps:$4 sm:$0xff]  }
 0x615   :  { %9511 = vmatpush2.bf16.msra.mxu0 %v19777_v62  ;;  %v19908_v62 = vld [vmem:[#allocation13 + $0xd4] ss:$48 sps:$4 sm:$0xff]  }
 0x616   :  { %9512 = vmatprep.subr.bf16.mxu0 %v19782_v38  ;;  %v19825_v38 = vld [vmem:[#allocation13 + $0x6c8] ss:$48 sps:$4 sm:$0xff]  }
 0x617   :  { %9552 = vmatpush2.bf16.msra.mxu1 %v19858_v39  ;;  %v19833_v39 = vld [vmem:[#allocation13 + $0x66c] ss:$48 sps:$4 sm:$0xff]  }
 0x618   :  { %9553 = vmatprep.subr.bf16.mxu1 %v19866_v42  ;;  %v19906_v42 = vld [vmem:[#allocation13 + $0xd0] ss:$48 sps:$4 sm:$0xff]  }
 0x619   :  { %9513 = vmatpush2.bf16.msra.mxu0 %v19780_v46  ;;  %v19914_v46 = vld [vmem:[#allocation13 + $0x74] ss:$48 sps:$4 sm:$0xff]  }
 0x61a   :  { %9514 = vmatprep.subr.bf16.mxu0 %v19788_v19  ;;  %v19831_v19 = vld [vmem:[#allocation13 + $0x668] ss:$48 sps:$4 sm:$0xff]  }
 0x61b   :  { %9554 = vmatpush2.bf16.msra.mxu1 %v19864_v60  ;;  %v19839_v60 = vld [vmem:[#allocation13 + $0x60c] ss:$48 sps:$4 sm:$0xff]  }
 0x61c   :  { %9555 = vmatprep.subr.bf16.mxu1 %v19872_v15  ;;  %v19912_v15 = vld [vmem:[#allocation13 + $0x70] ss:$48 sps:$4 sm:$0xff]  }
 0x61d   :  { %9515 = vmatpush2.bf16.msra.mxu0 %v19786_v50  ;;  %v19920_v50 = vld [vmem:[#allocation13 + $0x14] ss:$48 sps:$4 sm:$0xff]  }
 0x61e   :  { %9566 = vmatprep.subr.bf16.mxu0 %v19797_v44  ;;  %v19845_v44 = vld [vmem:[#allocation13 + $0xbac] ss:$48 sps:$4 sm:$0xff]  }
 0x61f   :  { %9556 = vmatpush2.bf16.msra.mxu1 %v19870_v52  ;;  %v19926_v52 = vld [vmem:[#allocation13 + $0x5b4] ss:$48 sps:$4 sm:$0xff]  }
 0x620   :  { %v6900_v4 = vpop.f32.mrf.mxu0  ;;  %9517 = vmatmul.mubr.bf16.vlgmr.msra.gmra.mxu0 %v22410_v43  ;;  %9607 = vmatprep.subr.bf16.mxu1 %v19881_v53  ;;  %v19843_v53 = vld [vmem:[#allocation13 + $0xba8] ss:$48 sps:$4 sm:$0xff]  }
 0x621   :  { %v22417_v9 = vadd.f32 %v6900_v4, %v6860_v63  ;;  %v22419_v26 = vpop.f32.mrf.mxu1  ;;  %9567 = vmatpush1.bf16.msra.mxu0 %v19795_v3  ;;  %9598 = vmatprep.mubr.bf16.mxu0 %v22387_v22  ;;  %v19924_v3 = vld [vmem:[#allocation13 + $0x5b0] ss:$48 sps:$4 sm:$0xff]   ;;  %v19849_v63 = vld [vmem:[#allocation13 + $0xb48] ss:$48 sps:$4 sm:$0xff]  }
 0x622   :  { %v6902_v12 = vpop.f32.mrf.mxu0  ;;  %9568 = vmatprep.subr.bf16.mxu0 %v19803_v1  ;;  %9558 = vmatmul.mubr.bf16.vlgmr.msra.gmra.mxu1 %v22389_v23  ;;  %v19932_v1 = vld [vmem:[#allocation13 + $0x554] ss:$48 sps:$4 sm:$0xff]   ;;  %v19930_v4 = vld [vmem:[#allocation13 + $0x550] ss:$48 sps:$4 sm:$0xff]  }
 0x623   :  { %v22423_v18 = vadd.f32 %v6902_v12, %v6862_v8  ;;  %v22425_v59 = vpop.f32.mrf.mxu1  ;;  %9608 = vmatpush1.bf16.msra.mxu1 %v19879_v24  ;;  %9639 = vmatprep.mubr.bf16.mxu1 %v22362_v40  ;;  %v19857_v24 = vld [vmem:[#allocation13 + $0xaec] ss:$48 sps:$4 sm:$0xff]   ;;  %v19855_v8 = vld [vmem:[#allocation13 + $0xae8] ss:$48 sps:$4 sm:$0xff]   ;;  %v19936_v12 = vld [vmem:[#allocation13 + $0x4f0] ss:$48 sps:$4 sm:$0xff]  }
 0x624   :  { %v6904_v58 = vpop.f32.mrf.mxu0  ;;  %9609 = vmatprep.subr.bf16.mxu1 %v19887_v6  ;;  %v19938_v6 = vld [vmem:[#allocation13 + $0x4f4] ss:$48 sps:$4 sm:$0xff]  }
 0x625   :  { %v6945_v25 = vpop.f32.mrf.mxu1  ;;  %9569 = vmatpush1.bf16.msra.mxu0 %v19801_v13  ;;  %v19863_v13 = vld [vmem:[#allocation13 + $0xa8c] ss:$48 sps:$4 sm:$0xff]  }
 0x626   :  { %v6905_v30 = vpop.f32.mrf.mxu0  ;;  %9570 = vmatprep.subr.bf16.mxu0 %v19809_v2  ;;  %v19944_v2 = vld [vmem:[#allocation13 + $0x494] ss:$48 sps:$4 sm:$0xff]   ;;  %v19869_v58 = vld [vmem:[#allocation13 + $0xa2c] ss:$48 sps:$4 sm:$0xff]  }
 0x627   :  { %v6946_v33 = vpop.f32.mrf.mxu1  ;;  %9610 = vmatpush1.bf16.msra.mxu1 %v19885_v21  ;;  %v19861_v21 = vld [vmem:[#allocation13 + $0xa88] ss:$48 sps:$4 sm:$0xff]   ;;  %v19950_v25 = vld [vmem:[#allocation13 + $0x434] ss:$48 sps:$4 sm:$0xff]   ;;  %v19875_v30 = vld [vmem:[#allocation13 + $0x9cc] ss:$48 sps:$4 sm:$0xff]  }
 0x628   :  { %9611 = vmatprep.subr.bf16.mxu1 %v19890_v14  ;;  %v19942_v14 = vld [vmem:[#allocation13 + $0x490] ss:$48 sps:$4 sm:$0xff]   ;;  %v19956_v33 = vld [vmem:[#allocation13 + $0x3d4] ss:$48 sps:$4 sm:$0xff]  }
 0x629   :  { %9571 = vmatpush1.bf16.msra.mxu0 %v19807_v20  ;;  %v19867_v20 = vld [vmem:[#allocation13 + $0xa28] ss:$48 sps:$4 sm:$0xff]  }
 0x62a   :  { %9572 = vmatprep.subr.bf16.mxu0 %v19815_v32  ;;  %v19948_v32 = vld [vmem:[#allocation13 + $0x430] ss:$48 sps:$4 sm:$0xff]  }
 0x62b   :  { %9612 = vmatpush1.bf16.msra.mxu1 %v19888_v0  ;;  %v19873_v0 = vld [vmem:[#allocation13 + $0x9c8] ss:$48 sps:$4 sm:$0xff]  }
 0x62c   :  { %9613 = vmatprep.subr.bf16.mxu1 %v19896_v41  ;;  %v19878_v41 = vld [vmem:[#allocation13 + $0x96c] ss:$48 sps:$4 sm:$0xff]  }
 0x62d   :  { %9573 = vmatpush1.bf16.msra.mxu0 %v19813_v45  ;;  %v19954_v45 = vld [vmem:[#allocation13 + $0x3d0] ss:$48 sps:$4 sm:$0xff]  }
 0x62e   :  { %9574 = vmatprep.subr.bf16.mxu0 %v19821_v36  ;;  %v19962_v36 = vld [vmem:[#allocation13 + $0x374] ss:$48 sps:$4 sm:$0xff]  }
 0x62f   :  { %9614 = vmatpush1.bf16.msra.mxu1 %v19894_v11  ;;  %v19876_v11 = vld [vmem:[#allocation13 + $0x968] ss:$48 sps:$4 sm:$0xff]  }
 0x630   :  { %9615 = vmatprep.subr.bf16.mxu1 %v19902_v54  ;;  %v19884_v54 = vld [vmem:[#allocation13 + $0x90c] ss:$48 sps:$4 sm:$0xff]  }
 0x631   :  { %9575 = vmatpush1.bf16.msra.mxu0 %v19819_v49  ;;  %v19960_v49 = vld [vmem:[#allocation13 + $0x370] ss:$48 sps:$4 sm:$0xff]  }
 0x632   :  { %9576 = vmatprep.subr.bf16.mxu0 %v19827_v10  ;;  %v22428_v10 = vld [vmem:[#allocation14 + $0x8] sm:$0xf] }
 0x633   :  { %9616 = vmatpush1.bf16.msra.mxu1 %v19900_v37  ;;  %v19968_v37 = vld [vmem:[#allocation13 + $0x314] ss:$48 sps:$4 sm:$0xff]  }
 0x634   :  { %9617 = vmatprep.subr.bf16.mxu1 %v19908_v62  ;;  %v19882_v62 = vld [vmem:[#allocation13 + $0x908] ss:$48 sps:$4 sm:$0xff]  }
 0x635   :  { %9577 = vmatpush1.bf16.msra.mxu0 %v19825_v38  ;;  %v19893_v38 = vld [vmem:[#allocation13 + $0x8b4] ss:$48 sps:$4 sm:$0xff]  }
 0x636   :  { %9578 = vmatprep.subr.bf16.mxu0 %v19833_v39  ;;  %v4634_v39 = vrot.slane %v22428_v10, %v22191_v31 }
 0x637   :  { %9618 = vmatpush1.bf16.msra.mxu1 %v19906_v42  ;;  %v19966_v42 = vld [vmem:[#allocation13 + $0x310] ss:$48 sps:$4 sm:$0xff]  }
 0x638   :  { %9619 = vmatprep.subr.bf16.mxu1 %v19914_v46  ;;  %v19977_v46 = vld [vmem:[#allocation13 + $0x2bc] ss:$48 sps:$4 sm:$0xff]  }
 0x639   :  { %9579 = vmatpush1.bf16.msra.mxu0 %v19831_v19  ;;  %v4638_v19 = vrot.slane %v22428_v10, %v22194_v35 }
 0x63a   :  { %9580 = vmatprep.subr.bf16.mxu0 %v19839_v60  ;;  %v19891_v60 = vld [vmem:[#allocation13 + $0x8b0] ss:$48 sps:$4 sm:$0xff]  }
 0x63b   :  { %9620 = vmatpush1.bf16.msra.mxu1 %v19912_v15  ;;  %v19899_v15 = vld [vmem:[#allocation13 + $0x854] ss:$48 sps:$4 sm:$0xff]  }
 0x63c   :  { %9621 = vmatprep.subr.bf16.mxu1 %v19920_v50  ;;  %v6942_v50 = vadd.f32 %v22419_v26, %v4634_v39  ;;  %v19905_v26 = vld [vmem:[#allocation13 + $0x7f4] ss:$48 sps:$4 sm:$0xff]   ;;  %v20016_v39 = vld [vmem:[#allocation13 + $0x1c] ss:$48 sps:$4 sm:$0xff]  }
 0x63d   :  { %9581 = vmatpush1.bf16.msra.mxu0 %v19837_v28  ;;  %v19975_v28 = vld [vmem:[#allocation13 + $0x2b8] ss:$48 sps:$4 sm:$0xff]  }
 0x63e   :  { %9582 = vmatprep.subr.bf16.mxu0 %v19845_v44 }
 0x63f   :  { %9622 = vmatpush1.bf16.msra.mxu1 %v19918_v7  ;;  %v19983_v7 = vld [vmem:[#allocation13 + $0x25c] ss:$48 sps:$4 sm:$0xff]  }
 0x640   :  { %9623 = vmatprep.subr.bf16.mxu1 %v19926_v52  ;;  %v6944_v52 = vadd.f32 %v22425_v59, %v4638_v19  ;;  %v20014_v19 = vld [vmem:[#allocation13 + $0x18] ss:$48 sps:$4 sm:$0xff]  }
 0x641   :  { %9583 = vmatpush2.bf16.msra.mxu0 %v19843_v53 }
 0x642   :  { %9584 = vmatprep.subr.bf16.mxu0 %v19851_v56 }
 0x643   :  { %9624 = vmatpush2.bf16.msra.mxu1 %v19924_v3  ;;  %v19897_v3 = vld [vmem:[#allocation13 + $0x850] ss:$48 sps:$4 sm:$0xff]  }
 0x644   :  { %9625 = vmatprep.subr.bf16.mxu1 %v19932_v1 }
 0x645   :  { %9585 = vmatpush2.bf16.msra.mxu0 %v19849_v63 }
 0x646   :  { %9586 = vmatprep.subr.bf16.mxu0 %v19857_v24 }
 0x647   :  { %9626 = vmatpush2.bf16.msra.mxu1 %v19930_v4  ;;  %v19981_v4 = vld [vmem:[#allocation13 + $0x258] ss:$48 sps:$4 sm:$0xff]  }
 0x648   :  { %9627 = vmatprep.subr.bf16.mxu1 %v19938_v6  ;;  %v19986_v6 = vld [vmem:[#allocation13 + $0x1fc] ss:$48 sps:$4 sm:$0xff]  }
 0x649   :  { %9587 = vmatpush2.bf16.msra.mxu0 %v19855_v8 }
 0x64a   :  { %9588 = vmatprep.subr.bf16.mxu0 %v19863_v13  ;;  %v19903_v13 = vld [vmem:[#allocation13 + $0x7f0] ss:$48 sps:$4 sm:$0xff]  }
 0x64b   :  { %9628 = vmatpush2.bf16.msra.mxu1 %v19936_v12 }
 0x64c   :  { %9629 = vmatprep.subr.bf16.mxu1 %v19944_v2  ;;  %v19911_v2 = vld [vmem:[#allocation13 + $0x794] ss:$48 sps:$4 sm:$0xff]  }
 0x64d   :  { %9589 = vmatpush2.bf16.msra.mxu0 %v19861_v21 }
 0x64e   :  { %9590 = vmatprep.subr.bf16.mxu0 %v19869_v58  ;;  %v19984_v58 = vld [vmem:[#allocation13 + $0x1f8] ss:$48 sps:$4 sm:$0xff]  }
 0x64f   :  { %9630 = vmatpush2.bf16.msra.mxu1 %v19942_v14  ;;  %v19992_v14 = vld [vmem:[#allocation13 + $0x19c] ss:$48 sps:$4 sm:$0xff]  }
 0x650   :  { %9631 = vmatprep.subr.bf16.mxu1 %v19950_v25  ;;  %v19909_v25 = vld [vmem:[#allocation13 + $0x790] ss:$48 sps:$4 sm:$0xff]  }
 0x651   :  { %9591 = vmatpush2.bf16.msra.mxu0 %v19867_v20  ;;  %v19917_v20 = vld [vmem:[#allocation13 + $0x734] ss:$48 sps:$4 sm:$0xff]  }
 0x652   :  { %9592 = vmatprep.subr.bf16.mxu0 %v19875_v30  ;;  %v19990_v30 = vld [vmem:[#allocation13 + $0x198] ss:$48 sps:$4 sm:$0xff]  }
 0x653   :  { %9632 = vmatpush2.bf16.msra.mxu1 %v19948_v32  ;;  %v19998_v32 = vld [vmem:[#allocation13 + $0x13c] ss:$48 sps:$4 sm:$0xff]  }
 0x654   :  { %9633 = vmatprep.subr.bf16.mxu1 %v19956_v33  ;;  %v19915_v33 = vld [vmem:[#allocation13 + $0x730] ss:$48 sps:$4 sm:$0xff]  }
 0x655   :  { %9593 = vmatpush2.bf16.msra.mxu0 %v19873_v0  ;;  %v19923_v0 = vld [vmem:[#allocation13 + $0x6d4] ss:$48 sps:$4 sm:$0xff]  }
 0x656   :  { %9594 = vmatprep.subr.bf16.mxu0 %v19878_v41  ;;  %v19996_v41 = vld [vmem:[#allocation13 + $0x138] ss:$48 sps:$4 sm:$0xff]  }
 0x657   :  { %9634 = vmatpush2.bf16.msra.mxu1 %v19954_v45  ;;  %v20004_v45 = vld [vmem:[#allocation13 + $0xdc] ss:$48 sps:$4 sm:$0xff]  }
 0x658   :  { %9635 = vmatprep.subr.bf16.mxu1 %v19962_v36  ;;  %v19921_v36 = vld [vmem:[#allocation13 + $0x6d0] ss:$48 sps:$4 sm:$0xff]  }
 0x659   :  { %9595 = vmatpush2.bf16.msra.mxu0 %v19876_v11  ;;  %v19929_v11 = vld [vmem:[#allocation13 + $0x674] ss:$48 sps:$4 sm:$0xff]  }
 0x65a   :  { %9596 = vmatprep.subr.bf16.mxu0 %v19884_v54  ;;  %v20002_v54 = vld [vmem:[#allocation13 + $0xd8] ss:$48 sps:$4 sm:$0xff]  }
 0x65b   :  { %9636 = vmatpush2.bf16.msra.mxu1 %v19960_v49  ;;  %v20010_v49 = vld [vmem:[#allocation13 + $0x7c] ss:$48 sps:$4 sm:$0xff]  }
 0x65c   :  { %9637 = vmatprep.subr.bf16.mxu1 %v19968_v37  ;;  %v19927_v37 = vld [vmem:[#allocation13 + $0x670] ss:$48 sps:$4 sm:$0xff]  }
 0x65d   :  { %9597 = vmatpush2.bf16.msra.mxu0 %v19882_v62  ;;  %v19935_v62 = vld [vmem:[#allocation13 + $0x614] ss:$48 sps:$4 sm:$0xff]  }
 0x65e   :  { %9648 = vmatprep.subr.bf16.mxu0 %v19893_v38  ;;  %v20008_v38 = vld [vmem:[#allocation13 + $0x78] ss:$48 sps:$4 sm:$0xff]  }
 0x65f   :  { %9638 = vmatpush2.bf16.msra.mxu1 %v19966_v42  ;;  %v19933_v42 = vld [vmem:[#allocation13 + $0x610] ss:$48 sps:$4 sm:$0xff]  }
 0x660   :  { %v6982_v44 = vpop.f32.mrf.mxu0  ;;  %9599 = vmatmul.mubr.bf16.vlgmr.msra.gmra.mxu0 %v22410_v43  ;;  %9689 = vmatprep.subr.bf16.mxu1 %v19977_v46  ;;  %v19941_v46 = vld [vmem:[#allocation13 + $0xbb4] ss:$48 sps:$4 sm:$0xff]  }
 0x661   :  { %v22437_v53 = vadd.f32 %v6982_v44, %v6942_v50  ;;  %v22439_v56 = vpop.f32.mrf.mxu1  ;;  %9649 = vmatpush1.bf16.msra.mxu0 %v19891_v60  ;;  %9680 = vmatprep.mubr.bf16.mxu0 %v22387_v22  ;;  %v20022_v60 = vld [vmem:[#allocation13 + $0x5bc] ss:$48 sps:$4 sm:$0xff]   ;;  %v19947_v50 = vld [vmem:[#allocation13 + $0xb54] ss:$48 sps:$4 sm:$0xff]  }
 0x662   :  { %v6984_v1 = vpop.f32.mrf.mxu0  ;;  %9650 = vmatprep.subr.bf16.mxu0 %v19899_v15  ;;  %9640 = vmatmul.mubr.bf16.vlgmr.msra.gmra.mxu1 %v22389_v23  ;;  %v19939_v15 = vld [vmem:[#allocation13 + $0xbb0] ss:$48 sps:$4 sm:$0xff]   ;;  %v20028_v44 = vld [vmem:[#allocation13 + $0x55c] ss:$48 sps:$4 sm:$0xff]  }
 0x663   :  { %v22443_v63 = vadd.f32 %v6984_v1, %v6944_v52  ;;  %v22445_v24 = vpop.f32.mrf.mxu1  ;;  %9690 = vmatpush1.bf16.msra.mxu1 %v19975_v28  ;;  %9721 = vmatprep.mubr.bf16.mxu1 %v22362_v40  ;;  %v20020_v28 = vld [vmem:[#allocation13 + $0x5b8] ss:$48 sps:$4 sm:$0xff]   ;;  %v19953_v52 = vld [vmem:[#allocation13 + $0xaf4] ss:$48 sps:$4 sm:$0xff]   ;;  %v20034_v1 = vld [vmem:[#allocation13 + $0x4fc] ss:$48 sps:$4 sm:$0xff]  }
 0x664   :  { %v6986_v59 = vpop.f32.mrf.mxu0  ;;  %9691 = vmatprep.subr.bf16.mxu1 %v19983_v7  ;;  %v19945_v7 = vld [vmem:[#allocation13 + $0xb50] ss:$48 sps:$4 sm:$0xff]  }
 0x665   :  { %v7027_v8 = vpop.f32.mrf.mxu1  ;;  %9651 = vmatpush1.bf16.msra.mxu0 %v19897_v3  ;;  %v20026_v3 = vld [vmem:[#allocation13 + $0x558] ss:$48 sps:$4 sm:$0xff]  }
 0x666   :  { %v6987_v12 = vpop.f32.mrf.mxu0  ;;  %9652 = vmatprep.subr.bf16.mxu0 %v19905_v26  ;;  %v19951_v26 = vld [vmem:[#allocation13 + $0xaf0] ss:$48 sps:$4 sm:$0xff]   ;;  %v20032_v59 = vld [vmem:[#allocation13 + $0x4f8] ss:$48 sps:$4 sm:$0xff]  }
 0x667   :  { %v7028_v21 = vpop.f32.mrf.mxu1  ;;  %9692 = vmatpush1.bf16.msra.mxu1 %v19981_v4  ;;  %v19959_v4 = vld [vmem:[#allocation13 + $0xa94] ss:$48 sps:$4 sm:$0xff]   ;;  %v19957_v8 = vld [vmem:[#allocation13 + $0xa90] ss:$48 sps:$4 sm:$0xff]   ;;  %v20038_v12 = vld [vmem:[#allocation13 + $0x498] ss:$48 sps:$4 sm:$0xff]  }
 0x668   :  { %9693 = vmatprep.subr.bf16.mxu1 %v19986_v6  ;;  %v20040_v6 = vld [vmem:[#allocation13 + $0x49c] ss:$48 sps:$4 sm:$0xff]   ;;  %v19963_v21 = vld [vmem:[#allocation13 + $0xa30] ss:$48 sps:$4 sm:$0xff]  }
 0x669   :  { %9653 = vmatpush1.bf16.msra.mxu0 %v19903_v13  ;;  %v19965_v13 = vld [vmem:[#allocation13 + $0xa34] ss:$48 sps:$4 sm:$0xff]  }
 0x66a   :  { %9654 = vmatprep.subr.bf16.mxu0 %v19911_v2  ;;  %v20046_v2 = vld [vmem:[#allocation13 + $0x43c] ss:$48 sps:$4 sm:$0xff]  }
 0x66b   :  { %9694 = vmatpush1.bf16.msra.mxu1 %v19984_v58  ;;  %v19971_v58 = vld [vmem:[#allocation13 + $0x9d4] ss:$48 sps:$4 sm:$0xff]  }
 0x66c   :  { %9695 = vmatprep.subr.bf16.mxu1 %v19992_v14  ;;  %v20044_v14 = vld [vmem:[#allocation13 + $0x438] ss:$48 sps:$4 sm:$0xff]  }
 0x66d   :  { %9655 = vmatpush1.bf16.msra.mxu0 %v19909_v25  ;;  %v20052_v25 = vld [vmem:[#allocation13 + $0x3dc] ss:$48 sps:$4 sm:$0xff]  }
 0x66e   :  { %9656 = vmatprep.subr.bf16.mxu0 %v19917_v20  ;;  %v19969_v20 = vld [vmem:[#allocation13 + $0x9d0] ss:$48 sps:$4 sm:$0xff]  }
 0x66f   :  { %9696 = vmatpush1.bf16.msra.mxu1 %v19990_v30  ;;  %v19974_v30 = vld [vmem:[#allocation13 + $0x974] ss:$48 sps:$4 sm:$0xff]  }
 0x670   :  { %9697 = vmatprep.subr.bf16.mxu1 %v19998_v32  ;;  %v20050_v32 = vld [vmem:[#allocation13 + $0x3d8] ss:$48 sps:$4 sm:$0xff]  }
 0x671   :  { %9657 = vmatpush1.bf16.msra.mxu0 %v19915_v33  ;;  %v20058_v33 = vld [vmem:[#allocation13 + $0x37c] ss:$48 sps:$4 sm:$0xff]  }
 0x672   :  { %9658 = vmatprep.subr.bf16.mxu0 %v19923_v0  ;;  %v19972_v0 = vld [vmem:[#allocation13 + $0x970] ss:$48 sps:$4 sm:$0xff]  }
 0x673   :  { %9698 = vmatpush1.bf16.msra.mxu1 %v19996_v41  ;;  %v19980_v41 = vld [vmem:[#allocation13 + $0x914] ss:$48 sps:$4 sm:$0xff]  }
 0x674   :  { %9699 = vmatprep.subr.bf16.mxu1 %v20004_v45  ;;  %v20056_v45 = vld [vmem:[#allocation13 + $0x378] ss:$48 sps:$4 sm:$0xff]  }
 0x675   :  { %9659 = vmatpush1.bf16.msra.mxu0 %v19921_v36  ;;  %v20064_v36 = vld [vmem:[#allocation13 + $0x31c] ss:$48 sps:$4 sm:$0xff]  }
 0x676   :  { %9660 = vmatprep.subr.bf16.mxu0 %v19929_v11  ;;  %v19978_v11 = vld [vmem:[#allocation13 + $0x910] ss:$48 sps:$4 sm:$0xff]  }
 0x677   :  { %9700 = vmatpush1.bf16.msra.mxu1 %v20002_v54  ;;  %v19989_v54 = vld [vmem:[#allocation13 + $0x8bc] ss:$48 sps:$4 sm:$0xff]  }
 0x678   :  { %9701 = vmatprep.subr.bf16.mxu1 %v20010_v49  ;;  %v4642_v49 = vrot.slane %v22428_v10, %v22133_v48 }
 0x679   :  { %9661 = vmatpush1.bf16.msra.mxu0 %v19927_v37  ;;  %v20062_v37 = vld [vmem:[#allocation13 + $0x318] ss:$48 sps:$4 sm:$0xff]  }
 0x67a   :  { %9662 = vmatprep.subr.bf16.mxu0 %v19935_v62  ;;  %v20073_v62 = vld [vmem:[#allocation13 + $0x2c4] ss:$48 sps:$4 sm:$0xff]  }
 0x67b   :  { %9702 = vmatpush1.bf16.msra.mxu1 %v20008_v38  ;;  %v4646_v38 = vrot.slane %v22428_v10, %v22138_v5 }
 0x67c   :  { %9703 = vmatprep.subr.bf16.mxu1 %v20016_v39  ;;  %v19987_v39 = vld [vmem:[#allocation13 + $0x8b8] ss:$48 sps:$4 sm:$0xff]  }
 0x67d   :  { %9663 = vmatpush1.bf16.msra.mxu0 %v19933_v42  ;;  %v19995_v42 = vld [vmem:[#allocation13 + $0x85c] ss:$48 sps:$4 sm:$0xff]  }
 0x67e   :  { %9664 = vmatprep.subr.bf16.mxu0 %v19941_v46  ;;  %v7024_v46 = vadd.f32 %v22439_v56, %v4642_v49  ;;  %v20104_v49 = vld [vmem:[#allocation13 + $0x80] ss:$48 sps:$4 sm:$0xff]  }
 0x67f   :  { %9704 = vmatpush1.bf16.msra.mxu1 %v20014_v19  ;;  %v20071_v19 = vld [vmem:[#allocation13 + $0x2c0] ss:$48 sps:$4 sm:$0xff]  }
 0x680   :  { %9705 = vmatprep.subr.bf16.mxu1 %v20022_v60 }
 0x681   :  { %9665 = vmatpush2.bf16.msra.mxu0 %v19939_v15  ;;  %v20079_v15 = vld [vmem:[#allocation13 + $0x264] ss:$48 sps:$4 sm:$0xff]  }
 0x682   :  { %9666 = vmatprep.subr.bf16.mxu0 %v19947_v50  ;;  %v7026_v50 = vadd.f32 %v22445_v24, %v4646_v38  ;;  %v20037_v38 = vld [vmem:[#allocation13 + $0xbbc] ss:$48 sps:$4 sm:$0xff]  }
 0x683   :  { %9706 = vmatpush2.bf16.msra.mxu1 %v20020_v28 }
 0x684   :  { %9707 = vmatprep.subr.bf16.mxu1 %v20028_v44  ;;  %v19993_v44 = vld [vmem:[#allocation13 + $0x858] ss:$48 sps:$4 sm:$0xff]  }
 0x685   :  { %9667 = vmatpush2.bf16.msra.mxu0 %v19945_v7  ;;  %v20001_v7 = vld [vmem:[#allocation13 + $0x7fc] ss:$48 sps:$4 sm:$0xff]  }
 0x686   :  { %9668 = vmatprep.subr.bf16.mxu0 %v19953_v52 }
 0x687   :  { %9708 = vmatpush2.bf16.msra.mxu1 %v20026_v3  ;;  %v20077_v3 = vld [vmem:[#allocation13 + $0x260] ss:$48 sps:$4 sm:$0xff]  }
 0x688   :  { %9709 = vmatprep.subr.bf16.mxu1 %v20034_v1 }
 0x689   :  { %9669 = vmatpush2.bf16.msra.mxu0 %v19951_v26  ;;  %v20082_v26 = vld [vmem:[#allocation13 + $0x204] ss:$48 sps:$4 sm:$0xff]  }
 0x68a   :  { %9670 = vmatprep.subr.bf16.mxu0 %v19959_v4  ;;  %v19999_v4 = vld [vmem:[#allocation13 + $0x7f8] ss:$48 sps:$4 sm:$0xff]  }
 0x68b   :  { %9710 = vmatpush2.bf16.msra.mxu1 %v20032_v59 }
 0x68c   :  { %9711 = vmatprep.subr.bf16.mxu1 %v20040_v6  ;;  %v20007_v6 = vld [vmem:[#allocation13 + $0x79c] ss:$48 sps:$4 sm:$0xff]  }
 0x68d   :  { %9671 = vmatpush2.bf16.msra.mxu0 %v19957_v8 }
 0x68e   :  { %9672 = vmatprep.subr.bf16.mxu0 %v19965_v13  ;;  %v20080_v13 = vld [vmem:[#allocation13 + $0x200] ss:$48 sps:$4 sm:$0xff]  }
 0x68f   :  { %9712 = vmatpush2.bf16.msra.mxu1 %v20038_v12 }
 0x690   :  { %9713 = vmatprep.subr.bf16.mxu1 %v20046_v2  ;;  %v20088_v2 = vld [vmem:[#allocation13 + $0x1a4] ss:$48 sps:$4 sm:$0xff]  }
 0x691   :  { %9673 = vmatpush2.bf16.msra.mxu0 %v19963_v21  ;;  %v20005_v21 = vld [vmem:[#allocation13 + $0x798] ss:$48 sps:$4 sm:$0xff]  }
 0x692   :  { %9674 = vmatprep.subr.bf16.mxu0 %v19971_v58  ;;  %v20013_v58 = vld [vmem:[#allocation13 + $0x73c] ss:$48 sps:$4 sm:$0xff]  }
 0x693   :  { %9714 = vmatpush2.bf16.msra.mxu1 %v20044_v14  ;;  %v20086_v14 = vld [vmem:[#allocation13 + $0x1a0] ss:$48 sps:$4 sm:$0xff]  }
 0x694   :  { %9715 = vmatprep.subr.bf16.mxu1 %v20052_v25  ;;  %v20094_v25 = vld [vmem:[#allocation13 + $0x144] ss:$48 sps:$4 sm:$0xff]  }
 0x695   :  { %9675 = vmatpush2.bf16.msra.mxu0 %v19969_v20  ;;  %v20011_v20 = vld [vmem:[#allocation13 + $0x738] ss:$48 sps:$4 sm:$0xff]  }
 0x696   :  { %9676 = vmatprep.subr.bf16.mxu0 %v19974_v30  ;;  %v20019_v30 = vld [vmem:[#allocation13 + $0x6dc] ss:$48 sps:$4 sm:$0xff]  }
 0x697   :  { %9716 = vmatpush2.bf16.msra.mxu1 %v20050_v32  ;;  %v20092_v32 = vld [vmem:[#allocation13 + $0x140] ss:$48 sps:$4 sm:$0xff]  }
 0x698   :  { %9717 = vmatprep.subr.bf16.mxu1 %v20058_v33  ;;  %v20100_v33 = vld [vmem:[#allocation13 + $0xe4] ss:$48 sps:$4 sm:$0xff]  }
 0x699   :  { %9677 = vmatpush2.bf16.msra.mxu0 %v19972_v0  ;;  %v20017_v0 = vld [vmem:[#allocation13 + $0x6d8] ss:$48 sps:$4 sm:$0xff]  }
 0x69a   :  { %9678 = vmatprep.subr.bf16.mxu0 %v19980_v41  ;;  %v20025_v41 = vld [vmem:[#allocation13 + $0x67c] ss:$48 sps:$4 sm:$0xff]  }
 0x69b   :  { %9718 = vmatpush2.bf16.msra.mxu1 %v20056_v45  ;;  %v20098_v45 = vld [vmem:[#allocation13 + $0xe0] ss:$48 sps:$4 sm:$0xff]  }
 0x69c   :  { %9719 = vmatprep.subr.bf16.mxu1 %v20064_v36  ;;  %v20106_v36 = vld [vmem:[#allocation13 + $0x84] ss:$48 sps:$4 sm:$0xff]  }
 0x69d   :  { %9679 = vmatpush2.bf16.msra.mxu0 %v19978_v11  ;;  %v20023_v11 = vld [vmem:[#allocation13 + $0x678] ss:$48 sps:$4 sm:$0xff]  }
 0x69e   :  { %9730 = vmatprep.subr.bf16.mxu0 %v19989_v54  ;;  %v20031_v54 = vld [vmem:[#allocation13 + $0x61c] ss:$48 sps:$4 sm:$0xff]  }
 0x69f   :  { %9720 = vmatpush2.bf16.msra.mxu1 %v20062_v37  ;;  %v20112_v37 = vld [vmem:[#allocation13 + $0x24] ss:$48 sps:$4 sm:$0xff]  }
 0x6a0   :  { %v7064_v60 = vpop.f32.mrf.mxu0  ;;  %9681 = vmatmul.mubr.bf16.vlgmr.msra.gmra.mxu0 %v22410_v43  ;;  %9771 = vmatprep.subr.bf16.mxu1 %v20073_v62  ;;  %v20029_v62 = vld [vmem:[#allocation13 + $0x618] ss:$48 sps:$4 sm:$0xff]  }
 0x6a1   :  { %v22455_v28 = vadd.f32 %v7064_v60, %v7024_v46  ;;  %9731 = vmatpush1.bf16.msra.mxu0 %v19987_v39  ;;  %9762 = vmatprep.mubr.bf16.mxu0 %v22387_v22  ;;  %v20110_v39 = vld [vmem:[#allocation13 + $0x20] ss:$48 sps:$4 sm:$0xff]   ;;  %v20035_v46 = vld [vmem:[#allocation13 + $0xbb8] ss:$48 sps:$4 sm:$0xff]  }
 0x6a2   :  { %v7066_v10 = vpop.f32.mrf.mxu0  ;;  %9732 = vmatprep.subr.bf16.mxu0 %v19995_v42  ;;  %v22458_v52 = vpop.f32.mrf.mxu1  ;;  %9722 = vmatmul.mubr.bf16.vlgmr.msra.gmra.mxu1 %v22389_v23  ;;  %v20118_v42 = vld [vmem:[#allocation13 + $0x5c4] ss:$48 sps:$4 sm:$0xff]   ;;  %v20116_v60 = vld [vmem:[#allocation13 + $0x5c0] ss:$48 sps:$4 sm:$0xff]  }
 0x6a3   :  { %v22461_v56 = vadd.f32 %v7066_v10, %v7026_v50  ;;  %9772 = vmatpush1.bf16.msra.mxu1 %v20071_v19  ;;  %9803 = vmatprep.mubr.bf16.mxu1 %v22362_v40  ;;  %v20043_v19 = vld [vmem:[#allocation13 + $0xb5c] ss:$48 sps:$4 sm:$0xff]   ;;  %v20041_v50 = vld [vmem:[#allocation13 + $0xb58] ss:$48 sps:$4 sm:$0xff]   ;;  %v20122_v10 = vld [vmem:[#allocation13 + $0x560] ss:$48 sps:$4 sm:$0xff]  }
 0x6a4   :  { %v7068_v24 = vpop.f32.mrf.mxu0  ;;  %v22464_v1 = vpop.f32.mrf.mxu1  ;;  %9773 = vmatprep.subr.bf16.mxu1 %v20079_v15  ;;  %v20124_v15 = vld [vmem:[#allocation13 + $0x564] ss:$48 sps:$4 sm:$0xff]  }
 0x6a5   :  { %9733 = vmatpush1.bf16.msra.mxu0 %v19993_v44  ;;  %v20049_v44 = vld [vmem:[#allocation13 + $0xafc] ss:$48 sps:$4 sm:$0xff]  }
 0x6a6   :  { %v7069_v59 = vpop.f32.mrf.mxu0  ;;  %9734 = vmatprep.subr.bf16.mxu0 %v20001_v7  ;;  %v9481_v8 = vpop.f32.mrf.mxu1  ;;  %v20130_v7 = vld [vmem:[#allocation13 + $0x504] ss:$48 sps:$4 sm:$0xff]   ;;  %v20055_v24 = vld [vmem:[#allocation13 + $0xa9c] ss:$48 sps:$4 sm:$0xff]  }
 0x6a7   :  { %9774 = vmatpush1.bf16.msra.mxu1 %v20077_v3  ;;  %v20047_v3 = vld [vmem:[#allocation13 + $0xaf8] ss:$48 sps:$4 sm:$0xff]   ;;  %v20134_v8 = vld [vmem:[#allocation13 + $0x4a0] ss:$48 sps:$4 sm:$0xff]  }
 0x6a8   :  { %v9482_v12 = vpop.f32.mrf.mxu1  ;;  %9775 = vmatprep.subr.bf16.mxu1 %v20082_v26  ;;  %v20128_v26 = vld [vmem:[#allocation13 + $0x500] ss:$48 sps:$4 sm:$0xff]   ;;  %v20053_v59 = vld [vmem:[#allocation13 + $0xa98] ss:$48 sps:$4 sm:$0xff]  }
 0x6a9   :  { %9735 = vmatpush1.bf16.msra.mxu0 %v19999_v4  ;;  %v20136_v4 = vld [vmem:[#allocation13 + $0x4a4] ss:$48 sps:$4 sm:$0xff]   ;;  %v20059_v12 = vld [vmem:[#allocation13 + $0xa38] ss:$48 sps:$4 sm:$0xff]  }
 0x6aa   :  { %9736 = vmatprep.subr.bf16.mxu0 %v20007_v6  ;;  %v20061_v6 = vld [vmem:[#allocation13 + $0xa3c] ss:$48 sps:$4 sm:$0xff]  }
 0x6ab   :  { %9776 = vmatpush1.bf16.msra.mxu1 %v20080_v13  ;;  %v20142_v13 = vld [vmem:[#allocation13 + $0x444] ss:$48 sps:$4 sm:$0xff]  }
 0x6ac   :  { %9777 = vmatprep.subr.bf16.mxu1 %v20088_v2  ;;  %v20067_v2 = vld [vmem:[#allocation13 + $0x9dc] ss:$48 sps:$4 sm:$0xff]  }
 0x6ad   :  { %9737 = vmatpush1.bf16.msra.mxu0 %v20005_v21  ;;  %v20140_v21 = vld [vmem:[#allocation13 + $0x440] ss:$48 sps:$4 sm:$0xff]  }
 0x6ae   :  { %9738 = vmatprep.subr.bf16.mxu0 %v20013_v58  ;;  %v20148_v58 = vld [vmem:[#allocation13 + $0x3e4] ss:$48 sps:$4 sm:$0xff]  }
 0x6af   :  { %9778 = vmatpush1.bf16.msra.mxu1 %v20086_v14  ;;  %v20065_v14 = vld [vmem:[#allocation13 + $0x9d8] ss:$48 sps:$4 sm:$0xff]  }
 0x6b0   :  { %9779 = vmatprep.subr.bf16.mxu1 %v20094_v25  ;;  %v20070_v25 = vld [vmem:[#allocation13 + $0x97c] ss:$48 sps:$4 sm:$0xff]  }
 0x6b1   :  { %9739 = vmatpush1.bf16.msra.mxu0 %v20011_v20  ;;  %v20146_v20 = vld [vmem:[#allocation13 + $0x3e0] ss:$48 sps:$4 sm:$0xff]  }
 0x6b2   :  { %9740 = vmatprep.subr.bf16.mxu0 %v20019_v30  ;;  %v20154_v30 = vld [vmem:[#allocation13 + $0x384] ss:$48 sps:$4 sm:$0xff]  }
 0x6b3   :  { %9780 = vmatpush1.bf16.msra.mxu1 %v20092_v32  ;;  %v20068_v32 = vld [vmem:[#allocation13 + $0x978] ss:$48 sps:$4 sm:$0xff]  }
 0x6b4   :  { %9781 = vmatprep.subr.bf16.mxu1 %v20100_v33  ;;  %v22466_v33 = vld [vmem:[#allocation16] sm:$0xff] }
 0x6b5   :  { %9741 = vmatpush1.bf16.msra.mxu0 %v20017_v0  ;;  %v20076_v0 = vld [vmem:[#allocation13 + $0x91c] ss:$48 sps:$4 sm:$0xff]  }
 0x6b6   :  { %9742 = vmatprep.subr.bf16.mxu0 %v20025_v41  ;;  %v20152_v41 = vld [vmem:[#allocation13 + $0x380] ss:$48 sps:$4 sm:$0xff]  }
 0x6b7   :  { %9782 = vmatpush1.bf16.msra.mxu1 %v20098_v45  ;;  %v20160_v45 = vld [vmem:[#allocation13 + $0x324] ss:$48 sps:$4 sm:$0xff]  }
 0x6b8   :  { %9783 = vmatprep.subr.bf16.mxu1 %v20106_v36  ;;  %v7466_v36 = vrot.slane %v22466_v33, %v22191_v31 }
 0x6b9   :  { %9743 = vmatpush1.bf16.msra.mxu0 %v20023_v11  ;;  %v20074_v11 = vld [vmem:[#allocation13 + $0x918] ss:$48 sps:$4 sm:$0xff]  }
 0x6ba   :  { %9744 = vmatprep.subr.bf16.mxu0 %v20031_v54  ;;  %v20085_v54 = vld [vmem:[#allocation13 + $0x8c4] ss:$48 sps:$4 sm:$0xff]  }
 0x6bb   :  { %9784 = vmatpush1.bf16.msra.mxu1 %v20104_v49  ;;  %v7470_v49 = vrot.slane %v22466_v33, %v22194_v35 }
 0x6bc   :  { %9785 = vmatprep.subr.bf16.mxu1 %v20112_v37  ;;  %v20158_v37 = vld [vmem:[#allocation13 + $0x320] ss:$48 sps:$4 sm:$0xff]  }
 0x6bd   :  { %9745 = vmatpush1.bf16.msra.mxu0 %v20029_v62  ;;  %v20169_v62 = vld [vmem:[#allocation13 + $0x2cc] ss:$48 sps:$4 sm:$0xff]  }
 0x6be   :  { %9746 = vmatprep.subr.bf16.mxu0 %v20037_v38  ;;  %v9478_v38 = vadd.f32 %v22458_v52, %v7466_v36  ;;  %v20097_v52 = vld [vmem:[#allocation13 + $0x804] ss:$48 sps:$4 sm:$0xff]   ;;  %v20194_v36 = vld [vmem:[#allocation13 + $0xe8] ss:$48 sps:$4 sm:$0xff]  }
 0x6bf   :  { %9786 = vmatpush1.bf16.msra.mxu1 %v20110_v39  ;;  %v20083_v39 = vld [vmem:[#allocation13 + $0x8c0] ss:$48 sps:$4 sm:$0xff]  }
 0x6c0   :  { %9787 = vmatprep.subr.bf16.mxu1 %v20118_v42  ;;  %v20091_v42 = vld [vmem:[#allocation13 + $0x864] ss:$48 sps:$4 sm:$0xff]  }
 0x6c1   :  { %9747 = vmatpush2.bf16.msra.mxu0 %v20035_v46  ;;  %v9480_v46 = vadd.f32 %v22464_v1, %v7470_v49  ;;  %v20127_v49 = vld [vmem:[#allocation13 + $0x624] ss:$48 sps:$4 sm:$0xff]  }
 0x6c2   :  { %9748 = vmatprep.subr.bf16.mxu0 %v20043_v19  ;;  %v20167_v19 = vld [vmem:[#allocation13 + $0x2c8] ss:$48 sps:$4 sm:$0xff]  }
 0x6c3   :  { %9788 = vmatpush2.bf16.msra.mxu1 %v20116_v60 }
 0x6c4   :  { %9789 = vmatprep.subr.bf16.mxu1 %v20124_v15  ;;  %v20175_v15 = vld [vmem:[#allocation13 + $0x26c] ss:$48 sps:$4 sm:$0xff]  }
 0x6c5   :  { %9749 = vmatpush2.bf16.msra.mxu0 %v20041_v50 }
 0x6c6   :  { %9750 = vmatprep.subr.bf16.mxu0 %v20049_v44  ;;  %v20089_v44 = vld [vmem:[#allocation13 + $0x860] ss:$48 sps:$4 sm:$0xff]  }
 0x6c7   :  { %9790 = vmatpush2.bf16.msra.mxu1 %v20122_v10 }
 0x6c8   :  { %9791 = vmatprep.subr.bf16.mxu1 %v20130_v7 }
 0x6c9   :  { %9751 = vmatpush2.bf16.msra.mxu0 %v20047_v3 }
 0x6ca   :  { %9752 = vmatprep.subr.bf16.mxu0 %v20055_v24  ;;  %v20173_v24 = vld [vmem:[#allocation13 + $0x268] ss:$48 sps:$4 sm:$0xff]  }
 0x6cb   :  { %9792 = vmatpush2.bf16.msra.mxu1 %v20128_v26 }
 0x6cc   :  { %9793 = vmatprep.subr.bf16.mxu1 %v20136_v4 }
 0x6cd   :  { %9753 = vmatpush2.bf16.msra.mxu0 %v20053_v59  ;;  %v20178_v59 = vld [vmem:[#allocation13 + $0x20c] ss:$48 sps:$4 sm:$0xff]  }
 0x6ce   :  { %9754 = vmatprep.subr.bf16.mxu0 %v20061_v6 }
 0x6cf   :  { %9794 = vmatpush2.bf16.msra.mxu1 %v20134_v8  ;;  %v20095_v8 = vld [vmem:[#allocation13 + $0x800] ss:$48 sps:$4 sm:$0xff]  }
 0x6d0   :  { %9795 = vmatprep.subr.bf16.mxu1 %v20142_v13 }
 0x6d1   :  { %9755 = vmatpush2.bf16.msra.mxu0 %v20059_v12  ;;  %v20103_v12 = vld [vmem:[#allocation13 + $0x7a4] ss:$48 sps:$4 sm:$0xff]  }
 0x6d2   :  { %9756 = vmatprep.subr.bf16.mxu0 %v20067_v2  ;;  %v20176_v2 = vld [vmem:[#allocation13 + $0x208] ss:$48 sps:$4 sm:$0xff]  }
 0x6d3   :  { %9796 = vmatpush2.bf16.msra.mxu1 %v20140_v21 }
 0x6d4   :  { %9797 = vmatprep.subr.bf16.mxu1 %v20148_v58  ;;  %v20184_v58 = vld [vmem:[#allocation13 + $0x1ac] ss:$48 sps:$4 sm:$0xff]  }
 0x6d5   :  { %9757 = vmatpush2.bf16.msra.mxu0 %v20065_v14  ;;  %v20109_v14 = vld [vmem:[#allocation13 + $0x744] ss:$48 sps:$4 sm:$0xff]  }
 0x6d6   :  { %9758 = vmatprep.subr.bf16.mxu0 %v20070_v25  ;;  %v20182_v25 = vld [vmem:[#allocation13 + $0x1a8] ss:$48 sps:$4 sm:$0xff]  }
 0x6d7   :  { %9798 = vmatpush2.bf16.msra.mxu1 %v20146_v20  ;;  %v20107_v20 = vld [vmem:[#allocation13 + $0x740] ss:$48 sps:$4 sm:$0xff]  }
 0x6d8   :  { %9799 = vmatprep.subr.bf16.mxu1 %v20154_v30  ;;  %v20115_v30 = vld [vmem:[#allocation13 + $0x6e4] ss:$48 sps:$4 sm:$0xff]  }
 0x6d9   :  { %9759 = vmatpush2.bf16.msra.mxu0 %v20068_v32  ;;  %v20188_v32 = vld [vmem:[#allocation13 + $0x148] ss:$48 sps:$4 sm:$0xff]  }
 0x6da   :  { %9760 = vmatprep.subr.bf16.mxu0 %v20076_v0  ;;  %v20196_v0 = vld [vmem:[#allocation13 + $0xec] ss:$48 sps:$4 sm:$0xff]  }
 0x6db   :  { %9800 = vmatpush2.bf16.msra.mxu1 %v20152_v41  ;;  %v20113_v41 = vld [vmem:[#allocation13 + $0x6e0] ss:$48 sps:$4 sm:$0xff]  }
 0x6dc   :  { %9801 = vmatprep.subr.bf16.mxu1 %v20160_v45  ;;  %v20121_v45 = vld [vmem:[#allocation13 + $0x684] ss:$48 sps:$4 sm:$0xff]  }
 0x6dd   :  { %9761 = vmatpush2.bf16.msra.mxu0 %v20074_v11  ;;  %v20202_v11 = vld [vmem:[#allocation13 + $0x8c] ss:$48 sps:$4 sm:$0xff]  }
 0x6de   :  { %9812 = vmatprep.subr.bf16.mxu0 %v20085_v54  ;;  %v20119_v54 = vld [vmem:[#allocation13 + $0x680] ss:$48 sps:$4 sm:$0xff]  }
 0x6df   :  { %9802 = vmatpush2.bf16.msra.mxu1 %v20158_v37  ;;  %v20200_v37 = vld [vmem:[#allocation13 + $0x88] ss:$48 sps:$4 sm:$0xff]  }
 0x6e0   :  { %v9518_v60 = vpop.f32.mrf.mxu0  ;;  %9763 = vmatmul.mubr.bf16.vlgmr.msra.gmra.mxu0 %v22410_v43  ;;  %9853 = vmatprep.subr.bf16.mxu1 %v20169_v62  ;;  %v20208_v62 = vld [vmem:[#allocation13 + $0x2c] ss:$48 sps:$4 sm:$0xff]  }
 0x6e1   :  { %v9519_v50 = vadd.f32 %v9518_v60, %v9478_v38  ;;  %9813 = vmatpush1.bf16.msra.mxu0 %v20083_v39  ;;  %9844 = vmatprep.mubr.bf16.mxu0 %v22387_v22  ;;  %v20125_v38 = vld [vmem:[#allocation13 + $0x620] ss:$48 sps:$4 sm:$0xff]   ;;  %v20133_v39 = vld [vmem:[#allocation13 + $0xbc4] ss:$48 sps:$4 sm:$0xff]  }
 0x6e2   :  { %v9520_v10 = vpop.f32.mrf.mxu0  ;;  %9814 = vmatprep.subr.bf16.mxu0 %v20091_v42  ;;  %v22476_v7 = vpop.f32.mrf.mxu1  ;;  %9804 = vmatmul.mubr.bf16.vlgmr.msra.gmra.mxu1 %v22389_v23  ;;  %v20206_v42 = vld [vmem:[#allocation13 + $0x28] ss:$48 sps:$4 sm:$0xff]   ;;  %v20139_v60 = vld [vmem:[#allocation13 + $0xb64] ss:$48 sps:$4 sm:$0xff]  }
 0x6e3   :  { %v22480_v1 = vadd.f32 %v9519_v50, %v22346_v17  ;;  %v9521_v3 = vadd.f32 %v9520_v10, %v9480_v46  ;;  %9854 = vmatpush1.bf16.msra.mxu1 %v20167_v19  ;;  %9885 = vmatprep.mubr.bf16.mxu1 %v22362_v40  ;;  %v20101_v40 = vld [vmem:[#allocation13 + $0x7a0] ss:$48 sps:$4 sm:$0xff]   ;;  %v20214_v46 = vld [vmem:[#allocation13 + $0x5cc] ss:$48 sps:$4 sm:$0xff]   ;;  %v20145_v10 = vld [vmem:[#allocation13 + $0xb04] ss:$48 sps:$4 sm:$0xff]  }
 0x6e4   :  { %v9522_v26 = vpop.f32.mrf.mxu0  ;;  %v22483_v4 = vpop.f32.mrf.mxu1  ;;  %9855 = vmatprep.subr.bf16.mxu1 %v20175_v15  ;;  %v20131_v19 = vld [vmem:[#allocation13 + $0xbc0] ss:$48 sps:$4 sm:$0xff]   ;;  %v20212_v15 = vld [vmem:[#allocation13 + $0x5c8] ss:$48 sps:$4 sm:$0xff]   ;;  %v20220_v50 = vld [vmem:[#allocation13 + $0x56c] ss:$48 sps:$4 sm:$0xff]  }
 0x6e5   :  { %v22486_v6 = vadd.f32 %v9521_v3, %v22352_v29  ;;  %9815 = vmatpush1.bf16.msra.mxu0 %v20089_v44  ;;  %v20190_v29 = vld [vmem:[#allocation13 + $0x14c] ss:$48 sps:$4 sm:$0xff]   ;;  %v20137_v44 = vld [vmem:[#allocation13 + $0xb60] ss:$48 sps:$4 sm:$0xff]   ;;  %v20151_v26 = vld [vmem:[#allocation13 + $0xaa4] ss:$48 sps:$4 sm:$0xff]  }
 0x6e6   :  { %v9523_v13 = vpop.f32.mrf.mxu0  ;;  %9816 = vmatprep.subr.bf16.mxu0 %v20097_v52  ;;  %v9563_v17 = vpop.f32.mrf.mxu1  ;;  %v20218_v52 = vld [vmem:[#allocation13 + $0x568] ss:$48 sps:$4 sm:$0xff]   ;;  %v20226_v3 = vld [vmem:[#allocation13 + $0x50c] ss:$48 sps:$4 sm:$0xff]  }
 0x6e7   :  { %9856 = vmatpush1.bf16.msra.mxu1 %v20173_v24  ;;  %v20143_v24 = vld [vmem:[#allocation13 + $0xb00] ss:$48 sps:$4 sm:$0xff]   ;;  %v20230_v17 = vld [vmem:[#allocation13 + $0x4a8] ss:$48 sps:$4 sm:$0xff]  }
 0x6e8   :  { %v9564_v21 = vpop.f32.mrf.mxu1  ;;  %9857 = vmatprep.subr.bf16.mxu1 %v20178_v59  ;;  %v20224_v59 = vld [vmem:[#allocation13 + $0x508] ss:$48 sps:$4 sm:$0xff]   ;;  %v20149_v13 = vld [vmem:[#allocation13 + $0xaa0] ss:$48 sps:$4 sm:$0xff]  }
 0x6e9   :  { %9817 = vmatpush1.bf16.msra.mxu0 %v20095_v8  ;;  %v20232_v8 = vld [vmem:[#allocation13 + $0x4ac] ss:$48 sps:$4 sm:$0xff]   ;;  %v20155_v21 = vld [vmem:[#allocation13 + $0xa40] ss:$48 sps:$4 sm:$0xff]  }
 0x6ea   :  { %9818 = vmatprep.subr.bf16.mxu0 %v20103_v12  ;;  %v20157_v12 = vld [vmem:[#allocation13 + $0xa44] ss:$48 sps:$4 sm:$0xff]  }
 0x6eb   :  { %9858 = vmatpush1.bf16.msra.mxu1 %v20176_v2  ;;  %v20238_v2 = vld [vmem:[#allocation13 + $0x44c] ss:$48 sps:$4 sm:$0xff]  }
 0x6ec   :  { %9859 = vmatprep.subr.bf16.mxu1 %v20184_v58  ;;  %v20163_v58 = vld [vmem:[#allocation13 + $0x9e4] ss:$48 sps:$4 sm:$0xff]  }
 0x6ed   :  { %9819 = vmatpush1.bf16.msra.mxu0 %v20101_v40  ;;  %v20236_v40 = vld [vmem:[#allocation13 + $0x448] ss:$48 sps:$4 sm:$0xff]  }
 0x6ee   :  { %9820 = vmatprep.subr.bf16.mxu0 %v20109_v14  ;;  %v20244_v14 = vld [vmem:[#allocation13 + $0x3ec] ss:$48 sps:$4 sm:$0xff]  }
 0x6ef   :  { %9860 = vmatpush1.bf16.msra.mxu1 %v20182_v25  ;;  %v20161_v25 = vld [vmem:[#allocation13 + $0x9e0] ss:$48 sps:$4 sm:$0xff]  }
 0x6f0   :  { %9861 = vmatprep.subr.bf16.mxu1 %v20190_v29  ;;  %v20166_v29 = vld [vmem:[#allocation13 + $0x984] ss:$48 sps:$4 sm:$0xff]  }
 0x6f1   :  { %9821 = vmatpush1.bf16.msra.mxu0 %v20107_v20  ;;  %v20242_v20 = vld [vmem:[#allocation13 + $0x3e8] ss:$48 sps:$4 sm:$0xff]  }
 0x6f2   :  { %9822 = vmatprep.subr.bf16.mxu0 %v20115_v30  ;;  %v20250_v30 = vld [vmem:[#allocation13 + $0x38c] ss:$48 sps:$4 sm:$0xff]  }
 0x6f3   :  { %9862 = vmatpush1.bf16.msra.mxu1 %v20188_v32  ;;  %v20164_v32 = vld [vmem:[#allocation13 + $0x980] ss:$48 sps:$4 sm:$0xff]  }
 0x6f4   :  { %9863 = vmatprep.subr.bf16.mxu1 %v20196_v0  ;;  %v20172_v0 = vld [vmem:[#allocation13 + $0x924] ss:$48 sps:$4 sm:$0xff]  }
 0x6f5   :  { %9823 = vmatpush1.bf16.msra.mxu0 %v20113_v41  ;;  %v20248_v41 = vld [vmem:[#allocation13 + $0x388] ss:$48 sps:$4 sm:$0xff]  }
 0x6f6   :  { %9824 = vmatprep.subr.bf16.mxu0 %v20121_v45  ;;  %v20256_v45 = vld [vmem:[#allocation13 + $0x32c] ss:$48 sps:$4 sm:$0xff]  }
 0x6f7   :  { %9864 = vmatpush1.bf16.msra.mxu1 %v20194_v36  ;;  %v7474_v36 = vrot.slane %v22466_v33, %v22133_v48 }
 0x6f8   :  { %9865 = vmatprep.subr.bf16.mxu1 %v20202_v11  ;;  %v20170_v11 = vld [vmem:[#allocation13 + $0x920] ss:$48 sps:$4 sm:$0xff]  }
 0x6f9   :  { %9825 = vmatpush1.bf16.msra.mxu0 %v20119_v54  ;;  %v20181_v54 = vld [vmem:[#allocation13 + $0x8cc] ss:$48 sps:$4 sm:$0xff]  }
 0x6fa   :  { %9826 = vmatprep.subr.bf16.mxu0 %v20127_v49  ;;  %v7478_v49 = vrot.slane %v22466_v33, %v22138_v5 }
 0x6fb   :  { %9866 = vmatpush1.bf16.msra.mxu1 %v20200_v37  ;;  %v20254_v37 = vld [vmem:[#allocation13 + $0x328] ss:$48 sps:$4 sm:$0xff]  }
 0x6fc   :  { %9867 = vmatprep.subr.bf16.mxu1 %v20208_v62  ;;  %v9560_v62 = vadd.f32 %v22476_v7, %v7474_v36  ;;  %v20277_v36 = vld [vmem:[#allocation17 + $0x184] ss:$48 sps:$4 sm:$0xff]  }
 0x6fd   :  { %9827 = vmatpush1.bf16.msra.mxu0 %v20125_v38  ;;  %v20179_v38 = vld [vmem:[#allocation13 + $0x8c8] ss:$48 sps:$4 sm:$0xff]  }
 0x6fe   :  { %9828 = vmatprep.subr.bf16.mxu0 %v20133_v39  ;;  %v20187_v39 = vld [vmem:[#allocation13 + $0x86c] ss:$48 sps:$4 sm:$0xff]  }
 0x6ff   :  { %9868 = vmatpush1.bf16.msra.mxu1 %v20206_v42  ;;  %v9562_v42 = vadd.f32 %v22483_v4, %v7478_v49  ;;  %v20239_v49 = vld [vmem:[#allocation13 + $0xb08] ss:$48 sps:$4 sm:$0xff]  }
 0x700   :  { %9869 = vmatprep.subr.bf16.mxu1 %v20214_v46 }
 0x701   :  { %9829 = vmatpush2.bf16.msra.mxu0 %v20131_v19 }
 0x702   :  { %9830 = vmatprep.subr.bf16.mxu0 %v20139_v60  ;;  %v20185_v60 = vld [vmem:[#allocation13 + $0x868] ss:$48 sps:$4 sm:$0xff]  }
 0x703   :  { %9870 = vmatpush2.bf16.msra.mxu1 %v20212_v15 }
 0x704   :  { %9871 = vmatprep.subr.bf16.mxu1 %v20220_v50  ;;  %v20193_v50 = vld [vmem:[#allocation13 + $0x80c] ss:$48 sps:$4 sm:$0xff]  }
 0x705   :  { %9831 = vmatpush2.bf16.msra.mxu0 %v20137_v44 }
 0x706   :  { %9832 = vmatprep.subr.bf16.mxu0 %v20145_v10 }
 0x707   :  { %9872 = vmatpush2.bf16.msra.mxu1 %v20218_v52 }
 0x708   :  { %9873 = vmatprep.subr.bf16.mxu1 %v20226_v3 }
 0x709   :  { %9833 = vmatpush2.bf16.msra.mxu0 %v20143_v24  ;;  %v20191_v24 = vld [vmem:[#allocation13 + $0x808] ss:$48 sps:$4 sm:$0xff]  }
 0x70a   :  { %9834 = vmatprep.subr.bf16.mxu0 %v20151_v26  ;;  %v20199_v26 = vld [vmem:[#allocation13 + $0x7ac] ss:$48 sps:$4 sm:$0xff]  }
 0x70b   :  { %9874 = vmatpush2.bf16.msra.mxu1 %v20224_v59 }
 0x70c   :  { %9875 = vmatprep.subr.bf16.mxu1 %v20232_v8 }
 0x70d   :  { %9835 = vmatpush2.bf16.msra.mxu0 %v20149_v13  ;;  %v20205_v13 = vld [vmem:[#allocation13 + $0x74c] ss:$48 sps:$4 sm:$0xff]  }
 0x70e   :  { %9836 = vmatprep.subr.bf16.mxu0 %v20157_v12  ;;  %v20211_v12 = vld [vmem:[#allocation13 + $0x6ec] ss:$48 sps:$4 sm:$0xff]  }
 0x70f   :  { %9876 = vmatpush2.bf16.msra.mxu1 %v20230_v17  ;;  %v20209_v17 = vld [vmem:[#allocation13 + $0x6e8] ss:$48 sps:$4 sm:$0xff]  }
 0x710   :  { %9877 = vmatprep.subr.bf16.mxu1 %v20238_v2  ;;  %v20215_v2 = vld [vmem:[#allocation13 + $0x688] ss:$48 sps:$4 sm:$0xff]  }
 0x711   :  { %9837 = vmatpush2.bf16.msra.mxu0 %v20155_v21  ;;  %v20223_v21 = vld [vmem:[#allocation13 + $0x62c] ss:$48 sps:$4 sm:$0xff]  }
 0x712   :  { %9838 = vmatprep.subr.bf16.mxu0 %v20163_v58  ;;  %v20221_v58 = vld [vmem:[#allocation13 + $0x628] ss:$48 sps:$4 sm:$0xff]  }
 0x713   :  { %9878 = vmatpush2.bf16.msra.mxu1 %v20236_v40  ;;  %v20266_v40 = vld [vmem:[#allocation17 + $0x2a0] ss:$48 sps:$4 sm:$0xff]  }
 0x714   :  { %9879 = vmatprep.subr.bf16.mxu1 %v20244_v14  ;;  %v20268_v14 = vld [vmem:[#allocation17 + $0x2a4] ss:$48 sps:$4 sm:$0xff]  }
 0x715   :  { %9839 = vmatpush2.bf16.msra.mxu0 %v20161_v25  ;;  %v20229_v25 = vld [vmem:[#allocation13 + $0xbcc] ss:$48 sps:$4 sm:$0xff]  }
 0x716   :  { %9840 = vmatprep.subr.bf16.mxu0 %v20166_v29  ;;  %v20271_v29 = vld [vmem:[#allocation17 + $0x244] ss:$48 sps:$4 sm:$0xff]  }
 0x717   :  { %9880 = vmatpush2.bf16.msra.mxu1 %v20242_v20  ;;  %v20269_v20 = vld [vmem:[#allocation17 + $0x240] ss:$48 sps:$4 sm:$0xff]  }
 0x718   :  { %9881 = vmatprep.subr.bf16.mxu1 %v20250_v30  ;;  %v20227_v30 = vld [vmem:[#allocation13 + $0xbc8] ss:$48 sps:$4 sm:$0xff]  }
 0x719   :  { %9841 = vmatpush2.bf16.msra.mxu0 %v20164_v32  ;;  %v20274_v32 = vld [vmem:[#allocation17 + $0x1e4] ss:$48 sps:$4 sm:$0xff]  }
 0x71a   :  { %9842 = vmatprep.subr.bf16.mxu0 %v20172_v0  ;;  %v20235_v0 = vld [vmem:[#allocation13 + $0xb6c] ss:$48 sps:$4 sm:$0xff]  }
 0x71b   :  { %9882 = vmatpush2.bf16.msra.mxu1 %v20248_v41  ;;  %v20272_v41 = vld [vmem:[#allocation17 + $0x1e0] ss:$48 sps:$4 sm:$0xff]  }
 0x71c   :  { %9883 = vmatprep.subr.bf16.mxu1 %v20256_v45  ;;  %v20233_v45 = vld [vmem:[#allocation13 + $0xb68] ss:$48 sps:$4 sm:$0xff]  }
 0x71d   :  { %9843 = vmatpush2.bf16.msra.mxu0 %v20170_v11  ;;  %v20241_v11 = vld [vmem:[#allocation13 + $0xb0c] ss:$48 sps:$4 sm:$0xff]  }
 0x71e   :  { %9894 = vmatprep.subr.bf16.mxu0 %v20181_v54  ;;  %v20275_v54 = vld [vmem:[#allocation17 + $0x180] ss:$48 sps:$4 sm:$0xff]  }
 0x71f   :  { %9884 = vmatpush2.bf16.msra.mxu1 %v20254_v37  ;;  %v20280_v37 = vld [vmem:[#allocation17 + $0x124] ss:$48 sps:$4 sm:$0xff]  }
 0x720   :  { %v9600_v46 = vpop.f32.mrf.mxu0  ;;  %9845 = vmatmul.mubr.bf16.vlgmr.msra.gmra.mxu0 %v22410_v43  ;;  %12396 = vmatprep.subr.bf16.mxu1 %v20268_v14 }
 0x721   :  { %v9601_v19 = vadd.f32 %v9600_v46, %v9560_v62  ;;  %9895 = vmatpush1.bf16.msra.mxu0 %v20179_v38  ;;  %9926 = vmatprep.mubr.bf16.mxu0 %v22387_v22  ;;  %v20247_v62 = vld [vmem:[#allocation13 + $0xaac] ss:$48 sps:$4 sm:$0xff]   ;;  %v20278_v38 = vld [vmem:[#allocation17 + $0x120] ss:$48 sps:$4 sm:$0xff]  }
 0x722   :  { %v9602_v15 = vpop.f32.mrf.mxu0  ;;  %9896 = vmatprep.subr.bf16.mxu0 %v20187_v39  ;;  %9886 = vmatmul.mubr.bf16.vlgmr.msra.gmra.mxu1 %v22389_v23  ;;  %v22497_v7 = vpop.f32.mrf.mxu1  ;;  %v20197_v23 = vld [vmem:[#allocation13 + $0x7a8] ss:$48 sps:$4 sm:$0xff]   ;;  %v20253_v46 = vld [vmem:[#allocation13 + $0xa4c] ss:$48 sps:$4 sm:$0xff]  }
 0x723   :  { %v22500_v44 = vadd.f32 %v9601_v19, %v22368_v61  ;;  %v9603_v4 = vadd.f32 %v9602_v15, %v9562_v42  ;;  %v20203_v61 = vld [vmem:[#allocation13 + $0x748] ss:$48 sps:$4 sm:$0xff]   ;;  %12397 = vmatpush1.bf16.msra.mxu1 %v20266_v40  ;;  %v20283_v42 = vld [vmem:[#allocation17 + $0xc4] ss:$48 sps:$4 sm:$0xff]  }
 0x724   :  { %v9604_v10 = vpop.f32.mrf.mxu0  ;;  %v22502_v52 = vpop.f32.mrf.mxu1  ;;  %12398 = vmatprep.subr.bf16.mxu1 %v20271_v29  ;;  %v20245_v39 = vld [vmem:[#allocation13 + $0xaa8] ss:$48 sps:$4 sm:$0xff]   ;;  %v20286_v15 = vld [vmem:[#allocation17 + $0x64] ss:$48 sps:$4 sm:$0xff]  }
 0x725   :  { %v22505_v3 = vadd.f32 %v9603_v4, %v22374_v57  ;;  %9897 = vmatpush1.bf16.msra.mxu0 %v20185_v60  ;;  %v20217_v57 = vld [vmem:[#allocation13 + $0x68c] ss:$48 sps:$4 sm:$0xff]   ;;  %v20281_v19 = vld [vmem:[#allocation17 + $0xc0] ss:$48 sps:$4 sm:$0xff]  }
 0x726   :  { %v9605_v22 = vpop.f32.mrf.mxu0  ;;  %9898 = vmatprep.subr.bf16.mxu0 %v20193_v50  ;;  %v9645_v59 = vpop.f32.mrf.mxu1  ;;  %v20251_v60 = vld [vmem:[#allocation13 + $0xa48] ss:$48 sps:$4 sm:$0xff]   ;;  %v20259_v50 = vld [vmem:[#allocation13 + $0x9ec] ss:$48 sps:$4 sm:$0xff]  }
 0x727   :  { %12399 = vmatpush1.bf16.msra.mxu1 %v20269_v20  ;;  %v20284_v4 = vld [vmem:[#allocation17 + $0x60] ss:$48 sps:$4 sm:$0xff]   ;;  %v20262_v22 = vld [vmem:[#allocation13 + $0x98c] ss:$48 sps:$4 sm:$0xff]  }
 0x728   :  { %v9646_v8 = vpop.f32.mrf.mxu1  ;;  %12400 = vmatprep.subr.bf16.mxu1 %v20274_v32  ;;  %v20257_v10 = vld [vmem:[#allocation13 + $0x9e8] ss:$48 sps:$4 sm:$0xff]   ;;  %v20295_v40 = vld [vmem:[#allocation17 + $0x544] ss:$48 sps:$4 sm:$0xff]  }
 0x729   :  { %9899 = vmatpush1.bf16.msra.mxu0 %v20191_v24  ;;  %v20289_v24 = vld [vmem:[#allocation17 + $0x4] ss:$48 sps:$4 sm:$0xff]   ;;  %v20260_v59 = vld [vmem:[#allocation13 + $0x988] ss:$48 sps:$4 sm:$0xff]  }
 0x72a   :  { %9900 = vmatprep.subr.bf16.mxu0 %v20199_v26  ;;  %v20287_v26 = vld [vmem:[#allocation17] ss:$48 sps:$4 sm:$0xff]   ;;  %v20292_v8 = vld [vmem:[#allocation17 + $0x5a4] ss:$48 sps:$4 sm:$0xff]  }
 0x72b   :  { %12401 = vmatpush1.bf16.msra.mxu1 %v20272_v41  ;;  %v20293_v29 = vld [vmem:[#allocation17 + $0x540] ss:$48 sps:$4 sm:$0xff]  }
 0x72c   :  { %12402 = vmatprep.subr.bf16.mxu1 %v20277_v36 }
 0x72d   :  { %9901 = vmatpush1.bf16.msra.mxu0 %v20197_v23  ;;  %v20265_v23 = vld [vmem:[#allocation13 + $0x92c] ss:$48 sps:$4 sm:$0xff]  }
 0x72e   :  { %9902 = vmatprep.subr.bf16.mxu0 %v20205_v13  ;;  %v20290_v13 = vld [vmem:[#allocation17 + $0x5a0] ss:$48 sps:$4 sm:$0xff]  }
 0x72f   :  { %12403 = vmatpush1.bf16.msra.mxu1 %v20275_v54  ;;  %v20299_v54 = vld [vmem:[#allocation17 + $0x480] ss:$48 sps:$4 sm:$0xff]  }
 0x730   :  { %12404 = vmatprep.subr.bf16.mxu1 %v20280_v37  ;;  %v20307_v37 = vld [vmem:[#allocation17 + $0x3c4] ss:$48 sps:$4 sm:$0xff]  }
 0x731   :  { %9903 = vmatpush1.bf16.msra.mxu0 %v20203_v61  ;;  %v7482_v61 = vrot.slane %v22466_v33, %v22227_v16 }
 0x732   :  { %9904 = vmatprep.subr.bf16.mxu0 %v20211_v12  ;;  %v20263_v12 = vld [vmem:[#allocation13 + $0x928] ss:$48 sps:$4 sm:$0xff]  }
 0x733   :  { %12405 = vmatpush1.bf16.msra.mxu1 %v20278_v38  ;;  %v20308_v38 = vld [vmem:[#allocation17 + $0x360] ss:$48 sps:$4 sm:$0xff]  }
 0x734   :  { %12406 = vmatprep.subr.bf16.mxu1 %v20283_v42  ;;  %v20311_v42 = vld [vmem:[#allocation17 + $0x300] ss:$48 sps:$4 sm:$0xff]  }
 0x735   :  { %9905 = vmatpush1.bf16.msra.mxu0 %v20209_v17  ;;  %v7486_v17 = vrot.slane %v22466_v33, %v22230_v27 }
 0x736   :  { %9906 = vmatprep.subr.bf16.mxu0 %v20217_v57  ;;  %v9642_v57 = vadd.f32 %v22497_v7, %v7482_v61  ;;  %v20350_v61 = vld [vmem:[#allocation17 + $0x660] ss:$48 sps:$4 sm:$0xff]  }
 0x737   :  { %12407 = vmatpush1.bf16.msra.mxu1 %v20281_v19  ;;  %v20316_v19 = vld [vmem:[#allocation17 + $0x8a4] ss:$48 sps:$4 sm:$0xff]  }
 0x738   :  { %12408 = vmatprep.subr.bf16.mxu1 %v20286_v15  ;;  %v20322_v15 = vld [vmem:[#allocation17 + $0x844] ss:$48 sps:$4 sm:$0xff]  }
 0x739   :  { %9907 = vmatpush1.bf16.msra.mxu0 %v20215_v2  ;;  %v9644_v2 = vadd.f32 %v22502_v52, %v7486_v17  ;;  %v20298_v52 = vld [vmem:[#allocation17 + $0x4e4] ss:$48 sps:$4 sm:$0xff]   ;;  %v20356_v17 = vld [vmem:[#allocation17 + $0x600] ss:$48 sps:$4 sm:$0xff]  }
 0x73a   :  { %9908 = vmatprep.subr.bf16.mxu0 %v20223_v21 }
 0x73b   :  { %12409 = vmatpush1.bf16.msra.mxu1 %v20284_v4  ;;  %v20328_v4 = vld [vmem:[#allocation17 + $0x7e4] ss:$48 sps:$4 sm:$0xff]  }
 0x73c   :  { %12410 = vmatprep.subr.bf16.mxu1 %v20289_v24  ;;  %v20334_v24 = vld [vmem:[#allocation17 + $0x784] ss:$48 sps:$4 sm:$0xff]  }
 0x73d   :  { %9909 = vmatpush1.bf16.msra.mxu0 %v20221_v58 }
 0x73e   :  { %9910 = vmatprep.subr.bf16.mxu0 %v20229_v25 }
 0x73f   :  { %12411 = vmatpush1.bf16.msra.mxu1 %v20287_v26  ;;  %v20340_v26 = vld [vmem:[#allocation17 + $0x724] ss:$48 sps:$4 sm:$0xff]  }
 0x740   :  { %12412 = vmatprep.subr.bf16.mxu1 %v20292_v8  ;;  %v20346_v8 = vld [vmem:[#allocation17 + $0x6c4] ss:$48 sps:$4 sm:$0xff]  }
 0x741   :  { %9911 = vmatpush2.bf16.msra.mxu0 %v20227_v30 }
 0x742   :  { %9912 = vmatprep.subr.bf16.mxu0 %v20235_v0 }
 0x743   :  { %12413 = vmatpush2.bf16.msra.mxu1 %v20290_v13  ;;  %v20352_v13 = vld [vmem:[#allocation17 + $0x664] ss:$48 sps:$4 sm:$0xff]  }
 0x744   :  { %12414 = vmatprep.subr.bf16.mxu1 %v20295_v40 }
 0x745   :  { %9913 = vmatpush2.bf16.msra.mxu0 %v20233_v45  ;;  %v20296_v45 = vld [vmem:[#allocation17 + $0x4e0] ss:$48 sps:$4 sm:$0xff]  }
 0x746   :  { %9914 = vmatprep.subr.bf16.mxu0 %v20241_v11  ;;  %v20301_v11 = vld [vmem:[#allocation17 + $0x484] ss:$48 sps:$4 sm:$0xff]  }
 0x747   :  { %12415 = vmatpush2.bf16.msra.mxu1 %v20293_v29 }
 0x748   :  { %12416 = vmatprep.subr.bf16.mxu1 %v20298_v52 }
 0x749   :  { %9915 = vmatpush2.bf16.msra.mxu0 %v20239_v49  ;;  %v20302_v49 = vld [vmem:[#allocation17 + $0x420] ss:$48 sps:$4 sm:$0xff]  }
 0x74a   :  { %9916 = vmatprep.subr.bf16.mxu0 %v20247_v62  ;;  %v20305_v62 = vld [vmem:[#allocation17 + $0x3c0] ss:$48 sps:$4 sm:$0xff]  }
 0x74b   :  { %12417 = vmatpush2.bf16.msra.mxu1 %v20296_v45 }
 0x74c   :  { %12418 = vmatprep.subr.bf16.mxu1 %v20301_v11 }
 0x74d   :  { %9917 = vmatpush2.bf16.msra.mxu0 %v20245_v39  ;;  %v20313_v39 = vld [vmem:[#allocation17 + $0x304] ss:$48 sps:$4 sm:$0xff]  }
 0x74e   :  { %9918 = vmatprep.subr.bf16.mxu0 %v20253_v46  ;;  %v20314_v46 = vld [vmem:[#allocation17 + $0x8a0] ss:$48 sps:$4 sm:$0xff]  }
 0x74f   :  { %12419 = vmatpush2.bf16.msra.mxu1 %v20299_v54  ;;  %v20376_v54 = vld [vmem:[#allocation17 + $0xae4] ss:$48 sps:$4 sm:$0xff]  }
 0x751   :  { %9919 = vmatpush2.bf16.msra.mxu0 %v20251_v60  ;;  %v20319_v60 = vld [vmem:[#allocation17 + $0x2ac] ss:$48 sps:$4 sm:$0xff]  }
 0x752   :  { %9920 = vmatprep.subr.bf16.mxu0 %v20259_v50  ;;  %v20320_v50 = vld [vmem:[#allocation17 + $0x840] ss:$48 sps:$4 sm:$0xff]  }
 0x755   :  { %9921 = vmatpush2.bf16.msra.mxu0 %v20257_v10  ;;  %v20326_v10 = vld [vmem:[#allocation17 + $0x7e0] ss:$48 sps:$4 sm:$0xff]  }
 0x756   :  { %9922 = vmatprep.subr.bf16.mxu0 %v20262_v22  ;;  %v20332_v22 = vld [vmem:[#allocation17 + $0x780] ss:$48 sps:$4 sm:$0xff]  }
 0x759   :  { %9923 = vmatpush2.bf16.msra.mxu0 %v20260_v59  ;;  %v20338_v59 = vld [vmem:[#allocation17 + $0x720] ss:$48 sps:$4 sm:$0xff]  }
 0x75a   :  { %9924 = vmatprep.subr.bf16.mxu0 %v20265_v23  ;;  %v20344_v23 = vld [vmem:[#allocation17 + $0x6c0] ss:$48 sps:$4 sm:$0xff]  }
 0x75d   :  { %9925 = vmatpush2.bf16.msra.mxu0 %v20263_v12  ;;  %v20358_v12 = vld [vmem:[#allocation17 + $0x604] ss:$48 sps:$4 sm:$0xff]  }
 0x75e   :  { %12437 = vmatprep.subr.bf16.mxu0 %v20316_v19  ;;  %v20406_v19 = vld [vmem:[#allocation17 + $0x904] ss:$48 sps:$4 sm:$0xff]  }
 0x760   :  { %v9682_v21 = vpop.f32.mrf.mxu0  ;;  %9927 = vmatmul.mubr.bf16.vlgmr.msra.gmra.mxu0 %v22410_v43 }
 0x761   :  { %v9683_v58 = vadd.f32 %v9682_v21, %v9642_v57  ;;  %12438 = vmatpush1.bf16.msra.mxu0 %v20314_v46  ;;  %v7490_v57 = vrot.slane %v22466_v33, %v22157_v47  ;;  %v20364_v21 = vld [vmem:[#allocation17 + $0xba4] ss:$48 sps:$4 sm:$0xff]   ;;  %v20398_v46 = vld [vmem:[#allocation17 + $0x960] ss:$48 sps:$4 sm:$0xff]  }
 0x762   :  { %v9684_v14 = vpop.f32.mrf.mxu0  ;;  %v22514_v25 = vpop.f32.mrf.mxu1  ;;  %12439 = vmatprep.subr.bf16.mxu0 %v20322_v15  ;;  %v17484_v15 = vmul.f32 -1.442695, %v22480_v1 }
 0x763   :  { %v22517_v20 = vadd.f32 %v9683_v58, %v22394_v34  ;;  %v9685_v30 = vadd.f32 %v9684_v14, %v9644_v2  ;;  %v20304_v34 = vld [vmem:[#allocation17 + $0x424] ss:$48 sps:$4 sm:$0xff]   ;;  %v7494_v2 = vrot.slane %v22466_v33, %v22160_v51  ;;  %v20362_v58 = vld [vmem:[#allocation17 + $0xba0] ss:$48 sps:$4 sm:$0xff]   ;;  %v9724_v40 = vadd.f32 %v22514_v25, %v7490_v57 }
 0x764   :  { %v9686_v32 = vpop.f32.mrf.mxu0  ;;  %v22519_v0 = vpop.f32.mrf.mxu1  ;;  %12420 = vmatprep.subr.bf16.mxu1 %v20304_v34  ;;  %21490 = vpow2.f32 %v17484_v15 }
 0x765   :  { %v22522_v7 = vadd.f32 %v9685_v30, %v22400_v55  ;;  %12421 = vmatpush2.bf16.msra.mxu1 %v20302_v49  ;;  %v20310_v55 = vld [vmem:[#allocation17 + $0x364] ss:$48 sps:$4 sm:$0xff]   ;;  %12440 = vmatpush1.bf16.msra.mxu0 %v20320_v50  ;;  %v9726_v14 = vadd.f32 %v22519_v0, %v7494_v2  ;;  %v20374_v49 = vld [vmem:[#allocation17 + $0xae0] ss:$48 sps:$4 sm:$0xff]   ;;  %v20412_v50 = vld [vmem:[#allocation17 + $0x8ac] ss:$48 sps:$4 sm:$0xff]  }
 0x766   :  { %v9687_v43 = vpop.f32.mrf.mxu0  ;;  %v9727_v41 = vpop.f32.mrf.mxu1  ;;  %12422 = vmatprep.subr.bf16.mxu1 %v20307_v37  ;;  %12441 = vmatprep.subr.bf16.mxu0 %v20328_v4  ;;  %v20370_v32 = vld [vmem:[#allocation17 + $0xb44] ss:$48 sps:$4 sm:$0xff]   ;;  %v17485_v4 = vmul.f32 -1.442695, %v22486_v6 }
 0x767   :  { %v20368_v41 = vld [vmem:[#allocation17 + $0xb40] ss:$48 sps:$4 sm:$0xff]  }
 0x768   :  { %v9728_v36 = vpop.f32.mrf.mxu1  ;;  %21492 = vpow2.f32 %v17485_v4  ;;  %v17486_v4 = vmul.f32 -1.442695, %v22500_v44  ;;  %v20335_v44 = vld [vmem:[#allocation17 + $0x188] ss:$48 sps:$4 sm:$0xff]  }
 0x769   :  { %12423 = vmatpush2.bf16.msra.mxu1 %v20305_v62  ;;  %12442 = vmatpush1.bf16.msra.mxu0 %v20326_v10  ;;  %v20382_v62 = vld [vmem:[#allocation17 + $0xa84] ss:$48 sps:$4 sm:$0xff]   ;;  %v17488_v10 = vmul.f32 -1.442695, %v22517_v20 }
 0x76a   :  { %12424 = vmatprep.subr.bf16.mxu1 %v20310_v55  ;;  %12443 = vmatprep.subr.bf16.mxu0 %v20334_v24  ;;  %v20380_v55 = vld [vmem:[#allocation17 + $0xa80] ss:$48 sps:$4 sm:$0xff]   ;;  %v17489_v24 = vmul.f32 -1.442695, %v22522_v7 }
 0x76b   :  { %21494 = vpow2.f32 %v17488_v10  ;;  %v17487_v10 = vmul.f32 -1.442695, %v22505_v3  ;;  %v20341_v3 = vld [vmem:[#allocation17 + $0x128] ss:$48 sps:$4 sm:$0xff]  }
 0x76c   :  { %21496 = vpow2.f32 %v17489_v24  ;;  %v20323_v24 = vld [vmem:[#allocation17 + $0x248] ss:$48 sps:$4 sm:$0xff]  }
 0x76d   :  { %12425 = vmatpush2.bf16.msra.mxu1 %v20308_v38  ;;  %12444 = vmatpush1.bf16.msra.mxu0 %v20332_v22  ;;  %v20386_v38 = vld [vmem:[#allocation17 + $0xa20] ss:$48 sps:$4 sm:$0xff]  }
 0x76e   :  { %12426 = vmatprep.subr.bf16.mxu1 %v20313_v39  ;;  %12445 = vmatprep.subr.bf16.mxu0 %v20340_v26  ;;  %v20394_v39 = vld [vmem:[#allocation17 + $0x9c4] ss:$48 sps:$4 sm:$0xff]  }
 0x771   :  { %12427 = vmatpush2.bf16.msra.mxu1 %v20311_v42  ;;  %12446 = vmatpush1.bf16.msra.mxu0 %v20338_v59  ;;  %v20392_v42 = vld [vmem:[#allocation17 + $0x9c0] ss:$48 sps:$4 sm:$0xff]   ;;  %v21491_v22 = vpop.eup %21490 }
 0x772   :  { %12478 = vmatprep.subr.bf16.mxu1 %v20319_v60  ;;  %12447 = vmatprep.subr.bf16.mxu0 %v20346_v8  ;;  %v20404_v60 = vld [vmem:[#allocation17 + $0x900] ss:$48 sps:$4 sm:$0xff]   ;;  %v9951_v59 = vadd.f32 1.0, %v21491_v22  ;;  %v20331_v22 = vld [vmem:[#allocation17 + $0x1ec] ss:$48 sps:$4 sm:$0xff]  }
 0x774   :  { %21498 = vrcp.f32 %v9951_v59  ;;  %v20337_v59 = vld [vmem:[#allocation17 + $0x18c] ss:$48 sps:$4 sm:$0xff]  }
 0x775   :  { %12448 = vmatpush1.bf16.msra.mxu0 %v20344_v23  ;;  %v21493_v26 = vpop.eup %21492  ;;  %v22540_v23 = vld [vmem:[#allocation16 + $0x8] sm:$0xf] }
 0x776   :  { %12449 = vmatprep.subr.bf16.mxu0 %v20352_v13  ;;  %v9952_v8 = vadd.f32 1.0, %v21493_v26  ;;  %v7498_v1 = vrot.slane %v22540_v23, %v22191_v31  ;;  %v7502_v6 = vrot.slane %v22540_v23, %v22194_v35  ;;  %v20329_v26 = vld [vmem:[#allocation17 + $0x1e8] ss:$48 sps:$4 sm:$0xff]  }
 0x778   :  { %21500 = vrcp.f32 %v9952_v8  ;;  %v21495_v13 = vpop.eup %21494  ;;  %v20343_v8 = vld [vmem:[#allocation17 + $0x12c] ss:$48 sps:$4 sm:$0xff]  }
 0x779   :  { %12450 = vmatpush1.bf16.msra.mxu0 %v20350_v61  ;;  %v21497_v61 = vpop.eup %21496  ;;  %v9979_v7 = vadd.f32 1.0, %v21495_v13 }
 0x77a   :  { %12451 = vmatprep.subr.bf16.mxu0 %v20358_v12  ;;  %v9980_v57 = vadd.f32 1.0, %v21497_v61  ;;  %v20347_v61 = vld [vmem:[#allocation17 + $0xc8] ss:$48 sps:$4 sm:$0xff]  }
 0x77b   :  { %21502 = vrcp.f32 %v9979_v7 }
 0x77c   :  { %21504 = vrcp.f32 %v9980_v57 }
 0x77d   :  { %12452 = vmatpush1.bf16.msra.mxu0 %v20356_v17 }
 0x77e   :  { %12453 = vmatprep.subr.bf16.mxu0 %v20364_v21 }
 0x781   :  { %12454 = vmatpush2.bf16.msra.mxu0 %v20362_v58  ;;  %v21499_v21 = vpop.eup %21498 }
 0x782   :  { %12455 = vmatprep.subr.bf16.mxu0 %v20370_v32 }
 0x785   :  { %12456 = vmatpush2.bf16.msra.mxu0 %v20368_v41 }
 0x786   :  { %12457 = vmatprep.subr.bf16.mxu0 %v20376_v54 }
 0x789   :  { %12458 = vmatpush2.bf16.msra.mxu0 %v20374_v49 }
 0x78a   :  { %12459 = vmatprep.subr.bf16.mxu0 %v20382_v62 }
 0x78d   :  { %12460 = vmatpush2.bf16.msra.mxu0 %v20380_v55 }
 0x7a0   :  { %v9764_v29 = vpop.f32.mrf.mxu0 }
 0x7a1   :  { %v9765_v30 = vadd.f32 %v9764_v29, %v9724_v40 }
 0x7a2   :  { %v9766_v52 = vpop.f32.mrf.mxu0  ;;  %v9805_v43 = vpop.f32.mrf.mxu1 }
 0x7a3   :  { %v22531_v45 = vadd.f32 %v9765_v30, %v22417_v9  ;;  %v9767_v36 = vadd.f32 %v9766_v52, %v9726_v14  ;;  %v20388_v9 = vld [vmem:[#allocation17 + $0xa24] ss:$48 sps:$4 sm:$0xff]   ;;  %v9806_v20 = vadd.f32 %v9805_v43, %v7498_v1  ;;  %v21501_v30 = vpop.eup %21500 }
 0x7a4   :  { %v9768_v33 = vpop.f32.mrf.mxu0  ;;  %v9807_v11 = vpop.f32.mrf.mxu1  ;;  %12461 = vmatprep.subr.bf16.mxu0 %v20388_v9  ;;  %v21578_v9 = vld [vmem:[%s22886_s1 + $0x20] sm:$0xff] }
 0x7a5   :  { %v22534_v25 = vadd.f32 %v9767_v36, %v22423_v18  ;;  %12462 = vmatpush2.bf16.msra.mxu0 %v20386_v38  ;;  %v20400_v18 = vld [vmem:[#allocation17 + $0x964] ss:$48 sps:$4 sm:$0xff]   ;;  %v9808_v12 = vadd.f32 %v9807_v11, %v7502_v6  ;;  %v17490_v1 = vmul.f32 -1.442695, %v22531_v45  ;;  %v20349_v6 = vld [vmem:[#allocation17 + $0xcc] ss:$48 sps:$4 sm:$0xff]  }
 0x7a6   :  { %v9769_v0 = vpop.f32.mrf.mxu0  ;;  %v9809_v34 = vpop.f32.mrf.mxu1  ;;  %12463 = vmatprep.subr.bf16.mxu0 %v20394_v39  ;;  %v20361_v45 = vld [vmem:[#allocation17 + $0xc] ss:$48 sps:$4 sm:$0xff]  }
 0x7a7   :  { %v21503_v0 = vpop.eup %21502  ;;  %v17491_v13 = vmul.f32 -1.442695, %v22534_v25  ;;  %v20367_v25 = vld [vmem:[#allocation17 + $0x5ac] ss:$48 sps:$4 sm:$0xff]  }
 0x7a8   :  { %v9810_v37 = vpop.f32.mrf.mxu1  ;;  %v21505_v34 = vpop.eup %21504  ;;  %v10003_v49 = vsub.f32 1.0, %v21503_v0  ;;  %v10011_v38 = vmul.f32 %v21578_v9, %v21503_v0 }
 0x7a9   :  { %12464 = vmatpush2.bf16.msra.mxu0 %v20392_v42  ;;  %v10004_v55 = vsub.f32 1.0, %v21505_v34  ;;  %v21579_v42 = vld [vmem:[%s22886_s1 + $0x28] sm:$0xff] }
 0x7aa   :  { %12465 = vmatprep.subr.bf16.mxu0 %v20400_v18 }
 0x7ad   :  { %12466 = vmatpush2.bf16.msra.mxu0 %v20398_v46 }
 0x7ae   :  { %12467 = vmatprep.subr.bf16.mxu0 %v20406_v19 }
 0x7b1   :  { %12468 = vmatpush2.bf16.msra.mxu0 %v20404_v60  ;;  %v20317_v60 = vld [vmem:[#allocation17 + $0x2a8] ss:$48 sps:$4 sm:$0xff]  }
 0x7b2   :  { %12519 = vmatprep.subr.bf16.mxu0 %v20412_v50  ;;  %v20325_v50 = vld [vmem:[#allocation17 + $0x24c] ss:$48 sps:$4 sm:$0xff]  }
 0x7e0   :  { %v9846_v17 = vpop.f32.mrf.mxu0 }
 0x7e1   :  { %v9847_v2 = vadd.f32 %v9846_v17, %v9806_v20 }
 0x7e2   :  { %v9848_v58 = vpop.f32.mrf.mxu0  ;;  %v22546_v40 = vpop.f32.mrf.mxu1 }
 0x7e3   :  { %v9991_v14 = vmul.f32 %v21499_v21, %v9847_v2  ;;  %v9849_v29 = vadd.f32 %v9848_v58, %v9808_v12  ;;  %v20355_v12 = vld [vmem:[#allocation17 + $0x6c] ss:$48 sps:$4 sm:$0xff]   ;;  %v20353_v2 = vld [vmem:[#allocation17 + $0x68] ss:$48 sps:$4 sm:$0xff]   ;;  %v7506_v58 = vrot.slane %v22540_v23, %v22133_v48 }
 0x7e4   :  { %v9850_v32 = vpop.f32.mrf.mxu0  ;;  %v22548_v52 = vpop.f32.mrf.mxu1  ;;  %v20359_v21 = vld [vmem:[#allocation17 + $0x8] ss:$48 sps:$4 sm:$0xff]  }
 0x7e5   :  { %v9995_v43 = vadd.f32 %v9991_v14, %v22437_v53  ;;  %v9992_v41 = vmul.f32 %v21501_v30, %v9849_v29  ;;  %v20365_v14 = vld [vmem:[#allocation17 + $0x5a8] ss:$48 sps:$4 sm:$0xff]   ;;  %v20373_v30 = vld [vmem:[#allocation17 + $0x54c] ss:$48 sps:$4 sm:$0xff]   ;;  %v9888_v32 = vadd.f32 %v22546_v40, %v7506_v58 }
 0x7e6   :  { %v9851_v36 = vpop.f32.mrf.mxu0  ;;  %v9891_v33 = vpop.f32.mrf.mxu1  ;;  %v20377_v40 = vld [vmem:[#allocation17 + $0x4e8] ss:$48 sps:$4 sm:$0xff]   ;;  %v20418_v58 = vld [vmem:[#allocation17 + $0x84c] ss:$48 sps:$4 sm:$0xff]  }
 0x7e7   :  { %21506 = vtanh.f32 %v9995_v43  ;;  %v9996_v11 = vadd.f32 %v9992_v41, %v22443_v63  ;;  %v10012_v63 = vmul.f32 %v21579_v42, %v21505_v34  ;;  %v7510_v43 = vrot.slane %v22540_v23, %v22138_v5  ;;  %v20371_v33 = vld [vmem:[#allocation17 + $0x548] ss:$48 sps:$4 sm:$0xff]  }
 0x7e8   :  { %v9892_v54 = vpop.f32.mrf.mxu1 }
 0x7e9   :  { %21508 = vtanh.f32 %v9996_v11  ;;  %v20379_v54 = vld [vmem:[#allocation17 + $0x4ec] ss:$48 sps:$4 sm:$0xff]   ;;  %v9890_v34 = vadd.f32 %v22548_v52, %v7510_v43  ;;  %v20427_v43 = vld [vmem:[#allocation17 + $0x1f4] ss:$48 sps:$4 sm:$0xff]  }
 0x7ea   :  { %21510 = vpow2.f32 %v17486_v4  ;;  %v20395_v4 = vld [vmem:[#allocation17 + $0x3c8] ss:$48 sps:$4 sm:$0xff]  }
 0x7eb   :  { %21512 = vpow2.f32 %v17487_v10 }
 0x7ec   :  { %21514 = vpow2.f32 %v17490_v1 }
 0x7ed   :  { %21516 = vpow2.f32 %v17491_v13 }
 0x7f4   :  { %v21507_v37 = vpop.eup %21506 }
 0x7f5   :  { %v10007_v62 = vmul.f32 %v21507_v37, %v10003_v49 }
 0x7f6   :  { %v21509_v53 = vpop.eup %21508 }
 0x7f7   :  { %v10008_v39 = vmul.f32 %v21509_v53, %v10004_v55  ;;  %v10015_v18 = vadd.f32 %v10011_v38, %v10007_v62  ;;  %v21511_v20 = vpop.eup %21510  ;;  %v20385_v53 = vld [vmem:[#allocation17 + $0x48c] ss:$48 sps:$4 sm:$0xff]  }
 0x7f8   :  { %v21513_v7 = vpop.eup %21512  ;;  %v9953_v17 = vadd.f32 1.0, %v21511_v20  ;;  %v20407_v20 = vld [vmem:[#allocation17 + $0x308] ss:$48 sps:$4 sm:$0xff]  }
 0x7f9   :  { %v10016_v46 = vadd.f32 %v10012_v63, %v10008_v39  ;;  %18268 = vst [vmem:[%s22879_s18 + $0x20] sm:$0xff] %v10015_v18  ;;  %v22566_v15 = vpack.c.bf16 %v10015_v18, %v10015_v18  ;;  %v9954_v57 = vadd.f32 1.0, %v21513_v7  ;;  %v21515_v29 = vpop.eup %21514  ;;  %v20383_v18 = vld [vmem:[#allocation17 + $0x488] ss:$48 sps:$4 sm:$0xff]  }
 0x7fa   :  { %21518 = vrcp.f32 %v9953_v17  ;;  %v21517_v41 = vpop.eup %21516  ;;  %v9981_v36 = vadd.f32 1.0, %v21515_v29  ;;  %v20415_v17 = vld [vmem:[#allocation17 + $0x2b4] ss:$48 sps:$4 sm:$0xff]   ;;  %v20416_v29 = vld [vmem:[#allocation17 + $0x848] ss:$48 sps:$4 sm:$0xff]  }
 0x7fb   :  { %v22561_v19 = vpack.c.bf16 %v10016_v46, %v10016_v46  ;;  %18269 = vst [vmem:[%s22879_s18 + $0x28] sm:$0xff] %v10016_v46  ;;  %21520 = vrcp.f32 %v9954_v57  ;;  %v9982_v0 = vadd.f32 1.0, %v21517_v41  ;;  %v20391_v46 = vld [vmem:[#allocation17 + $0x42c] ss:$48 sps:$4 sm:$0xff]   ;;  %v20422_v41 = vld [vmem:[#allocation17 + $0x7e8] ss:$48 sps:$4 sm:$0xff]  }
 0x7fc   :  { %21522 = vrcp.f32 %v9981_v36  ;;  %v20425_v36 = vld [vmem:[#allocation17 + $0x1f0] ss:$48 sps:$4 sm:$0xff]  }
 0x7fd   :  { %12428 = vmatprep.mubr.bf16.mxu1 %v22561_v19  ;;  %21524 = vrcp.f32 %v9982_v0  ;;  %v20431_v0 = vld [vmem:[#allocation17 + $0x190] ss:$48 sps:$4 sm:$0xff]  }
 0x7fe   :  { %12429 = vmatmul.mubr.bf16.vlgmr.msra.gmra.mxu1 %v22566_v15 }
 0x7ff   :  { %12479 = vmatpush1.bf16.msra.mxu1 %v20317_v60  ;;  %12510 = vmatprep.mubr.bf16.mxu1 %v22561_v19  ;;  %v20389_v60 = vld [vmem:[#allocation17 + $0x428] ss:$48 sps:$4 sm:$0xff]  }
 0x800   :  { %12480 = vmatprep.subr.bf16.mxu1 %v20325_v50  ;;  %v20397_v50 = vld [vmem:[#allocation17 + $0x3cc] ss:$48 sps:$4 sm:$0xff]  }
 0x802   :  { %v21580_v1 = vld [vmem:[%s22886_s1 + $0x30] sm:$0xff] }
 0x803   :  { %12481 = vmatpush1.bf16.msra.mxu1 %v20323_v24  ;;  %v20403_v24 = vld [vmem:[#allocation17 + $0x36c] ss:$48 sps:$4 sm:$0xff]  }
 0x804   :  { %12482 = vmatprep.subr.bf16.mxu1 %v20331_v22 }
 0x807   :  { %12483 = vmatpush1.bf16.msra.mxu1 %v20329_v26  ;;  %v21519_v37 = vpop.eup %21518  ;;  %v20401_v26 = vld [vmem:[#allocation17 + $0x368] ss:$48 sps:$4 sm:$0xff]  }
 0x808   :  { %12484 = vmatprep.subr.bf16.mxu1 %v20337_v59  ;;  %v21521_v38 = vpop.eup %21520 }
 0x809   :  { %v21523_v10 = vpop.eup %21522 }
 0x80a   :  { %v10005_v22 = vsub.f32 1.0, %v21523_v10 }
 0x80b   :  { %12485 = vmatpush1.bf16.msra.mxu1 %v20335_v44 }
 0x80c   :  { %12486 = vmatprep.subr.bf16.mxu1 %v20343_v8 }
 0x80f   :  { %12487 = vmatpush1.bf16.msra.mxu1 %v20341_v3  ;;  %v10013_v3 = vmul.f32 %v21580_v1, %v21523_v10  ;;  %v20461_v10 = vld [vmem:[#allocation17 + $0x5b0] ss:$48 sps:$4 sm:$0xff]   ;;  %v20478_v1 = vld [vmem:[#allocation17 + $0xa8c] ss:$48 sps:$4 sm:$0xff]  }
 0x810   :  { %12488 = vmatprep.subr.bf16.mxu1 %v20349_v6 }
 0x813   :  { %12489 = vmatpush1.bf16.msra.mxu1 %v20347_v61  ;;  %v21581_v61 = vld [vmem:[%s22886_s1 + $0x38] sm:$0xff] }
 0x814   :  { %12490 = vmatprep.subr.bf16.mxu1 %v20355_v12 }
 0x817   :  { %12491 = vmatpush1.bf16.msra.mxu1 %v20353_v2 }
 0x818   :  { %12492 = vmatprep.subr.bf16.mxu1 %v20361_v45  ;;  %v20410_v45 = vld [vmem:[#allocation17 + $0x8a8] ss:$48 sps:$4 sm:$0xff]  }
 0x81b   :  { %12493 = vmatpush1.bf16.msra.mxu1 %v20359_v21  ;;  %v20413_v21 = vld [vmem:[#allocation17 + $0x2b0] ss:$48 sps:$4 sm:$0xff]  }
 0x81c   :  { %12494 = vmatprep.subr.bf16.mxu1 %v20367_v25 }
 0x81f   :  { %12495 = vmatpush2.bf16.msra.mxu1 %v20365_v14  ;;  %v20421_v14 = vld [vmem:[#allocation17 + $0x254] ss:$48 sps:$4 sm:$0xff]  }
 0x820   :  { %v9928_v11 = vpop.f32.mrf.mxu0  ;;  %12496 = vmatprep.subr.bf16.mxu1 %v20373_v30  ;;  %v20419_v30 = vld [vmem:[#allocation17 + $0x250] ss:$48 sps:$4 sm:$0xff]  }
 0x821   :  { %v9929_v49 = vadd.f32 %v9928_v11, %v9888_v32  ;;  %v20424_v32 = vld [vmem:[#allocation17 + $0x7ec] ss:$48 sps:$4 sm:$0xff]   ;;  %v20433_v11 = vld [vmem:[#allocation17 + $0x194] ss:$48 sps:$4 sm:$0xff]  }
 0x822   :  { %v9930_v62 = vpop.f32.mrf.mxu0 }
 0x823   :  { %v9993_v55 = vmul.f32 %v21519_v37, %v9929_v49  ;;  %v9931_v9 = vadd.f32 %v9930_v62, %v9890_v34  ;;  %12497 = vmatpush2.bf16.msra.mxu1 %v20371_v33  ;;  %v20430_v33 = vld [vmem:[#allocation17 + $0x78c] ss:$48 sps:$4 sm:$0xff]   ;;  %v20439_v49 = vld [vmem:[#allocation17 + $0x134] ss:$48 sps:$4 sm:$0xff]   ;;  %v20434_v37 = vld [vmem:[#allocation17 + $0x728] ss:$48 sps:$4 sm:$0xff]  }
 0x824   :  { %v9932_v23 = vpop.f32.mrf.mxu0  ;;  %12498 = vmatprep.subr.bf16.mxu1 %v20379_v54  ;;  %v20428_v54 = vld [vmem:[#allocation17 + $0x788] ss:$48 sps:$4 sm:$0xff]   ;;  %v20436_v34 = vld [vmem:[#allocation17 + $0x72c] ss:$48 sps:$4 sm:$0xff]   ;;  %v20437_v62 = vld [vmem:[#allocation17 + $0x130] ss:$48 sps:$4 sm:$0xff]  }
 0x825   :  { %v9997_v39 = vadd.f32 %v9993_v55, %v22455_v28  ;;  %v9994_v42 = vmul.f32 %v21521_v38, %v9931_v9  ;;  %v21525_v28 = vpop.eup %21524  ;;  %v20442_v55 = vld [vmem:[#allocation17 + $0x6cc] ss:$48 sps:$4 sm:$0xff]   ;;  %v20445_v9 = vld [vmem:[#allocation17 + $0xd4] ss:$48 sps:$4 sm:$0xff]   ;;  %v20443_v38 = vld [vmem:[#allocation17 + $0xd0] ss:$48 sps:$4 sm:$0xff]  }
 0x826   :  { %v9933_v63 = vpop.f32.mrf.mxu0  ;;  %v10006_v8 = vsub.f32 1.0, %v21525_v28  ;;  %v10014_v7 = vmul.f32 %v21581_v61, %v21525_v28  ;;  %v20448_v23 = vld [vmem:[#allocation17 + $0x66c] ss:$48 sps:$4 sm:$0xff]   ;;  %v20469_v28 = vld [vmem:[#allocation17 + $0x554] ss:$48 sps:$4 sm:$0xff]  }
 0x827   :  { %21526 = vtanh.f32 %v9997_v39  ;;  %v9998_v52 = vadd.f32 %v9994_v42, %v22461_v56  ;;  %12499 = vmatpush2.bf16.msra.mxu1 %v20377_v40  ;;  %v20409_v56 = vld [vmem:[#allocation17 + $0x30c] ss:$48 sps:$4 sm:$0xff]   ;;  %v20440_v40 = vld [vmem:[#allocation17 + $0x6c8] ss:$48 sps:$4 sm:$0xff]   ;;  %v20449_v42 = vld [vmem:[#allocation17 + $0x70] ss:$48 sps:$4 sm:$0xff]  }
 0x828   :  { %12500 = vmatprep.subr.bf16.mxu1 %v20385_v53  ;;  %v20451_v53 = vld [vmem:[#allocation17 + $0x74] ss:$48 sps:$4 sm:$0xff]   ;;  %v20446_v39 = vld [vmem:[#allocation17 + $0x668] ss:$48 sps:$4 sm:$0xff]   ;;  %v20454_v63 = vld [vmem:[#allocation17 + $0x60c] ss:$48 sps:$4 sm:$0xff]  }
 0x829   :  { %21528 = vtanh.f32 %v9998_v52  ;;  %v20457_v52 = vld [vmem:[#allocation17 + $0x14] ss:$48 sps:$4 sm:$0xff]  }
 0x82a   :  { %v20487_v61 = vld [vmem:[#allocation17 + $0x434] ss:$48 sps:$4 sm:$0xff]  }
 0x82b   :  { %12501 = vmatpush2.bf16.msra.mxu1 %v20383_v18  ;;  %v20452_v18 = vld [vmem:[#allocation17 + $0x608] ss:$48 sps:$4 sm:$0xff]  }
 0x82c   :  { %12502 = vmatprep.subr.bf16.mxu1 %v20391_v46  ;;  %v20455_v46 = vld [vmem:[#allocation17 + $0x10] ss:$48 sps:$4 sm:$0xff]  }
 0x82f   :  { %12503 = vmatpush2.bf16.msra.mxu1 %v20389_v60  ;;  %v20460_v60 = vld [vmem:[#allocation17 + $0xbac] ss:$48 sps:$4 sm:$0xff]  }
 0x830   :  { %12504 = vmatprep.subr.bf16.mxu1 %v20397_v50  ;;  %v20463_v50 = vld [vmem:[#allocation17 + $0x5b4] ss:$48 sps:$4 sm:$0xff]  }
 0x833   :  { %12505 = vmatpush2.bf16.msra.mxu1 %v20395_v4  ;;  %v20458_v4 = vld [vmem:[#allocation17 + $0xba8] ss:$48 sps:$4 sm:$0xff]  }
 0x834   :  { %v21527_v59 = vpop.eup %21526  ;;  %12506 = vmatprep.subr.bf16.mxu1 %v20403_v24  ;;  %v20466_v24 = vld [vmem:[#allocation17 + $0xb4c] ss:$48 sps:$4 sm:$0xff]  }
 0x835   :  { %v10009_v44 = vmul.f32 %v21527_v59, %v10005_v22  ;;  %v20464_v22 = vld [vmem:[#allocation17 + $0xb48] ss:$48 sps:$4 sm:$0xff]   ;;  %v20472_v59 = vld [vmem:[#allocation17 + $0xaec] ss:$48 sps:$4 sm:$0xff]  }
 0x836   :  { %v21529_v6 = vpop.eup %21528 }
 0x837   :  { %v10010_v13 = vmul.f32 %v21529_v6, %v10006_v8  ;;  %12507 = vmatpush2.bf16.msra.mxu1 %v20401_v26  ;;  %v10017_v12 = vadd.f32 %v10013_v3, %v10009_v44  ;;  %v20467_v26 = vld [vmem:[#allocation17 + $0x550] ss:$48 sps:$4 sm:$0xff]   ;;  %v20470_v44 = vld [vmem:[#allocation17 + $0xae8] ss:$48 sps:$4 sm:$0xff]   ;;  %v20481_v3 = vld [vmem:[#allocation17 + $0x494] ss:$48 sps:$4 sm:$0xff]  }
 0x838   :  { %12508 = vmatprep.subr.bf16.mxu1 %v20409_v56  ;;  %v20475_v56 = vld [vmem:[#allocation17 + $0x4f4] ss:$48 sps:$4 sm:$0xff]   ;;  %v20473_v8 = vld [vmem:[#allocation17 + $0x4f0] ss:$48 sps:$4 sm:$0xff]   ;;  %v20476_v6 = vld [vmem:[#allocation17 + $0xa88] ss:$48 sps:$4 sm:$0xff]  }
 0x839   :  { %v10018_v57 = vadd.f32 %v10014_v7, %v10010_v13  ;;  %18270 = vst [vmem:[%s22879_s18 + $0x30] sm:$0xff] %v10017_v12  ;;  %v22597_v25 = vpack.c.bf16 %v10017_v12, %v10017_v12  ;;  %v20479_v13 = vld [vmem:[#allocation17 + $0x490] ss:$48 sps:$4 sm:$0xff]   ;;  %v20482_v7 = vld [vmem:[#allocation17 + $0xa28] ss:$48 sps:$4 sm:$0xff]  }
 0x83a   :  { %v20485_v12 = vld [vmem:[#allocation17 + $0x430] ss:$48 sps:$4 sm:$0xff]  }
 0x83b   :  { %12509 = vmatpush2.bf16.msra.mxu1 %v20407_v20  ;;  %v22592_v2 = vpack.c.bf16 %v10018_v57, %v10018_v57  ;;  %18271 = vst [vmem:[%s22879_s18 + $0x38] sm:$0xff] %v10018_v57  ;;  %v20484_v20 = vld [vmem:[#allocation17 + $0xa2c] ss:$48 sps:$4 sm:$0xff]   ;;  %v20493_v57 = vld [vmem:[#allocation17 + $0x3d4] ss:$48 sps:$4 sm:$0xff]  }
 0x83c   :  { %12560 = vmatprep.subr.bf16.mxu1 %v20415_v17  ;;  %v20490_v17 = vld [vmem:[#allocation17 + $0x9cc] ss:$48 sps:$4 sm:$0xff]  }
 0x83d   :  { %12469 = vmatprep.mubr.bf16.mxu0 %v22592_v2 }
 0x83e   :  { %12511 = vmatmul.mubr.bf16.vlgmr.msra.gmra.mxu1 %v22566_v15  ;;  %12470 = vmatmul.mubr.bf16.vlgmr.msra.gmra.mxu0 %v22597_v25 }
 0x83f   :  { %12520 = vmatpush1.bf16.msra.mxu0 %v20410_v45  ;;  %12561 = vmatpush1.bf16.msra.mxu1 %v20413_v21  ;;  %v20488_v45 = vld [vmem:[#allocation17 + $0x9c8] ss:$48 sps:$4 sm:$0xff]   ;;  %v20491_v21 = vld [vmem:[#allocation17 + $0x3d0] ss:$48 sps:$4 sm:$0xff]  }
 0x840   :  { %12592 = vmatprep.mubr.bf16.mxu1 %v22561_v19  ;;  %12551 = vmatprep.mubr.bf16.mxu0 %v22592_v2 }
 0x841   :  { %12521 = vmatprep.subr.bf16.mxu0 %v20418_v58  ;;  %12562 = vmatprep.subr.bf16.mxu1 %v20421_v14  ;;  %v20496_v58 = vld [vmem:[#allocation17 + $0x96c] ss:$48 sps:$4 sm:$0xff]   ;;  %v20499_v14 = vld [vmem:[#allocation17 + $0x374] ss:$48 sps:$4 sm:$0xff]  }
 0x843   :  { %12522 = vmatpush1.bf16.msra.mxu0 %v20416_v29  ;;  %12563 = vmatpush1.bf16.msra.mxu1 %v20419_v30  ;;  %v20494_v29 = vld [vmem:[#allocation17 + $0x968] ss:$48 sps:$4 sm:$0xff]   ;;  %v20497_v30 = vld [vmem:[#allocation17 + $0x370] ss:$48 sps:$4 sm:$0xff]  }
 0x844   :  { %12523 = vmatprep.subr.bf16.mxu0 %v20424_v32  ;;  %12564 = vmatprep.subr.bf16.mxu1 %v20427_v43  ;;  %v20502_v32 = vld [vmem:[#allocation17 + $0x90c] ss:$48 sps:$4 sm:$0xff]   ;;  %v20505_v43 = vld [vmem:[#allocation17 + $0x314] ss:$48 sps:$4 sm:$0xff]  }
 0x847   :  { %12524 = vmatpush1.bf16.msra.mxu0 %v20422_v41  ;;  %12565 = vmatpush1.bf16.msra.mxu1 %v20425_v36  ;;  %v20500_v41 = vld [vmem:[#allocation17 + $0x908] ss:$48 sps:$4 sm:$0xff]   ;;  %v20503_v36 = vld [vmem:[#allocation17 + $0x310] ss:$48 sps:$4 sm:$0xff]  }
 0x848   :  { %12525 = vmatprep.subr.bf16.mxu0 %v20430_v33  ;;  %12566 = vmatprep.subr.bf16.mxu1 %v20433_v11  ;;  %v20508_v33 = vld [vmem:[#allocation17 + $0x8b4] ss:$48 sps:$4 sm:$0xff]   ;;  %v20511_v11 = vld [vmem:[#allocation17 + $0x2bc] ss:$48 sps:$4 sm:$0xff]  }
 0x84b   :  { %12526 = vmatpush1.bf16.msra.mxu0 %v20428_v54  ;;  %12567 = vmatpush1.bf16.msra.mxu1 %v20431_v0  ;;  %v20506_v54 = vld [vmem:[#allocation17 + $0x8b0] ss:$48 sps:$4 sm:$0xff]   ;;  %v20509_v0 = vld [vmem:[#allocation17 + $0x2b8] ss:$48 sps:$4 sm:$0xff]  }
 0x84c   :  { %12527 = vmatprep.subr.bf16.mxu0 %v20436_v34  ;;  %12568 = vmatprep.subr.bf16.mxu1 %v20439_v49  ;;  %v20514_v34 = vld [vmem:[#allocation17 + $0x854] ss:$48 sps:$4 sm:$0xff]   ;;  %v20517_v49 = vld [vmem:[#allocation17 + $0x25c] ss:$48 sps:$4 sm:$0xff]  }
 0x84f   :  { %12528 = vmatpush1.bf16.msra.mxu0 %v20434_v37  ;;  %12569 = vmatpush1.bf16.msra.mxu1 %v20437_v62  ;;  %v20512_v37 = vld [vmem:[#allocation17 + $0x850] ss:$48 sps:$4 sm:$0xff]   ;;  %v20515_v62 = vld [vmem:[#allocation17 + $0x258] ss:$48 sps:$4 sm:$0xff]  }
 0x850   :  { %12529 = vmatprep.subr.bf16.mxu0 %v20442_v55  ;;  %12570 = vmatprep.subr.bf16.mxu1 %v20445_v9  ;;  %v20520_v55 = vld [vmem:[#allocation17 + $0x7f4] ss:$48 sps:$4 sm:$0xff]   ;;  %v20523_v9 = vld [vmem:[#allocation17 + $0x1fc] ss:$48 sps:$4 sm:$0xff]  }
 0x853   :  { %12530 = vmatpush1.bf16.msra.mxu0 %v20440_v40  ;;  %12571 = vmatpush1.bf16.msra.mxu1 %v20443_v38  ;;  %v20518_v40 = vld [vmem:[#allocation17 + $0x7f0] ss:$48 sps:$4 sm:$0xff]   ;;  %v20521_v38 = vld [vmem:[#allocation17 + $0x1f8] ss:$48 sps:$4 sm:$0xff]  }
 0x854   :  { %12531 = vmatprep.subr.bf16.mxu0 %v20448_v23  ;;  %12572 = vmatprep.subr.bf16.mxu1 %v20451_v53  ;;  %v20526_v23 = vld [vmem:[#allocation17 + $0x794] ss:$48 sps:$4 sm:$0xff]   ;;  %v20529_v53 = vld [vmem:[#allocation17 + $0x19c] ss:$48 sps:$4 sm:$0xff]  }
 0x857   :  { %12532 = vmatpush1.bf16.msra.mxu0 %v20446_v39  ;;  %12573 = vmatpush1.bf16.msra.mxu1 %v20449_v42  ;;  %v20524_v39 = vld [vmem:[#allocation17 + $0x790] ss:$48 sps:$4 sm:$0xff]   ;;  %v20527_v42 = vld [vmem:[#allocation17 + $0x198] ss:$48 sps:$4 sm:$0xff]  }
 0x858   :  { %12533 = vmatprep.subr.bf16.mxu0 %v20454_v63  ;;  %12574 = vmatprep.subr.bf16.mxu1 %v20457_v52  ;;  %v20532_v63 = vld [vmem:[#allocation17 + $0x734] ss:$48 sps:$4 sm:$0xff]   ;;  %v20535_v52 = vld [vmem:[#allocation17 + $0x13c] ss:$48 sps:$4 sm:$0xff]  }
 0x85b   :  { %12534 = vmatpush1.bf16.msra.mxu0 %v20452_v18  ;;  %12575 = vmatpush1.bf16.msra.mxu1 %v20455_v46  ;;  %v20530_v18 = vld [vmem:[#allocation17 + $0x730] ss:$48 sps:$4 sm:$0xff]   ;;  %v20533_v46 = vld [vmem:[#allocation17 + $0x138] ss:$48 sps:$4 sm:$0xff]  }
 0x85c   :  { %12535 = vmatprep.subr.bf16.mxu0 %v20460_v60  ;;  %12576 = vmatprep.subr.bf16.mxu1 %v20463_v50  ;;  %v20538_v60 = vld [vmem:[#allocation17 + $0x6d4] ss:$48 sps:$4 sm:$0xff]   ;;  %v20541_v50 = vld [vmem:[#allocation17 + $0xdc] ss:$48 sps:$4 sm:$0xff]  }
 0x85f   :  { %12536 = vmatpush2.bf16.msra.mxu0 %v20458_v4  ;;  %12577 = vmatpush2.bf16.msra.mxu1 %v20461_v10  ;;  %v20536_v4 = vld [vmem:[#allocation17 + $0x6d0] ss:$48 sps:$4 sm:$0xff]   ;;  %v20539_v10 = vld [vmem:[#allocation17 + $0xd8] ss:$48 sps:$4 sm:$0xff]  }
 0x860   :  { %12537 = vmatprep.subr.bf16.mxu0 %v20466_v24  ;;  %12578 = vmatprep.subr.bf16.mxu1 %v20469_v28  ;;  %v20544_v24 = vld [vmem:[#allocation17 + $0x674] ss:$48 sps:$4 sm:$0xff]   ;;  %v20547_v28 = vld [vmem:[#allocation17 + $0x7c] ss:$48 sps:$4 sm:$0xff]  }
 0x863   :  { %12538 = vmatpush2.bf16.msra.mxu0 %v20464_v22  ;;  %12579 = vmatpush2.bf16.msra.mxu1 %v20467_v26  ;;  %v20542_v22 = vld [vmem:[#allocation17 + $0x670] ss:$48 sps:$4 sm:$0xff]   ;;  %v20545_v26 = vld [vmem:[#allocation17 + $0x78] ss:$48 sps:$4 sm:$0xff]  }
 0x864   :  { %12539 = vmatprep.subr.bf16.mxu0 %v20472_v59  ;;  %12580 = vmatprep.subr.bf16.mxu1 %v20475_v56  ;;  %v20550_v59 = vld [vmem:[#allocation17 + $0x614] ss:$48 sps:$4 sm:$0xff]   ;;  %v20553_v56 = vld [vmem:[#allocation17 + $0x1c] ss:$48 sps:$4 sm:$0xff]  }
 0x867   :  { %12540 = vmatpush2.bf16.msra.mxu0 %v20470_v44  ;;  %12581 = vmatpush2.bf16.msra.mxu1 %v20473_v8  ;;  %v20548_v44 = vld [vmem:[#allocation17 + $0x610] ss:$48 sps:$4 sm:$0xff]   ;;  %v20551_v8 = vld [vmem:[#allocation17 + $0x18] ss:$48 sps:$4 sm:$0xff]  }
 0x868   :  { %12541 = vmatprep.subr.bf16.mxu0 %v20478_v1  ;;  %12582 = vmatprep.subr.bf16.mxu1 %v20481_v3  ;;  %v20556_v1 = vld [vmem:[#allocation17 + $0xbb4] ss:$48 sps:$4 sm:$0xff]   ;;  %v20559_v3 = vld [vmem:[#allocation17 + $0x5bc] ss:$48 sps:$4 sm:$0xff]  }
 0x86b   :  { %12542 = vmatpush2.bf16.msra.mxu0 %v20476_v6  ;;  %12583 = vmatpush2.bf16.msra.mxu1 %v20479_v13  ;;  %v20554_v6 = vld [vmem:[#allocation17 + $0xbb0] ss:$48 sps:$4 sm:$0xff]   ;;  %v20557_v13 = vld [vmem:[#allocation17 + $0x5b8] ss:$48 sps:$4 sm:$0xff]  }
 0x86c   :  { %12543 = vmatprep.subr.bf16.mxu0 %v20484_v20  ;;  %12584 = vmatprep.subr.bf16.mxu1 %v20487_v61  ;;  %v20562_v20 = vld [vmem:[#allocation17 + $0xb54] ss:$48 sps:$4 sm:$0xff]   ;;  %v20565_v61 = vld [vmem:[#allocation17 + $0x55c] ss:$48 sps:$4 sm:$0xff]  }
 0x86f   :  { %12544 = vmatpush2.bf16.msra.mxu0 %v20482_v7  ;;  %12585 = vmatpush2.bf16.msra.mxu1 %v20485_v12  ;;  %v20560_v7 = vld [vmem:[#allocation17 + $0xb50] ss:$48 sps:$4 sm:$0xff]   ;;  %v20563_v12 = vld [vmem:[#allocation17 + $0x558] ss:$48 sps:$4 sm:$0xff]  }
 0x870   :  { %12545 = vmatprep.subr.bf16.mxu0 %v20490_v17  ;;  %12586 = vmatprep.subr.bf16.mxu1 %v20493_v57  ;;  %v20568_v17 = vld [vmem:[#allocation17 + $0xaf4] ss:$48 sps:$4 sm:$0xff]   ;;  %v20571_v57 = vld [vmem:[#allocation17 + $0x4fc] ss:$48 sps:$4 sm:$0xff]  }
 0x873   :  { %12546 = vmatpush2.bf16.msra.mxu0 %v20488_v45  ;;  %12587 = vmatpush2.bf16.msra.mxu1 %v20491_v21  ;;  %v20566_v45 = vld [vmem:[#allocation17 + $0xaf0] ss:$48 sps:$4 sm:$0xff]   ;;  %v20569_v21 = vld [vmem:[#allocation17 + $0x4f8] ss:$48 sps:$4 sm:$0xff]  }
 0x874   :  { %12547 = vmatprep.subr.bf16.mxu0 %v20496_v58  ;;  %12588 = vmatprep.subr.bf16.mxu1 %v20499_v14  ;;  %v20574_v58 = vld [vmem:[#allocation17 + $0xa94] ss:$48 sps:$4 sm:$0xff]   ;;  %v20577_v14 = vld [vmem:[#allocation17 + $0x49c] ss:$48 sps:$4 sm:$0xff]  }
 0x877   :  { %12548 = vmatpush2.bf16.msra.mxu0 %v20494_v29  ;;  %12589 = vmatpush2.bf16.msra.mxu1 %v20497_v30  ;;  %v20572_v29 = vld [vmem:[#allocation17 + $0xa90] ss:$48 sps:$4 sm:$0xff]   ;;  %v20575_v30 = vld [vmem:[#allocation17 + $0x498] ss:$48 sps:$4 sm:$0xff]  }
 0x878   :  { %12549 = vmatprep.subr.bf16.mxu0 %v20502_v32  ;;  %12590 = vmatprep.subr.bf16.mxu1 %v20505_v43  ;;  %v20580_v32 = vld [vmem:[#allocation17 + $0xa34] ss:$48 sps:$4 sm:$0xff]   ;;  %v20583_v43 = vld [vmem:[#allocation17 + $0x43c] ss:$48 sps:$4 sm:$0xff]  }
 0x87b   :  { %12550 = vmatpush2.bf16.msra.mxu0 %v20500_v41  ;;  %12591 = vmatpush2.bf16.msra.mxu1 %v20503_v36  ;;  %v20578_v41 = vld [vmem:[#allocation17 + $0xa30] ss:$48 sps:$4 sm:$0xff]   ;;  %v20581_v36 = vld [vmem:[#allocation17 + $0x438] ss:$48 sps:$4 sm:$0xff]  }
 0x87c   :  { %12601 = vmatprep.subr.bf16.mxu0 %v20508_v33  ;;  %12642 = vmatprep.subr.bf16.mxu1 %v20511_v11  ;;  %v20586_v33 = vld [vmem:[#allocation17 + $0x9d4] ss:$48 sps:$4 sm:$0xff]   ;;  %v20589_v11 = vld [vmem:[#allocation17 + $0x3dc] ss:$48 sps:$4 sm:$0xff]  }
 0x87e   :  { %12552 = vmatmul.mubr.bf16.vlgmr.msra.gmra.mxu0 %v22597_v25  ;;  %12593 = vmatmul.mubr.bf16.vlgmr.msra.gmra.mxu1 %v22566_v15 }
 0x87f   :  { %12602 = vmatpush1.bf16.msra.mxu0 %v20506_v54  ;;  %12633 = vmatprep.mubr.bf16.mxu0 %v22592_v2  ;;  %v20584_v54 = vld [vmem:[#allocation17 + $0x9d0] ss:$48 sps:$4 sm:$0xff]  }
 0x880   :  { %12643 = vmatpush1.bf16.msra.mxu1 %v20509_v0  ;;  %12674 = vmatprep.mubr.bf16.mxu1 %v22561_v19  ;;  %v20587_v0 = vld [vmem:[#allocation17 + $0x3d8] ss:$48 sps:$4 sm:$0xff]  }
 0x881   :  { %12603 = vmatprep.subr.bf16.mxu0 %v20514_v34  ;;  %12644 = vmatprep.subr.bf16.mxu1 %v20517_v49  ;;  %v20592_v34 = vld [vmem:[#allocation17 + $0x974] ss:$48 sps:$4 sm:$0xff]   ;;  %v20595_v49 = vld [vmem:[#allocation17 + $0x37c] ss:$48 sps:$4 sm:$0xff]  }
 0x883   :  { %12604 = vmatpush1.bf16.msra.mxu0 %v20512_v37  ;;  %v20590_v37 = vld [vmem:[#allocation17 + $0x970] ss:$48 sps:$4 sm:$0xff]  }
 0x884   :  { %12645 = vmatpush1.bf16.msra.mxu1 %v20515_v62  ;;  %12605 = vmatprep.subr.bf16.mxu0 %v20520_v55  ;;  %v20593_v62 = vld [vmem:[#allocation17 + $0x378] ss:$48 sps:$4 sm:$0xff]   ;;  %v20598_v55 = vld [vmem:[#allocation17 + $0x914] ss:$48 sps:$4 sm:$0xff]  }
 0x885   :  { %12646 = vmatprep.subr.bf16.mxu1 %v20523_v9  ;;  %v20601_v9 = vld [vmem:[#allocation17 + $0x31c] ss:$48 sps:$4 sm:$0xff]  }
 0x887   :  { %12606 = vmatpush1.bf16.msra.mxu0 %v20518_v40  ;;  %v20596_v40 = vld [vmem:[#allocation17 + $0x910] ss:$48 sps:$4 sm:$0xff]  }
 0x888   :  { %12647 = vmatpush1.bf16.msra.mxu1 %v20521_v38  ;;  %12607 = vmatprep.subr.bf16.mxu0 %v20526_v23  ;;  %v20599_v38 = vld [vmem:[#allocation17 + $0x318] ss:$48 sps:$4 sm:$0xff]   ;;  %v20604_v23 = vld [vmem:[#allocation17 + $0x8bc] ss:$48 sps:$4 sm:$0xff]  }
 0x889   :  { %12648 = vmatprep.subr.bf16.mxu1 %v20529_v53  ;;  %v20607_v53 = vld [vmem:[#allocation17 + $0x2c4] ss:$48 sps:$4 sm:$0xff]  }
 0x88b   :  { %12608 = vmatpush1.bf16.msra.mxu0 %v20524_v39  ;;  %v20602_v39 = vld [vmem:[#allocation17 + $0x8b8] ss:$48 sps:$4 sm:$0xff]  }
 0x88c   :  { %12649 = vmatpush1.bf16.msra.mxu1 %v20527_v42  ;;  %12609 = vmatprep.subr.bf16.mxu0 %v20532_v63  ;;  %v20605_v42 = vld [vmem:[#allocation17 + $0x2c0] ss:$48 sps:$4 sm:$0xff]   ;;  %v20610_v63 = vld [vmem:[#allocation17 + $0x85c] ss:$48 sps:$4 sm:$0xff]  }
 0x88d   :  { %12650 = vmatprep.subr.bf16.mxu1 %v20535_v52 }
 0x88f   :  { %12610 = vmatpush1.bf16.msra.mxu0 %v20530_v18  ;;  %v20613_v18 = vld [vmem:[#allocation17 + $0x264] ss:$48 sps:$4 sm:$0xff]  }
 0x890   :  { %12651 = vmatpush1.bf16.msra.mxu1 %v20533_v46  ;;  %12611 = vmatprep.subr.bf16.mxu0 %v20538_v60  ;;  %v20608_v46 = vld [vmem:[#allocation17 + $0x858] ss:$48 sps:$4 sm:$0xff]  }
 0x891   :  { %12652 = vmatprep.subr.bf16.mxu1 %v20541_v50  ;;  %v20611_v50 = vld [vmem:[#allocation17 + $0x260] ss:$48 sps:$4 sm:$0xff]  }
 0x893   :  { %12612 = vmatpush1.bf16.msra.mxu0 %v20536_v4  ;;  %v20616_v4 = vld [vmem:[#allocation17 + $0x7fc] ss:$48 sps:$4 sm:$0xff]  }
 0x894   :  { %12653 = vmatpush1.bf16.msra.mxu1 %v20539_v10  ;;  %12613 = vmatprep.subr.bf16.mxu0 %v20544_v24  ;;  %v20619_v10 = vld [vmem:[#allocation17 + $0x204] ss:$48 sps:$4 sm:$0xff]  }
 0x895   :  { %12654 = vmatprep.subr.bf16.mxu1 %v20547_v28  ;;  %v20614_v28 = vld [vmem:[#allocation17 + $0x7f8] ss:$48 sps:$4 sm:$0xff]  }
 0x897   :  { %12614 = vmatpush1.bf16.msra.mxu0 %v20542_v22 }
 0x898   :  { %12655 = vmatpush1.bf16.msra.mxu1 %v20545_v26  ;;  %12615 = vmatprep.subr.bf16.mxu0 %v20550_v59  ;;  %v20617_v26 = vld [vmem:[#allocation17 + $0x200] ss:$48 sps:$4 sm:$0xff]   ;;  %v20622_v59 = vld [vmem:[#allocation17 + $0x79c] ss:$48 sps:$4 sm:$0xff]  }
 0x899   :  { %12656 = vmatprep.subr.bf16.mxu1 %v20553_v56  ;;  %v20625_v56 = vld [vmem:[#allocation17 + $0x1a4] ss:$48 sps:$4 sm:$0xff]  }
 0x89b   :  { %12616 = vmatpush1.bf16.msra.mxu0 %v20548_v44  ;;  %v20620_v44 = vld [vmem:[#allocation17 + $0x798] ss:$48 sps:$4 sm:$0xff]  }
 0x89c   :  { %12657 = vmatpush1.bf16.msra.mxu1 %v20551_v8  ;;  %12617 = vmatprep.subr.bf16.mxu0 %v20556_v1  ;;  %v20623_v8 = vld [vmem:[#allocation17 + $0x1a0] ss:$48 sps:$4 sm:$0xff]   ;;  %v20628_v1 = vld [vmem:[#allocation17 + $0x73c] ss:$48 sps:$4 sm:$0xff]  }
 0x89d   :  { %12658 = vmatprep.subr.bf16.mxu1 %v20559_v3  ;;  %v20631_v3 = vld [vmem:[#allocation17 + $0x144] ss:$48 sps:$4 sm:$0xff]  }
 0x89f   :  { %12618 = vmatpush2.bf16.msra.mxu0 %v20554_v6  ;;  %v20626_v6 = vld [vmem:[#allocation17 + $0x738] ss:$48 sps:$4 sm:$0xff]  }
 0x8a0   :  { %12659 = vmatpush2.bf16.msra.mxu1 %v20557_v13  ;;  %12619 = vmatprep.subr.bf16.mxu0 %v20562_v20  ;;  %v20629_v13 = vld [vmem:[#allocation17 + $0x140] ss:$48 sps:$4 sm:$0xff]   ;;  %v20634_v20 = vld [vmem:[#allocation17 + $0x6dc] ss:$48 sps:$4 sm:$0xff]  }
 0x8a1   :  { %12660 = vmatprep.subr.bf16.mxu1 %v20565_v61  ;;  %v20637_v61 = vld [vmem:[#allocation17 + $0xe4] ss:$48 sps:$4 sm:$0xff]  }
 0x8a3   :  { %12620 = vmatpush2.bf16.msra.mxu0 %v20560_v7  ;;  %v20632_v7 = vld [vmem:[#allocation17 + $0x6d8] ss:$48 sps:$4 sm:$0xff]  }
 0x8a4   :  { %12661 = vmatpush2.bf16.msra.mxu1 %v20563_v12  ;;  %12621 = vmatprep.subr.bf16.mxu0 %v20568_v17  ;;  %v20635_v12 = vld [vmem:[#allocation17 + $0xe0] ss:$48 sps:$4 sm:$0xff]   ;;  %v20640_v17 = vld [vmem:[#allocation17 + $0x67c] ss:$48 sps:$4 sm:$0xff]  }
 0x8a5   :  { %12662 = vmatprep.subr.bf16.mxu1 %v20571_v57  ;;  %v20643_v57 = vld [vmem:[#allocation17 + $0x84] ss:$48 sps:$4 sm:$0xff]  }
 0x8a7   :  { %12622 = vmatpush2.bf16.msra.mxu0 %v20566_v45  ;;  %v20638_v45 = vld [vmem:[#allocation17 + $0x678] ss:$48 sps:$4 sm:$0xff]  }
 0x8a8   :  { %12663 = vmatpush2.bf16.msra.mxu1 %v20569_v21  ;;  %12623 = vmatprep.subr.bf16.mxu0 %v20574_v58  ;;  %v20641_v21 = vld [vmem:[#allocation17 + $0x80] ss:$48 sps:$4 sm:$0xff]   ;;  %v20646_v58 = vld [vmem:[#allocation17 + $0x61c] ss:$48 sps:$4 sm:$0xff]  }
 0x8a9   :  { %12664 = vmatprep.subr.bf16.mxu1 %v20577_v14  ;;  %v20649_v14 = vld [vmem:[#allocation17 + $0x24] ss:$48 sps:$4 sm:$0xff]  }
 0x8ab   :  { %12624 = vmatpush2.bf16.msra.mxu0 %v20572_v29  ;;  %v20644_v29 = vld [vmem:[#allocation17 + $0x618] ss:$48 sps:$4 sm:$0xff]  }
 0x8ac   :  { %12665 = vmatpush2.bf16.msra.mxu1 %v20575_v30  ;;  %12625 = vmatprep.subr.bf16.mxu0 %v20580_v32  ;;  %v20647_v30 = vld [vmem:[#allocation17 + $0x20] ss:$48 sps:$4 sm:$0xff]   ;;  %v20652_v32 = vld [vmem:[#allocation17 + $0xbbc] ss:$48 sps:$4 sm:$0xff]  }
 0x8ad   :  { %12666 = vmatprep.subr.bf16.mxu1 %v20583_v43  ;;  %v20655_v43 = vld [vmem:[#allocation17 + $0x5c4] ss:$48 sps:$4 sm:$0xff]  }
 0x8af   :  { %12626 = vmatpush2.bf16.msra.mxu0 %v20578_v41  ;;  %v20650_v41 = vld [vmem:[#allocation17 + $0xbb8] ss:$48 sps:$4 sm:$0xff]  }
 0x8b0   :  { %12667 = vmatpush2.bf16.msra.mxu1 %v20581_v36  ;;  %12627 = vmatprep.subr.bf16.mxu0 %v20586_v33  ;;  %v20653_v36 = vld [vmem:[#allocation17 + $0x5c0] ss:$48 sps:$4 sm:$0xff]   ;;  %v20658_v33 = vld [vmem:[#allocation17 + $0xb5c] ss:$48 sps:$4 sm:$0xff]  }
 0x8b1   :  { %12668 = vmatprep.subr.bf16.mxu1 %v20589_v11  ;;  %v20661_v11 = vld [vmem:[#allocation17 + $0x564] ss:$48 sps:$4 sm:$0xff]  }
 0x8b3   :  { %12628 = vmatpush2.bf16.msra.mxu0 %v20584_v54  ;;  %v20656_v54 = vld [vmem:[#allocation17 + $0xb58] ss:$48 sps:$4 sm:$0xff]  }
 0x8b4   :  { %12669 = vmatpush2.bf16.msra.mxu1 %v20587_v0  ;;  %12629 = vmatprep.subr.bf16.mxu0 %v20592_v34  ;;  %v20659_v0 = vld [vmem:[#allocation17 + $0x560] ss:$48 sps:$4 sm:$0xff]   ;;  %v20664_v34 = vld [vmem:[#allocation17 + $0xafc] ss:$48 sps:$4 sm:$0xff]  }
 0x8b5   :  { %12670 = vmatprep.subr.bf16.mxu1 %v20595_v49  ;;  %v20667_v49 = vld [vmem:[#allocation17 + $0x504] ss:$48 sps:$4 sm:$0xff]  }
 0x8b7   :  { %12630 = vmatpush2.bf16.msra.mxu0 %v20590_v37  ;;  %v20662_v37 = vld [vmem:[#allocation17 + $0xaf8] ss:$48 sps:$4 sm:$0xff]  }
 0x8b8   :  { %12671 = vmatpush2.bf16.msra.mxu1 %v20593_v62  ;;  %12631 = vmatprep.subr.bf16.mxu0 %v20598_v55  ;;  %v20665_v62 = vld [vmem:[#allocation17 + $0x500] ss:$48 sps:$4 sm:$0xff]   ;;  %v20670_v55 = vld [vmem:[#allocation17 + $0xa9c] ss:$48 sps:$4 sm:$0xff]  }
 0x8b9   :  { %12672 = vmatprep.subr.bf16.mxu1 %v20601_v9  ;;  %v20673_v9 = vld [vmem:[#allocation17 + $0x4a4] ss:$48 sps:$4 sm:$0xff]  }
 0x8bb   :  { %12632 = vmatpush2.bf16.msra.mxu0 %v20596_v40  ;;  %v20668_v40 = vld [vmem:[#allocation17 + $0xa98] ss:$48 sps:$4 sm:$0xff]  }
 0x8bc   :  { %12673 = vmatpush2.bf16.msra.mxu1 %v20599_v38  ;;  %12683 = vmatprep.subr.bf16.mxu0 %v20604_v23  ;;  %v20671_v38 = vld [vmem:[#allocation17 + $0x4a0] ss:$48 sps:$4 sm:$0xff]   ;;  %v20676_v23 = vld [vmem:[#allocation17 + $0xa3c] ss:$48 sps:$4 sm:$0xff]  }
 0x8bd   :  { %12724 = vmatprep.subr.bf16.mxu1 %v20607_v53  ;;  %v20679_v53 = vld [vmem:[#allocation17 + $0x444] ss:$48 sps:$4 sm:$0xff]  }
 0x8be   :  { %12634 = vmatmul.mubr.bf16.vlgmr.msra.gmra.mxu0 %v22597_v25  ;;  %v22609_v52 = vpop.f32.mrf.mxu1 }
 0x8bf   :  { %12675 = vmatmul.mubr.bf16.vlgmr.msra.gmra.mxu1 %v22566_v15  ;;  %12684 = vmatpush1.bf16.msra.mxu0 %v20602_v39  ;;  %v20674_v39 = vld [vmem:[#allocation17 + $0xa38] ss:$48 sps:$4 sm:$0xff]  }
 0x8c0   :  { %12715 = vmatprep.mubr.bf16.mxu0 %v22592_v2  ;;  %12725 = vmatpush1.bf16.msra.mxu1 %v20605_v42  ;;  %v22613_v60 = vpop.f32.mrf.mxu1  ;;  %v20677_v42 = vld [vmem:[#allocation17 + $0x440] ss:$48 sps:$4 sm:$0xff]  }
 0x8c1   :  { %12756 = vmatprep.mubr.bf16.mxu1 %v22561_v19  ;;  %12685 = vmatprep.subr.bf16.mxu0 %v20610_v63  ;;  %v20682_v63 = vld [vmem:[#allocation17 + $0x9dc] ss:$48 sps:$4 sm:$0xff]  }
 0x8c2   :  { %12726 = vmatprep.subr.bf16.mxu1 %v20613_v18  ;;  %v12434_v24 = vpop.f32.mrf.mxu1  ;;  %v20685_v18 = vld [vmem:[#allocation17 + $0x3e4] ss:$48 sps:$4 sm:$0xff]  }
 0x8c3   :  { %12686 = vmatpush1.bf16.msra.mxu0 %v20608_v46  ;;  %v20680_v46 = vld [vmem:[#allocation17 + $0x9d8] ss:$48 sps:$4 sm:$0xff]  }
 0x8c4   :  { %12727 = vmatpush1.bf16.msra.mxu1 %v20611_v50  ;;  %v12435_v22 = vpop.f32.mrf.mxu1  ;;  %12687 = vmatprep.subr.bf16.mxu0 %v20616_v4  ;;  %v20683_v50 = vld [vmem:[#allocation17 + $0x3e0] ss:$48 sps:$4 sm:$0xff]   ;;  %v20688_v4 = vld [vmem:[#allocation17 + $0x97c] ss:$48 sps:$4 sm:$0xff]   ;;  %v20686_v24 = vld [vmem:[#allocation17 + $0x978] ss:$48 sps:$4 sm:$0xff]  }
 0x8c5   :  { %12728 = vmatprep.subr.bf16.mxu1 %v20619_v10  ;;  %v20691_v10 = vld [vmem:[#allocation17 + $0x384] ss:$48 sps:$4 sm:$0xff]   ;;  %v20694_v22 = vld [vmem:[#allocation17 + $0x91c] ss:$48 sps:$4 sm:$0xff]  }
 0x8c7   :  { %12688 = vmatpush1.bf16.msra.mxu0 %v20614_v28  ;;  %v20689_v28 = vld [vmem:[#allocation17 + $0x380] ss:$48 sps:$4 sm:$0xff]  }
 0x8c8   :  { %12729 = vmatpush1.bf16.msra.mxu1 %v20617_v26  ;;  %12689 = vmatprep.subr.bf16.mxu0 %v20622_v59  ;;  %v20697_v26 = vld [vmem:[#allocation17 + $0x324] ss:$48 sps:$4 sm:$0xff]  }
 0x8c9   :  { %12730 = vmatprep.subr.bf16.mxu1 %v20625_v56  ;;  %v22616_v59 = vld [vmem:[#allocation20] sm:$0xff]  ;;  %v20692_v56 = vld [vmem:[#allocation17 + $0x918] ss:$48 sps:$4 sm:$0xff]  }
 0x8cb   :  { %12690 = vmatpush1.bf16.msra.mxu0 %v20620_v44  ;;  %v20695_v44 = vld [vmem:[#allocation17 + $0x320] ss:$48 sps:$4 sm:$0xff]  }
 0x8cc   :  { %12731 = vmatpush1.bf16.msra.mxu1 %v20623_v8  ;;  %12691 = vmatprep.subr.bf16.mxu0 %v20628_v1  ;;  %v20700_v8 = vld [vmem:[#allocation17 + $0x8c4] ss:$48 sps:$4 sm:$0xff]   ;;  %v10419_v1 = vrot.slane %v22616_v59, %v22191_v31 }
 0x8cd   :  { %12732 = vmatprep.subr.bf16.mxu1 %v20631_v3  ;;  %v20703_v3 = vld [vmem:[#allocation17 + $0x2cc] ss:$48 sps:$4 sm:$0xff]  }
 0x8cf   :  { %12692 = vmatpush1.bf16.msra.mxu0 %v20626_v6  ;;  %v10423_v6 = vrot.slane %v22616_v59, %v22194_v35 }
 0x8d0   :  { %12733 = vmatpush1.bf16.msra.mxu1 %v20629_v13  ;;  %12693 = vmatprep.subr.bf16.mxu0 %v20634_v20  ;;  %v20698_v13 = vld [vmem:[#allocation17 + $0x8c0] ss:$48 sps:$4 sm:$0xff]   ;;  %v20701_v20 = vld [vmem:[#allocation17 + $0x2c8] ss:$48 sps:$4 sm:$0xff]  }
 0x8d1   :  { %12734 = vmatprep.subr.bf16.mxu1 %v20637_v61  ;;  %v12431_v61 = vadd.f32 %v22609_v52, %v10419_v1  ;;  %v20755_v1 = vld [vmem:[#allocation17 + $0x568] ss:$48 sps:$4 sm:$0xff]  }
 0x8d3   :  { %12694 = vmatpush1.bf16.msra.mxu0 %v20632_v7  ;;  %v20706_v7 = vld [vmem:[#allocation17 + $0x864] ss:$48 sps:$4 sm:$0xff]  }
 0x8d4   :  { %12735 = vmatpush1.bf16.msra.mxu1 %v20635_v12  ;;  %12695 = vmatprep.subr.bf16.mxu0 %v20640_v17 }
 0x8d5   :  { %12736 = vmatprep.subr.bf16.mxu1 %v20643_v57  ;;  %v20709_v57 = vld [vmem:[#allocation17 + $0x26c] ss:$48 sps:$4 sm:$0xff]  }
 0x8d7   :  { %12696 = vmatpush1.bf16.msra.mxu0 %v20638_v45  ;;  %v12433_v45 = vadd.f32 %v22613_v60, %v10423_v6  ;;  %v20715_v60 = vld [vmem:[#allocation17 + $0x20c] ss:$48 sps:$4 sm:$0xff]  }
 0x8d8   :  { %12737 = vmatpush1.bf16.msra.mxu1 %v20641_v21  ;;  %12697 = vmatprep.subr.bf16.mxu0 %v20646_v58  ;;  %v20704_v58 = vld [vmem:[#allocation17 + $0x860] ss:$48 sps:$4 sm:$0xff]   ;;  %v20763_v6 = vld [vmem:[#allocation17 + $0x50c] ss:$48 sps:$4 sm:$0xff]  }
 0x8d9   :  { %12738 = vmatprep.subr.bf16.mxu1 %v20649_v14 }
 0x8db   :  { %12698 = vmatpush1.bf16.msra.mxu0 %v20644_v29  ;;  %v20707_v29 = vld [vmem:[#allocation17 + $0x268] ss:$48 sps:$4 sm:$0xff]  }
 0x8dc   :  { %12739 = vmatpush1.bf16.msra.mxu1 %v20647_v30  ;;  %12699 = vmatprep.subr.bf16.mxu0 %v20652_v32  ;;  %v20712_v30 = vld [vmem:[#allocation17 + $0x804] ss:$48 sps:$4 sm:$0xff]  }
 0x8dd   :  { %12740 = vmatprep.subr.bf16.mxu1 %v20655_v43 }
 0x8df   :  { %12700 = vmatpush2.bf16.msra.mxu0 %v20650_v41 }
 0x8e0   :  { %12741 = vmatpush2.bf16.msra.mxu1 %v20653_v36  ;;  %12701 = vmatprep.subr.bf16.mxu0 %v20658_v33  ;;  %v20710_v36 = vld [vmem:[#allocation17 + $0x800] ss:$48 sps:$4 sm:$0xff]  }
 0x8e1   :  { %12742 = vmatprep.subr.bf16.mxu1 %v20661_v11 }
 0x8e3   :  { %12702 = vmatpush2.bf16.msra.mxu0 %v20656_v54  ;;  %v20713_v54 = vld [vmem:[#allocation17 + $0x208] ss:$48 sps:$4 sm:$0xff]  }
 0x8e4   :  { %12743 = vmatpush2.bf16.msra.mxu1 %v20659_v0  ;;  %12703 = vmatprep.subr.bf16.mxu0 %v20664_v34  ;;  %v20718_v0 = vld [vmem:[#allocation17 + $0x7a4] ss:$48 sps:$4 sm:$0xff]   ;;  %v20721_v34 = vld [vmem:[#allocation17 + $0x1ac] ss:$48 sps:$4 sm:$0xff]  }
 0x8e5   :  { %12744 = vmatprep.subr.bf16.mxu1 %v20667_v49  ;;  %v20716_v49 = vld [vmem:[#allocation17 + $0x7a0] ss:$48 sps:$4 sm:$0xff]  }
 0x8e7   :  { %12704 = vmatpush2.bf16.msra.mxu0 %v20662_v37  ;;  %v20724_v37 = vld [vmem:[#allocation17 + $0x744] ss:$48 sps:$4 sm:$0xff]  }
 0x8e8   :  { %12745 = vmatpush2.bf16.msra.mxu1 %v20665_v62  ;;  %12705 = vmatprep.subr.bf16.mxu0 %v20670_v55  ;;  %v20727_v62 = vld [vmem:[#allocation17 + $0x14c] ss:$48 sps:$4 sm:$0xff]   ;;  %v20722_v55 = vld [vmem:[#allocation17 + $0x740] ss:$48 sps:$4 sm:$0xff]  }
 0x8e9   :  { %12746 = vmatprep.subr.bf16.mxu1 %v20673_v9  ;;  %v20725_v9 = vld [vmem:[#allocation17 + $0x148] ss:$48 sps:$4 sm:$0xff]  }
 0x8eb   :  { %12706 = vmatpush2.bf16.msra.mxu0 %v20668_v40  ;;  %v20730_v40 = vld [vmem:[#allocation17 + $0x6e4] ss:$48 sps:$4 sm:$0xff]  }
 0x8ec   :  { %12747 = vmatpush2.bf16.msra.mxu1 %v20671_v38  ;;  %12707 = vmatprep.subr.bf16.mxu0 %v20676_v23  ;;  %v20733_v38 = vld [vmem:[#allocation17 + $0xec] ss:$48 sps:$4 sm:$0xff]   ;;  %v20728_v23 = vld [vmem:[#allocation17 + $0x6e0] ss:$48 sps:$4 sm:$0xff]  }
 0x8ed   :  { %12748 = vmatprep.subr.bf16.mxu1 %v20679_v53  ;;  %v20731_v53 = vld [vmem:[#allocation17 + $0xe8] ss:$48 sps:$4 sm:$0xff]  }
 0x8ef   :  { %12708 = vmatpush2.bf16.msra.mxu0 %v20674_v39  ;;  %v20736_v39 = vld [vmem:[#allocation17 + $0x684] ss:$48 sps:$4 sm:$0xff]  }
 0x8f0   :  { %12749 = vmatpush2.bf16.msra.mxu1 %v20677_v42  ;;  %12709 = vmatprep.subr.bf16.mxu0 %v20682_v63  ;;  %v20739_v42 = vld [vmem:[#allocation17 + $0x8c] ss:$48 sps:$4 sm:$0xff]   ;;  %v20734_v63 = vld [vmem:[#allocation17 + $0x680] ss:$48 sps:$4 sm:$0xff]  }
 0x8f1   :  { %12750 = vmatprep.subr.bf16.mxu1 %v20685_v18  ;;  %v20737_v18 = vld [vmem:[#allocation17 + $0x88] ss:$48 sps:$4 sm:$0xff]  }
 0x8f3   :  { %12710 = vmatpush2.bf16.msra.mxu0 %v20680_v46  ;;  %v20742_v46 = vld [vmem:[#allocation17 + $0x624] ss:$48 sps:$4 sm:$0xff]  }
 0x8f4   :  { %12751 = vmatpush2.bf16.msra.mxu1 %v20683_v50  ;;  %12711 = vmatprep.subr.bf16.mxu0 %v20688_v4  ;;  %v20745_v50 = vld [vmem:[#allocation17 + $0x2c] ss:$48 sps:$4 sm:$0xff]   ;;  %v20740_v4 = vld [vmem:[#allocation17 + $0x620] ss:$48 sps:$4 sm:$0xff]  }
 0x8f5   :  { %12752 = vmatprep.subr.bf16.mxu1 %v20691_v10  ;;  %v20743_v10 = vld [vmem:[#allocation17 + $0x28] ss:$48 sps:$4 sm:$0xff]  }
 0x8f7   :  { %12712 = vmatpush2.bf16.msra.mxu0 %v20686_v24  ;;  %v20748_v24 = vld [vmem:[#allocation17 + $0xbc4] ss:$48 sps:$4 sm:$0xff]  }
 0x8f8   :  { %12753 = vmatpush2.bf16.msra.mxu1 %v20689_v28  ;;  %12713 = vmatprep.subr.bf16.mxu0 %v20694_v22  ;;  %v20751_v28 = vld [vmem:[#allocation17 + $0x5cc] ss:$48 sps:$4 sm:$0xff]   ;;  %v20746_v22 = vld [vmem:[#allocation17 + $0xbc0] ss:$48 sps:$4 sm:$0xff]  }
 0x8f9   :  { %12754 = vmatprep.subr.bf16.mxu1 %v20697_v26  ;;  %v20749_v26 = vld [vmem:[#allocation17 + $0x5c8] ss:$48 sps:$4 sm:$0xff]  }
 0x8fb   :  { %12714 = vmatpush2.bf16.msra.mxu0 %v20692_v56  ;;  %v20754_v56 = vld [vmem:[#allocation17 + $0xb64] ss:$48 sps:$4 sm:$0xff]  }
 0x8fc   :  { %12755 = vmatpush2.bf16.msra.mxu1 %v20695_v44  ;;  %12765 = vmatprep.subr.bf16.mxu0 %v20700_v8  ;;  %v20757_v44 = vld [vmem:[#allocation17 + $0x56c] ss:$48 sps:$4 sm:$0xff]   ;;  %v20752_v8 = vld [vmem:[#allocation17 + $0xb60] ss:$48 sps:$4 sm:$0xff]  }
 0x8fd   :  { %12806 = vmatprep.subr.bf16.mxu1 %v20703_v3  ;;  %v20760_v3 = vld [vmem:[#allocation17 + $0xb04] ss:$48 sps:$4 sm:$0xff]  }
 0x8fe   :  { %v22623_v12 = vpop.f32.mrf.mxu1  ;;  %12716 = vmatmul.mubr.bf16.vlgmr.msra.gmra.mxu0 %v22597_v25  ;;  %v12471_v17 = vpop.f32.mrf.mxu0 }
 0x8ff   :  { %12757 = vmatmul.mubr.bf16.vlgmr.msra.gmra.mxu1 %v22566_v15  ;;  %v22628_v21 = vadd.f32 %v12471_v17, %v12431_v61  ;;  %12766 = vmatpush1.bf16.msra.mxu0 %v20698_v13  ;;  %v20758_v13 = vld [vmem:[#allocation17 + $0xb00] ss:$48 sps:$4 sm:$0xff]   ;;  %v20766_v61 = vld [vmem:[#allocation17 + $0xaa4] ss:$48 sps:$4 sm:$0xff]  }
 0x900   :  { %12797 = vmatprep.mubr.bf16.mxu0 %v22592_v2  ;;  %12807 = vmatpush1.bf16.msra.mxu1 %v20701_v20  ;;  %v22631_v52 = vpop.f32.mrf.mxu1  ;;  %v12473_v14 = vpop.f32.mrf.mxu0  ;;  %v20761_v20 = vld [vmem:[#allocation17 + $0x508] ss:$48 sps:$4 sm:$0xff]   ;;  %v20764_v17 = vld [vmem:[#allocation17 + $0xaa0] ss:$48 sps:$4 sm:$0xff]  }
 0x901   :  { %12838 = vmatprep.mubr.bf16.mxu1 %v22561_v19  ;;  %v22634_v32 = vadd.f32 %v12473_v14, %v12433_v45  ;;  %12767 = vmatprep.subr.bf16.mxu0 %v20706_v7  ;;  %v20719_v19 = vld [vmem:[#allocation17 + $0x1a8] ss:$48 sps:$4 sm:$0xff]   ;;  %v20769_v7 = vld [vmem:[#allocation17 + $0x4ac] ss:$48 sps:$4 sm:$0xff]   ;;  %v20772_v45 = vld [vmem:[#allocation17 + $0xa44] ss:$48 sps:$4 sm:$0xff]  }
 0x902   :  { %v12516_v43 = vpop.f32.mrf.mxu1  ;;  %12808 = vmatprep.subr.bf16.mxu1 %v20709_v57  ;;  %v12475_v41 = vpop.f32.mrf.mxu0  ;;  %v20767_v57 = vld [vmem:[#allocation17 + $0x4a8] ss:$48 sps:$4 sm:$0xff]   ;;  %v20770_v14 = vld [vmem:[#allocation17 + $0xa40] ss:$48 sps:$4 sm:$0xff]  }
 0x903   :  { %12768 = vmatpush1.bf16.msra.mxu0 %v20704_v58  ;;  %v20775_v58 = vld [vmem:[#allocation17 + $0x44c] ss:$48 sps:$4 sm:$0xff]   ;;  %v20776_v43 = vld [vmem:[#allocation17 + $0x9e0] ss:$48 sps:$4 sm:$0xff]   ;;  %v20779_v41 = vld [vmem:[#allocation17 + $0x3e8] ss:$48 sps:$4 sm:$0xff]  }
 0x904   :  { %12809 = vmatpush1.bf16.msra.mxu1 %v20707_v29  ;;  %v12517_v33 = vpop.f32.mrf.mxu1  ;;  %v12476_v11 = vpop.f32.mrf.mxu0  ;;  %12769 = vmatprep.subr.bf16.mxu0 %v20712_v30  ;;  %v20773_v29 = vld [vmem:[#allocation17 + $0x448] ss:$48 sps:$4 sm:$0xff]   ;;  %v20778_v30 = vld [vmem:[#allocation17 + $0x9e4] ss:$48 sps:$4 sm:$0xff]  }
 0x905   :  { %12810 = vmatprep.subr.bf16.mxu1 %v20715_v60  ;;  %v20781_v60 = vld [vmem:[#allocation17 + $0x3ec] ss:$48 sps:$4 sm:$0xff]   ;;  %v20782_v11 = vld [vmem:[#allocation17 + $0x980] ss:$48 sps:$4 sm:$0xff]  }
 0x906   :  { %v20787_v33 = vld [vmem:[#allocation17 + $0x38c] ss:$48 sps:$4 sm:$0xff]  }
 0x907   :  { %12770 = vmatpush1.bf16.msra.mxu0 %v20710_v36  ;;  %v20784_v36 = vld [vmem:[#allocation17 + $0x984] ss:$48 sps:$4 sm:$0xff]  }
 0x908   :  { %12811 = vmatpush1.bf16.msra.mxu1 %v20713_v54  ;;  %12771 = vmatprep.subr.bf16.mxu0 %v20718_v0  ;;  %v20785_v54 = vld [vmem:[#allocation17 + $0x388] ss:$48 sps:$4 sm:$0xff]   ;;  %v20790_v0 = vld [vmem:[#allocation17 + $0x924] ss:$48 sps:$4 sm:$0xff]  }
 0x909   :  { %12812 = vmatprep.subr.bf16.mxu1 %v20721_v34  ;;  %v20793_v34 = vld [vmem:[#allocation17 + $0x32c] ss:$48 sps:$4 sm:$0xff]  }
 0x90b   :  { %12772 = vmatpush1.bf16.msra.mxu0 %v20716_v49  ;;  %v20788_v49 = vld [vmem:[#allocation17 + $0x920] ss:$48 sps:$4 sm:$0xff]  }
 0x90c   :  { %12813 = vmatpush1.bf16.msra.mxu1 %v20719_v19  ;;  %12773 = vmatprep.subr.bf16.mxu0 %v20724_v37  ;;  %v20791_v19 = vld [vmem:[#allocation17 + $0x328] ss:$48 sps:$4 sm:$0xff]   ;;  %v20796_v37 = vld [vmem:[#allocation17 + $0x8cc] ss:$48 sps:$4 sm:$0xff]  }
 0x90d   :  { %12814 = vmatprep.subr.bf16.mxu1 %v20727_v62  ;;  %v10427_v62 = vrot.slane %v22616_v59, %v22133_v48 }
 0x90f   :  { %12774 = vmatpush1.bf16.msra.mxu0 %v20722_v55  ;;  %v20841_v55 = vld [vmem:[#allocation19 + $0x2a4] ss:$48 sps:$4 sm:$0xff]  }
 0x910   :  { %12815 = vmatpush1.bf16.msra.mxu1 %v20725_v9  ;;  %12775 = vmatprep.subr.bf16.mxu0 %v20730_v40  ;;  %v261_v9 = vld [vmem:[%s22886_s1 + $0x48] sm:$0xff]  ;;  %v10431_v40 = vrot.slane %v22616_v59, %v22138_v5 }
 0x911   :  { %12816 = vmatprep.subr.bf16.mxu1 %v20733_v38  ;;  %v20794_v38 = vld [vmem:[#allocation17 + $0x8c8] ss:$48 sps:$4 sm:$0xff]  }
 0x913   :  { %12776 = vmatpush1.bf16.msra.mxu0 %v20728_v23  ;;  %v20799_v23 = vld [vmem:[#allocation17 + $0x86c] ss:$48 sps:$4 sm:$0xff]  }
 0x914   :  { %12817 = vmatpush1.bf16.msra.mxu1 %v20731_v53  ;;  %12777 = vmatprep.subr.bf16.mxu0 %v20736_v39  ;;  %v12513_v53 = vadd.f32 %v22623_v12, %v10427_v62  ;;  %v20839_v39 = vld [vmem:[#allocation19 + $0x2a0] ss:$48 sps:$4 sm:$0xff]   ;;  %v20892_v62 = vld [vmem:[#allocation19 + $0x544] ss:$48 sps:$4 sm:$0xff]  }
 0x915   :  { %12818 = vmatprep.subr.bf16.mxu1 %v20739_v42  ;;  %v22644_v42 = vpack.c.bf16 %v261_v9, %v261_v9  ;;  %v20826_v9 = vld [vmem:[#allocation17 + $0xb0c] ss:$48 sps:$4 sm:$0xff]  }
 0x917   :  { %12778 = vmatpush1.bf16.msra.mxu0 %v20734_v63 }
 0x918   :  { %12819 = vmatpush1.bf16.msra.mxu1 %v20737_v18  ;;  %12779 = vmatprep.subr.bf16.mxu0 %v20742_v46  ;;  %v20847_v46 = vld [vmem:[#allocation19 + $0x244] ss:$48 sps:$4 sm:$0xff]  }
 0x919   :  { %12820 = vmatprep.subr.bf16.mxu1 %v20745_v50  ;;  %v12515_v50 = vadd.f32 %v22631_v52, %v10431_v40  ;;  %v20890_v40 = vld [vmem:[#allocation19 + $0x540] ss:$48 sps:$4 sm:$0xff]  }
 0x91b   :  { %12780 = vmatpush1.bf16.msra.mxu0 %v20740_v4 }
 0x91c   :  { %12821 = vmatpush1.bf16.msra.mxu1 %v20743_v10  ;;  %12781 = vmatprep.subr.bf16.mxu0 %v20748_v24  ;;  %v20797_v10 = vld [vmem:[#allocation17 + $0x868] ss:$48 sps:$4 sm:$0xff]  }
 0x91d   :  { %12822 = vmatprep.subr.bf16.mxu1 %v20751_v28  ;;  %v20802_v28 = vld [vmem:[#allocation17 + $0x80c] ss:$48 sps:$4 sm:$0xff]  }
 0x91f   :  { %12782 = vmatpush2.bf16.msra.mxu0 %v20746_v22 }
 0x920   :  { %12823 = vmatpush2.bf16.msra.mxu1 %v20749_v26  ;;  %12783 = vmatprep.subr.bf16.mxu0 %v20754_v56  ;;  %v20845_v26 = vld [vmem:[#allocation19 + $0x240] ss:$48 sps:$4 sm:$0xff]  }
 0x921   :  { %12824 = vmatprep.subr.bf16.mxu1 %v20757_v44  ;;  %v20850_v44 = vld [vmem:[#allocation19 + $0x1e4] ss:$48 sps:$4 sm:$0xff]  }
 0x923   :  { %12784 = vmatpush2.bf16.msra.mxu0 %v20752_v8 }
 0x924   :  { %12825 = vmatpush2.bf16.msra.mxu1 %v20755_v1  ;;  %12785 = vmatprep.subr.bf16.mxu0 %v20760_v3  ;;  %v20848_v3 = vld [vmem:[#allocation19 + $0x1e0] ss:$48 sps:$4 sm:$0xff]  }
 0x925   :  { %12826 = vmatprep.subr.bf16.mxu1 %v20763_v6  ;;  %v20856_v6 = vld [vmem:[#allocation19 + $0x184] ss:$48 sps:$4 sm:$0xff]  }
 0x927   :  { %12786 = vmatpush2.bf16.msra.mxu0 %v20758_v13  ;;  %v20803_v13 = vld [vmem:[#allocation17 + $0x7a8] ss:$48 sps:$4 sm:$0xff]  }
 0x928   :  { %12827 = vmatpush2.bf16.msra.mxu1 %v20761_v20  ;;  %12787 = vmatprep.subr.bf16.mxu0 %v20766_v61  ;;  %v20808_v20 = vld [vmem:[#allocation17 + $0x74c] ss:$48 sps:$4 sm:$0xff]   ;;  %v20854_v61 = vld [vmem:[#allocation19 + $0x180] ss:$48 sps:$4 sm:$0xff]  }
 0x929   :  { %12828 = vmatprep.subr.bf16.mxu1 %v20769_v7  ;;  %v20862_v7 = vld [vmem:[#allocation19 + $0x124] ss:$48 sps:$4 sm:$0xff]  }
 0x92b   :  { %12788 = vmatpush2.bf16.msra.mxu0 %v20764_v17  ;;  %v20806_v17 = vld [vmem:[#allocation17 + $0x748] ss:$48 sps:$4 sm:$0xff]  }
 0x92c   :  { %12829 = vmatpush2.bf16.msra.mxu1 %v20767_v57  ;;  %12789 = vmatprep.subr.bf16.mxu0 %v20772_v45  ;;  %v20811_v57 = vld [vmem:[#allocation17 + $0x6ec] ss:$48 sps:$4 sm:$0xff]   ;;  %v20860_v45 = vld [vmem:[#allocation19 + $0x120] ss:$48 sps:$4 sm:$0xff]  }
 0x92d   :  { %12830 = vmatprep.subr.bf16.mxu1 %v20775_v58  ;;  %v20868_v58 = vld [vmem:[#allocation19 + $0xc4] ss:$48 sps:$4 sm:$0xff]  }
 0x92f   :  { %12790 = vmatpush2.bf16.msra.mxu0 %v20770_v14  ;;  %v20809_v14 = vld [vmem:[#allocation17 + $0x6e8] ss:$48 sps:$4 sm:$0xff]  }
 0x930   :  { %12831 = vmatpush2.bf16.msra.mxu1 %v20773_v29  ;;  %12791 = vmatprep.subr.bf16.mxu0 %v20778_v30  ;;  %v20814_v29 = vld [vmem:[#allocation17 + $0x68c] ss:$48 sps:$4 sm:$0xff]   ;;  %v20866_v30 = vld [vmem:[#allocation19 + $0xc0] ss:$48 sps:$4 sm:$0xff]  }
 0x931   :  { %12832 = vmatprep.subr.bf16.mxu1 %v20781_v60  ;;  %v20874_v60 = vld [vmem:[#allocation19 + $0x64] ss:$48 sps:$4 sm:$0xff]  }
 0x933   :  { %12792 = vmatpush2.bf16.msra.mxu0 %v20776_v43  ;;  %v20812_v43 = vld [vmem:[#allocation17 + $0x688] ss:$48 sps:$4 sm:$0xff]  }
 0x934   :  { %12833 = vmatpush2.bf16.msra.mxu1 %v20779_v41  ;;  %12793 = vmatprep.subr.bf16.mxu0 %v20784_v36  ;;  %v20817_v41 = vld [vmem:[#allocation17 + $0x62c] ss:$48 sps:$4 sm:$0xff]   ;;  %v20872_v36 = vld [vmem:[#allocation19 + $0x60] ss:$48 sps:$4 sm:$0xff]  }
 0x935   :  { %12834 = vmatprep.subr.bf16.mxu1 %v20787_v33  ;;  %v20880_v33 = vld [vmem:[#allocation19 + $0x4] ss:$48 sps:$4 sm:$0xff]  }
 0x937   :  { %12794 = vmatpush2.bf16.msra.mxu0 %v20782_v11  ;;  %v20815_v11 = vld [vmem:[#allocation17 + $0x628] ss:$48 sps:$4 sm:$0xff]  }
 0x938   :  { %12835 = vmatpush2.bf16.msra.mxu1 %v20785_v54  ;;  %12795 = vmatprep.subr.bf16.mxu0 %v20790_v0  ;;  %v20820_v54 = vld [vmem:[#allocation17 + $0xbcc] ss:$48 sps:$4 sm:$0xff]   ;;  %v20878_v0 = vld [vmem:[#allocation19] ss:$48 sps:$4 sm:$0xff]  }
 0x939   :  { %12836 = vmatprep.subr.bf16.mxu1 %v20793_v34  ;;  %v20886_v34 = vld [vmem:[#allocation19 + $0x5a4] ss:$48 sps:$4 sm:$0xff]  }
 0x93b   :  { %12796 = vmatpush2.bf16.msra.mxu0 %v20788_v49  ;;  %v20818_v49 = vld [vmem:[#allocation17 + $0xbc8] ss:$48 sps:$4 sm:$0xff]  }
 0x93c   :  { %12837 = vmatpush2.bf16.msra.mxu1 %v20791_v19  ;;  %12847 = vmatprep.subr.bf16.mxu0 %v20796_v37  ;;  %v20823_v19 = vld [vmem:[#allocation17 + $0xb6c] ss:$48 sps:$4 sm:$0xff]   ;;  %v20884_v37 = vld [vmem:[#allocation19 + $0x5a0] ss:$48 sps:$4 sm:$0xff]  }
 0x93d   :  { %15260 = vmatprep.subr.bf16.mxu1 %v20841_v55  ;;  %v20821_v55 = vld [vmem:[#allocation17 + $0xb68] ss:$48 sps:$4 sm:$0xff]  }
 0x93e   :  { %v12553_v63 = vpop.f32.mrf.mxu0  ;;  %v22646_v18 = vpop.f32.mrf.mxu1  ;;  %12798 = vmatmul.mubr.bf16.vlgmr.msra.gmra.mxu0 %v22597_v25 }
 0x93f   :  { %v22650_v4 = vadd.f32 %v12553_v63, %v12513_v53  ;;  %12839 = vmatmul.mubr.bf16.vlgmr.msra.gmra.mxu1 %v22566_v15  ;;  %12848 = vmatpush1.bf16.msra.mxu0 %v20794_v38  ;;  %v20800_v15 = vld [vmem:[#allocation17 + $0x808] ss:$48 sps:$4 sm:$0xff]   ;;  %v20898_v38 = vld [vmem:[#allocation19 + $0x4e4] ss:$48 sps:$4 sm:$0xff]   ;;  %v20829_v53 = vld [vmem:[#allocation17 + $0xaac] ss:$48 sps:$4 sm:$0xff]  }
 0x940   :  { %12879 = vmatprep.mubr.bf16.mxu0 %v22592_v2  ;;  %v12555_v12 = vpop.f32.mrf.mxu0  ;;  %v22654_v24 = vpop.f32.mrf.mxu1  ;;  %12849 = vmatprep.subr.bf16.mxu0 %v20799_v23  ;;  %v20805_v2 = vld [vmem:[#allocation17 + $0x7ac] ss:$48 sps:$4 sm:$0xff]   ;;  %v20824_v23 = vld [vmem:[#allocation17 + $0xb08] ss:$48 sps:$4 sm:$0xff]   ;;  %v20904_v63 = vld [vmem:[#allocation19 + $0x484] ss:$48 sps:$4 sm:$0xff]  }
 0x941   :  { %v22656_v22 = vadd.f32 %v12555_v12, %v12515_v50  ;;  %15261 = vmatpush1.bf16.msra.mxu1 %v20839_v39  ;;  %15292 = vmatprep.mubr.bf16.mxu1 %v22644_v42  ;;  %v20896_v39 = vld [vmem:[#allocation19 + $0x4e0] ss:$48 sps:$4 sm:$0xff]   ;;  %v20832_v50 = vld [vmem:[#allocation17 + $0xa4c] ss:$48 sps:$4 sm:$0xff]   ;;  %v20910_v12 = vld [vmem:[#allocation19 + $0x424] ss:$48 sps:$4 sm:$0xff]  }
 0x942   :  { %v12557_v52 = vpop.f32.mrf.mxu0  ;;  %v12598_v56 = vpop.f32.mrf.mxu1  ;;  %15262 = vmatprep.subr.bf16.mxu1 %v20847_v46  ;;  %v20827_v46 = vld [vmem:[#allocation17 + $0xaa8] ss:$48 sps:$4 sm:$0xff]  }
 0x943   :  { %12850 = vmatpush1.bf16.msra.mxu0 %v20797_v10  ;;  %v20902_v10 = vld [vmem:[#allocation19 + $0x480] ss:$48 sps:$4 sm:$0xff]   ;;  %v20916_v56 = vld [vmem:[#allocation19 + $0x3c4] ss:$48 sps:$4 sm:$0xff]  }
 0x944   :  { %v12558_v8 = vpop.f32.mrf.mxu0  ;;  %v12599_v1 = vpop.f32.mrf.mxu1  ;;  %12851 = vmatprep.subr.bf16.mxu0 %v20802_v28  ;;  %v20830_v28 = vld [vmem:[#allocation17 + $0xa48] ss:$48 sps:$4 sm:$0xff]   ;;  %v20908_v52 = vld [vmem:[#allocation19 + $0x420] ss:$48 sps:$4 sm:$0xff]  }
 0x945   :  { %15263 = vmatpush1.bf16.msra.mxu1 %v20845_v26  ;;  %v20835_v26 = vld [vmem:[#allocation17 + $0x9ec] ss:$48 sps:$4 sm:$0xff]   ;;  %v20914_v8 = vld [vmem:[#allocation19 + $0x3c0] ss:$48 sps:$4 sm:$0xff]   ;;  %v20922_v1 = vld [vmem:[#allocation19 + $0x364] ss:$48 sps:$4 sm:$0xff]  }
 0x946   :  { %15264 = vmatprep.subr.bf16.mxu1 %v20850_v44  ;;  %v20833_v44 = vld [vmem:[#allocation17 + $0x9e8] ss:$48 sps:$4 sm:$0xff]  }
 0x947   :  { %12852 = vmatpush1.bf16.msra.mxu0 %v20800_v15  ;;  %v20838_v15 = vld [vmem:[#allocation17 + $0x98c] ss:$48 sps:$4 sm:$0xff]  }
 0x948   :  { %12853 = vmatprep.subr.bf16.mxu0 %v20805_v2  ;;  %v20836_v2 = vld [vmem:[#allocation17 + $0x988] ss:$48 sps:$4 sm:$0xff]  }
 0x949   :  { %15265 = vmatpush1.bf16.msra.mxu1 %v20848_v3  ;;  %v20844_v3 = vld [vmem:[#allocation17 + $0x92c] ss:$48 sps:$4 sm:$0xff]  }
 0x94a   :  { %15266 = vmatprep.subr.bf16.mxu1 %v20856_v6  ;;  %v20920_v6 = vld [vmem:[#allocation19 + $0x360] ss:$48 sps:$4 sm:$0xff]  }
 0x94b   :  { %12854 = vmatpush1.bf16.msra.mxu0 %v20803_v13  ;;  %v20928_v13 = vld [vmem:[#allocation19 + $0x304] ss:$48 sps:$4 sm:$0xff]  }
 0x94c   :  { %12855 = vmatprep.subr.bf16.mxu0 %v20808_v20  ;;  %v20842_v20 = vld [vmem:[#allocation17 + $0x928] ss:$48 sps:$4 sm:$0xff]  }
 0x94d   :  { %15267 = vmatpush1.bf16.msra.mxu1 %v20854_v61  ;;  %v20853_v61 = vld [vmem:[#allocation19 + $0x8a4] ss:$48 sps:$4 sm:$0xff]  }
 0x94e   :  { %15268 = vmatprep.subr.bf16.mxu1 %v20862_v7  ;;  %v263_v7 = vld [vmem:[%s22886_s1 + $0x58] sm:$0xff] }
 0x94f   :  { %12856 = vmatpush1.bf16.msra.mxu0 %v20806_v17  ;;  %v10435_v17 = vrot.slane %v22616_v59, %v22227_v16 }
 0x950   :  { %12857 = vmatprep.subr.bf16.mxu0 %v20811_v57  ;;  %v20926_v57 = vld [vmem:[#allocation19 + $0x300] ss:$48 sps:$4 sm:$0xff]  }
 0x951   :  { %15269 = vmatpush1.bf16.msra.mxu1 %v20860_v45  ;;  %v260_v45 = vld [vmem:[%s22886_s1 + $0x40] sm:$0xff] }
 0x952   :  { %15270 = vmatprep.subr.bf16.mxu1 %v20868_v58  ;;  %v20937_v58 = vld [vmem:[#allocation19 + $0x2ac] ss:$48 sps:$4 sm:$0xff]  }
 0x953   :  { %12858 = vmatpush1.bf16.msra.mxu0 %v20809_v14  ;;  %v10439_v14 = vrot.slane %v22616_v59, %v22230_v27 }
 0x954   :  { %12859 = vmatprep.subr.bf16.mxu0 %v20814_v29  ;;  %v20851_v29 = vld [vmem:[#allocation19 + $0x8a0] ss:$48 sps:$4 sm:$0xff]  }
 0x955   :  { %15271 = vmatpush1.bf16.msra.mxu1 %v20866_v30  ;;  %v22669_v30 = vpack.c.bf16 %v263_v7, %v263_v7  ;;  %v20974_v7 = vld [vmem:[#allocation19 + $0x8] ss:$48 sps:$4 sm:$0xff]  }
 0x956   :  { %15272 = vmatprep.subr.bf16.mxu1 %v20874_v60  ;;  %v20859_v60 = vld [vmem:[#allocation19 + $0x844] ss:$48 sps:$4 sm:$0xff]  }
 0x957   :  { %12860 = vmatpush1.bf16.msra.mxu0 %v20812_v43  ;;  %v22671_v43 = vpack.c.bf16 %v260_v45, %v260_v45  ;;  %v20907_v45 = vld [vmem:[#allocation19 + $0xb44] ss:$48 sps:$4 sm:$0xff]  }
 0x958   :  { %12861 = vmatprep.subr.bf16.mxu0 %v20817_v41  ;;  %v12595_v41 = vadd.f32 %v22646_v18, %v10435_v17  ;;  %v20865_v18 = vld [vmem:[#allocation19 + $0x7e4] ss:$48 sps:$4 sm:$0xff]   ;;  %v20982_v17 = vld [vmem:[#allocation19 + $0x5ac] ss:$48 sps:$4 sm:$0xff]  }
 0x959   :  { %15273 = vmatpush1.bf16.msra.mxu1 %v20872_v36  ;;  %v20935_v36 = vld [vmem:[#allocation19 + $0x2a8] ss:$48 sps:$4 sm:$0xff]  }
 0x95a   :  { %15274 = vmatprep.subr.bf16.mxu1 %v20880_v33 }
 0x95b   :  { %12862 = vmatpush1.bf16.msra.mxu0 %v20815_v11  ;;  %v20943_v11 = vld [vmem:[#allocation19 + $0x24c] ss:$48 sps:$4 sm:$0xff]  }
 0x95c   :  { %12863 = vmatprep.subr.bf16.mxu0 %v20820_v54  ;;  %v12597_v54 = vadd.f32 %v22654_v24, %v10439_v14  ;;  %v20988_v14 = vld [vmem:[#allocation19 + $0x54c] ss:$48 sps:$4 sm:$0xff]  }
 0x95d   :  { %15275 = vmatpush1.bf16.msra.mxu1 %v20878_v0 }
 0x95e   :  { %15276 = vmatprep.subr.bf16.mxu1 %v20886_v34 }
 0x95f   :  { %12864 = vmatpush2.bf16.msra.mxu0 %v20818_v49  ;;  %v20857_v49 = vld [vmem:[#allocation19 + $0x840] ss:$48 sps:$4 sm:$0xff]  }
 0x960   :  { %12865 = vmatprep.subr.bf16.mxu0 %v20823_v19 }
 0x961   :  { %15277 = vmatpush2.bf16.msra.mxu1 %v20884_v37 }
 0x962   :  { %15278 = vmatprep.subr.bf16.mxu1 %v20892_v62  ;;  %v20941_v62 = vld [vmem:[#allocation19 + $0x248] ss:$48 sps:$4 sm:$0xff]  }
 0x963   :  { %12866 = vmatpush2.bf16.msra.mxu0 %v20821_v55  ;;  %v20946_v55 = vld [vmem:[#allocation19 + $0x1ec] ss:$48 sps:$4 sm:$0xff]  }
 0x964   :  { %12867 = vmatprep.subr.bf16.mxu0 %v20826_v9 }
 0x965   :  { %15279 = vmatpush2.bf16.msra.mxu1 %v20890_v40  ;;  %v20863_v40 = vld [vmem:[#allocation19 + $0x7e0] ss:$48 sps:$4 sm:$0xff]  }
 0x966   :  { %15280 = vmatprep.subr.bf16.mxu1 %v20898_v38 }
 0x967   :  { %12868 = vmatpush2.bf16.msra.mxu0 %v20824_v23  ;;  %v20871_v23 = vld [vmem:[#allocation19 + $0x784] ss:$48 sps:$4 sm:$0xff]  }
 0x968   :  { %12869 = vmatprep.subr.bf16.mxu0 %v20829_v53 }
 0x969   :  { %15281 = vmatpush2.bf16.msra.mxu1 %v20896_v39  ;;  %v20944_v39 = vld [vmem:[#allocation19 + $0x1e8] ss:$48 sps:$4 sm:$0xff]  }
 0x96a   :  { %15282 = vmatprep.subr.bf16.mxu1 %v20904_v63  ;;  %v20952_v63 = vld [vmem:[#allocation19 + $0x18c] ss:$48 sps:$4 sm:$0xff]  }
 0x96b   :  { %12870 = vmatpush2.bf16.msra.mxu0 %v20827_v46  ;;  %v20869_v46 = vld [vmem:[#allocation19 + $0x780] ss:$48 sps:$4 sm:$0xff]  }
 0x96c   :  { %12871 = vmatprep.subr.bf16.mxu0 %v20832_v50  ;;  %v20877_v50 = vld [vmem:[#allocation19 + $0x724] ss:$48 sps:$4 sm:$0xff]  }
 0x96d   :  { %15283 = vmatpush2.bf16.msra.mxu1 %v20902_v10  ;;  %v20950_v10 = vld [vmem:[#allocation19 + $0x188] ss:$48 sps:$4 sm:$0xff]  }
 0x96e   :  { %15284 = vmatprep.subr.bf16.mxu1 %v20910_v12  ;;  %v20958_v12 = vld [vmem:[#allocation19 + $0x12c] ss:$48 sps:$4 sm:$0xff]  }
 0x96f   :  { %12872 = vmatpush2.bf16.msra.mxu0 %v20830_v28  ;;  %v20875_v28 = vld [vmem:[#allocation19 + $0x720] ss:$48 sps:$4 sm:$0xff]  }
 0x970   :  { %12873 = vmatprep.subr.bf16.mxu0 %v20835_v26  ;;  %v20883_v26 = vld [vmem:[#allocation19 + $0x6c4] ss:$48 sps:$4 sm:$0xff]  }
 0x971   :  { %15285 = vmatpush2.bf16.msra.mxu1 %v20908_v52  ;;  %v20956_v52 = vld [vmem:[#allocation19 + $0x128] ss:$48 sps:$4 sm:$0xff]  }
 0x972   :  { %15286 = vmatprep.subr.bf16.mxu1 %v20916_v56  ;;  %v20964_v56 = vld [vmem:[#allocation19 + $0xcc] ss:$48 sps:$4 sm:$0xff]  }
 0x973   :  { %12874 = vmatpush2.bf16.msra.mxu0 %v20833_v44  ;;  %v20881_v44 = vld [vmem:[#allocation19 + $0x6c0] ss:$48 sps:$4 sm:$0xff]  }
 0x974   :  { %12875 = vmatprep.subr.bf16.mxu0 %v20838_v15  ;;  %v20889_v15 = vld [vmem:[#allocation19 + $0x664] ss:$48 sps:$4 sm:$0xff]  }
 0x975   :  { %15287 = vmatpush2.bf16.msra.mxu1 %v20914_v8  ;;  %v20962_v8 = vld [vmem:[#allocation19 + $0xc8] ss:$48 sps:$4 sm:$0xff]  }
 0x976   :  { %15288 = vmatprep.subr.bf16.mxu1 %v20922_v1  ;;  %v20970_v1 = vld [vmem:[#allocation19 + $0x6c] ss:$48 sps:$4 sm:$0xff]  }
 0x977   :  { %12876 = vmatpush2.bf16.msra.mxu0 %v20836_v2  ;;  %v20887_v2 = vld [vmem:[#allocation19 + $0x660] ss:$48 sps:$4 sm:$0xff]  }
 0x978   :  { %12877 = vmatprep.subr.bf16.mxu0 %v20844_v3  ;;  %v20895_v3 = vld [vmem:[#allocation19 + $0x604] ss:$48 sps:$4 sm:$0xff]  }
 0x979   :  { %15289 = vmatpush2.bf16.msra.mxu1 %v20920_v6  ;;  %v20968_v6 = vld [vmem:[#allocation19 + $0x68] ss:$48 sps:$4 sm:$0xff]  }
 0x97a   :  { %15290 = vmatprep.subr.bf16.mxu1 %v20928_v13  ;;  %v20976_v13 = vld [vmem:[#allocation19 + $0xc] ss:$48 sps:$4 sm:$0xff]  }
 0x97b   :  { %12878 = vmatpush2.bf16.msra.mxu0 %v20842_v20  ;;  %v20893_v20 = vld [vmem:[#allocation19 + $0x600] ss:$48 sps:$4 sm:$0xff]  }
 0x97c   :  { %15301 = vmatprep.subr.bf16.mxu0 %v20853_v61  ;;  %v20901_v61 = vld [vmem:[#allocation19 + $0xba4] ss:$48 sps:$4 sm:$0xff]  }
 0x97d   :  { %15291 = vmatpush2.bf16.msra.mxu1 %v20926_v57  ;;  %v20899_v57 = vld [vmem:[#allocation19 + $0xba0] ss:$48 sps:$4 sm:$0xff]  }
 0x97e   :  { %v12635_v33 = vpop.f32.mrf.mxu0  ;;  %12880 = vmatmul.mubr.bf16.vlgmr.msra.gmra.mxu0 %v22597_v25  ;;  %15342 = vmatprep.subr.bf16.mxu1 %v20937_v58  ;;  %v20980_v58 = vld [vmem:[#allocation19 + $0x5a8] ss:$48 sps:$4 sm:$0xff]  }
 0x97f   :  { %v22676_v0 = vadd.f32 %v12635_v33, %v12595_v41  ;;  %v22678_v34 = vpop.f32.mrf.mxu1  ;;  %15302 = vmatpush1.bf16.msra.mxu0 %v20851_v29  ;;  %15333 = vmatprep.mubr.bf16.mxu0 %v22669_v30  ;;  %v20905_v29 = vld [vmem:[#allocation19 + $0xb40] ss:$48 sps:$4 sm:$0xff]   ;;  %v20986_v41 = vld [vmem:[#allocation19 + $0x548] ss:$48 sps:$4 sm:$0xff]  }
 0x980   :  { %v12637_v19 = vpop.f32.mrf.mxu0  ;;  %15303 = vmatprep.subr.bf16.mxu0 %v20859_v60  ;;  %15293 = vmatmul.mubr.bf16.vlgmr.msra.gmra.mxu1 %v22671_v43  ;;  %v20913_v60 = vld [vmem:[#allocation19 + $0xae4] ss:$48 sps:$4 sm:$0xff]   ;;  %v20911_v33 = vld [vmem:[#allocation19 + $0xae0] ss:$48 sps:$4 sm:$0xff]  }
 0x981   :  { %v22682_v37 = vadd.f32 %v12637_v19, %v12597_v54  ;;  %v22684_v25 = vpop.f32.mrf.mxu1  ;;  %15343 = vmatpush1.bf16.msra.mxu1 %v20935_v36  ;;  %15374 = vmatprep.mubr.bf16.mxu1 %v22644_v42  ;;  %v20994_v36 = vld [vmem:[#allocation19 + $0x4ec] ss:$48 sps:$4 sm:$0xff]   ;;  %v20992_v54 = vld [vmem:[#allocation19 + $0x4e8] ss:$48 sps:$4 sm:$0xff]   ;;  %v20917_v19 = vld [vmem:[#allocation19 + $0xa80] ss:$48 sps:$4 sm:$0xff]  }
 0x982   :  { %v12639_v24 = vpop.f32.mrf.mxu0  ;;  %15344 = vmatprep.subr.bf16.mxu1 %v20943_v11  ;;  %v20919_v11 = vld [vmem:[#allocation19 + $0xa84] ss:$48 sps:$4 sm:$0xff]  }
 0x983   :  { %v12680_v9 = vpop.f32.mrf.mxu1  ;;  %15304 = vmatpush1.bf16.msra.mxu0 %v20857_v49  ;;  %v21000_v49 = vld [vmem:[#allocation19 + $0x48c] ss:$48 sps:$4 sm:$0xff]  }
 0x984   :  { %v12640_v38 = vpop.f32.mrf.mxu0  ;;  %15305 = vmatprep.subr.bf16.mxu0 %v20865_v18  ;;  %v20925_v18 = vld [vmem:[#allocation19 + $0xa24] ss:$48 sps:$4 sm:$0xff]   ;;  %v21006_v24 = vld [vmem:[#allocation19 + $0x42c] ss:$48 sps:$4 sm:$0xff]  }
 0x985   :  { %v12681_v53 = vpop.f32.mrf.mxu1  ;;  %15345 = vmatpush1.bf16.msra.mxu1 %v20941_v62  ;;  %v20998_v62 = vld [vmem:[#allocation19 + $0x488] ss:$48 sps:$4 sm:$0xff]   ;;  %v20931_v9 = vld [vmem:[#allocation19 + $0x9c4] ss:$48 sps:$4 sm:$0xff]   ;;  %v21012_v38 = vld [vmem:[#allocation19 + $0x3cc] ss:$48 sps:$4 sm:$0xff]  }
 0x986   :  { %15346 = vmatprep.subr.bf16.mxu1 %v20946_v55  ;;  %v20923_v55 = vld [vmem:[#allocation19 + $0xa20] ss:$48 sps:$4 sm:$0xff]   ;;  %v20934_v53 = vld [vmem:[#allocation19 + $0x964] ss:$48 sps:$4 sm:$0xff]  }
 0x987   :  { %15306 = vmatpush1.bf16.msra.mxu0 %v20863_v40  ;;  %v21004_v40 = vld [vmem:[#allocation19 + $0x428] ss:$48 sps:$4 sm:$0xff]  }
 0x988   :  { %15307 = vmatprep.subr.bf16.mxu0 %v20871_v23  ;;  %v20929_v23 = vld [vmem:[#allocation19 + $0x9c0] ss:$48 sps:$4 sm:$0xff]  }
 0x989   :  { %15347 = vmatpush1.bf16.msra.mxu1 %v20944_v39  ;;  %v21010_v39 = vld [vmem:[#allocation19 + $0x3c8] ss:$48 sps:$4 sm:$0xff]  }
 0x98a   :  { %15348 = vmatprep.subr.bf16.mxu1 %v20952_v63  ;;  %v21018_v63 = vld [vmem:[#allocation19 + $0x36c] ss:$48 sps:$4 sm:$0xff]  }
 0x98b   :  { %15308 = vmatpush1.bf16.msra.mxu0 %v20869_v46  ;;  %v20932_v46 = vld [vmem:[#allocation19 + $0x960] ss:$48 sps:$4 sm:$0xff]  }
 0x98c   :  { %15309 = vmatprep.subr.bf16.mxu0 %v20877_v50  ;;  %v20940_v50 = vld [vmem:[#allocation19 + $0x904] ss:$48 sps:$4 sm:$0xff]  }
 0x98d   :  { %15349 = vmatpush1.bf16.msra.mxu1 %v20950_v10  ;;  %v21016_v10 = vld [vmem:[#allocation19 + $0x368] ss:$48 sps:$4 sm:$0xff]  }
 0x98e   :  { %15350 = vmatprep.subr.bf16.mxu1 %v20958_v12  ;;  %v21024_v12 = vld [vmem:[#allocation19 + $0x30c] ss:$48 sps:$4 sm:$0xff]  }
 0x98f   :  { %15310 = vmatpush1.bf16.msra.mxu0 %v20875_v28  ;;  %v20938_v28 = vld [vmem:[#allocation19 + $0x900] ss:$48 sps:$4 sm:$0xff]  }
 0x990   :  { %15311 = vmatprep.subr.bf16.mxu0 %v20883_v26  ;;  %v262_v26 = vld [vmem:[%s22886_s1 + $0x50] sm:$0xff] }
 0x991   :  { %15351 = vmatpush1.bf16.msra.mxu1 %v20956_v52  ;;  %v20949_v52 = vld [vmem:[#allocation19 + $0x8ac] ss:$48 sps:$4 sm:$0xff]  }
 0x992   :  { %15352 = vmatprep.subr.bf16.mxu1 %v20964_v56  ;;  %v10443_v56 = vrot.slane %v22616_v59, %v22157_v47 }
 0x993   :  { %15312 = vmatpush1.bf16.msra.mxu0 %v20881_v44  ;;  %v21022_v44 = vld [vmem:[#allocation19 + $0x308] ss:$48 sps:$4 sm:$0xff]  }
 0x994   :  { %15313 = vmatprep.subr.bf16.mxu0 %v20889_v15  ;;  %v22692_v15 = vpack.c.bf16 %v262_v26, %v262_v26  ;;  %v20989_v26 = vld [vmem:[#allocation19 + $0x608] ss:$48 sps:$4 sm:$0xff]  }
 0x995   :  { %15353 = vmatpush1.bf16.msra.mxu1 %v20962_v8  ;;  %v21033_v8 = vld [vmem:[#allocation19 + $0x2b4] ss:$48 sps:$4 sm:$0xff]  }
 0x996   :  { %15354 = vmatprep.subr.bf16.mxu1 %v20970_v1  ;;  %v10447_v1 = vrot.slane %v22616_v59, %v22160_v51  ;;  %v20953_v59 = vld [vmem:[#allocation19 + $0x848] ss:$48 sps:$4 sm:$0xff]  }
 0x997   :  { %15314 = vmatpush1.bf16.msra.mxu0 %v20887_v2  ;;  %v20947_v2 = vld [vmem:[#allocation19 + $0x8a8] ss:$48 sps:$4 sm:$0xff]  }
 0x998   :  { %15315 = vmatprep.subr.bf16.mxu0 %v20895_v3  ;;  %v20955_v3 = vld [vmem:[#allocation19 + $0x84c] ss:$48 sps:$4 sm:$0xff]  }
 0x999   :  { %15355 = vmatpush1.bf16.msra.mxu1 %v20968_v6  ;;  %v12677_v6 = vadd.f32 %v22678_v34, %v10443_v56  ;;  %v20961_v34 = vld [vmem:[#allocation19 + $0x7ec] ss:$48 sps:$4 sm:$0xff]   ;;  %v21070_v56 = vld [vmem:[#allocation19 + $0x10] ss:$48 sps:$4 sm:$0xff]  }
 0x99a   :  { %15356 = vmatprep.subr.bf16.mxu1 %v20976_v13  ;;  %v21031_v13 = vld [vmem:[#allocation19 + $0x2b0] ss:$48 sps:$4 sm:$0xff]  }
 0x99b   :  { %15316 = vmatpush1.bf16.msra.mxu0 %v20893_v20 }
 0x99c   :  { %15317 = vmatprep.subr.bf16.mxu0 %v20901_v61  ;;  %v21039_v61 = vld [vmem:[#allocation19 + $0x254] ss:$48 sps:$4 sm:$0xff]  }
 0x99d   :  { %15357 = vmatpush1.bf16.msra.mxu1 %v20974_v7  ;;  %v12679_v7 = vadd.f32 %v22684_v25, %v10447_v1  ;;  %v21003_v1 = vld [vmem:[#allocation19 + $0xb4c] ss:$48 sps:$4 sm:$0xff]  }
 0x99e   :  { %15358 = vmatprep.subr.bf16.mxu1 %v20982_v17 }
 0x99f   :  { %15318 = vmatpush2.bf16.msra.mxu0 %v20899_v57 }
 0x9a0   :  { %15319 = vmatprep.subr.bf16.mxu0 %v20907_v45 }
 0x9a1   :  { %15359 = vmatpush2.bf16.msra.mxu1 %v20980_v58 }
 0x9a2   :  { %15360 = vmatprep.subr.bf16.mxu1 %v20988_v14 }
 0x9a3   :  { %15320 = vmatpush2.bf16.msra.mxu0 %v20905_v29  ;;  %v21037_v29 = vld [vmem:[#allocation19 + $0x250] ss:$48 sps:$4 sm:$0xff]  }
 0x9a4   :  { %15321 = vmatprep.subr.bf16.mxu0 %v20913_v60  ;;  %v21042_v60 = vld [vmem:[#allocation19 + $0x1f4] ss:$48 sps:$4 sm:$0xff]  }
 0x9a5   :  { %15361 = vmatpush2.bf16.msra.mxu1 %v20986_v41 }
 0x9a6   :  { %15362 = vmatprep.subr.bf16.mxu1 %v20994_v36  ;;  %v20959_v36 = vld [vmem:[#allocation19 + $0x7e8] ss:$48 sps:$4 sm:$0xff]  }
 0x9a7   :  { %15322 = vmatpush2.bf16.msra.mxu0 %v20911_v33 }
 0x9a8   :  { %15323 = vmatprep.subr.bf16.mxu0 %v20919_v11  ;;  %v20967_v11 = vld [vmem:[#allocation19 + $0x78c] ss:$48 sps:$4 sm:$0xff]  }
 0x9a9   :  { %15363 = vmatpush2.bf16.msra.mxu1 %v20992_v54 }
 0x9aa   :  { %15364 = vmatprep.subr.bf16.mxu1 %v21000_v49  ;;  %v21040_v49 = vld [vmem:[#allocation19 + $0x1f0] ss:$48 sps:$4 sm:$0xff]  }
 0x9ab   :  { %15324 = vmatpush2.bf16.msra.mxu0 %v20917_v19  ;;  %v21048_v19 = vld [vmem:[#allocation19 + $0x194] ss:$48 sps:$4 sm:$0xff]  }
 0x9ac   :  { %15325 = vmatprep.subr.bf16.mxu0 %v20925_v18  ;;  %v20965_v18 = vld [vmem:[#allocation19 + $0x788] ss:$48 sps:$4 sm:$0xff]  }
 0x9ad   :  { %15365 = vmatpush2.bf16.msra.mxu1 %v20998_v62  ;;  %v20973_v62 = vld [vmem:[#allocation19 + $0x72c] ss:$48 sps:$4 sm:$0xff]  }
 0x9ae   :  { %15366 = vmatprep.subr.bf16.mxu1 %v21006_v24  ;;  %v21046_v24 = vld [vmem:[#allocation19 + $0x190] ss:$48 sps:$4 sm:$0xff]  }
 0x9af   :  { %15326 = vmatpush2.bf16.msra.mxu0 %v20923_v55  ;;  %v21054_v55 = vld [vmem:[#allocation19 + $0x134] ss:$48 sps:$4 sm:$0xff]  }
 0x9b0   :  { %15327 = vmatprep.subr.bf16.mxu0 %v20931_v9  ;;  %v20971_v9 = vld [vmem:[#allocation19 + $0x728] ss:$48 sps:$4 sm:$0xff]  }
 0x9b1   :  { %15367 = vmatpush2.bf16.msra.mxu1 %v21004_v40  ;;  %v20979_v40 = vld [vmem:[#allocation19 + $0x6cc] ss:$48 sps:$4 sm:$0xff]  }
 0x9b2   :  { %15368 = vmatprep.subr.bf16.mxu1 %v21012_v38  ;;  %v21052_v38 = vld [vmem:[#allocation19 + $0x130] ss:$48 sps:$4 sm:$0xff]  }
 0x9b3   :  { %15328 = vmatpush2.bf16.msra.mxu0 %v20929_v23  ;;  %v21060_v23 = vld [vmem:[#allocation19 + $0xd4] ss:$48 sps:$4 sm:$0xff]  }
 0x9b4   :  { %15329 = vmatprep.subr.bf16.mxu0 %v20934_v53  ;;  %v20977_v53 = vld [vmem:[#allocation19 + $0x6c8] ss:$48 sps:$4 sm:$0xff]  }
 0x9b5   :  { %15369 = vmatpush2.bf16.msra.mxu1 %v21010_v39  ;;  %v20985_v39 = vld [vmem:[#allocation19 + $0x66c] ss:$48 sps:$4 sm:$0xff]  }
 0x9b6   :  { %15370 = vmatprep.subr.bf16.mxu1 %v21018_v63  ;;  %v21058_v63 = vld [vmem:[#allocation19 + $0xd0] ss:$48 sps:$4 sm:$0xff]  }
 0x9b7   :  { %15330 = vmatpush2.bf16.msra.mxu0 %v20932_v46  ;;  %v21066_v46 = vld [vmem:[#allocation19 + $0x74] ss:$48 sps:$4 sm:$0xff]  }
 0x9b8   :  { %15331 = vmatprep.subr.bf16.mxu0 %v20940_v50  ;;  %v20983_v50 = vld [vmem:[#allocation19 + $0x668] ss:$48 sps:$4 sm:$0xff]  }
 0x9b9   :  { %15371 = vmatpush2.bf16.msra.mxu1 %v21016_v10  ;;  %v20991_v10 = vld [vmem:[#allocation19 + $0x60c] ss:$48 sps:$4 sm:$0xff]  }
 0x9ba   :  { %15372 = vmatprep.subr.bf16.mxu1 %v21024_v12  ;;  %v21064_v12 = vld [vmem:[#allocation19 + $0x70] ss:$48 sps:$4 sm:$0xff]  }
 0x9bb   :  { %15332 = vmatpush2.bf16.msra.mxu0 %v20938_v28  ;;  %v21072_v28 = vld [vmem:[#allocation19 + $0x14] ss:$48 sps:$4 sm:$0xff]  }
 0x9bc   :  { %15383 = vmatprep.subr.bf16.mxu0 %v20949_v52  ;;  %v20997_v52 = vld [vmem:[#allocation19 + $0xbac] ss:$48 sps:$4 sm:$0xff]  }
 0x9bd   :  { %15373 = vmatpush2.bf16.msra.mxu1 %v21022_v44  ;;  %v21078_v44 = vld [vmem:[#allocation19 + $0x5b4] ss:$48 sps:$4 sm:$0xff]  }
 0x9be   :  { %v12717_v20 = vpop.f32.mrf.mxu0  ;;  %15334 = vmatmul.mubr.bf16.vlgmr.msra.gmra.mxu0 %v22692_v15  ;;  %15424 = vmatprep.subr.bf16.mxu1 %v21033_v8  ;;  %v20995_v8 = vld [vmem:[#allocation19 + $0xba8] ss:$48 sps:$4 sm:$0xff]  }
 0x9bf   :  { %v22699_v17 = vadd.f32 %v12717_v20, %v12677_v6  ;;  %v22701_v57 = vpop.f32.mrf.mxu1  ;;  %15384 = vmatpush1.bf16.msra.mxu0 %v20947_v2  ;;  %15415 = vmatprep.mubr.bf16.mxu0 %v22669_v30  ;;  %v21076_v2 = vld [vmem:[#allocation19 + $0x5b0] ss:$48 sps:$4 sm:$0xff]   ;;  %v21001_v6 = vld [vmem:[#allocation19 + $0xb48] ss:$48 sps:$4 sm:$0xff]  }
 0x9c0   :  { %v12719_v45 = vpop.f32.mrf.mxu0  ;;  %15385 = vmatprep.subr.bf16.mxu0 %v20955_v3  ;;  %15375 = vmatmul.mubr.bf16.vlgmr.msra.gmra.mxu1 %v22671_v43  ;;  %v21084_v3 = vld [vmem:[#allocation19 + $0x554] ss:$48 sps:$4 sm:$0xff]   ;;  %v21082_v20 = vld [vmem:[#allocation19 + $0x550] ss:$48 sps:$4 sm:$0xff]  }
 0x9c1   :  { %v22705_v58 = vadd.f32 %v12719_v45, %v12679_v7  ;;  %v22707_v14 = vpop.f32.mrf.mxu1  ;;  %15425 = vmatpush1.bf16.msra.mxu1 %v21031_v13  ;;  %15456 = vmatprep.mubr.bf16.mxu1 %v22644_v42  ;;  %v21009_v13 = vld [vmem:[#allocation19 + $0xaec] ss:$48 sps:$4 sm:$0xff]   ;;  %v21007_v7 = vld [vmem:[#allocation19 + $0xae8] ss:$48 sps:$4 sm:$0xff]   ;;  %v21088_v45 = vld [vmem:[#allocation19 + $0x4f0] ss:$48 sps:$4 sm:$0xff]  }
 0x9c2   :  { %v12721_v25 = vpop.f32.mrf.mxu0  ;;  %15426 = vmatprep.subr.bf16.mxu1 %v21039_v61  ;;  %v21090_v61 = vld [vmem:[#allocation19 + $0x4f4] ss:$48 sps:$4 sm:$0xff]  }
 0x9c3   :  { %v12762_v41 = vpop.f32.mrf.mxu1  ;;  %15386 = vmatpush1.bf16.msra.mxu0 %v20953_v59  ;;  %v21015_v59 = vld [vmem:[#allocation19 + $0xa8c] ss:$48 sps:$4 sm:$0xff]  }
 0x9c4   :  { %v12722_v33 = vpop.f32.mrf.mxu0  ;;  %15387 = vmatprep.subr.bf16.mxu0 %v20961_v34  ;;  %v21096_v34 = vld [vmem:[#allocation19 + $0x494] ss:$48 sps:$4 sm:$0xff]   ;;  %v21021_v25 = vld [vmem:[#allocation19 + $0xa2c] ss:$48 sps:$4 sm:$0xff]  }
 0x9c5   :  { %v12763_v54 = vpop.f32.mrf.mxu1  ;;  %15427 = vmatpush1.bf16.msra.mxu1 %v21037_v29  ;;  %v21013_v29 = vld [vmem:[#allocation19 + $0xa88] ss:$48 sps:$4 sm:$0xff]   ;;  %v21102_v41 = vld [vmem:[#allocation19 + $0x434] ss:$48 sps:$4 sm:$0xff]   ;;  %v21027_v33 = vld [vmem:[#allocation19 + $0x9cc] ss:$48 sps:$4 sm:$0xff]  }
 0x9c6   :  { %15428 = vmatprep.subr.bf16.mxu1 %v21042_v60  ;;  %v21094_v60 = vld [vmem:[#allocation19 + $0x490] ss:$48 sps:$4 sm:$0xff]   ;;  %v21108_v54 = vld [vmem:[#allocation19 + $0x3d4] ss:$48 sps:$4 sm:$0xff]  }
 0x9c7   :  { %15388 = vmatpush1.bf16.msra.mxu0 %v20959_v36  ;;  %v21019_v36 = vld [vmem:[#allocation19 + $0xa28] ss:$48 sps:$4 sm:$0xff]  }
 0x9c8   :  { %15389 = vmatprep.subr.bf16.mxu0 %v20967_v11  ;;  %v21100_v11 = vld [vmem:[#allocation19 + $0x430] ss:$48 sps:$4 sm:$0xff]  }
 0x9c9   :  { %15429 = vmatpush1.bf16.msra.mxu1 %v21040_v49  ;;  %v21025_v49 = vld [vmem:[#allocation19 + $0x9c8] ss:$48 sps:$4 sm:$0xff]  }
 0x9ca   :  { %15430 = vmatprep.subr.bf16.mxu1 %v21048_v19  ;;  %v21030_v19 = vld [vmem:[#allocation19 + $0x96c] ss:$48 sps:$4 sm:$0xff]  }
 0x9cb   :  { %15390 = vmatpush1.bf16.msra.mxu0 %v20965_v18  ;;  %v21106_v18 = vld [vmem:[#allocation19 + $0x3d0] ss:$48 sps:$4 sm:$0xff]  }
 0x9cc   :  { %15391 = vmatprep.subr.bf16.mxu0 %v20973_v62  ;;  %v21114_v62 = vld [vmem:[#allocation19 + $0x374] ss:$48 sps:$4 sm:$0xff]  }
 0x9cd   :  { %15431 = vmatpush1.bf16.msra.mxu1 %v21046_v24  ;;  %v21028_v24 = vld [vmem:[#allocation19 + $0x968] ss:$48 sps:$4 sm:$0xff]  }
 0x9ce   :  { %15432 = vmatprep.subr.bf16.mxu1 %v21054_v55  ;;  %v21036_v55 = vld [vmem:[#allocation19 + $0x90c] ss:$48 sps:$4 sm:$0xff]  }
 0x9cf   :  { %15392 = vmatpush1.bf16.msra.mxu0 %v20971_v9  ;;  %v21112_v9 = vld [vmem:[#allocation19 + $0x370] ss:$48 sps:$4 sm:$0xff]  }
 0x9d0   :  { %15393 = vmatprep.subr.bf16.mxu0 %v20979_v40  ;;  %v22710_v40 = vld [vmem:[#allocation20 + $0x8] sm:$0xf] }
 0x9d1   :  { %15433 = vmatpush1.bf16.msra.mxu1 %v21052_v38  ;;  %v21120_v38 = vld [vmem:[#allocation19 + $0x314] ss:$48 sps:$4 sm:$0xff]  }
 0x9d2   :  { %15434 = vmatprep.subr.bf16.mxu1 %v21060_v23  ;;  %v21034_v23 = vld [vmem:[#allocation19 + $0x908] ss:$48 sps:$4 sm:$0xff]  }
 0x9d3   :  { %15394 = vmatpush1.bf16.msra.mxu0 %v20977_v53  ;;  %v21045_v53 = vld [vmem:[#allocation19 + $0x8b4] ss:$48 sps:$4 sm:$0xff]  }
 0x9d4   :  { %15395 = vmatprep.subr.bf16.mxu0 %v20985_v39  ;;  %v10451_v39 = vrot.slane %v22710_v40, %v22191_v31 }
 0x9d5   :  { %15435 = vmatpush1.bf16.msra.mxu1 %v21058_v63  ;;  %v21118_v63 = vld [vmem:[#allocation19 + $0x310] ss:$48 sps:$4 sm:$0xff]  }
 0x9d6   :  { %15436 = vmatprep.subr.bf16.mxu1 %v21066_v46  ;;  %v21129_v46 = vld [vmem:[#allocation19 + $0x2bc] ss:$48 sps:$4 sm:$0xff]  }
 0x9d7   :  { %15396 = vmatpush1.bf16.msra.mxu0 %v20983_v50  ;;  %v10455_v50 = vrot.slane %v22710_v40, %v22194_v35 }
 0x9d8   :  { %15397 = vmatprep.subr.bf16.mxu0 %v20991_v10  ;;  %v21043_v10 = vld [vmem:[#allocation19 + $0x8b0] ss:$48 sps:$4 sm:$0xff]  }
 0x9d9   :  { %15437 = vmatpush1.bf16.msra.mxu1 %v21064_v12  ;;  %v21051_v12 = vld [vmem:[#allocation19 + $0x854] ss:$48 sps:$4 sm:$0xff]  }
 0x9da   :  { %15438 = vmatprep.subr.bf16.mxu1 %v21072_v28  ;;  %v12759_v28 = vadd.f32 %v22701_v57, %v10451_v39  ;;  %v21057_v57 = vld [vmem:[#allocation19 + $0x7f4] ss:$48 sps:$4 sm:$0xff]   ;;  %v21168_v39 = vld [vmem:[#allocation19 + $0x1c] ss:$48 sps:$4 sm:$0xff]  }
 0x9db   :  { %15398 = vmatpush1.bf16.msra.mxu0 %v20989_v26  ;;  %v21127_v26 = vld [vmem:[#allocation19 + $0x2b8] ss:$48 sps:$4 sm:$0xff]  }
 0x9dc   :  { %15399 = vmatprep.subr.bf16.mxu0 %v20997_v52 }
 0x9dd   :  { %15439 = vmatpush1.bf16.msra.mxu1 %v21070_v56  ;;  %v21135_v56 = vld [vmem:[#allocation19 + $0x25c] ss:$48 sps:$4 sm:$0xff]  }
 0x9de   :  { %15440 = vmatprep.subr.bf16.mxu1 %v21078_v44  ;;  %v12761_v44 = vadd.f32 %v22707_v14, %v10455_v50  ;;  %v21166_v50 = vld [vmem:[#allocation19 + $0x18] ss:$48 sps:$4 sm:$0xff]  }
 0x9df   :  { %15400 = vmatpush2.bf16.msra.mxu0 %v20995_v8 }
 0x9e0   :  { %15401 = vmatprep.subr.bf16.mxu0 %v21003_v1 }
 0x9e1   :  { %15441 = vmatpush2.bf16.msra.mxu1 %v21076_v2  ;;  %v21049_v2 = vld [vmem:[#allocation19 + $0x850] ss:$48 sps:$4 sm:$0xff]  }
 0x9e2   :  { %15442 = vmatprep.subr.bf16.mxu1 %v21084_v3 }
 0x9e3   :  { %15402 = vmatpush2.bf16.msra.mxu0 %v21001_v6 }
 0x9e4   :  { %15403 = vmatprep.subr.bf16.mxu0 %v21009_v13 }
 0x9e5   :  { %15443 = vmatpush2.bf16.msra.mxu1 %v21082_v20  ;;  %v21133_v20 = vld [vmem:[#allocation19 + $0x258] ss:$48 sps:$4 sm:$0xff]  }
 0x9e6   :  { %15444 = vmatprep.subr.bf16.mxu1 %v21090_v61  ;;  %v21138_v61 = vld [vmem:[#allocation19 + $0x1fc] ss:$48 sps:$4 sm:$0xff]  }
 0x9e7   :  { %15404 = vmatpush2.bf16.msra.mxu0 %v21007_v7 }
 0x9e8   :  { %15405 = vmatprep.subr.bf16.mxu0 %v21015_v59  ;;  %v21055_v59 = vld [vmem:[#allocation19 + $0x7f0] ss:$48 sps:$4 sm:$0xff]  }
 0x9e9   :  { %15445 = vmatpush2.bf16.msra.mxu1 %v21088_v45 }
 0x9ea   :  { %15446 = vmatprep.subr.bf16.mxu1 %v21096_v34  ;;  %v21063_v34 = vld [vmem:[#allocation19 + $0x794] ss:$48 sps:$4 sm:$0xff]  }
 0x9eb   :  { %15406 = vmatpush2.bf16.msra.mxu0 %v21013_v29 }
 0x9ec   :  { %15407 = vmatprep.subr.bf16.mxu0 %v21021_v25  ;;  %v21136_v25 = vld [vmem:[#allocation19 + $0x1f8] ss:$48 sps:$4 sm:$0xff]  }
 0x9ed   :  { %15447 = vmatpush2.bf16.msra.mxu1 %v21094_v60  ;;  %v21144_v60 = vld [vmem:[#allocation19 + $0x19c] ss:$48 sps:$4 sm:$0xff]  }
 0x9ee   :  { %15448 = vmatprep.subr.bf16.mxu1 %v21102_v41  ;;  %v21061_v41 = vld [vmem:[#allocation19 + $0x790] ss:$48 sps:$4 sm:$0xff]  }
 0x9ef   :  { %15408 = vmatpush2.bf16.msra.mxu0 %v21019_v36  ;;  %v21069_v36 = vld [vmem:[#allocation19 + $0x734] ss:$48 sps:$4 sm:$0xff]  }
 0x9f0   :  { %15409 = vmatprep.subr.bf16.mxu0 %v21027_v33  ;;  %v21142_v33 = vld [vmem:[#allocation19 + $0x198] ss:$48 sps:$4 sm:$0xff]  }
 0x9f1   :  { %15449 = vmatpush2.bf16.msra.mxu1 %v21100_v11  ;;  %v21150_v11 = vld [vmem:[#allocation19 + $0x13c] ss:$48 sps:$4 sm:$0xff]  }
 0x9f2   :  { %15450 = vmatprep.subr.bf16.mxu1 %v21108_v54  ;;  %v21067_v54 = vld [vmem:[#allocation19 + $0x730] ss:$48 sps:$4 sm:$0xff]  }
 0x9f3   :  { %15410 = vmatpush2.bf16.msra.mxu0 %v21025_v49  ;;  %v21075_v49 = vld [vmem:[#allocation19 + $0x6d4] ss:$48 sps:$4 sm:$0xff]  }
 0x9f4   :  { %15411 = vmatprep.subr.bf16.mxu0 %v21030_v19  ;;  %v21148_v19 = vld [vmem:[#allocation19 + $0x138] ss:$48 sps:$4 sm:$0xff]  }
 0x9f5   :  { %15451 = vmatpush2.bf16.msra.mxu1 %v21106_v18  ;;  %v21156_v18 = vld [vmem:[#allocation19 + $0xdc] ss:$48 sps:$4 sm:$0xff]  }
 0x9f6   :  { %15452 = vmatprep.subr.bf16.mxu1 %v21114_v62  ;;  %v21073_v62 = vld [vmem:[#allocation19 + $0x6d0] ss:$48 sps:$4 sm:$0xff]  }
 0x9f7   :  { %15412 = vmatpush2.bf16.msra.mxu0 %v21028_v24  ;;  %v21081_v24 = vld [vmem:[#allocation19 + $0x674] ss:$48 sps:$4 sm:$0xff]  }
 0x9f8   :  { %15413 = vmatprep.subr.bf16.mxu0 %v21036_v55  ;;  %v21154_v55 = vld [vmem:[#allocation19 + $0xd8] ss:$48 sps:$4 sm:$0xff]  }
 0x9f9   :  { %15453 = vmatpush2.bf16.msra.mxu1 %v21112_v9  ;;  %v21162_v9 = vld [vmem:[#allocation19 + $0x7c] ss:$48 sps:$4 sm:$0xff]  }
 0x9fa   :  { %15454 = vmatprep.subr.bf16.mxu1 %v21120_v38  ;;  %v21079_v38 = vld [vmem:[#allocation19 + $0x670] ss:$48 sps:$4 sm:$0xff]  }
 0x9fb   :  { %15414 = vmatpush2.bf16.msra.mxu0 %v21034_v23  ;;  %v21087_v23 = vld [vmem:[#allocation19 + $0x614] ss:$48 sps:$4 sm:$0xff]  }
 0x9fc   :  { %15465 = vmatprep.subr.bf16.mxu0 %v21045_v53  ;;  %v21160_v53 = vld [vmem:[#allocation19 + $0x78] ss:$48 sps:$4 sm:$0xff]  }
 0x9fd   :  { %15455 = vmatpush2.bf16.msra.mxu1 %v21118_v63  ;;  %v21085_v63 = vld [vmem:[#allocation19 + $0x610] ss:$48 sps:$4 sm:$0xff]  }
 0x9fe   :  { %v12799_v52 = vpop.f32.mrf.mxu0  ;;  %15416 = vmatmul.mubr.bf16.vlgmr.msra.gmra.mxu0 %v22692_v15  ;;  %15506 = vmatprep.subr.bf16.mxu1 %v21129_v46  ;;  %v21093_v46 = vld [vmem:[#allocation19 + $0xbb4] ss:$48 sps:$4 sm:$0xff]  }
 0x9ff   :  { %v22719_v8 = vadd.f32 %v12799_v52, %v12759_v28  ;;  %v22721_v1 = vpop.f32.mrf.mxu1  ;;  %15466 = vmatpush1.bf16.msra.mxu0 %v21043_v10  ;;  %15497 = vmatprep.mubr.bf16.mxu0 %v22669_v30  ;;  %v21174_v10 = vld [vmem:[#allocation19 + $0x5bc] ss:$48 sps:$4 sm:$0xff]   ;;  %v21099_v28 = vld [vmem:[#allocation19 + $0xb54] ss:$48 sps:$4 sm:$0xff]  }
 0xa00   :  { %v12801_v3 = vpop.f32.mrf.mxu0  ;;  %15467 = vmatprep.subr.bf16.mxu0 %v21051_v12  ;;  %15457 = vmatmul.mubr.bf16.vlgmr.msra.gmra.mxu1 %v22671_v43  ;;  %v21091_v12 = vld [vmem:[#allocation19 + $0xbb0] ss:$48 sps:$4 sm:$0xff]   ;;  %v21180_v52 = vld [vmem:[#allocation19 + $0x55c] ss:$48 sps:$4 sm:$0xff]  }
 0xa01   :  { %v22725_v6 = vadd.f32 %v12801_v3, %v12761_v44  ;;  %v22727_v13 = vpop.f32.mrf.mxu1  ;;  %15507 = vmatpush1.bf16.msra.mxu1 %v21127_v26  ;;  %15538 = vmatprep.mubr.bf16.mxu1 %v22644_v42  ;;  %v21172_v26 = vld [vmem:[#allocation19 + $0x5b8] ss:$48 sps:$4 sm:$0xff]   ;;  %v21105_v44 = vld [vmem:[#allocation19 + $0xaf4] ss:$48 sps:$4 sm:$0xff]   ;;  %v21186_v3 = vld [vmem:[#allocation19 + $0x4fc] ss:$48 sps:$4 sm:$0xff]  }
 0xa02   :  { %v12803_v14 = vpop.f32.mrf.mxu0  ;;  %15508 = vmatprep.subr.bf16.mxu1 %v21135_v56  ;;  %v21097_v56 = vld [vmem:[#allocation19 + $0xb50] ss:$48 sps:$4 sm:$0xff]  }
 0xa03   :  { %v12844_v7 = vpop.f32.mrf.mxu1  ;;  %15468 = vmatpush1.bf16.msra.mxu0 %v21049_v2  ;;  %v21178_v2 = vld [vmem:[#allocation19 + $0x558] ss:$48 sps:$4 sm:$0xff]  }
 0xa04   :  { %v12804_v45 = vpop.f32.mrf.mxu0  ;;  %15469 = vmatprep.subr.bf16.mxu0 %v21057_v57  ;;  %v21103_v57 = vld [vmem:[#allocation19 + $0xaf0] ss:$48 sps:$4 sm:$0xff]   ;;  %v21184_v14 = vld [vmem:[#allocation19 + $0x4f8] ss:$48 sps:$4 sm:$0xff]  }
 0xa05   :  { %v12845_v29 = vpop.f32.mrf.mxu1  ;;  %15509 = vmatpush1.bf16.msra.mxu1 %v21133_v20  ;;  %v21111_v20 = vld [vmem:[#allocation19 + $0xa94] ss:$48 sps:$4 sm:$0xff]   ;;  %v21109_v7 = vld [vmem:[#allocation19 + $0xa90] ss:$48 sps:$4 sm:$0xff]   ;;  %v21190_v45 = vld [vmem:[#allocation19 + $0x498] ss:$48 sps:$4 sm:$0xff]  }
 0xa06   :  { %15510 = vmatprep.subr.bf16.mxu1 %v21138_v61  ;;  %v21192_v61 = vld [vmem:[#allocation19 + $0x49c] ss:$48 sps:$4 sm:$0xff]   ;;  %v21115_v29 = vld [vmem:[#allocation19 + $0xa30] ss:$48 sps:$4 sm:$0xff]  }
 0xa07   :  { %15470 = vmatpush1.bf16.msra.mxu0 %v21055_v59  ;;  %v21117_v59 = vld [vmem:[#allocation19 + $0xa34] ss:$48 sps:$4 sm:$0xff]  }
 0xa08   :  { %15471 = vmatprep.subr.bf16.mxu0 %v21063_v34  ;;  %v21198_v34 = vld [vmem:[#allocation19 + $0x43c] ss:$48 sps:$4 sm:$0xff]  }
 0xa09   :  { %15511 = vmatpush1.bf16.msra.mxu1 %v21136_v25  ;;  %v21123_v25 = vld [vmem:[#allocation19 + $0x9d4] ss:$48 sps:$4 sm:$0xff]  }
 0xa0a   :  { %15512 = vmatprep.subr.bf16.mxu1 %v21144_v60  ;;  %v21196_v60 = vld [vmem:[#allocation19 + $0x438] ss:$48 sps:$4 sm:$0xff]  }
 0xa0b   :  { %15472 = vmatpush1.bf16.msra.mxu0 %v21061_v41  ;;  %v21204_v41 = vld [vmem:[#allocation19 + $0x3dc] ss:$48 sps:$4 sm:$0xff]  }
 0xa0c   :  { %15473 = vmatprep.subr.bf16.mxu0 %v21069_v36  ;;  %v21121_v36 = vld [vmem:[#allocation19 + $0x9d0] ss:$48 sps:$4 sm:$0xff]  }
 0xa0d   :  { %15513 = vmatpush1.bf16.msra.mxu1 %v21142_v33  ;;  %v21126_v33 = vld [vmem:[#allocation19 + $0x974] ss:$48 sps:$4 sm:$0xff]  }
 0xa0e   :  { %15514 = vmatprep.subr.bf16.mxu1 %v21150_v11  ;;  %v21202_v11 = vld [vmem:[#allocation19 + $0x3d8] ss:$48 sps:$4 sm:$0xff]  }
 0xa0f   :  { %15474 = vmatpush1.bf16.msra.mxu0 %v21067_v54  ;;  %v21210_v54 = vld [vmem:[#allocation19 + $0x37c] ss:$48 sps:$4 sm:$0xff]  }
 0xa10   :  { %15475 = vmatprep.subr.bf16.mxu0 %v21075_v49  ;;  %v21124_v49 = vld [vmem:[#allocation19 + $0x970] ss:$48 sps:$4 sm:$0xff]  }
 0xa11   :  { %15515 = vmatpush1.bf16.msra.mxu1 %v21148_v19  ;;  %v21132_v19 = vld [vmem:[#allocation19 + $0x914] ss:$48 sps:$4 sm:$0xff]  }
 0xa12   :  { %15516 = vmatprep.subr.bf16.mxu1 %v21156_v18  ;;  %v21208_v18 = vld [vmem:[#allocation19 + $0x378] ss:$48 sps:$4 sm:$0xff]  }
 0xa13   :  { %15476 = vmatpush1.bf16.msra.mxu0 %v21073_v62  ;;  %v21216_v62 = vld [vmem:[#allocation19 + $0x31c] ss:$48 sps:$4 sm:$0xff]  }
 0xa14   :  { %15477 = vmatprep.subr.bf16.mxu0 %v21081_v24  ;;  %v21130_v24 = vld [vmem:[#allocation19 + $0x910] ss:$48 sps:$4 sm:$0xff]  }
 0xa15   :  { %15517 = vmatpush1.bf16.msra.mxu1 %v21154_v55  ;;  %v21141_v55 = vld [vmem:[#allocation19 + $0x8bc] ss:$48 sps:$4 sm:$0xff]  }
 0xa16   :  { %15518 = vmatprep.subr.bf16.mxu1 %v21162_v9  ;;  %v10459_v9 = vrot.slane %v22710_v40, %v22133_v48 }
 0xa17   :  { %15478 = vmatpush1.bf16.msra.mxu0 %v21079_v38  ;;  %v21214_v38 = vld [vmem:[#allocation19 + $0x318] ss:$48 sps:$4 sm:$0xff]  }
 0xa18   :  { %15479 = vmatprep.subr.bf16.mxu0 %v21087_v23  ;;  %v21225_v23 = vld [vmem:[#allocation19 + $0x2c4] ss:$48 sps:$4 sm:$0xff]  }
 0xa19   :  { %15519 = vmatpush1.bf16.msra.mxu1 %v21160_v53  ;;  %v10463_v53 = vrot.slane %v22710_v40, %v22138_v5 }
 0xa1a   :  { %15520 = vmatprep.subr.bf16.mxu1 %v21168_v39  ;;  %v21139_v39 = vld [vmem:[#allocation19 + $0x8b8] ss:$48 sps:$4 sm:$0xff]  }
 0xa1b   :  { %15480 = vmatpush1.bf16.msra.mxu0 %v21085_v63  ;;  %v21147_v63 = vld [vmem:[#allocation19 + $0x85c] ss:$48 sps:$4 sm:$0xff]  }
 0xa1c   :  { %15481 = vmatprep.subr.bf16.mxu0 %v21093_v46  ;;  %v12841_v46 = vadd.f32 %v22721_v1, %v10459_v9  ;;  %v21256_v9 = vld [vmem:[#allocation19 + $0x80] ss:$48 sps:$4 sm:$0xff]  }
 0xa1d   :  { %15521 = vmatpush1.bf16.msra.mxu1 %v21166_v50  ;;  %v21223_v50 = vld [vmem:[#allocation19 + $0x2c0] ss:$48 sps:$4 sm:$0xff]  }
 0xa1e   :  { %15522 = vmatprep.subr.bf16.mxu1 %v21174_v10 }
 0xa1f   :  { %15482 = vmatpush2.bf16.msra.mxu0 %v21091_v12  ;;  %v21231_v12 = vld [vmem:[#allocation19 + $0x264] ss:$48 sps:$4 sm:$0xff]  }
 0xa20   :  { %15483 = vmatprep.subr.bf16.mxu0 %v21099_v28  ;;  %v12843_v28 = vadd.f32 %v22727_v13, %v10463_v53  ;;  %v21189_v53 = vld [vmem:[#allocation19 + $0xbbc] ss:$48 sps:$4 sm:$0xff]  }
 0xa21   :  { %15523 = vmatpush2.bf16.msra.mxu1 %v21172_v26 }
 0xa22   :  { %15524 = vmatprep.subr.bf16.mxu1 %v21180_v52  ;;  %v21145_v52 = vld [vmem:[#allocation19 + $0x858] ss:$48 sps:$4 sm:$0xff]  }
 0xa23   :  { %15484 = vmatpush2.bf16.msra.mxu0 %v21097_v56  ;;  %v21153_v56 = vld [vmem:[#allocation19 + $0x7fc] ss:$48 sps:$4 sm:$0xff]  }
 0xa24   :  { %15485 = vmatprep.subr.bf16.mxu0 %v21105_v44 }
 0xa25   :  { %15525 = vmatpush2.bf16.msra.mxu1 %v21178_v2  ;;  %v21229_v2 = vld [vmem:[#allocation19 + $0x260] ss:$48 sps:$4 sm:$0xff]  }
 0xa26   :  { %15526 = vmatprep.subr.bf16.mxu1 %v21186_v3 }
 0xa27   :  { %15486 = vmatpush2.bf16.msra.mxu0 %v21103_v57  ;;  %v21234_v57 = vld [vmem:[#allocation19 + $0x204] ss:$48 sps:$4 sm:$0xff]  }
 0xa28   :  { %15487 = vmatprep.subr.bf16.mxu0 %v21111_v20  ;;  %v21151_v20 = vld [vmem:[#allocation19 + $0x7f8] ss:$48 sps:$4 sm:$0xff]  }
 0xa29   :  { %15527 = vmatpush2.bf16.msra.mxu1 %v21184_v14 }
 0xa2a   :  { %15528 = vmatprep.subr.bf16.mxu1 %v21192_v61  ;;  %v21159_v61 = vld [vmem:[#allocation19 + $0x79c] ss:$48 sps:$4 sm:$0xff]  }
 0xa2b   :  { %15488 = vmatpush2.bf16.msra.mxu0 %v21109_v7 }
 0xa2c   :  { %15489 = vmatprep.subr.bf16.mxu0 %v21117_v59  ;;  %v21232_v59 = vld [vmem:[#allocation19 + $0x200] ss:$48 sps:$4 sm:$0xff]  }
 0xa2d   :  { %15529 = vmatpush2.bf16.msra.mxu1 %v21190_v45 }
 0xa2e   :  { %15530 = vmatprep.subr.bf16.mxu1 %v21198_v34  ;;  %v21240_v34 = vld [vmem:[#allocation19 + $0x1a4] ss:$48 sps:$4 sm:$0xff]  }
 0xa2f   :  { %15490 = vmatpush2.bf16.msra.mxu0 %v21115_v29  ;;  %v21157_v29 = vld [vmem:[#allocation19 + $0x798] ss:$48 sps:$4 sm:$0xff]  }
 0xa30   :  { %15491 = vmatprep.subr.bf16.mxu0 %v21123_v25  ;;  %v21165_v25 = vld [vmem:[#allocation19 + $0x73c] ss:$48 sps:$4 sm:$0xff]  }
 0xa31   :  { %15531 = vmatpush2.bf16.msra.mxu1 %v21196_v60  ;;  %v21238_v60 = vld [vmem:[#allocation19 + $0x1a0] ss:$48 sps:$4 sm:$0xff]  }
 0xa32   :  { %15532 = vmatprep.subr.bf16.mxu1 %v21204_v41  ;;  %v21246_v41 = vld [vmem:[#allocation19 + $0x144] ss:$48 sps:$4 sm:$0xff]  }
 0xa33   :  { %15492 = vmatpush2.bf16.msra.mxu0 %v21121_v36  ;;  %v21163_v36 = vld [vmem:[#allocation19 + $0x738] ss:$48 sps:$4 sm:$0xff]  }
 0xa34   :  { %15493 = vmatprep.subr.bf16.mxu0 %v21126_v33  ;;  %v21171_v33 = vld [vmem:[#allocation19 + $0x6dc] ss:$48 sps:$4 sm:$0xff]  }
 0xa35   :  { %15533 = vmatpush2.bf16.msra.mxu1 %v21202_v11  ;;  %v21244_v11 = vld [vmem:[#allocation19 + $0x140] ss:$48 sps:$4 sm:$0xff]  }
 0xa36   :  { %15534 = vmatprep.subr.bf16.mxu1 %v21210_v54  ;;  %v21252_v54 = vld [vmem:[#allocation19 + $0xe4] ss:$48 sps:$4 sm:$0xff]  }
 0xa37   :  { %15494 = vmatpush2.bf16.msra.mxu0 %v21124_v49  ;;  %v21169_v49 = vld [vmem:[#allocation19 + $0x6d8] ss:$48 sps:$4 sm:$0xff]  }
 0xa38   :  { %15495 = vmatprep.subr.bf16.mxu0 %v21132_v19  ;;  %v21177_v19 = vld [vmem:[#allocation19 + $0x67c] ss:$48 sps:$4 sm:$0xff]  }
 0xa39   :  { %15535 = vmatpush2.bf16.msra.mxu1 %v21208_v18  ;;  %v21250_v18 = vld [vmem:[#allocation19 + $0xe0] ss:$48 sps:$4 sm:$0xff]  }
 0xa3a   :  { %15536 = vmatprep.subr.bf16.mxu1 %v21216_v62  ;;  %v21258_v62 = vld [vmem:[#allocation19 + $0x84] ss:$48 sps:$4 sm:$0xff]  }
 0xa3b   :  { %15496 = vmatpush2.bf16.msra.mxu0 %v21130_v24  ;;  %v21175_v24 = vld [vmem:[#allocation19 + $0x678] ss:$48 sps:$4 sm:$0xff]  }
 0xa3c   :  { %15547 = vmatprep.subr.bf16.mxu0 %v21141_v55  ;;  %v21183_v55 = vld [vmem:[#allocation19 + $0x61c] ss:$48 sps:$4 sm:$0xff]  }
 0xa3d   :  { %15537 = vmatpush2.bf16.msra.mxu1 %v21214_v38  ;;  %v21264_v38 = vld [vmem:[#allocation19 + $0x24] ss:$48 sps:$4 sm:$0xff]  }
 0xa3e   :  { %v12881_v10 = vpop.f32.mrf.mxu0  ;;  %15498 = vmatmul.mubr.bf16.vlgmr.msra.gmra.mxu0 %v22692_v15  ;;  %15588 = vmatprep.subr.bf16.mxu1 %v21225_v23  ;;  %v21181_v23 = vld [vmem:[#allocation19 + $0x618] ss:$48 sps:$4 sm:$0xff]  }
 0xa3f   :  { %v22737_v26 = vadd.f32 %v12881_v10, %v12841_v46  ;;  %15548 = vmatpush1.bf16.msra.mxu0 %v21139_v39  ;;  %15579 = vmatprep.mubr.bf16.mxu0 %v22669_v30  ;;  %v21262_v39 = vld [vmem:[#allocation19 + $0x20] ss:$48 sps:$4 sm:$0xff]   ;;  %v21187_v46 = vld [vmem:[#allocation19 + $0xbb8] ss:$48 sps:$4 sm:$0xff]  }
 0xa40   :  { %v12883_v40 = vpop.f32.mrf.mxu0  ;;  %15549 = vmatprep.subr.bf16.mxu0 %v21147_v63  ;;  %v22740_v44 = vpop.f32.mrf.mxu1  ;;  %15539 = vmatmul.mubr.bf16.vlgmr.msra.gmra.mxu1 %v22671_v43  ;;  %v21270_v63 = vld [vmem:[#allocation19 + $0x5c4] ss:$48 sps:$4 sm:$0xff]   ;;  %v21268_v10 = vld [vmem:[#allocation19 + $0x5c0] ss:$48 sps:$4 sm:$0xff]  }
 0xa41   :  { %v22743_v1 = vadd.f32 %v12883_v40, %v12843_v28  ;;  %15589 = vmatpush1.bf16.msra.mxu1 %v21223_v50  ;;  %15620 = vmatprep.mubr.bf16.mxu1 %v22644_v42  ;;  %v21195_v50 = vld [vmem:[#allocation19 + $0xb5c] ss:$48 sps:$4 sm:$0xff]   ;;  %v21193_v28 = vld [vmem:[#allocation19 + $0xb58] ss:$48 sps:$4 sm:$0xff]   ;;  %v21274_v40 = vld [vmem:[#allocation19 + $0x560] ss:$48 sps:$4 sm:$0xff]  }
 0xa42   :  { %v12885_v13 = vpop.f32.mrf.mxu0  ;;  %v22746_v3 = vpop.f32.mrf.mxu1  ;;  %15590 = vmatprep.subr.bf16.mxu1 %v21231_v12  ;;  %v21276_v12 = vld [vmem:[#allocation19 + $0x564] ss:$48 sps:$4 sm:$0xff]  }
 0xa43   :  { %15550 = vmatpush1.bf16.msra.mxu0 %v21145_v52  ;;  %v21201_v52 = vld [vmem:[#allocation19 + $0xafc] ss:$48 sps:$4 sm:$0xff]  }
 0xa44   :  { %v12886_v14 = vpop.f32.mrf.mxu0  ;;  %15551 = vmatprep.subr.bf16.mxu0 %v21153_v56  ;;  %v15298_v7 = vpop.f32.mrf.mxu1  ;;  %v21282_v56 = vld [vmem:[#allocation19 + $0x504] ss:$48 sps:$4 sm:$0xff]   ;;  %v21207_v13 = vld [vmem:[#allocation19 + $0xa9c] ss:$48 sps:$4 sm:$0xff]  }
 0xa45   :  { %15591 = vmatpush1.bf16.msra.mxu1 %v21229_v2  ;;  %v21199_v2 = vld [vmem:[#allocation19 + $0xaf8] ss:$48 sps:$4 sm:$0xff]   ;;  %v21286_v7 = vld [vmem:[#allocation19 + $0x4a0] ss:$48 sps:$4 sm:$0xff]  }
 0xa46   :  { %v15299_v45 = vpop.f32.mrf.mxu1  ;;  %15592 = vmatprep.subr.bf16.mxu1 %v21234_v57  ;;  %v21280_v57 = vld [vmem:[#allocation19 + $0x500] ss:$48 sps:$4 sm:$0xff]   ;;  %v21205_v14 = vld [vmem:[#allocation19 + $0xa98] ss:$48 sps:$4 sm:$0xff]  }
 0xa47   :  { %15552 = vmatpush1.bf16.msra.mxu0 %v21151_v20  ;;  %v21288_v20 = vld [vmem:[#allocation19 + $0x4a4] ss:$48 sps:$4 sm:$0xff]   ;;  %v21211_v45 = vld [vmem:[#allocation19 + $0xa38] ss:$48 sps:$4 sm:$0xff]  }
 0xa48   :  { %15553 = vmatprep.subr.bf16.mxu0 %v21159_v61  ;;  %v21213_v61 = vld [vmem:[#allocation19 + $0xa3c] ss:$48 sps:$4 sm:$0xff]  }
 0xa49   :  { %15593 = vmatpush1.bf16.msra.mxu1 %v21232_v59  ;;  %v21294_v59 = vld [vmem:[#allocation19 + $0x444] ss:$48 sps:$4 sm:$0xff]  }
 0xa4a   :  { %15594 = vmatprep.subr.bf16.mxu1 %v21240_v34  ;;  %v21219_v34 = vld [vmem:[#allocation19 + $0x9dc] ss:$48 sps:$4 sm:$0xff]  }
 0xa4b   :  { %15554 = vmatpush1.bf16.msra.mxu0 %v21157_v29  ;;  %v21292_v29 = vld [vmem:[#allocation19 + $0x440] ss:$48 sps:$4 sm:$0xff]  }
 0xa4c   :  { %15555 = vmatprep.subr.bf16.mxu0 %v21165_v25  ;;  %v21300_v25 = vld [vmem:[#allocation19 + $0x3e4] ss:$48 sps:$4 sm:$0xff]  }
 0xa4d   :  { %15595 = vmatpush1.bf16.msra.mxu1 %v21238_v60  ;;  %v21217_v60 = vld [vmem:[#allocation19 + $0x9d8] ss:$48 sps:$4 sm:$0xff]  }
 0xa4e   :  { %15596 = vmatprep.subr.bf16.mxu1 %v21246_v41  ;;  %v21222_v41 = vld [vmem:[#allocation19 + $0x97c] ss:$48 sps:$4 sm:$0xff]  }
 0xa4f   :  { %15556 = vmatpush1.bf16.msra.mxu0 %v21163_v36  ;;  %v21298_v36 = vld [vmem:[#allocation19 + $0x3e0] ss:$48 sps:$4 sm:$0xff]  }
 0xa50   :  { %15557 = vmatprep.subr.bf16.mxu0 %v21171_v33  ;;  %v21306_v33 = vld [vmem:[#allocation19 + $0x384] ss:$48 sps:$4 sm:$0xff]  }
 0xa51   :  { %15597 = vmatpush1.bf16.msra.mxu1 %v21244_v11  ;;  %v21220_v11 = vld [vmem:[#allocation19 + $0x978] ss:$48 sps:$4 sm:$0xff]  }
 0xa52   :  { %15598 = vmatprep.subr.bf16.mxu1 %v21252_v54  ;;  %v22748_v54 = vld [vmem:[#allocation22] sm:$0xff] }
 0xa53   :  { %15558 = vmatpush1.bf16.msra.mxu0 %v21169_v49  ;;  %v21228_v49 = vld [vmem:[#allocation19 + $0x91c] ss:$48 sps:$4 sm:$0xff]  }
 0xa54   :  { %15559 = vmatprep.subr.bf16.mxu0 %v21177_v19  ;;  %v21304_v19 = vld [vmem:[#allocation19 + $0x380] ss:$48 sps:$4 sm:$0xff]  }
 0xa55   :  { %15599 = vmatpush1.bf16.msra.mxu1 %v21250_v18  ;;  %v21312_v18 = vld [vmem:[#allocation19 + $0x324] ss:$48 sps:$4 sm:$0xff]  }
 0xa56   :  { %15600 = vmatprep.subr.bf16.mxu1 %v21258_v62  ;;  %v13283_v62 = vrot.slane %v22748_v54, %v22191_v31 }
 0xa57   :  { %15560 = vmatpush1.bf16.msra.mxu0 %v21175_v24  ;;  %v21226_v24 = vld [vmem:[#allocation19 + $0x918] ss:$48 sps:$4 sm:$0xff]  }
 0xa58   :  { %15561 = vmatprep.subr.bf16.mxu0 %v21183_v55  ;;  %v21237_v55 = vld [vmem:[#allocation19 + $0x8c4] ss:$48 sps:$4 sm:$0xff]  }
 0xa59   :  { %15601 = vmatpush1.bf16.msra.mxu1 %v21256_v9  ;;  %v13287_v9 = vrot.slane %v22748_v54, %v22194_v35 }
 0xa5a   :  { %15602 = vmatprep.subr.bf16.mxu1 %v21264_v38  ;;  %v21310_v38 = vld [vmem:[#allocation19 + $0x320] ss:$48 sps:$4 sm:$0xff]  }
 0xa5b   :  { %15562 = vmatpush1.bf16.msra.mxu0 %v21181_v23  ;;  %v21321_v23 = vld [vmem:[#allocation19 + $0x2cc] ss:$48 sps:$4 sm:$0xff]  }
 0xa5c   :  { %15563 = vmatprep.subr.bf16.mxu0 %v21189_v53  ;;  %v15295_v53 = vadd.f32 %v22740_v44, %v13283_v62  ;;  %v21249_v44 = vld [vmem:[#allocation19 + $0x804] ss:$48 sps:$4 sm:$0xff]   ;;  %v21346_v62 = vld [vmem:[#allocation19 + $0xe8] ss:$48 sps:$4 sm:$0xff]  }
 0xa5d   :  { %15603 = vmatpush1.bf16.msra.mxu1 %v21262_v39  ;;  %v21235_v39 = vld [vmem:[#allocation19 + $0x8c0] ss:$48 sps:$4 sm:$0xff]  }
 0xa5e   :  { %15604 = vmatprep.subr.bf16.mxu1 %v21270_v63  ;;  %v21243_v63 = vld [vmem:[#allocation19 + $0x864] ss:$48 sps:$4 sm:$0xff]  }
 0xa5f   :  { %15564 = vmatpush2.bf16.msra.mxu0 %v21187_v46  ;;  %v15297_v46 = vadd.f32 %v22746_v3, %v13287_v9  ;;  %v21279_v9 = vld [vmem:[#allocation19 + $0x624] ss:$48 sps:$4 sm:$0xff]  }
 0xa60   :  { %15565 = vmatprep.subr.bf16.mxu0 %v21195_v50  ;;  %v21319_v50 = vld [vmem:[#allocation19 + $0x2c8] ss:$48 sps:$4 sm:$0xff]  }
 0xa61   :  { %15605 = vmatpush2.bf16.msra.mxu1 %v21268_v10 }
 0xa62   :  { %15606 = vmatprep.subr.bf16.mxu1 %v21276_v12  ;;  %v21327_v12 = vld [vmem:[#allocation19 + $0x26c] ss:$48 sps:$4 sm:$0xff]  }
 0xa63   :  { %15566 = vmatpush2.bf16.msra.mxu0 %v21193_v28 }
 0xa64   :  { %15567 = vmatprep.subr.bf16.mxu0 %v21201_v52  ;;  %v21241_v52 = vld [vmem:[#allocation19 + $0x860] ss:$48 sps:$4 sm:$0xff]  }
 0xa65   :  { %15607 = vmatpush2.bf16.msra.mxu1 %v21274_v40 }
 0xa66   :  { %15608 = vmatprep.subr.bf16.mxu1 %v21282_v56 }
 0xa67   :  { %15568 = vmatpush2.bf16.msra.mxu0 %v21199_v2 }
 0xa68   :  { %15569 = vmatprep.subr.bf16.mxu0 %v21207_v13  ;;  %v21325_v13 = vld [vmem:[#allocation19 + $0x268] ss:$48 sps:$4 sm:$0xff]  }
 0xa69   :  { %15609 = vmatpush2.bf16.msra.mxu1 %v21280_v57 }
 0xa6a   :  { %15610 = vmatprep.subr.bf16.mxu1 %v21288_v20 }
 0xa6b   :  { %15570 = vmatpush2.bf16.msra.mxu0 %v21205_v14  ;;  %v21330_v14 = vld [vmem:[#allocation19 + $0x20c] ss:$48 sps:$4 sm:$0xff]  }
 0xa6c   :  { %15571 = vmatprep.subr.bf16.mxu0 %v21213_v61 }
 0xa6d   :  { %15611 = vmatpush2.bf16.msra.mxu1 %v21286_v7  ;;  %v21247_v7 = vld [vmem:[#allocation19 + $0x800] ss:$48 sps:$4 sm:$0xff]  }
 0xa6e   :  { %15612 = vmatprep.subr.bf16.mxu1 %v21294_v59 }
 0xa6f   :  { %15572 = vmatpush2.bf16.msra.mxu0 %v21211_v45  ;;  %v21255_v45 = vld [vmem:[#allocation19 + $0x7a4] ss:$48 sps:$4 sm:$0xff]  }
 0xa70   :  { %15573 = vmatprep.subr.bf16.mxu0 %v21219_v34  ;;  %v21328_v34 = vld [vmem:[#allocation19 + $0x208] ss:$48 sps:$4 sm:$0xff]  }
 0xa71   :  { %15613 = vmatpush2.bf16.msra.mxu1 %v21292_v29 }
 0xa72   :  { %15614 = vmatprep.subr.bf16.mxu1 %v21300_v25  ;;  %v21336_v25 = vld [vmem:[#allocation19 + $0x1ac] ss:$48 sps:$4 sm:$0xff]  }
 0xa73   :  { %15574 = vmatpush2.bf16.msra.mxu0 %v21217_v60  ;;  %v21261_v60 = vld [vmem:[#allocation19 + $0x744] ss:$48 sps:$4 sm:$0xff]  }
 0xa74   :  { %15575 = vmatprep.subr.bf16.mxu0 %v21222_v41  ;;  %v21334_v41 = vld [vmem:[#allocation19 + $0x1a8] ss:$48 sps:$4 sm:$0xff]  }
 0xa75   :  { %15615 = vmatpush2.bf16.msra.mxu1 %v21298_v36  ;;  %v21259_v36 = vld [vmem:[#allocation19 + $0x740] ss:$48 sps:$4 sm:$0xff]  }
 0xa76   :  { %15616 = vmatprep.subr.bf16.mxu1 %v21306_v33  ;;  %v21267_v33 = vld [vmem:[#allocation19 + $0x6e4] ss:$48 sps:$4 sm:$0xff]  }
 0xa77   :  { %15576 = vmatpush2.bf16.msra.mxu0 %v21220_v11  ;;  %v21340_v11 = vld [vmem:[#allocation19 + $0x148] ss:$48 sps:$4 sm:$0xff]  }
 0xa78   :  { %15577 = vmatprep.subr.bf16.mxu0 %v21228_v49  ;;  %v21348_v49 = vld [vmem:[#allocation19 + $0xec] ss:$48 sps:$4 sm:$0xff]  }
 0xa79   :  { %15617 = vmatpush2.bf16.msra.mxu1 %v21304_v19  ;;  %v21265_v19 = vld [vmem:[#allocation19 + $0x6e0] ss:$48 sps:$4 sm:$0xff]  }
 0xa7a   :  { %15618 = vmatprep.subr.bf16.mxu1 %v21312_v18  ;;  %v21273_v18 = vld [vmem:[#allocation19 + $0x684] ss:$48 sps:$4 sm:$0xff]  }
 0xa7b   :  { %15578 = vmatpush2.bf16.msra.mxu0 %v21226_v24  ;;  %v21354_v24 = vld [vmem:[#allocation19 + $0x8c] ss:$48 sps:$4 sm:$0xff]  }
 0xa7c   :  { %15629 = vmatprep.subr.bf16.mxu0 %v21237_v55  ;;  %v21271_v55 = vld [vmem:[#allocation19 + $0x680] ss:$48 sps:$4 sm:$0xff]  }
 0xa7d   :  { %15619 = vmatpush2.bf16.msra.mxu1 %v21310_v38  ;;  %v21352_v38 = vld [vmem:[#allocation19 + $0x88] ss:$48 sps:$4 sm:$0xff]  }
 0xa7e   :  { %v15335_v10 = vpop.f32.mrf.mxu0  ;;  %15580 = vmatmul.mubr.bf16.vlgmr.msra.gmra.mxu0 %v22692_v15  ;;  %15670 = vmatprep.subr.bf16.mxu1 %v21321_v23  ;;  %v21360_v23 = vld [vmem:[#allocation19 + $0x2c] ss:$48 sps:$4 sm:$0xff]  }
 0xa7f   :  { %v15336_v28 = vadd.f32 %v15335_v10, %v15295_v53  ;;  %15630 = vmatpush1.bf16.msra.mxu0 %v21235_v39  ;;  %15661 = vmatprep.mubr.bf16.mxu0 %v22669_v30  ;;  %v21277_v53 = vld [vmem:[#allocation19 + $0x620] ss:$48 sps:$4 sm:$0xff]   ;;  %v21285_v39 = vld [vmem:[#allocation19 + $0xbc4] ss:$48 sps:$4 sm:$0xff]  }
 0xa80   :  { %v15337_v40 = vpop.f32.mrf.mxu0  ;;  %15631 = vmatprep.subr.bf16.mxu0 %v21243_v63  ;;  %v22758_v56 = vpop.f32.mrf.mxu1  ;;  %15621 = vmatmul.mubr.bf16.vlgmr.msra.gmra.mxu1 %v22671_v43  ;;  %v21358_v63 = vld [vmem:[#allocation19 + $0x28] ss:$48 sps:$4 sm:$0xff]   ;;  %v21291_v10 = vld [vmem:[#allocation19 + $0xb64] ss:$48 sps:$4 sm:$0xff]  }
 0xa81   :  { %v22762_v3 = vadd.f32 %v15336_v28, %v22628_v21  ;;  %v15338_v2 = vadd.f32 %v15337_v40, %v15297_v46  ;;  %15671 = vmatpush1.bf16.msra.mxu1 %v21319_v50  ;;  %15702 = vmatprep.mubr.bf16.mxu1 %v22644_v42  ;;  %v21253_v42 = vld [vmem:[#allocation19 + $0x7a0] ss:$48 sps:$4 sm:$0xff]   ;;  %v21366_v46 = vld [vmem:[#allocation19 + $0x5cc] ss:$48 sps:$4 sm:$0xff]   ;;  %v21297_v40 = vld [vmem:[#allocation19 + $0xb04] ss:$48 sps:$4 sm:$0xff]  }
 0xa82   :  { %v15339_v57 = vpop.f32.mrf.mxu0  ;;  %v22765_v20 = vpop.f32.mrf.mxu1  ;;  %15672 = vmatprep.subr.bf16.mxu1 %v21327_v12  ;;  %v21283_v50 = vld [vmem:[#allocation19 + $0xbc0] ss:$48 sps:$4 sm:$0xff]   ;;  %v21364_v12 = vld [vmem:[#allocation19 + $0x5c8] ss:$48 sps:$4 sm:$0xff]   ;;  %v21372_v28 = vld [vmem:[#allocation19 + $0x56c] ss:$48 sps:$4 sm:$0xff]  }
 0xa83   :  { %v22768_v61 = vadd.f32 %v15338_v2, %v22634_v32  ;;  %15632 = vmatpush1.bf16.msra.mxu0 %v21241_v52  ;;  %v21342_v32 = vld [vmem:[#allocation19 + $0x14c] ss:$48 sps:$4 sm:$0xff]   ;;  %v21289_v52 = vld [vmem:[#allocation19 + $0xb60] ss:$48 sps:$4 sm:$0xff]   ;;  %v21303_v57 = vld [vmem:[#allocation19 + $0xaa4] ss:$48 sps:$4 sm:$0xff]  }
 0xa84   :  { %v15340_v59 = vpop.f32.mrf.mxu0  ;;  %15633 = vmatprep.subr.bf16.mxu0 %v21249_v44  ;;  %v15380_v21 = vpop.f32.mrf.mxu1  ;;  %v21370_v44 = vld [vmem:[#allocation19 + $0x568] ss:$48 sps:$4 sm:$0xff]   ;;  %v21378_v2 = vld [vmem:[#allocation19 + $0x50c] ss:$48 sps:$4 sm:$0xff]  }
 0xa85   :  { %15673 = vmatpush1.bf16.msra.mxu1 %v21325_v13  ;;  %v21295_v13 = vld [vmem:[#allocation19 + $0xb00] ss:$48 sps:$4 sm:$0xff]   ;;  %v21382_v21 = vld [vmem:[#allocation19 + $0x4a8] ss:$48 sps:$4 sm:$0xff]  }
 0xa86   :  { %v15381_v29 = vpop.f32.mrf.mxu1  ;;  %15674 = vmatprep.subr.bf16.mxu1 %v21330_v14  ;;  %v21376_v14 = vld [vmem:[#allocation19 + $0x508] ss:$48 sps:$4 sm:$0xff]   ;;  %v21301_v59 = vld [vmem:[#allocation19 + $0xaa0] ss:$48 sps:$4 sm:$0xff]  }
 0xa87   :  { %15634 = vmatpush1.bf16.msra.mxu0 %v21247_v7  ;;  %v21384_v7 = vld [vmem:[#allocation19 + $0x4ac] ss:$48 sps:$4 sm:$0xff]   ;;  %v21307_v29 = vld [vmem:[#allocation19 + $0xa40] ss:$48 sps:$4 sm:$0xff]  }
 0xa88   :  { %15635 = vmatprep.subr.bf16.mxu0 %v21255_v45  ;;  %v21309_v45 = vld [vmem:[#allocation19 + $0xa44] ss:$48 sps:$4 sm:$0xff]  }
 0xa89   :  { %15675 = vmatpush1.bf16.msra.mxu1 %v21328_v34  ;;  %v21390_v34 = vld [vmem:[#allocation19 + $0x44c] ss:$48 sps:$4 sm:$0xff]  }
 0xa8a   :  { %15676 = vmatprep.subr.bf16.mxu1 %v21336_v25  ;;  %v21315_v25 = vld [vmem:[#allocation19 + $0x9e4] ss:$48 sps:$4 sm:$0xff]  }
 0xa8b   :  { %15636 = vmatpush1.bf16.msra.mxu0 %v21253_v42  ;;  %v21388_v42 = vld [vmem:[#allocation19 + $0x448] ss:$48 sps:$4 sm:$0xff]  }
 0xa8c   :  { %15637 = vmatprep.subr.bf16.mxu0 %v21261_v60  ;;  %v21396_v60 = vld [vmem:[#allocation19 + $0x3ec] ss:$48 sps:$4 sm:$0xff]  }
 0xa8d   :  { %15677 = vmatpush1.bf16.msra.mxu1 %v21334_v41  ;;  %v21313_v41 = vld [vmem:[#allocation19 + $0x9e0] ss:$48 sps:$4 sm:$0xff]  }
 0xa8e   :  { %15678 = vmatprep.subr.bf16.mxu1 %v21342_v32  ;;  %v21318_v32 = vld [vmem:[#allocation19 + $0x984] ss:$48 sps:$4 sm:$0xff]  }
 0xa8f   :  { %15638 = vmatpush1.bf16.msra.mxu0 %v21259_v36  ;;  %v21394_v36 = vld [vmem:[#allocation19 + $0x3e8] ss:$48 sps:$4 sm:$0xff]  }
 0xa90   :  { %15639 = vmatprep.subr.bf16.mxu0 %v21267_v33  ;;  %v21402_v33 = vld [vmem:[#allocation19 + $0x38c] ss:$48 sps:$4 sm:$0xff]  }
 0xa91   :  { %15679 = vmatpush1.bf16.msra.mxu1 %v21340_v11  ;;  %v21316_v11 = vld [vmem:[#allocation19 + $0x980] ss:$48 sps:$4 sm:$0xff]  }
 0xa92   :  { %15680 = vmatprep.subr.bf16.mxu1 %v21348_v49  ;;  %v21324_v49 = vld [vmem:[#allocation19 + $0x924] ss:$48 sps:$4 sm:$0xff]  }
 0xa93   :  { %15640 = vmatpush1.bf16.msra.mxu0 %v21265_v19  ;;  %v21400_v19 = vld [vmem:[#allocation19 + $0x388] ss:$48 sps:$4 sm:$0xff]  }
 0xa94   :  { %15641 = vmatprep.subr.bf16.mxu0 %v21273_v18  ;;  %v21408_v18 = vld [vmem:[#allocation19 + $0x32c] ss:$48 sps:$4 sm:$0xff]  }
 0xa95   :  { %15681 = vmatpush1.bf16.msra.mxu1 %v21346_v62  ;;  %v13291_v62 = vrot.slane %v22748_v54, %v22133_v48 }
 0xa96   :  { %15682 = vmatprep.subr.bf16.mxu1 %v21354_v24  ;;  %v21322_v24 = vld [vmem:[#allocation19 + $0x920] ss:$48 sps:$4 sm:$0xff]  }
 0xa97   :  { %15642 = vmatpush1.bf16.msra.mxu0 %v21271_v55  ;;  %v21333_v55 = vld [vmem:[#allocation19 + $0x8cc] ss:$48 sps:$4 sm:$0xff]  }
 0xa98   :  { %15643 = vmatprep.subr.bf16.mxu0 %v21279_v9  ;;  %v13295_v9 = vrot.slane %v22748_v54, %v22138_v5 }
 0xa99   :  { %15683 = vmatpush1.bf16.msra.mxu1 %v21352_v38  ;;  %v21406_v38 = vld [vmem:[#allocation19 + $0x328] ss:$48 sps:$4 sm:$0xff]  }
 0xa9a   :  { %15684 = vmatprep.subr.bf16.mxu1 %v21360_v23  ;;  %v15377_v23 = vadd.f32 %v22758_v56, %v13291_v62  ;;  %v21405_v62 = vld [vmem:[#allocation19 + $0xa4c] ss:$48 sps:$4 sm:$0xff]  }
 0xa9b   :  { %15644 = vmatpush1.bf16.msra.mxu0 %v21277_v53  ;;  %v21331_v53 = vld [vmem:[#allocation19 + $0x8c8] ss:$48 sps:$4 sm:$0xff]  }
 0xa9c   :  { %15645 = vmatprep.subr.bf16.mxu0 %v21285_v39  ;;  %v21339_v39 = vld [vmem:[#allocation19 + $0x86c] ss:$48 sps:$4 sm:$0xff]  }
 0xa9d   :  { %15685 = vmatpush1.bf16.msra.mxu1 %v21358_v63  ;;  %v15379_v63 = vadd.f32 %v22765_v20, %v13295_v9  ;;  %v21409_v9 = vld [vmem:[#allocation19 + $0x9e8] ss:$48 sps:$4 sm:$0xff]  }
 0xa9e   :  { %15686 = vmatprep.subr.bf16.mxu1 %v21366_v46 }
 0xa9f   :  { %15646 = vmatpush2.bf16.msra.mxu0 %v21283_v50 }
 0xaa0   :  { %15647 = vmatprep.subr.bf16.mxu0 %v21291_v10  ;;  %v21337_v10 = vld [vmem:[#allocation19 + $0x868] ss:$48 sps:$4 sm:$0xff]  }
 0xaa1   :  { %15687 = vmatpush2.bf16.msra.mxu1 %v21364_v12 }
 0xaa2   :  { %15688 = vmatprep.subr.bf16.mxu1 %v21372_v28  ;;  %v21345_v28 = vld [vmem:[#allocation19 + $0x80c] ss:$48 sps:$4 sm:$0xff]  }
 0xaa3   :  { %15648 = vmatpush2.bf16.msra.mxu0 %v21289_v52 }
 0xaa4   :  { %15649 = vmatprep.subr.bf16.mxu0 %v21297_v40 }
 0xaa5   :  { %15689 = vmatpush2.bf16.msra.mxu1 %v21370_v44 }
 0xaa6   :  { %15690 = vmatprep.subr.bf16.mxu1 %v21378_v2 }
 0xaa7   :  { %15650 = vmatpush2.bf16.msra.mxu0 %v21295_v13  ;;  %v21343_v13 = vld [vmem:[#allocation19 + $0x808] ss:$48 sps:$4 sm:$0xff]  }
 0xaa8   :  { %15651 = vmatprep.subr.bf16.mxu0 %v21303_v57  ;;  %v21351_v57 = vld [vmem:[#allocation19 + $0x7ac] ss:$48 sps:$4 sm:$0xff]  }
 0xaa9   :  { %15691 = vmatpush2.bf16.msra.mxu1 %v21376_v14 }
 0xaaa   :  { %15692 = vmatprep.subr.bf16.mxu1 %v21384_v7 }
 0xaab   :  { %15652 = vmatpush2.bf16.msra.mxu0 %v21301_v59  ;;  %v21357_v59 = vld [vmem:[#allocation19 + $0x74c] ss:$48 sps:$4 sm:$0xff]  }
 0xaac   :  { %15653 = vmatprep.subr.bf16.mxu0 %v21309_v45  ;;  %v21363_v45 = vld [vmem:[#allocation19 + $0x6ec] ss:$48 sps:$4 sm:$0xff]  }
 0xaad   :  { %15693 = vmatpush2.bf16.msra.mxu1 %v21382_v21  ;;  %v21361_v21 = vld [vmem:[#allocation19 + $0x6e8] ss:$48 sps:$4 sm:$0xff]  }
 0xaae   :  { %15694 = vmatprep.subr.bf16.mxu1 %v21390_v34  ;;  %v21367_v34 = vld [vmem:[#allocation19 + $0x688] ss:$48 sps:$4 sm:$0xff]  }
 0xaaf   :  { %15654 = vmatpush2.bf16.msra.mxu0 %v21307_v29  ;;  %v21375_v29 = vld [vmem:[#allocation19 + $0x62c] ss:$48 sps:$4 sm:$0xff]  }
 0xab0   :  { %15655 = vmatprep.subr.bf16.mxu0 %v21315_v25  ;;  %v21373_v25 = vld [vmem:[#allocation19 + $0x628] ss:$48 sps:$4 sm:$0xff]  }
 0xab1   :  { %15695 = vmatpush2.bf16.msra.mxu1 %v21388_v42  ;;  %v21418_v42 = vld [vmem:[#allocation23 + $0x78] sm:$0xff]  }
 0xab2   :  { %15696 = vmatprep.subr.bf16.mxu1 %v21396_v60  ;;  %v21419_v60 = vld [vmem:[#allocation23 + $0x38] sm:$0xff]  }
 0xab3   :  { %15656 = vmatpush2.bf16.msra.mxu0 %v21313_v41  ;;  %v21381_v41 = vld [vmem:[#allocation19 + $0xbcc] ss:$48 sps:$4 sm:$0xff]  }
 0xab4   :  { %15657 = vmatprep.subr.bf16.mxu0 %v21318_v32  ;;  %v21379_v32 = vld [vmem:[#allocation19 + $0xbc8] ss:$48 sps:$4 sm:$0xff]  }
 0xab5   :  { %15697 = vmatpush2.bf16.msra.mxu1 %v21394_v36  ;;  %v21387_v36 = vld [vmem:[#allocation19 + $0xb6c] ss:$48 sps:$4 sm:$0xff]  }
 0xab6   :  { %15698 = vmatprep.subr.bf16.mxu1 %v21402_v33  ;;  %v21385_v33 = vld [vmem:[#allocation19 + $0xb68] ss:$48 sps:$4 sm:$0xff]  }
 0xab7   :  { %15658 = vmatpush2.bf16.msra.mxu0 %v21316_v11  ;;  %v21393_v11 = vld [vmem:[#allocation19 + $0xb0c] ss:$48 sps:$4 sm:$0xff]  }
 0xab8   :  { %15659 = vmatprep.subr.bf16.mxu0 %v21324_v49  ;;  %v21391_v49 = vld [vmem:[#allocation19 + $0xb08] ss:$48 sps:$4 sm:$0xff]  }
 0xab9   :  { %15699 = vmatpush2.bf16.msra.mxu1 %v21400_v19  ;;  %v21399_v19 = vld [vmem:[#allocation19 + $0xaac] ss:$48 sps:$4 sm:$0xff]  }
 0xaba   :  { %15700 = vmatprep.subr.bf16.mxu1 %v21408_v18  ;;  %v21397_v18 = vld [vmem:[#allocation19 + $0xaa8] ss:$48 sps:$4 sm:$0xff]  }
 0xabb   :  { %15660 = vmatpush2.bf16.msra.mxu0 %v21322_v24  ;;  %v21403_v24 = vld [vmem:[#allocation19 + $0xa48] ss:$48 sps:$4 sm:$0xff]  }
 0xabc   :  { %15711 = vmatprep.subr.bf16.mxu0 %v21333_v55  ;;  %v21411_v55 = vld [vmem:[#allocation19 + $0x9ec] ss:$48 sps:$4 sm:$0xff]  }
 0xabd   :  { %15701 = vmatpush2.bf16.msra.mxu1 %v21406_v38  ;;  %v21414_v38 = vld [vmem:[#allocation19 + $0x98c] ss:$48 sps:$4 sm:$0xff]  }
 0xabe   :  { %v15417_v46 = vpop.f32.mrf.mxu0  ;;  %15662 = vmatmul.mubr.bf16.vlgmr.msra.gmra.mxu0 %v22692_v15  ;;  %18314 = vmatprep.subr.bf16.mxu1 %v21418_v42  ;;  %v21433_v42 = vld [vmem:[#allocation23] sm:$0xff]  }
 0xabf   :  { %v15418_v50 = vadd.f32 %v15417_v46, %v15377_v23  ;;  %15712 = vmatpush1.bf16.msra.mxu0 %v21331_v53  ;;  %15743 = vmatprep.mubr.bf16.mxu0 %v22669_v30  ;;  %v21412_v23 = vld [vmem:[#allocation19 + $0x988] ss:$48 sps:$4 sm:$0xff]   ;;  %v21417_v53 = vld [vmem:[#allocation19 + $0x92c] ss:$48 sps:$4 sm:$0xff]   ;;  %v13303_v46 = vrot.slane %v22748_v54, %v22230_v27 }
 0xac0   :  { %v15419_v12 = vpop.f32.mrf.mxu0  ;;  %15713 = vmatprep.subr.bf16.mxu0 %v21339_v39  ;;  %15703 = vmatmul.mubr.bf16.vlgmr.msra.gmra.mxu1 %v22671_v43  ;;  %v22779_v56 = vpop.f32.mrf.mxu1  ;;  %v21349_v43 = vld [vmem:[#allocation19 + $0x7a8] ss:$48 sps:$4 sm:$0xff]   ;;  %v13299_v39 = vrot.slane %v22748_v54, %v22227_v16 }
 0xac1   :  { %v22782_v52 = vadd.f32 %v15418_v50, %v22650_v4  ;;  %v15420_v20 = vadd.f32 %v15419_v12, %v15379_v63  ;;  %v21355_v4 = vld [vmem:[#allocation19 + $0x748] ss:$48 sps:$4 sm:$0xff]   ;;  %18315 = vmatpush3.bf16.msra.mxu1 %v21419_v60  ;;  %v21434_v60 = vld [vmem:[#allocation23 + $0xf8] sm:$0xff]  }
 0xac2   :  { %v15421_v40 = vpop.f32.mrf.mxu0  ;;  %v22784_v44 = vpop.f32.mrf.mxu1  ;;  %v21415_v63 = vld [vmem:[#allocation19 + $0x928] ss:$48 sps:$4 sm:$0xff]   ;;  %v15459_v50 = vadd.f32 %v22779_v56, %v13299_v39  ;;  %v21438_v39 = vld [vmem:[#allocation23 + $0xe8] sm:$0xff]  }
 0xac3   :  { %v22787_v2 = vadd.f32 %v15420_v20, %v22656_v22  ;;  %15714 = vmatpush1.bf16.msra.mxu0 %v21337_v10  ;;  %v21369_v22 = vld [vmem:[#allocation19 + $0x68c] ss:$48 sps:$4 sm:$0xff]   ;;  %v15461_v10 = vadd.f32 %v22784_v44, %v13303_v46 }
 0xac4   :  { %v15422_v30 = vpop.f32.mrf.mxu0  ;;  %15715 = vmatprep.subr.bf16.mxu0 %v21345_v28  ;;  %v15462_v14 = vpop.f32.mrf.mxu1 }
 0xac6   :  { %v15463_v7 = vpop.f32.mrf.mxu1 }
 0xac7   :  { %15716 = vmatpush1.bf16.msra.mxu0 %v21343_v13  ;;  %v21420_v13 = vld [vmem:[#allocation23 + $0x70] sm:$0xff]  }
 0xac8   :  { %15717 = vmatprep.subr.bf16.mxu0 %v21351_v57  ;;  %v21421_v57 = vld [vmem:[#allocation23 + $0x30] sm:$0xff]   ;;  %18316 = vmatprep.subr.bf16.mxu1 %v21420_v13  ;;  %v21448_v13 = vld [vmem:[#allocation23 + $0xc0] sm:$0xff]  }
 0xac9   :  { %18317 = vmatpush3.bf16.msra.mxu1 %v21421_v57  ;;  %v18260_v57 = vmul.f32 -1.442695, %v22762_v3 }
 0xacb   :  { %15718 = vmatpush1.bf16.msra.mxu0 %v21349_v43  ;;  %v21422_v43 = vld [vmem:[#allocation23 + $0x68] sm:$0xff]   ;;  %21530 = vpow2.f32 %v18260_v57 }
 0xacc   :  { %15719 = vmatprep.subr.bf16.mxu0 %v21357_v59  ;;  %18318 = vmatprep.subr.bf16.mxu1 %v21422_v43 }
 0xacf   :  { %15720 = vmatpush1.bf16.msra.mxu0 %v21355_v4  ;;  %v21424_v4 = vld [vmem:[#allocation23 + $0x60] sm:$0xff]  }
 0xad0   :  { %15721 = vmatprep.subr.bf16.mxu0 %v21363_v45  ;;  %v21425_v45 = vld [vmem:[#allocation23 + $0x20] sm:$0xff]  }
 0xad3   :  { %15722 = vmatpush1.bf16.msra.mxu0 %v21361_v21  ;;  %v21427_v21 = vld [vmem:[#allocation23 + $0x18] sm:$0xff]  }
 0xad4   :  { %15723 = vmatprep.subr.bf16.mxu0 %v21369_v22  ;;  %v21428_v22 = vld [vmem:[#allocation23 + $0x50] sm:$0xff]  }
 0xad7   :  { %15724 = vmatpush1.bf16.msra.mxu0 %v21367_v34  ;;  %v21429_v34 = vld [vmem:[#allocation23 + $0x10] sm:$0xff]  }
 0xad8   :  { %15725 = vmatprep.subr.bf16.mxu0 %v21375_v29  ;;  %v21431_v29 = vld [vmem:[#allocation23 + $0x8] sm:$0xff]  }
 0xadb   :  { %15726 = vmatpush1.bf16.msra.mxu0 %v21373_v25  ;;  %v21432_v25 = vld [vmem:[#allocation23 + $0x40] sm:$0xff]  }
 0xadc   :  { %15727 = vmatprep.subr.bf16.mxu0 %v21381_v41  ;;  %v21435_v41 = vld [vmem:[#allocation23 + $0xb8] sm:$0xff]  }
 0xadf   :  { %15728 = vmatpush2.bf16.msra.mxu0 %v21379_v32  ;;  %v13307_v32 = vrot.slane %v22748_v54, %v22157_v47 }
 0xae0   :  { %15729 = vmatprep.subr.bf16.mxu0 %v21387_v36  ;;  %v13311_v36 = vrot.slane %v22748_v54, %v22160_v51 }
 0xae3   :  { %15730 = vmatpush2.bf16.msra.mxu0 %v21385_v33 }
 0xae4   :  { %15731 = vmatprep.subr.bf16.mxu0 %v21393_v11 }
 0xae7   :  { %15732 = vmatpush2.bf16.msra.mxu0 %v21391_v49 }
 0xae8   :  { %15733 = vmatprep.subr.bf16.mxu0 %v21399_v19 }
 0xaeb   :  { %15734 = vmatpush2.bf16.msra.mxu0 %v21397_v18 }
 0xaec   :  { %15735 = vmatprep.subr.bf16.mxu0 %v21405_v62 }
 0xaef   :  { %15736 = vmatpush2.bf16.msra.mxu0 %v21403_v24  ;;  %v21436_v24 = vld [vmem:[#allocation23 + $0xf0] sm:$0xff]  }
 0xaf0   :  { %15737 = vmatprep.subr.bf16.mxu0 %v21411_v55 }
 0xaf3   :  { %15738 = vmatpush2.bf16.msra.mxu0 %v21409_v9 }
 0xaf4   :  { %15739 = vmatprep.subr.bf16.mxu0 %v21414_v38  ;;  %v21437_v38 = vld [vmem:[#allocation23 + $0xb0] sm:$0xff]  }
 0xaf7   :  { %15740 = vmatpush2.bf16.msra.mxu0 %v21412_v23 }
 0xaf8   :  { %15741 = vmatprep.subr.bf16.mxu0 %v21417_v53 }
 0xafb   :  { %15742 = vmatpush2.bf16.msra.mxu0 %v21415_v63  ;;  %v21439_v63 = vld [vmem:[#allocation23 + $0xa8] sm:$0xff]  }
 0xafc   :  { %18336 = vmatprep.subr.bf16.mxu0 %v21434_v60 }
 0xafe   :  { %v15499_v12 = vpop.f32.mrf.mxu0  ;;  %15744 = vmatmul.mubr.bf16.vlgmr.msra.gmra.mxu0 %v22692_v15  ;;  %v21423_v15 = vld [vmem:[#allocation23 + $0x28] sm:$0xff]  }
 0xaff   :  { %v15500_v28 = vadd.f32 %v15499_v12, %v15459_v50  ;;  %18319 = vmatpush3.bf16.msra.mxu1 %v21423_v15  ;;  %18337 = vmatpush3.bf16.msra.mxu0 %v21435_v41  ;;  %v21440_v50 = vld [vmem:[#allocation23 + $0xe0] sm:$0xff]   ;;  %v21443_v12 = vld [vmem:[#allocation23 + $0x98] sm:$0xff]  }
 0xb00   :  { %v15501_v20 = vpop.f32.mrf.mxu0  ;;  %v15540_v40 = vpop.f32.mrf.mxu1  ;;  %18320 = vmatprep.subr.bf16.mxu1 %v21424_v4  ;;  %18338 = vmatprep.subr.bf16.mxu0 %v21436_v24  ;;  %v22816_v4 = vld [vmem:[#allocation22 + $0x8] sm:$0xf] }
 0xb01   :  { %v22797_v16 = vadd.f32 %v15500_v28, %v22676_v0  ;;  %v15502_v30 = vadd.f32 %v15501_v20, %v15461_v10  ;;  %v21426_v0 = vld [vmem:[#allocation23 + $0x58] sm:$0xff]   ;;  %v15541_v33 = vadd.f32 %v15540_v40, %v13307_v32  ;;  %v21441_v10 = vld [vmem:[#allocation23 + $0xa0] sm:$0xff]   ;;  %v21444_v28 = vld [vmem:[#allocation23 + $0xd0] sm:$0xff]   ;;  %v13315_v3 = vrot.slane %v22816_v4, %v22191_v31 }
 0xb02   :  { %v15503_v14 = vpop.f32.mrf.mxu0  ;;  %v15542_v7 = vpop.f32.mrf.mxu1  ;;  %v21445_v20 = vld [vmem:[#allocation23 + $0x90] sm:$0xff]   ;;  %v21447_v40 = vld [vmem:[#allocation23 + $0x88] sm:$0xff]  }
 0xb03   :  { %v22800_v27 = vadd.f32 %v15502_v30, %v22682_v37  ;;  %18321 = vmatpush3.bf16.msra.mxu1 %v21425_v45  ;;  %v21430_v37 = vld [vmem:[#allocation23 + $0x48] sm:$0xff]   ;;  %v15543_v11 = vadd.f32 %v15542_v7, %v13311_v36  ;;  %18339 = vmatpush3.bf16.msra.mxu0 %v21437_v38  ;;  %v21449_v30 = vld [vmem:[#allocation23 + $0x80] sm:$0xff]   ;;  %v18261_v14 = vmul.f32 -1.442695, %v22768_v61  ;;  %v18264_v7 = vmul.f32 -1.442695, %v22797_v16 }
 0xb04   :  { %v15504_v56 = vpop.f32.mrf.mxu0  ;;  %v15544_v44 = vpop.f32.mrf.mxu1  ;;  %18322 = vmatprep.subr.bf16.mxu1 %v21426_v0  ;;  %18340 = vmatprep.subr.bf16.mxu0 %v21438_v39  ;;  %v13319_v61 = vrot.slane %v22816_v4, %v22194_v35 }
 0xb05   :  { %21532 = vpow2.f32 %v18261_v14  ;;  %v18265_v56 = vmul.f32 -1.442695, %v22800_v27  ;;  %v21531_v44 = vpop.eup %21530 }
 0xb06   :  { %v15545_v59 = vpop.f32.mrf.mxu1  ;;  %21534 = vpow2.f32 %v18264_v7  ;;  %v15768_v15 = vadd.f32 1.0, %v21531_v44 }
 0xb07   :  { %18323 = vmatpush3.bf16.msra.mxu1 %v21427_v21  ;;  %18341 = vmatpush3.bf16.msra.mxu0 %v21439_v63  ;;  %21536 = vpow2.f32 %v18265_v56  ;;  %v21583_v63 = vld [vmem:[%s22886_s1 + $0x48] sm:$0xff] }
 0xb08   :  { %18324 = vmatprep.subr.bf16.mxu1 %v21428_v22  ;;  %18342 = vmatprep.subr.bf16.mxu0 %v21440_v50  ;;  %21538 = vrcp.f32 %v15768_v15 }
 0xb0b   :  { %18325 = vmatpush3.bf16.msra.mxu1 %v21429_v34  ;;  %18343 = vmatpush3.bf16.msra.mxu0 %v21441_v10 }
 0xb0c   :  { %18326 = vmatprep.subr.bf16.mxu1 %v21430_v37 }
 0xb0f   :  { %18327 = vmatpush3.bf16.msra.mxu1 %v21431_v29 }
 0xb10   :  { %18328 = vmatprep.subr.bf16.mxu1 %v21432_v25 }
 0xb12   :  { %v21533_v43 = vpop.eup %21532 }
 0xb13   :  { %18329 = vmatpush3.bf16.msra.mxu1 %v21433_v42  ;;  %v15769_v59 = vadd.f32 1.0, %v21533_v43  ;;  %v21535_v45 = vpop.eup %21534 }
 0xb14   :  { %v21537_v0 = vpop.eup %21536  ;;  %v15796_v27 = vadd.f32 1.0, %v21535_v45 }
 0xb15   :  { %21540 = vrcp.f32 %v15769_v59  ;;  %v15797_v34 = vadd.f32 1.0, %v21537_v0  ;;  %v21539_v29 = vpop.eup %21538 }
 0xb16   :  { %21542 = vrcp.f32 %v15796_v27 }
 0xb17   :  { %21544 = vrcp.f32 %v15797_v34 }
 0xb22   :  { %v21541_v32 = vpop.eup %21540 }
 0xb3e   :  { %v15581_v49 = vpop.f32.mrf.mxu0 }
 0xb3f   :  { %v15582_v19 = vadd.f32 %v15581_v49, %v15541_v33 }
 0xb40   :  { %v15583_v18 = vpop.f32.mrf.mxu0  ;;  %v15622_v62 = vpop.f32.mrf.mxu1 }
 0xb41   :  { %v22807_v55 = vadd.f32 %v15582_v19, %v22699_v17  ;;  %v15584_v9 = vadd.f32 %v15583_v18, %v15543_v11  ;;  %v21442_v17 = vld [vmem:[#allocation23 + $0xd8] sm:$0xff]   ;;  %v15623_v16 = vadd.f32 %v15622_v62, %v13315_v3  ;;  %v21543_v62 = vpop.eup %21542 }
 0xb42   :  { %v15585_v23 = vpop.f32.mrf.mxu0  ;;  %v15624_v53 = vpop.f32.mrf.mxu1  ;;  %18344 = vmatprep.subr.bf16.mxu0 %v21442_v17 }
 0xb43   :  { %v22810_v47 = vadd.f32 %v15584_v9, %v22705_v58  ;;  %18345 = vmatpush3.bf16.msra.mxu0 %v21443_v12  ;;  %v21446_v58 = vld [vmem:[#allocation23 + $0xc8] sm:$0xff]   ;;  %v15625_v21 = vadd.f32 %v15624_v53, %v13319_v61  ;;  %v21545_v24 = vpop.eup %21544  ;;  %v15820_v9 = vsub.f32 1.0, %v21543_v62  ;;  %v18262_v12 = vmul.f32 -1.442695, %v22782_v52 }
 0xb44   :  { %v15586_v51 = vpop.f32.mrf.mxu0  ;;  %v15626_v54 = vpop.f32.mrf.mxu1  ;;  %18346 = vmatprep.subr.bf16.mxu0 %v21444_v28  ;;  %v15821_v23 = vsub.f32 1.0, %v21545_v24  ;;  %v18263_v28 = vmul.f32 -1.442695, %v22787_v2  ;;  %v13323_v52 = vrot.slane %v22816_v4, %v22133_v48  ;;  %v13327_v2 = vrot.slane %v22816_v4, %v22138_v5 }
 0xb45   :  { %v21582_v51 = vld [vmem:[%s22886_s1 + $0x40] sm:$0xff] }
 0xb46   :  { %v15627_v46 = vpop.f32.mrf.mxu1  ;;  %v15828_v54 = vmul.f32 %v21582_v51, %v21543_v62 }
 0xb47   :  { %18347 = vmatpush3.bf16.msra.mxu0 %v21445_v20  ;;  %v18266_v20 = vmul.f32 -1.442695, %v22807_v55 }
 0xb48   :  { %18348 = vmatprep.subr.bf16.mxu0 %v21446_v58  ;;  %v18267_v58 = vmul.f32 -1.442695, %v22810_v47 }
 0xb4b   :  { %18349 = vmatpush3.bf16.msra.mxu0 %v21447_v40 }
 0xb4c   :  { %18350 = vmatprep.subr.bf16.mxu0 %v21448_v13 }
 0xb4f   :  { %18351 = vmatpush3.bf16.msra.mxu0 %v21449_v30 }
 0xb7e   :  { %v15663_v22 = vpop.f32.mrf.mxu0 }
 0xb7f   :  { %v15664_v37 = vadd.f32 %v15663_v22, %v15623_v16 }
 0xb80   :  { %v15665_v25 = vpop.f32.mrf.mxu0  ;;  %v15704_v42 = vpop.f32.mrf.mxu1 }
 0xb81   :  { %v15808_v60 = vmul.f32 %v21539_v29, %v15664_v37  ;;  %v15666_v41 = vadd.f32 %v15665_v25, %v15625_v21  ;;  %v15705_v7 = vadd.f32 %v15704_v42, %v13323_v52 }
 0xb82   :  { %v15667_v36 = vpop.f32.mrf.mxu0  ;;  %v15706_v31 = vpop.f32.mrf.mxu1 }
 0xb83   :  { %v15812_v35 = vadd.f32 %v15808_v60, %v22719_v8  ;;  %v15809_v33 = vmul.f32 %v21541_v32, %v15666_v41  ;;  %v15707_v43 = vadd.f32 %v15706_v31, %v13327_v2 }
 0xb84   :  { %v15668_v11 = vpop.f32.mrf.mxu0  ;;  %v15708_v49 = vpop.f32.mrf.mxu1 }
 0xb85   :  { %21546 = vtanh.f32 %v15812_v35  ;;  %v15813_v19 = vadd.f32 %v15809_v33, %v22725_v6  ;;  %v15829_v6 = vmul.f32 %v21583_v63, %v21545_v24  ;;  %v18276_v24 = vld [vmem:[#allocation25] ss:$0 sm:$0xff] }
 0xb86   :  { %v15709_v18 = vpop.f32.mrf.mxu1 }
 0xb87   :  { %21548 = vtanh.f32 %v15813_v19 }
 0xb88   :  { %21550 = vpow2.f32 %v18262_v12 }
 0xb89   :  { %21552 = vpow2.f32 %v18263_v28 }
 0xb8a   :  { %21554 = vpow2.f32 %v18266_v20 }
 0xb8b   :  { %21556 = vpow2.f32 %v18267_v58 }
 0xb92   :  { %v21547_v38 = vpop.eup %21546 }
 0xb93   :  { %v15824_v53 = vmul.f32 %v21547_v38, %v15820_v9 }
 0xb94   :  { %v21549_v8 = vpop.eup %21548 }
 0xb95   :  { %v15825_v39 = vmul.f32 %v21549_v8, %v15821_v23  ;;  %v15832_v46 = vadd.f32 %v15828_v54, %v15824_v53  ;;  %v21551_v40 = vpop.eup %21550 }
 0xb96   :  { %v21553_v13 = vpop.eup %21552  ;;  %v15770_v30 = vadd.f32 1.0, %v21551_v40 }
 0xb97   :  { %v15833_v50 = vadd.f32 %v15829_v6, %v15825_v39  ;;  %18272 = vst [vmem:[%s22879_s18 + $0x40] sm:$0xff] %v15832_v46  ;;  %v15862_v17 = vpack.c.bf16 %v15832_v46, %v15832_v46  ;;  %v15771_v57 = vadd.f32 1.0, %v21553_v13  ;;  %v21555_v14 = vpop.eup %21554 }
 0xb98   :  { %21558 = vrcp.f32 %v15770_v30  ;;  %v21557_v56 = vpop.eup %21556  ;;  %v15798_v55 = vadd.f32 1.0, %v21555_v14 }
 0xb99   :  { %18273 = vst [vmem:[%s22879_s18 + $0x48] sm:$0xff] %v15833_v50  ;;  %v15863_v10 = vpack.c.bf16 %v15833_v50, %v15833_v50  ;;  %21560 = vrcp.f32 %v15771_v57  ;;  %v15799_v47 = vadd.f32 1.0, %v21557_v56 }
 0xb9a   :  { %21562 = vrcp.f32 %v15798_v55 }
 0xb9b   :  { %16161 = vmatprep.mubr.bf16.mxu1 %v15863_v10  ;;  %21564 = vrcp.f32 %v15799_v47 }
 0xb9c   :  { %16162 = vmatmul.mubr.bf16.vlgmr.msra.gmra.mxu1 %v15862_v17 }
 0xba0   :  { %v21584_v42 = vld [vmem:[%s22886_s1 + $0x50] sm:$0xff] }
 0xba5   :  { %v21559_v59 = vpop.eup %21558 }
 0xba6   :  { %v21561_v16 = vpop.eup %21560 }
 0xba7   :  { %v21563_v4 = vpop.eup %21562 }
 0xba8   :  { %v21565_v22 = vpop.eup %21564  ;;  %v15822_v34 = vsub.f32 1.0, %v21563_v4  ;;  %v15830_v60 = vmul.f32 %v21584_v42, %v21563_v4 }
 0xba9   :  { %v15823_v29 = vsub.f32 1.0, %v21565_v22 }
 0xbbe   :  { %v15745_v44 = vpop.f32.mrf.mxu0 }
 0xbbf   :  { %v15746_v15 = vadd.f32 %v15745_v44, %v15705_v7 }
 0xbc0   :  { %v15747_v3 = vpop.f32.mrf.mxu0 }
 0xbc1   :  { %v15810_v61 = vmul.f32 %v21559_v59, %v15746_v15  ;;  %v15748_v45 = vadd.f32 %v15747_v3, %v15707_v43 }
 0xbc2   :  { %v15749_v0 = vpop.f32.mrf.mxu0 }
 0xbc3   :  { %v15814_v48 = vadd.f32 %v15810_v61, %v22737_v26  ;;  %v15811_v27 = vmul.f32 %v21561_v16, %v15748_v45  ;;  %v21585_v26 = vld [vmem:[%s22886_s1 + $0x58] sm:$0xff] }
 0xbc4   :  { %v15750_v21 = vpop.f32.mrf.mxu0  ;;  %v15831_v36 = vmul.f32 %v21585_v26, %v21565_v22 }
 0xbc5   :  { %21566 = vtanh.f32 %v15814_v48  ;;  %v15815_v5 = vadd.f32 %v15811_v27, %v22743_v1 }
 0xbc7   :  { %21568 = vtanh.f32 %v15815_v5 }
 0xbd2   :  { %v21567_v37 = vpop.eup %21566 }
 0xbd3   :  { %v15826_v25 = vmul.f32 %v21567_v37, %v15822_v34 }
 0xbd4   :  { %v21569_v41 = vpop.eup %21568 }
 0xbd5   :  { %v15827_v32 = vmul.f32 %v21569_v41, %v15823_v29  ;;  %v15834_v1 = vadd.f32 %v15830_v60, %v15826_v25 }
 0xbd7   :  { %v15835_v31 = vadd.f32 %v15831_v36, %v15827_v32  ;;  %18274 = vst [vmem:[%s22879_s18 + $0x50] sm:$0xff] %v15834_v1  ;;  %v15864_v33 = vpack.c.bf16 %v15834_v1, %v15834_v1 }
 0xbd9   :  { %18275 = vst [vmem:[%s22879_s18 + $0x58] sm:$0xff] %v15835_v31  ;;  %v15865_v35 = vpack.c.bf16 %v15835_v31, %v15835_v31 }
 0xbdb   :  { %16201 = vmatprep.mubr.bf16.mxu0 %v15865_v35 }
 0xbdc   :  { %16202 = vmatmul.mubr.bf16.vlgmr.msra.gmra.mxu0 %v15864_v33 }
 0xc5c   :  { %v18330_v11 = vpop.f32.mrf.mxu1 }
 0xc5e   :  { %v18331_v49 = vpop.f32.mrf.mxu1 }
 0xc5f   :  { %v18332_v62 = vadd.f32 %v18331_v49, %v18330_v11 }
 0xc60   :  { %v18333_v19 = vpop.f32.mrf.mxu1 }
 0xc61   :  { %v16164_v23 = vadd.f32 %v18332_v62, %v18276_v24 }
 0xc62   :  { %v18334_v18 = vpop.f32.mrf.mxu1 }
 0xc9c   :  { %v18352_v9 = vpop.f32.mrf.mxu0 }
 0xc9e   :  { %v18353_v38 = vpop.f32.mrf.mxu0 }
 0xc9f   :  { %v18354_v53 = vadd.f32 %v18353_v38, %v18352_v9 }
 0xca0   :  { %v18355_v51 = vpop.f32.mrf.mxu0 }
 0xca1   :  { %v16204_v54 = vadd.f32 %v18354_v53, %v16164_v23 }
 0xca2   :  { %v18356_v8 = vpop.f32.mrf.mxu0 }
 0xca3   :  { %16209 = vst [vmem:[%s22878_s17] sm:$0xff] %v16204_v54 }
 0xca4   :  { %16218 = vsyncpa [#allocation4], 1 }
 0xca5   :  { %16219 = vsyncpa [#allocation6], 1 }
 0xca6   :  { %16220 = vsyncpa [#allocation9], 1 }
 0xca7   :  { %16221 = vsyncpa [#allocation12], 1 }
 0xca8   :  { %16222 = vsyncpa [#allocation15], 1 }
 0xca9   :  { %16223 = vsyncpa [#allocation18], 1 }
 0xcaa   :  { %16224 = vsyncpa [#allocation21], 1 }
 0xcab   :  { %16225 = vsyncpa [#allocation24], 1 }

</bundles_post_ra>
